<compile_context>
chip_gen: v7x
topology: tpu7x:2x2x1
jax: 0.10.0
libtpu: 0.0.40
codegen_flags: <defaults>
</compile_context>

<pallas_src>
import jax
import jax.numpy as jnp
from jax.experimental import pallas as pl
from jax.experimental.pallas import tpu as pltpu

_KW = 4                     # discriminator conv kernel size
_PAD = 1                    # discriminator conv padding
_LRELU_SLOPE = 0.2
_BN_EPS = 1e-5
_VMEM_LIMIT = 32 * 1024 * 1024


def _round_up(x, m):
    return (x + m - 1) // m * m


# ---------------------------------------------------------------------------
# Pallas kernel 1: tiled conv-as-matmul with fused bias / LeakyReLU / BN partial stats
# ---------------------------------------------------------------------------
def _make_conv_kernel(fuse_bias, fuse_lrelu, compute_stats):
    def kernel(*refs):
        idx = 0
        a_ref = refs[idx]; idx += 1
        b_ref = refs[idx]; idx += 1
        bias_ref = None
        if fuse_bias:
            bias_ref = refs[idx]; idx += 1
        y_ref = refs[idx]; idx += 1
        sum_ref = sq_ref = None
        if compute_stats:
            sum_ref = refs[idx]; idx += 1
            sq_ref = refs[idx]; idx += 1
        acc_ref = refs[idx]

        # Grid queries hoisted to the top level (never call program_id inside pl.when).
        k = pl.program_id(2)
        k_last = pl.num_programs(2) - 1

        @pl.when(k == 0)
        def _init():
            acc_ref[...] = jnp.zeros_like(acc_ref)

        # bf16 x bf16 -> f32 on the MXU
        acc_ref[...] += jnp.dot(a_ref[...], b_ref[...],
                                preferred_element_type=jnp.float32)

        @pl.when(k == k_last)
        def _epilogue():
            acc = acc_ref[...]
            if fuse_bias:
                acc = acc + bias_ref[...]                 # (1, tn) broadcasts over rows
            if compute_stats:
                # Per-channel partial sum / sum-of-squares for THIS M block only, written
                # to its own (8, tn) output slot (row 0 holds the data, rows 1-7 are zero).
                # Padded A rows are zero and BN layers have no bias, so padding adds zero.
                tn = acc.shape[1]
                row = jax.lax.broadcasted_iota(jnp.int32, (8, tn), 0)
                s1 = jnp.sum(acc, axis=0, keepdims=True)
                s2 = jnp.sum(acc * acc, axis=0, keepdims=True)
                sum_ref[...] = jnp.where(row == 0, s1, 0.0)
                sq_ref[...] = jnp.where(row == 0, s2, 0.0)
            if fuse_lrelu:
                acc = jnp.where(acc >= 0, acc, _LRELU_SLOPE * acc)
            y_ref[...] = acc.astype(y_ref.dtype)

    return kernel


def conv_matmul(a, b, bias=None, *, fuse_lrelu=False, compute_stats=False,
                out_dtype=jnp.bfloat16):
    """(M,K) x (K,N) conv-as-matmul. a/b cast to bf16; accumulation and stats are f32."""
    M, K = a.shape
    Kb, N = b.shape
    assert K == Kb
    fuse_bias = bias is not None

    # --- M tiling: up to 512 rows, bf16 sublane granularity 16 ---
    mp16 = _round_up(M, 16)
    tm = mp16 if mp16 <= 512 else 512
    Mp = _round_up(M, tm)
    # --- K tiling: never pad K (layer 0 K=48 is a full-dim block; others are 16*Cin) ---
    tk = K if K <= 1024 else 1024
    assert K % tk == 0, (K, tk)
    # --- N tiling: single lane-dense N block so the big A matrix is streamed exactly once ---
    Np = N if (N % 128 == 0 or N == 64) else _round_up(N, 128)
    tn = Np

    a_p = a.astype(jnp.bfloat16)
    if Mp != M:
        a_p = jnp.pad(a_p, ((0, Mp - M), (0, 0)))
    b_p = b.astype(jnp.bfloat16)
    if Np != N:
        b_p = jnp.pad(b_p, ((0, 0), (0, Np - N)))

    grid = (Mp // tm, Np // tn, K // tk)          # M, N parallel; K innermost reduction

    in_specs = [
        pl.BlockSpec((tm, tk), lambda i, j, k: (i, k)),
        pl.BlockSpec((tk, tn), lambda i, j, k: (k, j)),
    ]
    operands = [a_p, b_p]
    if fuse_bias:
        bias_p = bias.astype(jnp.float32).reshape(1, -1)
        if Np != N:
            bias_p = jnp.pad(bias_p, ((0, 0), (0, Np - N)))
        in_specs.append(pl.BlockSpec((1, tn), lambda i, j, k: (0, j)))
        operands.append(bias_p)

    n_mblk = Mp // tm
    out_shapes = [jax.ShapeDtypeStruct((Mp, Np), out_dtype)]
    out_specs = [pl.BlockSpec((tm, tn), lambda i, j, k: (i, j))]
    if compute_stats:
        out_shapes += [jax.ShapeDtypeStruct((n_mblk * 8, Np), jnp.float32),
                       jax.ShapeDtypeStruct((n_mblk * 8, Np), jnp.float32)]
        out_specs += [pl.BlockSpec((8, tn), lambda i, j, k: (i, j)),
                      pl.BlockSpec((8, tn), lambda i, j, k: (i, j))]

    outs = pl.pallas_call(
        _make_conv_kernel(fuse_bias, fuse_lrelu, compute_stats),
        grid=grid,
        in_specs=in_specs,
        out_specs=tuple(out_specs) if compute_stats else out_specs[0],
        out_shape=tuple(out_shapes) if compute_stats else out_shapes[0],
        scratch_shapes=[pltpu.VMEM((tm, tn), jnp.float32)],
        compiler_params=pltpu.CompilerParams(
            dimension_semantics=("parallel", "parallel", "arbitrary"),
            vmem_limit_bytes=_VMEM_LIMIT),
    )(*operands)

    if compute_stats:
        y_p, s1, s2 = outs
        # Combine per-M-block partials (tiny XLA reduction over n_mblk*8 rows).
        s1 = jnp.sum(s1, axis=0, keepdims=True)[:, :N]
        s2 = jnp.sum(s2, axis=0, keepdims=True)[:, :N]
        return y_p, s1, s2
    return outs


# ---------------------------------------------------------------------------
# Pallas kernel 2: apply BatchNorm (scale/shift from fused batch stats) + LeakyReLU
# ---------------------------------------------------------------------------
def _bn_lrelu_kernel(y_ref, scale_ref, shift_ref, o_ref):
    y = y_ref[...].astype(jnp.float32) * scale_ref[...] + shift_ref[...]
    o_ref[...] = jnp.where(y >= 0, y, _LRELU_SLOPE * y).astype(o_ref.dtype)


def bn_lrelu_apply(y_p, stat_sum, stat_sq, m_valid, gamma, beta,
                   out_dtype=jnp.bfloat16):
    """Training-mode BatchNorm2d (batch statistics from the conv kernel) + LeakyReLU(0.2)."""
    Mp, C = y_p.shape
    mean = stat_sum / m_valid                                    # (1, C)
    var = jnp.maximum(stat_sq / m_valid - mean * mean, 0.0)      # biased var, clamp cancellation
    scale = gamma.reshape(1, -1) * jax.lax.rsqrt(var + _BN_EPS)
    shift = beta.reshape(1, -1) - mean * scale

    tm = next((t for t in (1024, 512, 256, 128, 64, 32, 16, 8) if Mp % t == 0), Mp)
    return pl.pallas_call(
        _bn_lrelu_kernel,
        grid=(Mp // tm,),
        in_specs=[pl.BlockSpec((tm, C), lambda i: (i, 0)),
                  pl.BlockSpec((1, C), lambda i: (0, 0)),
                  pl.BlockSpec((1, C), lambda i: (0, 0))],
        out_specs=pl.BlockSpec((tm, C), lambda i: (i, 0)),
        out_shape=jax.ShapeDtypeStruct((Mp, C), out_dtype),
        compiler_params=pltpu.CompilerParams(
            dimension_semantics=("parallel",), vmem_limit_bytes=_VMEM_LIMIT),
    )(y_p, scale.astype(jnp.float32), shift.astype(jnp.float32))


# ---------------------------------------------------------------------------
# NLayerDiscriminator(input_nc=3, ndf=64, n_layers=3, use_actnorm=False)
# (C_in, C_out, stride, use_bias, use_bn, use_lrelu)
# ---------------------------------------------------------------------------
_DISC_LAYERS = (
    (3, 64, 2, True, False, True),
    (64, 128, 2, False, True, True),
    (128, 256, 2, False, True, True),
    (256, 512, 1, False, True, True),
    (512, 1, 1, True, False, False),
)


def init_discriminator_params(key):
    params = {}
    for idx, (cin, cout, _s, use_bias, use_bn, _lr) in enumerate(_DISC_LAYERS):
        key, kw_, kb_ = jax.random.split(key, 3)
        # torch Conv2d weight layout: [C_out, C_in, KH, KW]; deterministic synthetic init.
        params[f"w{idx}"] = 0.02 * jax.random.normal(kw_, (cout, cin, _KW, _KW), jnp.float32)
        if use_bias:
            params[f"b{idx}"] = 0.02 * jax.random.normal(kb_, (cout,), jnp.float32)
        if use_bn:
            params[f"gamma{idx}"] = jnp.ones((cout,), jnp.float32)    # BatchNorm2d affine init
            params[f"beta{idx}"] = jnp.zeros((cout,), jnp.float32)
    return params


def _im2col(x_nhwc, stride):
    """[N,H,W,C] -> ([N*Ho*Wo, 16*C], (N,Ho,Wo)), tap order (kh, kw, c); kept in bf16."""
    n, h, w, c = x_nhwc.shape
    xp = jnp.pad(x_nhwc, ((0, 0), (_PAD, _PAD), (_PAD, _PAD), (0, 0)))
    ho = (h + 2 * _PAD - _KW) // stride + 1
    wo = (w + 2 * _PAD - _KW) // stride + 1
    cols = []
    for kh in range(_KW):
        for kw in range(_KW):
            cols.append(xp[:, kh:kh + (ho - 1) * stride + 1:stride,
                           kw:kw + (wo - 1) * stride + 1:stride, :])
    patches = jnp.concatenate(cols, axis=-1)            # [N, Ho, Wo, 16*C]
    return patches.reshape(n * ho * wo, _KW * _KW * c), (n, ho, wo)


def discriminator_forward(params, x_nchw):
    """NLayerDiscriminator.forward (BatchNorm2d in training mode: batch stats, affine 1/0)."""
    x = jnp.transpose(x_nchw, (0, 2, 3, 1)).astype(jnp.bfloat16)      # NCHW -> NHWC, bf16 compute
    n_layers = len(_DISC_LAYERS)
    for idx, (cin, cout, stride, use_bias, use_bn, use_lrelu) in enumerate(_DISC_LAYERS):
        w = params[f"w{idx}"]                                          # [Cout, Cin, KH, KW]
        # match im2col patch order (kh, kw, cin): W_mat[(kh*4+kw)*cin + c, co] = w[co, c, kh, kw]
        w_mat = jnp.transpose(w, (2, 3, 1, 0)).reshape(_KW * _KW * cin, cout)
        bias = params[f"b{idx}"] if use_bias else None
        a, (n, ho, wo) = _im2col(x, stride)
        m = n * ho * wo
        is_last = idx == n_layers - 1

        if use_bn:
            # Conv kernel emits bf16 pre-norm activations + f32 per-channel sum / sumsq.
            y_p, s1, s2 = conv_matmul(a, w_mat, bias, fuse_lrelu=False,
                                      compute_stats=True, out_dtype=jnp.bfloat16)
            y_p = bn_lrelu_apply(y_p, s1, s2, float(m),
                                 params[f"gamma{idx}"], params[f"beta{idx}"])
            x = y_p[:m].reshape(n, ho, wo, cout)                       # bf16, lane-exact channels
        else:
            out_dtype = jnp.float32 if is_last else jnp.bfloat16
            y_p = conv_matmul(a, w_mat, bias, fuse_lrelu=use_lrelu,
                              compute_stats=False, out_dtype=out_dtype)
            x = y_p[:m, :cout].reshape(n, ho, wo, cout)

    return jnp.transpose(x.astype(jnp.float32), (0, 3, 1, 2))          # logits, NCHW [N, 1, Ho, Wo]


if __name__ == "__main__":
    key = jax.random.PRNGKey(0)
    k_x, k_p = jax.random.split(key)
    # Small PatchGAN input (spatial >= 32 so every conv layer produces a valid output).
    x = jax.random.normal(k_x, (2, 3, 32, 32), jnp.float32)
    params = init_discriminator_params(k_p)

    fwd = jax.jit(discriminator_forward)
    logits = fwd(params, x)
    jax.block_until_ready(logits)

    assert logits.shape == (2, 1, 2, 2), logits.shape
    assert bool(jnp.all(jnp.isfinite(logits))), "non-finite logits"
    print("KERNEL_OK")
</pallas_src>

<mosaic_0001>
module attributes {stable_mosaic.version = 11 : i64} {
  func.func @kernel(%arg0: i32, %arg1: i32, %arg2: i32, %arg3: memref<512x48xbf16, #tpu.memory_space<vmem>>, %arg4: memref<48x64xbf16, #tpu.memory_space<vmem>>, %arg5: memref<1x64xf32, #tpu.memory_space<vmem>>, %arg6: memref<512x64xbf16, #tpu.memory_space<vmem>>, %arg7: memref<512x64xf32, #tpu.memory_space<vmem>>) attributes {dimension_semantics = [#tpu.dimension_semantics<parallel>, #tpu.dimension_semantics<parallel>, #tpu.dimension_semantics<arbitrary>], iteration_bounds = array<i64: 1, 1, 1>, scalar_prefetch = 0 : i64, scratch_operands = 1 : i64, tpu.core_type = #tpu.core_type<tc>, window_params = [{transform_indices = @transform_0, window_bounds = array<i64: 512, 48>}, {transform_indices = @transform_1, window_bounds = array<i64: 48, 64>}, {transform_indices = @transform_2, window_bounds = array<i64: 1, 64>}, {transform_indices = @transform_3, window_bounds = array<i64: 512, 64>}]} {
    %c0_i32 = arith.constant 0 : i32
    %0 = arith.cmpi eq, %arg2, %c0_i32 : i32
    %1 = arith.extui %0 : i1 to i32
    %c0_i32_0 = arith.constant 0 : i32
    %2 = arith.cmpi ne, %1, %c0_i32_0 : i32
    scf.if %2 {
      %cst_10 = arith.constant 0.000000e+00 : f32
      %12 = vector.broadcast %cst_10 : f32 to vector<512x64xf32>
      %c0_11 = arith.constant 0 : index
      %c0_12 = arith.constant 0 : index
      %13 = vector.load %arg7[%c0_11, %c0_12] : memref<512x64xf32, #tpu.memory_space<vmem>>, vector<512x64xf32>
      tpu.vector_store %arg7[%c0_11, %c0_12], %12 {strides = array<i32>} : memref<512x64xf32, #tpu.memory_space<vmem>>, vector<512x64xf32>,
    } else {
    }
    %c0 = arith.constant 0 : index
    %c0_1 = arith.constant 0 : index
    %3 = vector.load %arg7[%c0, %c0_1] : memref<512x64xf32, #tpu.memory_space<vmem>>, vector<512x64xf32>
    %c0_2 = arith.constant 0 : index
    %c0_3 = arith.constant 0 : index
    %4 = vector.load %arg3[%c0_2, %c0_3] : memref<512x48xbf16, #tpu.memory_space<vmem>>, vector<512x48xbf16>
    %c0_4 = arith.constant 0 : index
    %c0_5 = arith.constant 0 : index
    %5 = vector.load %arg4[%c0_4, %c0_5] : memref<48x64xbf16, #tpu.memory_space<vmem>>, vector<48x64xbf16>
    %cst = arith.constant dense<0.000000e+00> : vector<512x64xf32>
    %6 = tpu.matmul %4, %5, %cst {dimension_numbers = #tpu.dot_dimension_numbers<[1], [0], [0], [1], [0, 0, 1, 1], [], []>} : vector<512x48xbf16>, vector<48x64xbf16>, vector<512x64xf32> -> vector<512x64xf32>
    %7 = arith.addf %3, %6 : vector<512x64xf32>
    %c0_6 = arith.constant 0 : index
    %c0_7 = arith.constant 0 : index
    %8 = vector.load %arg7[%c0_6, %c0_7] : memref<512x64xf32, #tpu.memory_space<vmem>>, vector<512x64xf32>
    tpu.vector_store %arg7[%c0_6, %c0_7], %7 {strides = array<i32>} : memref<512x64xf32, #tpu.memory_space<vmem>>, vector<512x64xf32>,
    %c0_i32_8 = arith.constant 0 : i32
    %9 = arith.cmpi eq, %arg2, %c0_i32_8 : i32
    %10 = arith.extui %9 : i1 to i32
    %c0_i32_9 = arith.constant 0 : i32
    %11 = arith.cmpi ne, %10, %c0_i32_9 : i32
    scf.if %11 {
      %c0_10 = arith.constant 0 : index
      %c0_11 = arith.constant 0 : index
      %12 = vector.load %arg7[%c0_10, %c0_11] : memref<512x64xf32, #tpu.memory_space<vmem>>, vector<512x64xf32>
      %c0_12 = arith.constant 0 : index
      %c0_13 = arith.constant 0 : index
      %13 = vector.load %arg5[%c0_12, %c0_13] : memref<1x64xf32, #tpu.memory_space<vmem>>, vector<1x64xf32>
      %14 = vector.broadcast %13 : vector<1x64xf32> to vector<512x64xf32>
      %15 = arith.addf %12, %14 : vector<512x64xf32>
      %cst_14 = arith.constant 0.000000e+00 : f32
      %16 = vector.broadcast %cst_14 : f32 to vector<512x64xf32>
      %17 = arith.cmpf oge, %15, %16 : vector<512x64xf32>
      %cst_15 = arith.constant 2.000000e-01 : f32
      %18 = vector.broadcast %cst_15 : f32 to vector<512x64xf32>
      %19 = arith.mulf %18, %15 : vector<512x64xf32>
      %20 = arith.select %17, %15, %19 : vector<512x64xi1>, vector<512x64xf32>
      %21 = arith.truncf %20 : vector<512x64xf32> to vector<512x64xbf16>
      %c0_16 = arith.constant 0 : index
      %c0_17 = arith.constant 0 : index
      %22 = vector.load %arg6[%c0_16, %c0_17] : memref<512x64xbf16, #tpu.memory_space<vmem>>, vector<512x64xbf16>
      tpu.vector_store %arg6[%c0_16, %c0_17], %21 {strides = array<i32>} : memref<512x64xbf16, #tpu.memory_space<vmem>>, vector<512x64xbf16>,
    } else {
    }
    return
  }
  func.func @transform_0(%arg0: i32, %arg1: i32, %arg2: i32) -> (i32, i32) {
    %c0_i32 = arith.constant 0 : i32
    return %arg0, %arg2 : i32, i32
  }
  func.func @transform_1(%arg0: i32, %arg1: i32, %arg2: i32) -> (i32, i32) {
    %c0_i32 = arith.constant 0 : i32
    return %arg2, %arg1 : i32, i32
  }
  func.func @transform_2(%arg0: i32, %arg1: i32, %arg2: i32) -> (i32, i32) {
    %c0_i32 = arith.constant 0 : i32
    %c0_i32_0 = arith.constant 0 : i32
    return %c0_i32, %arg1 : i32, i32
  }
  func.func @transform_3(%arg0: i32, %arg1: i32, %arg2: i32) -> (i32, i32) {
    %c0_i32 = arith.constant 0 : i32
    return %arg0, %arg1 : i32, i32
  }
}

module attributes {stable_mosaic.version = 11 : i64} {
  func.func @kernel(%arg0: i32, %arg1: i32, %arg2: i32, %arg3: memref<128x1024xbf16, #tpu.memory_space<vmem>>, %arg4: memref<1024x128xbf16, #tpu.memory_space<vmem>>, %arg5: memref<128x128xbf16, #tpu.memory_space<vmem>>, %arg6: memref<8x128xf32, #tpu.memory_space<vmem>>, %arg7: memref<8x128xf32, #tpu.memory_space<vmem>>, %arg8: memref<128x128xf32, #tpu.memory_space<vmem>>) attributes {dimension_semantics = [#tpu.dimension_semantics<parallel>, #tpu.dimension_semantics<parallel>, #tpu.dimension_semantics<arbitrary>], iteration_bounds = array<i64: 1, 1, 1>, scalar_prefetch = 0 : i64, scratch_operands = 1 : i64, tpu.core_type = #tpu.core_type<tc>, window_params = [{transform_indices = @transform_0, window_bounds = array<i64: 128, 1024>}, {transform_indices = @transform_1, window_bounds = array<i64: 1024, 128>}, {transform_indices = @transform_2, window_bounds = array<i64: 128, 128>}, {transform_indices = @transform_3, window_bounds = array<i64: 8, 128>}, {transform_indices = @transform_4, window_bounds = array<i64: 8, 128>}]} {
    %c0_i32 = arith.constant 0 : i32
    %0 = arith.cmpi eq, %arg2, %c0_i32 : i32
    %1 = arith.extui %0 : i1 to i32
    %c0_i32_0 = arith.constant 0 : i32
    %2 = arith.cmpi ne, %1, %c0_i32_0 : i32
    scf.if %2 {
      %cst_10 = arith.constant 0.000000e+00 : f32
      %12 = vector.broadcast %cst_10 : f32 to vector<128x128xf32>
      %c0_11 = arith.constant 0 : index
      %c0_12 = arith.constant 0 : index
      %13 = vector.load %arg8[%c0_11, %c0_12] : memref<128x128xf32, #tpu.memory_space<vmem>>, vector<128x128xf32>
      tpu.vector_store %arg8[%c0_11, %c0_12], %12 {strides = array<i32>} : memref<128x128xf32, #tpu.memory_space<vmem>>, vector<128x128xf32>,
    } else {
    }
    %c0 = arith.constant 0 : index
    %c0_1 = arith.constant 0 : index
    %3 = vector.load %arg8[%c0, %c0_1] : memref<128x128xf32, #tpu.memory_space<vmem>>, vector<128x128xf32>
    %c0_2 = arith.constant 0 : index
    %c0_3 = arith.constant 0 : index
    %4 = vector.load %arg3[%c0_2, %c0_3] : memref<128x1024xbf16, #tpu.memory_space<vmem>>, vector<128x1024xbf16>
    %c0_4 = arith.constant 0 : index
    %c0_5 = arith.constant 0 : index
    %5 = vector.load %arg4[%c0_4, %c0_5] : memref<1024x128xbf16, #tpu.memory_space<vmem>>, vector<1024x128xbf16>
    %cst = arith.constant dense<0.000000e+00> : vector<128x128xf32>
    %6 = tpu.matmul %4, %5, %cst {dimension_numbers = #tpu.dot_dimension_numbers<[1], [0], [0], [1], [0, 0, 1, 1], [], []>} : vector<128x1024xbf16>, vector<1024x128xbf16>, vector<128x128xf32> -> vector<128x128xf32>
    %7 = arith.addf %3, %6 : vector<128x128xf32>
    %c0_6 = arith.constant 0 : index
    %c0_7 = arith.constant 0 : index
    %8 = vector.load %arg8[%c0_6, %c0_7] : memref<128x128xf32, #tpu.memory_space<vmem>>, vector<128x128xf32>
    tpu.vector_store %arg8[%c0_6, %c0_7], %7 {strides = array<i32>} : memref<128x128xf32, #tpu.memory_space<vmem>>, vector<128x128xf32>,
    %c0_i32_8 = arith.constant 0 : i32
    %9 = arith.cmpi eq, %arg2, %c0_i32_8 : i32
    %10 = arith.extui %9 : i1 to i32
    %c0_i32_9 = arith.constant 0 : i32
    %11 = arith.cmpi ne, %10, %c0_i32_9 : i32
    scf.if %11 {
      %c0_10 = arith.constant 0 : index
      %c0_11 = arith.constant 0 : index
      %12 = vector.load %arg8[%c0_10, %c0_11] : memref<128x128xf32, #tpu.memory_space<vmem>>, vector<128x128xf32>
      %13 = tpu.iota {dimensions = array<i32: 0>} : vector<8x128xi32>
      %cst_12 = arith.constant dense<0.000000e+00> : vector<128xf32>
      %14 = vector.multi_reduction <add>, %12, %cst_12 [0] : vector<128x128xf32> to vector<128xf32>
      %15 = vector.shape_cast %14 : vector<128xf32> to vector<1x128xf32>
      %16 = arith.mulf %12, %12 : vector<128x128xf32>
      %cst_13 = arith.constant dense<0.000000e+00> : vector<128xf32>
      %17 = vector.multi_reduction <add>, %16, %cst_13 [0] : vector<128x128xf32> to vector<128xf32>
      %18 = vector.shape_cast %17 : vector<128xf32> to vector<1x128xf32>
      %c0_i32_14 = arith.constant 0 : i32
      %19 = vector.broadcast %c0_i32_14 : i32 to vector<8x128xi32>
      %20 = arith.cmpi eq, %13, %19 : vector<8x128xi32>
      %cst_15 = arith.constant 0.000000e+00 : f32
      %21 = vector.shape_cast %15 : vector<1x128xf32> to vector<1x128xf32>
      %22 = vector.broadcast %21 : vector<1x128xf32> to vector<8x128xf32>
      %23 = vector.broadcast %cst_15 : f32 to vector<8x128xf32>
      %24 = arith.select %20, %22, %23 : vector<8x128xi1>, vector<8x128xf32>
      %c0_16 = arith.constant 0 : index
      %c0_17 = arith.constant 0 : index
      %25 = vector.load %arg6[%c0_16, %c0_17] : memref<8x128xf32, #tpu.memory_space<vmem>>, vector<8x128xf32>
      tpu.vector_store %arg6[%c0_16, %c0_17], %24 {strides = array<i32>} : memref<8x128xf32, #tpu.memory_space<vmem>>, vector<8x128xf32>,
      %c0_i32_18 = arith.constant 0 : i32
      %26 = vector.broadcast %c0_i32_18 : i32 to vector<8x128xi32>
      %27 = arith.cmpi eq, %13, %26 : vector<8x128xi32>
      %cst_19 = arith.constant 0.000000e+00 : f32
      %28 = vector.shape_cast %18 : vector<1x128xf32> to vector<1x128xf32>
      %29 = vector.broadcast %28 : vector<1x128xf32> to vector<8x128xf32>
      %30 = vector.broadcast %cst_19 : f32 to vector<8x128xf32>
      %31 = arith.select %27, %29, %30 : vector<8x128xi1>, vector<8x128xf32>
      %c0_20 = arith.constant 0 : index
      %c0_21 = arith.constant 0 : index
      %32 = vector.load %arg7[%c0_20, %c0_21] : memref<8x128xf32, #tpu.memory_space<vmem>>, vector<8x128xf32>
      tpu.vector_store %arg7[%c0_20, %c0_21], %31 {strides = array<i32>} : memref<8x128xf32, #tpu.memory_space<vmem>>, vector<8x128xf32>,
      %33 = arith.truncf %12 : vector<128x128xf32> to vector<128x128xbf16>
      %c0_22 = arith.constant 0 : index
      %c0_23 = arith.constant 0 : index
      %34 = vector.load %arg5[%c0_22, %c0_23] : memref<128x128xbf16, #tpu.memory_space<vmem>>, vector<128x128xbf16>
      tpu.vector_store %arg5[%c0_22, %c0_23], %33 {strides = array<i32>} : memref<128x128xbf16, #tpu.memory_space<vmem>>, vector<128x128xbf16>,
    } else {
    }
    return
  }
  func.func @transform_0(%arg0: i32, %arg1: i32, %arg2: i32) -> (i32, i32) {
    %c0_i32 = arith.constant 0 : i32
    return %arg0, %arg2 : i32, i32
  }
  func.func @transform_1(%arg0: i32, %arg1: i32, %arg2: i32) -> (i32, i32) {
    %c0_i32 = arith.constant 0 : i32
    return %arg2, %arg1 : i32, i32
  }
  func.func @transform_2(%arg0: i32, %arg1: i32, %arg2: i32) -> (i32, i32) {
    %c0_i32 = arith.constant 0 : i32
    return %arg0, %arg1 : i32, i32
  }
  func.func @transform_3(%arg0: i32, %arg1: i32, %arg2: i32) -> (i32, i32) {
    %c0_i32 = arith.constant 0 : i32
    return %arg0, %arg1 : i32, i32
  }
  func.func @transform_4(%arg0: i32, %arg1: i32, %arg2: i32) -> (i32, i32) {
    %c0_i32 = arith.constant 0 : i32
    return %arg0, %arg1 : i32, i32
  }
}

module attributes {stable_mosaic.version = 11 : i64} {
  func.func @_bn_lrelu_kernel(%arg0: i32, %arg1: memref<128x128xbf16, #tpu.memory_space<vmem>>, %arg2: memref<1x128xf32, #tpu.memory_space<vmem>>, %arg3: memref<1x128xf32, #tpu.memory_space<vmem>>, %arg4: memref<128x128xbf16, #tpu.memory_space<vmem>>) attributes {dimension_semantics = [#tpu.dimension_semantics<parallel>], iteration_bounds = array<i64: 1>, scalar_prefetch = 0 : i64, scratch_operands = 0 : i64, tpu.core_type = #tpu.core_type<tc>, window_params = [{transform_indices = @transform_0, window_bounds = array<i64: 128, 128>}, {pipeline_mode = #tpu.pipeline_mode<synchronous>, transform_indices = @transform_1, window_bounds = array<i64: 1, 128>}, {pipeline_mode = #tpu.pipeline_mode<synchronous>, transform_indices = @transform_2, window_bounds = array<i64: 1, 128>}, {transform_indices = @transform_3, window_bounds = array<i64: 128, 128>}]} {
    %c0 = arith.constant 0 : index
    %c0_0 = arith.constant 0 : index
    %0 = vector.load %arg1[%c0, %c0_0] : memref<128x128xbf16, #tpu.memory_space<vmem>>, vector<128x128xbf16>
    %1 = arith.extf %0 : vector<128x128xbf16> to vector<128x128xf32>
    %c0_1 = arith.constant 0 : index
    %c0_2 = arith.constant 0 : index
    %2 = vector.load %arg2[%c0_1, %c0_2] : memref<1x128xf32, #tpu.memory_space<vmem>>, vector<1x128xf32>
    %3 = vector.broadcast %2 : vector<1x128xf32> to vector<128x128xf32>
    %4 = arith.mulf %1, %3 : vector<128x128xf32>
    %c0_3 = arith.constant 0 : index
    %c0_4 = arith.constant 0 : index
    %5 = vector.load %arg3[%c0_3, %c0_4] : memref<1x128xf32, #tpu.memory_space<vmem>>, vector<1x128xf32>
    %6 = vector.broadcast %5 : vector<1x128xf32> to vector<128x128xf32>
    %7 = arith.addf %4, %6 : vector<128x128xf32>
    %cst = arith.constant 0.000000e+00 : f32
    %8 = vector.broadcast %cst : f32 to vector<128x128xf32>
    %9 = arith.cmpf oge, %7, %8 : vector<128x128xf32>
    %cst_5 = arith.constant 2.000000e-01 : f32
    %10 = vector.broadcast %cst_5 : f32 to vector<128x128xf32>
    %11 = arith.mulf %10, %7 : vector<128x128xf32>
    %12 = arith.select %9, %7, %11 : vector<128x128xi1>, vector<128x128xf32>
    %13 = arith.truncf %12 : vector<128x128xf32> to vector<128x128xbf16>
    %c0_6 = arith.constant 0 : index
    %c0_7 = arith.constant 0 : index
    %14 = vector.load %arg4[%c0_6, %c0_7] : memref<128x128xbf16, #tpu.memory_space<vmem>>, vector<128x128xbf16>
    tpu.vector_store %arg4[%c0_6, %c0_7], %13 {strides = array<i32>} : memref<128x128xbf16, #tpu.memory_space<vmem>>, vector<128x128xbf16>,
    return
  }
  func.func @transform_0(%arg0: i32) -> (i32, i32) {
    %c0_i32 = arith.constant 0 : i32
    %c0_i32_0 = arith.constant 0 : i32
    return %arg0, %c0_i32 : i32, i32
  }
  func.func @transform_1(%arg0: i32) -> (i32, i32) {
    %c0_i32 = arith.constant 0 : i32
    %c0_i32_0 = arith.constant 0 : i32
    %c0_i32_1 = arith.constant 0 : i32
    return %c0_i32, %c0_i32_0 : i32, i32
  }
  func.func @transform_2(%arg0: i32) -> (i32, i32) {
    %c0_i32 = arith.constant 0 : i32
    %c0_i32_0 = arith.constant 0 : i32
    %c0_i32_1 = arith.constant 0 : i32
    return %c0_i32, %c0_i32_0 : i32, i32
  }
  func.func @transform_3(%arg0: i32) -> (i32, i32) {
    %c0_i32 = arith.constant 0 : i32
    %c0_i32_0 = arith.constant 0 : i32
    return %arg0, %c0_i32 : i32, i32
  }
}

module attributes {stable_mosaic.version = 11 : i64} {
  func.func @kernel(%arg0: i32, %arg1: i32, %arg2: i32, %arg3: memref<32x1024xbf16, #tpu.memory_space<vmem>>, %arg4: memref<1024x256xbf16, #tpu.memory_space<vmem>>, %arg5: memref<32x256xbf16, #tpu.memory_space<vmem>>, %arg6: memref<8x256xf32, #tpu.memory_space<vmem>>, %arg7: memref<8x256xf32, #tpu.memory_space<vmem>>, %arg8: memref<32x256xf32, #tpu.memory_space<vmem>>) attributes {dimension_semantics = [#tpu.dimension_semantics<parallel>, #tpu.dimension_semantics<parallel>, #tpu.dimension_semantics<arbitrary>], iteration_bounds = array<i64: 1, 1, 2>, scalar_prefetch = 0 : i64, scratch_operands = 1 : i64, tpu.core_type = #tpu.core_type<tc>, window_params = [{transform_indices = @transform_0, window_bounds = array<i64: 32, 1024>}, {transform_indices = @transform_1, window_bounds = array<i64: 1024, 256>}, {transform_indices = @transform_2, window_bounds = array<i64: 32, 256>}, {transform_indices = @transform_3, window_bounds = array<i64: 8, 256>}, {transform_indices = @transform_4, window_bounds = array<i64: 8, 256>}]} {
    %c0_i32 = arith.constant 0 : i32
    %0 = arith.cmpi eq, %arg2, %c0_i32 : i32
    %1 = arith.extui %0 : i1 to i32
    %c0_i32_0 = arith.constant 0 : i32
    %2 = arith.cmpi ne, %1, %c0_i32_0 : i32
    scf.if %2 {
      %cst_9 = arith.constant 0.000000e+00 : f32
      %12 = vector.broadcast %cst_9 : f32 to vector<32x256xf32>
      %c0_10 = arith.constant 0 : index
      %c0_11 = arith.constant 0 : index
      %13 = vector.load %arg8[%c0_10, %c0_11] : memref<32x256xf32, #tpu.memory_space<vmem>>, vector<32x256xf32>
      tpu.vector_store %arg8[%c0_10, %c0_11], %12 {strides = array<i32>} : memref<32x256xf32, #tpu.memory_space<vmem>>, vector<32x256xf32>,
    } else {
    }
    %c0 = arith.constant 0 : index
    %c0_1 = arith.constant 0 : index
    %3 = vector.load %arg8[%c0, %c0_1] : memref<32x256xf32, #tpu.memory_space<vmem>>, vector<32x256xf32>
    %c0_2 = arith.constant 0 : index
    %c0_3 = arith.constant 0 : index
    %4 = vector.load %arg3[%c0_2, %c0_3] : memref<32x1024xbf16, #tpu.memory_space<vmem>>, vector<32x1024xbf16>
    %c0_4 = arith.constant 0 : index
    %c0_5 = arith.constant 0 : index
    %5 = vector.load %arg4[%c0_4, %c0_5] : memref<1024x256xbf16, #tpu.memory_space<vmem>>, vector<1024x256xbf16>
    %cst = arith.constant dense<0.000000e+00> : vector<32x256xf32>
    %6 = tpu.matmul %4, %5, %cst {dimension_numbers = #tpu.dot_dimension_numbers<[1], [0], [0], [1], [0, 0, 1, 1], [], []>} : vector<32x1024xbf16>, vector<1024x256xbf16>, vector<32x256xf32> -> vector<32x256xf32>
    %7 = arith.addf %3, %6 : vector<32x256xf32>
    %c0_6 = arith.constant 0 : index
    %c0_7 = arith.constant 0 : index
    %8 = vector.load %arg8[%c0_6, %c0_7] : memref<32x256xf32, #tpu.memory_space<vmem>>, vector<32x256xf32>
    tpu.vector_store %arg8[%c0_6, %c0_7], %7 {strides = array<i32>} : memref<32x256xf32, #tpu.memory_space<vmem>>, vector<32x256xf32>,
    %c1_i32 = arith.constant 1 : i32
    %9 = arith.cmpi eq, %arg2, %c1_i32 : i32
    %10 = arith.extui %9 : i1 to i32
    %c0_i32_8 = arith.constant 0 : i32
    %11 = arith.cmpi ne, %10, %c0_i32_8 : i32
    scf.if %11 {
      %c0_9 = arith.constant 0 : index
      %c0_10 = arith.constant 0 : index
      %12 = vector.load %arg8[%c0_9, %c0_10] : memref<32x256xf32, #tpu.memory_space<vmem>>, vector<32x256xf32>
      %13 = tpu.iota {dimensions = array<i32: 0>} : vector<8x256xi32>
      %cst_11 = arith.constant dense<0.000000e+00> : vector<256xf32>
      %14 = vector.multi_reduction <add>, %12, %cst_11 [0] : vector<32x256xf32> to vector<256xf32>
      %15 = vector.shape_cast %14 : vector<256xf32> to vector<1x256xf32>
      %16 = arith.mulf %12, %12 : vector<32x256xf32>
      %cst_12 = arith.constant dense<0.000000e+00> : vector<256xf32>
      %17 = vector.multi_reduction <add>, %16, %cst_12 [0] : vector<32x256xf32> to vector<256xf32>
      %18 = vector.shape_cast %17 : vector<256xf32> to vector<1x256xf32>
      %c0_i32_13 = arith.constant 0 : i32
      %19 = vector.broadcast %c0_i32_13 : i32 to vector<8x256xi32>
      %20 = arith.cmpi eq, %13, %19 : vector<8x256xi32>
      %cst_14 = arith.constant 0.000000e+00 : f32
      %21 = vector.shape_cast %15 : vector<1x256xf32> to vector<1x256xf32>
      %22 = vector.broadcast %21 : vector<1x256xf32> to vector<8x256xf32>
      %23 = vector.broadcast %cst_14 : f32 to vector<8x256xf32>
      %24 = arith.select %20, %22, %23 : vector<8x256xi1>, vector<8x256xf32>
      %c0_15 = arith.constant 0 : index
      %c0_16 = arith.constant 0 : index
      %25 = vector.load %arg6[%c0_15, %c0_16] : memref<8x256xf32, #tpu.memory_space<vmem>>, vector<8x256xf32>
      tpu.vector_store %arg6[%c0_15, %c0_16], %24 {strides = array<i32>} : memref<8x256xf32, #tpu.memory_space<vmem>>, vector<8x256xf32>,
      %c0_i32_17 = arith.constant 0 : i32
      %26 = vector.broadcast %c0_i32_17 : i32 to vector<8x256xi32>
      %27 = arith.cmpi eq, %13, %26 : vector<8x256xi32>
      %cst_18 = arith.constant 0.000000e+00 : f32
      %28 = vector.shape_cast %18 : vector<1x256xf32> to vector<1x256xf32>
      %29 = vector.broadcast %28 : vector<1x256xf32> to vector<8x256xf32>
      %30 = vector.broadcast %cst_18 : f32 to vector<8x256xf32>
      %31 = arith.select %27, %29, %30 : vector<8x256xi1>, vector<8x256xf32>
      %c0_19 = arith.constant 0 : index
      %c0_20 = arith.constant 0 : index
      %32 = vector.load %arg7[%c0_19, %c0_20] : memref<8x256xf32, #tpu.memory_space<vmem>>, vector<8x256xf32>
      tpu.vector_store %arg7[%c0_19, %c0_20], %31 {strides = array<i32>} : memref<8x256xf32, #tpu.memory_space<vmem>>, vector<8x256xf32>,
      %33 = arith.truncf %12 : vector<32x256xf32> to vector<32x256xbf16>
      %c0_21 = arith.constant 0 : index
      %c0_22 = arith.constant 0 : index
      %34 = vector.load %arg5[%c0_21, %c0_22] : memref<32x256xbf16, #tpu.memory_space<vmem>>, vector<32x256xbf16>
      tpu.vector_store %arg5[%c0_21, %c0_22], %33 {strides = array<i32>} : memref<32x256xbf16, #tpu.memory_space<vmem>>, vector<32x256xbf16>,
    } else {
    }
    return
  }
  func.func @transform_0(%arg0: i32, %arg1: i32, %arg2: i32) -> (i32, i32) {
    %c0_i32 = arith.constant 0 : i32
    return %arg0, %arg2 : i32, i32
  }
  func.func @transform_1(%arg0: i32, %arg1: i32, %arg2: i32) -> (i32, i32) {
    %c0_i32 = arith.constant 0 : i32
    return %arg2, %arg1 : i32, i32
  }
  func.func @transform_2(%arg0: i32, %arg1: i32, %arg2: i32) -> (i32, i32) {
    %c0_i32 = arith.constant 0 : i32
    return %arg0, %arg1 : i32, i32
  }
  func.func @transform_3(%arg0: i32, %arg1: i32, %arg2: i32) -> (i32, i32) {
    %c0_i32 = arith.constant 0 : i32
    return %arg0, %arg1 : i32, i32
  }
  func.func @transform_4(%arg0: i32, %arg1: i32, %arg2: i32) -> (i32, i32) {
    %c0_i32 = arith.constant 0 : i32
    return %arg0, %arg1 : i32, i32
  }
}

module attributes {stable_mosaic.version = 11 : i64} {
  func.func @_bn_lrelu_kernel(%arg0: i32, %arg1: memref<32x256xbf16, #tpu.memory_space<vmem>>, %arg2: memref<1x256xf32, #tpu.memory_space<vmem>>, %arg3: memref<1x256xf32, #tpu.memory_space<vmem>>, %arg4: memref<32x256xbf16, #tpu.memory_space<vmem>>) attributes {dimension_semantics = [#tpu.dimension_semantics<parallel>], iteration_bounds = array<i64: 1>, scalar_prefetch = 0 : i64, scratch_operands = 0 : i64, tpu.core_type = #tpu.core_type<tc>, window_params = [{transform_indices = @transform_0, window_bounds = array<i64: 32, 256>}, {pipeline_mode = #tpu.pipeline_mode<synchronous>, transform_indices = @transform_1, window_bounds = array<i64: 1, 256>}, {pipeline_mode = #tpu.pipeline_mode<synchronous>, transform_indices = @transform_2, window_bounds = array<i64: 1, 256>}, {transform_indices = @transform_3, window_bounds = array<i64: 32, 256>}]} {
    %c0 = arith.constant 0 : index
    %c0_0 = arith.constant 0 : index
    %0 = vector.load %arg1[%c0, %c0_0] : memref<32x256xbf16, #tpu.memory_space<vmem>>, vector<32x256xbf16>
    %1 = arith.extf %0 : vector<32x256xbf16> to vector<32x256xf32>
    %c0_1 = arith.constant 0 : index
    %c0_2 = arith.constant 0 : index
    %2 = vector.load %arg2[%c0_1, %c0_2] : memref<1x256xf32, #tpu.memory_space<vmem>>, vector<1x256xf32>
    %3 = vector.broadcast %2 : vector<1x256xf32> to vector<32x256xf32>
    %4 = arith.mulf %1, %3 : vector<32x256xf32>
    %c0_3 = arith.constant 0 : index
    %c0_4 = arith.constant 0 : index
    %5 = vector.load %arg3[%c0_3, %c0_4] : memref<1x256xf32, #tpu.memory_space<vmem>>, vector<1x256xf32>
    %6 = vector.broadcast %5 : vector<1x256xf32> to vector<32x256xf32>
    %7 = arith.addf %4, %6 : vector<32x256xf32>
    %cst = arith.constant 0.000000e+00 : f32
    %8 = vector.broadcast %cst : f32 to vector<32x256xf32>
    %9 = arith.cmpf oge, %7, %8 : vector<32x256xf32>
    %cst_5 = arith.constant 2.000000e-01 : f32
    %10 = vector.broadcast %cst_5 : f32 to vector<32x256xf32>
    %11 = arith.mulf %10, %7 : vector<32x256xf32>
    %12 = arith.select %9, %7, %11 : vector<32x256xi1>, vector<32x256xf32>
    %13 = arith.truncf %12 : vector<32x256xf32> to vector<32x256xbf16>
    %c0_6 = arith.constant 0 : index
    %c0_7 = arith.constant 0 : index
    %14 = vector.load %arg4[%c0_6, %c0_7] : memref<32x256xbf16, #tpu.memory_space<vmem>>, vector<32x256xbf16>
    tpu.vector_store %arg4[%c0_6, %c0_7], %13 {strides = array<i32>} : memref<32x256xbf16, #tpu.memory_space<vmem>>, vector<32x256xbf16>,
    return
  }
  func.func @transform_0(%arg0: i32) -> (i32, i32) {
    %c0_i32 = arith.constant 0 : i32
    %c0_i32_0 = arith.constant 0 : i32
    return %arg0, %c0_i32 : i32, i32
  }
  func.func @transform_1(%arg0: i32) -> (i32, i32) {
    %c0_i32 = arith.constant 0 : i32
    %c0_i32_0 = arith.constant 0 : i32
    %c0_i32_1 = arith.constant 0 : i32
    return %c0_i32, %c0_i32_0 : i32, i32
  }
  func.func @transform_2(%arg0: i32) -> (i32, i32) {
    %c0_i32 = arith.constant 0 : i32
    %c0_i32_0 = arith.constant 0 : i32
    %c0_i32_1 = arith.constant 0 : i32
    return %c0_i32, %c0_i32_0 : i32, i32
  }
  func.func @transform_3(%arg0: i32) -> (i32, i32) {
    %c0_i32 = arith.constant 0 : i32
    %c0_i32_0 = arith.constant 0 : i32
    return %arg0, %c0_i32 : i32, i32
  }
}

module attributes {stable_mosaic.version = 11 : i64} {
  func.func @kernel(%arg0: i32, %arg1: i32, %arg2: i32, %arg3: memref<32x1024xbf16, #tpu.memory_space<vmem>>, %arg4: memref<1024x512xbf16, #tpu.memory_space<vmem>>, %arg5: memref<32x512xbf16, #tpu.memory_space<vmem>>, %arg6: memref<8x512xf32, #tpu.memory_space<vmem>>, %arg7: memref<8x512xf32, #tpu.memory_space<vmem>>, %arg8: memref<32x512xf32, #tpu.memory_space<vmem>>) attributes {dimension_semantics = [#tpu.dimension_semantics<parallel>, #tpu.dimension_semantics<parallel>, #tpu.dimension_semantics<arbitrary>], iteration_bounds = array<i64: 1, 1, 4>, scalar_prefetch = 0 : i64, scratch_operands = 1 : i64, tpu.core_type = #tpu.core_type<tc>, window_params = [{transform_indices = @transform_0, window_bounds = array<i64: 32, 1024>}, {transform_indices = @transform_1, window_bounds = array<i64: 1024, 512>}, {transform_indices = @transform_2, window_bounds = array<i64: 32, 512>}, {transform_indices = @transform_3, window_bounds = array<i64: 8, 512>}, {transform_indices = @transform_4, window_bounds = array<i64: 8, 512>}]} {
    %c0_i32 = arith.constant 0 : i32
    %0 = arith.cmpi eq, %arg2, %c0_i32 : i32
    %1 = arith.extui %0 : i1 to i32
    %c0_i32_0 = arith.constant 0 : i32
    %2 = arith.cmpi ne, %1, %c0_i32_0 : i32
    scf.if %2 {
      %cst_9 = arith.constant 0.000000e+00 : f32
      %12 = vector.broadcast %cst_9 : f32 to vector<32x512xf32>
      %c0_10 = arith.constant 0 : index
      %c0_11 = arith.constant 0 : index
      %13 = vector.load %arg8[%c0_10, %c0_11] : memref<32x512xf32, #tpu.memory_space<vmem>>, vector<32x512xf32>
      tpu.vector_store %arg8[%c0_10, %c0_11], %12 {strides = array<i32>} : memref<32x512xf32, #tpu.memory_space<vmem>>, vector<32x512xf32>,
    } else {
    }
    %c0 = arith.constant 0 : index
    %c0_1 = arith.constant 0 : index
    %3 = vector.load %arg8[%c0, %c0_1] : memref<32x512xf32, #tpu.memory_space<vmem>>, vector<32x512xf32>
    %c0_2 = arith.constant 0 : index
    %c0_3 = arith.constant 0 : index
    %4 = vector.load %arg3[%c0_2, %c0_3] : memref<32x1024xbf16, #tpu.memory_space<vmem>>, vector<32x1024xbf16>
    %c0_4 = arith.constant 0 : index
    %c0_5 = arith.constant 0 : index
    %5 = vector.load %arg4[%c0_4, %c0_5] : memref<1024x512xbf16, #tpu.memory_space<vmem>>, vector<1024x512xbf16>
    %cst = arith.constant dense<0.000000e+00> : vector<32x512xf32>
    %6 = tpu.matmul %4, %5, %cst {dimension_numbers = #tpu.dot_dimension_numbers<[1], [0], [0], [1], [0, 0, 1, 1], [], []>} : vector<32x1024xbf16>, vector<1024x512xbf16>, vector<32x512xf32> -> vector<32x512xf32>
    %7 = arith.addf %3, %6 : vector<32x512xf32>
    %c0_6 = arith.constant 0 : index
    %c0_7 = arith.constant 0 : index
    %8 = vector.load %arg8[%c0_6, %c0_7] : memref<32x512xf32, #tpu.memory_space<vmem>>, vector<32x512xf32>
    tpu.vector_store %arg8[%c0_6, %c0_7], %7 {strides = array<i32>} : memref<32x512xf32, #tpu.memory_space<vmem>>, vector<32x512xf32>,
    %c3_i32 = arith.constant 3 : i32
    %9 = arith.cmpi eq, %arg2, %c3_i32 : i32
    %10 = arith.extui %9 : i1 to i32
    %c0_i32_8 = arith.constant 0 : i32
    %11 = arith.cmpi ne, %10, %c0_i32_8 : i32
    scf.if %11 {
      %c0_9 = arith.constant 0 : index
      %c0_10 = arith.constant 0 : index
      %12 = vector.load %arg8[%c0_9, %c0_10] : memref<32x512xf32, #tpu.memory_space<vmem>>, vector<32x512xf32>
      %13 = tpu.iota {dimensions = array<i32: 0>} : vector<8x512xi32>
      %cst_11 = arith.constant dense<0.000000e+00> : vector<512xf32>
      %14 = vector.multi_reduction <add>, %12, %cst_11 [0] : vector<32x512xf32> to vector<512xf32>
      %15 = vector.shape_cast %14 : vector<512xf32> to vector<1x512xf32>
      %16 = arith.mulf %12, %12 : vector<32x512xf32>
      %cst_12 = arith.constant dense<0.000000e+00> : vector<512xf32>
      %17 = vector.multi_reduction <add>, %16, %cst_12 [0] : vector<32x512xf32> to vector<512xf32>
      %18 = vector.shape_cast %17 : vector<512xf32> to vector<1x512xf32>
      %c0_i32_13 = arith.constant 0 : i32
      %19 = vector.broadcast %c0_i32_13 : i32 to vector<8x512xi32>
      %20 = arith.cmpi eq, %13, %19 : vector<8x512xi32>
      %cst_14 = arith.constant 0.000000e+00 : f32
      %21 = vector.shape_cast %15 : vector<1x512xf32> to vector<1x512xf32>
      %22 = vector.broadcast %21 : vector<1x512xf32> to vector<8x512xf32>
      %23 = vector.broadcast %cst_14 : f32 to vector<8x512xf32>
      %24 = arith.select %20, %22, %23 : vector<8x512xi1>, vector<8x512xf32>
      %c0_15 = arith.constant 0 : index
      %c0_16 = arith.constant 0 : index
      %25 = vector.load %arg6[%c0_15, %c0_16] : memref<8x512xf32, #tpu.memory_space<vmem>>, vector<8x512xf32>
      tpu.vector_store %arg6[%c0_15, %c0_16], %24 {strides = array<i32>} : memref<8x512xf32, #tpu.memory_space<vmem>>, vector<8x512xf32>,
      %c0_i32_17 = arith.constant 0 : i32
      %26 = vector.broadcast %c0_i32_17 : i32 to vector<8x512xi32>
      %27 = arith.cmpi eq, %13, %26 : vector<8x512xi32>
      %cst_18 = arith.constant 0.000000e+00 : f32
      %28 = vector.shape_cast %18 : vector<1x512xf32> to vector<1x512xf32>
      %29 = vector.broadcast %28 : vector<1x512xf32> to vector<8x512xf32>
      %30 = vector.broadcast %cst_18 : f32 to vector<8x512xf32>
      %31 = arith.select %27, %29, %30 : vector<8x512xi1>, vector<8x512xf32>
      %c0_19 = arith.constant 0 : index
      %c0_20 = arith.constant 0 : index
      %32 = vector.load %arg7[%c0_19, %c0_20] : memref<8x512xf32, #tpu.memory_space<vmem>>, vector<8x512xf32>
      tpu.vector_store %arg7[%c0_19, %c0_20], %31 {strides = array<i32>} : memref<8x512xf32, #tpu.memory_space<vmem>>, vector<8x512xf32>,
      %33 = arith.truncf %12 : vector<32x512xf32> to vector<32x512xbf16>
      %c0_21 = arith.constant 0 : index
      %c0_22 = arith.constant 0 : index
      %34 = vector.load %arg5[%c0_21, %c0_22] : memref<32x512xbf16, #tpu.memory_space<vmem>>, vector<32x512xbf16>
      tpu.vector_store %arg5[%c0_21, %c0_22], %33 {strides = array<i32>} : memref<32x512xbf16, #tpu.memory_space<vmem>>, vector<32x512xbf16>,
    } else {
    }
    return
  }
  func.func @transform_0(%arg0: i32, %arg1: i32, %arg2: i32) -> (i32, i32) {
    %c0_i32 = arith.constant 0 : i32
    return %arg0, %arg2 : i32, i32
  }
  func.func @transform_1(%arg0: i32, %arg1: i32, %arg2: i32) -> (i32, i32) {
    %c0_i32 = arith.constant 0 : i32
    return %arg2, %arg1 : i32, i32
  }
  func.func @transform_2(%arg0: i32, %arg1: i32, %arg2: i32) -> (i32, i32) {
    %c0_i32 = arith.constant 0 : i32
    return %arg0, %arg1 : i32, i32
  }
  func.func @transform_3(%arg0: i32, %arg1: i32, %arg2: i32) -> (i32, i32) {
    %c0_i32 = arith.constant 0 : i32
    return %arg0, %arg1 : i32, i32
  }
  func.func @transform_4(%arg0: i32, %arg1: i32, %arg2: i32) -> (i32, i32) {
    %c0_i32 = arith.constant 0 : i32
    return %arg0, %arg1 : i32, i32
  }
}

module attributes {stable_mosaic.version = 11 : i64} {
  func.func @_bn_lrelu_kernel(%arg0: i32, %arg1: memref<32x512xbf16, #tpu.memory_space<vmem>>, %arg2: memref<1x512xf32, #tpu.memory_space<vmem>>, %arg3: memref<1x512xf32, #tpu.memory_space<vmem>>, %arg4: memref<32x512xbf16, #tpu.memory_space<vmem>>) attributes {dimension_semantics = [#tpu.dimension_semantics<parallel>], iteration_bounds = array<i64: 1>, scalar_prefetch = 0 : i64, scratch_operands = 0 : i64, tpu.core_type = #tpu.core_type<tc>, window_params = [{transform_indices = @transform_0, window_bounds = array<i64: 32, 512>}, {pipeline_mode = #tpu.pipeline_mode<synchronous>, transform_indices = @transform_1, window_bounds = array<i64: 1, 512>}, {pipeline_mode = #tpu.pipeline_mode<synchronous>, transform_indices = @transform_2, window_bounds = array<i64: 1, 512>}, {transform_indices = @transform_3, window_bounds = array<i64: 32, 512>}]} {
    %c0 = arith.constant 0 : index
    %c0_0 = arith.constant 0 : index
    %0 = vector.load %arg1[%c0, %c0_0] : memref<32x512xbf16, #tpu.memory_space<vmem>>, vector<32x512xbf16>
    %1 = arith.extf %0 : vector<32x512xbf16> to vector<32x512xf32>
    %c0_1 = arith.constant 0 : index
    %c0_2 = arith.constant 0 : index
    %2 = vector.load %arg2[%c0_1, %c0_2] : memref<1x512xf32, #tpu.memory_space<vmem>>, vector<1x512xf32>
    %3 = vector.broadcast %2 : vector<1x512xf32> to vector<32x512xf32>
    %4 = arith.mulf %1, %3 : vector<32x512xf32>
    %c0_3 = arith.constant 0 : index
    %c0_4 = arith.constant 0 : index
    %5 = vector.load %arg3[%c0_3, %c0_4] : memref<1x512xf32, #tpu.memory_space<vmem>>, vector<1x512xf32>
    %6 = vector.broadcast %5 : vector<1x512xf32> to vector<32x512xf32>
    %7 = arith.addf %4, %6 : vector<32x512xf32>
    %cst = arith.constant 0.000000e+00 : f32
    %8 = vector.broadcast %cst : f32 to vector<32x512xf32>
    %9 = arith.cmpf oge, %7, %8 : vector<32x512xf32>
    %cst_5 = arith.constant 2.000000e-01 : f32
    %10 = vector.broadcast %cst_5 : f32 to vector<32x512xf32>
    %11 = arith.mulf %10, %7 : vector<32x512xf32>
    %12 = arith.select %9, %7, %11 : vector<32x512xi1>, vector<32x512xf32>
    %13 = arith.truncf %12 : vector<32x512xf32> to vector<32x512xbf16>
    %c0_6 = arith.constant 0 : index
    %c0_7 = arith.constant 0 : index
    %14 = vector.load %arg4[%c0_6, %c0_7] : memref<32x512xbf16, #tpu.memory_space<vmem>>, vector<32x512xbf16>
    tpu.vector_store %arg4[%c0_6, %c0_7], %13 {strides = array<i32>} : memref<32x512xbf16, #tpu.memory_space<vmem>>, vector<32x512xbf16>,
    return
  }
  func.func @transform_0(%arg0: i32) -> (i32, i32) {
    %c0_i32 = arith.constant 0 : i32
    %c0_i32_0 = arith.constant 0 : i32
    return %arg0, %c0_i32 : i32, i32
  }
  func.func @transform_1(%arg0: i32) -> (i32, i32) {
    %c0_i32 = arith.constant 0 : i32
    %c0_i32_0 = arith.constant 0 : i32
    %c0_i32_1 = arith.constant 0 : i32
    return %c0_i32, %c0_i32_0 : i32, i32
  }
  func.func @transform_2(%arg0: i32) -> (i32, i32) {
    %c0_i32 = arith.constant 0 : i32
    %c0_i32_0 = arith.constant 0 : i32
    %c0_i32_1 = arith.constant 0 : i32
    return %c0_i32, %c0_i32_0 : i32, i32
  }
  func.func @transform_3(%arg0: i32) -> (i32, i32) {
    %c0_i32 = arith.constant 0 : i32
    %c0_i32_0 = arith.constant 0 : i32
    return %arg0, %c0_i32 : i32, i32
  }
}

module attributes {stable_mosaic.version = 11 : i64} {
  func.func @kernel(%arg0: i32, %arg1: i32, %arg2: i32, %arg3: memref<16x1024xbf16, #tpu.memory_space<vmem>>, %arg4: memref<1024x128xbf16, #tpu.memory_space<vmem>>, %arg5: memref<1x128xf32, #tpu.memory_space<vmem>>, %arg6: memref<16x128xf32, #tpu.memory_space<vmem>>, %arg7: memref<16x128xf32, #tpu.memory_space<vmem>>) attributes {dimension_semantics = [#tpu.dimension_semantics<parallel>, #tpu.dimension_semantics<parallel>, #tpu.dimension_semantics<arbitrary>], iteration_bounds = array<i64: 1, 1, 8>, scalar_prefetch = 0 : i64, scratch_operands = 1 : i64, tpu.core_type = #tpu.core_type<tc>, window_params = [{transform_indices = @transform_0, window_bounds = array<i64: 16, 1024>}, {transform_indices = @transform_1, window_bounds = array<i64: 1024, 128>}, {transform_indices = @transform_2, window_bounds = array<i64: 1, 128>}, {transform_indices = @transform_3, window_bounds = array<i64: 16, 128>}]} {
    %c0_i32 = arith.constant 0 : i32
    %0 = arith.cmpi eq, %arg2, %c0_i32 : i32
    %1 = arith.extui %0 : i1 to i32
    %c0_i32_0 = arith.constant 0 : i32
    %2 = arith.cmpi ne, %1, %c0_i32_0 : i32
    scf.if %2 {
      %cst_9 = arith.constant 0.000000e+00 : f32
      %12 = vector.broadcast %cst_9 : f32 to vector<16x128xf32>
      %c0_10 = arith.constant 0 : index
      %c0_11 = arith.constant 0 : index
      %13 = vector.load %arg7[%c0_10, %c0_11] : memref<16x128xf32, #tpu.memory_space<vmem>>, vector<16x128xf32>
      tpu.vector_store %arg7[%c0_10, %c0_11], %12 {strides = array<i32>} : memref<16x128xf32, #tpu.memory_space<vmem>>, vector<16x128xf32>,
    } else {
    }
    %c0 = arith.constant 0 : index
    %c0_1 = arith.constant 0 : index
    %3 = vector.load %arg7[%c0, %c0_1] : memref<16x128xf32, #tpu.memory_space<vmem>>, vector<16x128xf32>
    %c0_2 = arith.constant 0 : index
    %c0_3 = arith.constant 0 : index
    %4 = vector.load %arg3[%c0_2, %c0_3] : memref<16x1024xbf16, #tpu.memory_space<vmem>>, vector<16x1024xbf16>
    %c0_4 = arith.constant 0 : index
    %c0_5 = arith.constant 0 : index
    %5 = vector.load %arg4[%c0_4, %c0_5] : memref<1024x128xbf16, #tpu.memory_space<vmem>>, vector<1024x128xbf16>
    %cst = arith.constant dense<0.000000e+00> : vector<16x128xf32>
    %6 = tpu.matmul %4, %5, %cst {dimension_numbers = #tpu.dot_dimension_numbers<[1], [0], [0], [1], [0, 0, 1, 1], [], []>} : vector<16x1024xbf16>, vector<1024x128xbf16>, vector<16x128xf32> -> vector<16x128xf32>
    %7 = arith.addf %3, %6 : vector<16x128xf32>
    %c0_6 = arith.constant 0 : index
    %c0_7 = arith.constant 0 : index
    %8 = vector.load %arg7[%c0_6, %c0_7] : memref<16x128xf32, #tpu.memory_space<vmem>>, vector<16x128xf32>
    tpu.vector_store %arg7[%c0_6, %c0_7], %7 {strides = array<i32>} : memref<16x128xf32, #tpu.memory_space<vmem>>, vector<16x128xf32>,
    %c7_i32 = arith.constant 7 : i32
    %9 = arith.cmpi eq, %arg2, %c7_i32 : i32
    %10 = arith.extui %9 : i1 to i32
    %c0_i32_8 = arith.constant 0 : i32
    %11 = arith.cmpi ne, %10, %c0_i32_8 : i32
    scf.if %11 {
      %c0_9 = arith.constant 0 : index
      %c0_10 = arith.constant 0 : index
      %12 = vector.load %arg7[%c0_9, %c0_10] : memref<16x128xf32, #tpu.memory_space<vmem>>, vector<16x128xf32>
      %c0_11 = arith.constant 0 : index
      %c0_12 = arith.constant 0 : index
      %13 = vector.load %arg5[%c0_11, %c0_12] : memref<1x128xf32, #tpu.memory_space<vmem>>, vector<1x128xf32>
      %14 = vector.broadcast %13 : vector<1x128xf32> to vector<16x128xf32>
      %15 = arith.addf %12, %14 : vector<16x128xf32>
      %c0_13 = arith.constant 0 : index
      %c0_14 = arith.constant 0 : index
      %16 = vector.load %arg6[%c0_13, %c0_14] : memref<16x128xf32, #tpu.memory_space<vmem>>, vector<16x128xf32>
      tpu.vector_store %arg6[%c0_13, %c0_14], %15 {strides = array<i32>} : memref<16x128xf32, #tpu.memory_space<vmem>>, vector<16x128xf32>,
    } else {
    }
    return
  }
  func.func @transform_0(%arg0: i32, %arg1: i32, %arg2: i32) -> (i32, i32) {
    %c0_i32 = arith.constant 0 : i32
    return %arg0, %arg2 : i32, i32
  }
  func.func @transform_1(%arg0: i32, %arg1: i32, %arg2: i32) -> (i32, i32) {
    %c0_i32 = arith.constant 0 : i32
    return %arg2, %arg1 : i32, i32
  }
  func.func @transform_2(%arg0: i32, %arg1: i32, %arg2: i32) -> (i32, i32) {
    %c0_i32 = arith.constant 0 : i32
    %c0_i32_0 = arith.constant 0 : i32
    return %c0_i32, %arg1 : i32, i32
  }
  func.func @transform_3(%arg0: i32, %arg1: i32, %arg2: i32) -> (i32, i32) {
    %c0_i32 = arith.constant 0 : i32
    return %arg0, %arg1 : i32, i32
  }
}

</mosaic_0001>

<bundles_post_ra>
// kernel: discriminator_forward.8
= control target key start
LH: loop header
LB: loop body
LE: loop exit
PB: predicated region body
PF: predicated region fallthrough
CT: control target
= control target key end

     0   :  { %vm19_vm0 = vcmask 523264   ;;  %v1910_v1 = vmov 0.0   ;;  %vm396_vm1 = vcmask 392192   ;;  %vm1497_vm2 = vcmask 519168   ;;  %s2715_s1 = inlined_call_operand.vmem [shape: bf16[48,64], index: 1, kind: input, shape index: {}]   ;;  %s2716_s0 = inlined_call_operand.vmem [shape: bf16[512,48], index: 0, kind: input, shape index: {}]   ;;  %s2717_s2 = inlined_call_operand.vmem [shape: f32[1,64], index: 2, kind: input, shape index: {}]   ;;  %s2718_s3 = inlined_call_operand.vmem [shape: bf16[512,64], index: 3, kind: output, shape index: {}]  }
   0x1   :  { %v1934_v0 = vld [vmem:[%s2715_s1] sm:$0xff]   ;;  %22 = vst.msk [vmem:[#allocation2 + $0x10] sm:$0xff] %vm19_vm0, %v1910_v1  ;;  %20 = vst.msk [vmem:[#allocation2] sm:$0xff] %vm19_vm0, %v1910_v1  ;;  %v1875_v2 = vld [vmem:[%s2715_s1 + $0x8] sm:$0xff]  }
   0x2   :  { %21 = vst.msk [vmem:[#allocation2 + $0x8] sm:$0xff] %vm19_vm0, %v1910_v1  ;;  %23 = vst.msk [vmem:[#allocation2 + $0x18] sm:$0xff] %vm19_vm0, %v1910_v1  ;;  %1797 = vmatprep.subr.bf16.mxu0 %v1934_v0  ;;  %1867 = vmatprep.subr.bf16.mxu1 %v1934_v0  ;;  %v1876_v3 = vld [vmem:[%s2715_s1 + $0x10] sm:$0xff]   ;;  %v1877_v4 = vld [vmem:[%s2716_s0] sm:$0xff]  }
   0x3   :  { %24 = vst.msk [vmem:[#allocation2 + $0x20] sm:$0xff] %vm19_vm0, %v1910_v1  ;;  %25 = vst.msk [vmem:[#allocation2 + $0x28] sm:$0xff] %vm19_vm0, %v1910_v1  ;;  %1798 = vmatpush3.bf16.msra.mxu0 %v1934_v0  ;;  %1870 = vmatpush3.bf16.msra.mxu1 %v1934_v0  ;;  %v1878_v5 = vld [vmem:[%s2716_s0 + $0x80] sm:$0xff]   ;;  %v1879_v6 = vld [vmem:[%s2716_s0 + $0x8] sm:$0xff]  }
   0x4   :  { %26 = vst.msk [vmem:[#allocation2 + $0x30] sm:$0xff] %vm19_vm0, %v1910_v1  ;;  %27 = vst.msk [vmem:[#allocation2 + $0x38] sm:$0xff] %vm19_vm0, %v1910_v1  ;;  %1799 = vmatprep.subr.bf16.mxu0 %v1875_v2  ;;  %1868 = vmatprep.subr.bf16.mxu1 %v1875_v2  ;;  %v1880_v7 = vld [vmem:[%s2716_s0 + $0x88] sm:$0xff]   ;;  %v1881_v8 = vld [vmem:[%s2716_s0 + $0x10] sm:$0xff]  }
   0x5   :  { %28 = vst.msk [vmem:[#allocation2 + $0x40] sm:$0xff] %vm19_vm0, %v1910_v1  ;;  %29 = vst.msk [vmem:[#allocation2 + $0x48] sm:$0xff] %vm19_vm0, %v1910_v1  ;;  %1803 = vmatprep.mubr.msk.bf16.mxu0 %vm396_vm1, %v1877_v4  ;;  %1835 = vmatprep.mubr.msk.bf16.mxu1 %vm396_vm1, %v1878_v5  ;;  %v1882_v9 = vld [vmem:[%s2716_s0 + $0x90] sm:$0xff]   ;;  %v1883_v10 = vld [vmem:[%s2716_s0 + $0x18] sm:$0xff]  }
   0x6   :  { %30 = vst.msk [vmem:[#allocation2 + $0x50] sm:$0xff] %vm19_vm0, %v1910_v1  ;;  %31 = vst.msk [vmem:[#allocation2 + $0x58] sm:$0xff] %vm19_vm0, %v1910_v1  ;;  %v1884_v11 = vld [vmem:[%s2716_s0 + $0x98] sm:$0xff]   ;;  %v1885_v12 = vld [vmem:[%s2716_s0 + $0x20] sm:$0xff]  }
   0x7   :  { %32 = vst.msk [vmem:[#allocation2 + $0x60] sm:$0xff] %vm19_vm0, %v1910_v1  ;;  %33 = vst.msk [vmem:[#allocation2 + $0x68] sm:$0xff] %vm19_vm0, %v1910_v1  ;;  %1800 = vmatpush3.bf16.msra.mxu0 %v1875_v2  ;;  %1871 = vmatpush3.bf16.msra.mxu1 %v1875_v2  ;;  %v1886_v13 = vld [vmem:[%s2716_s0 + $0xa0] sm:$0xff]   ;;  %v1887_v14 = vld [vmem:[%s2716_s0 + $0x28] sm:$0xff]  }
   0x8   :  { %34 = vst.msk [vmem:[#allocation2 + $0x70] sm:$0xff] %vm19_vm0, %v1910_v1  ;;  %35 = vst.msk [vmem:[#allocation2 + $0x78] sm:$0xff] %vm19_vm0, %v1910_v1  ;;  %1801 = vmatprep.subr.bf16.mxu0 %v1876_v3  ;;  %1869 = vmatprep.subr.bf16.mxu1 %v1876_v3  ;;  %v1888_v15 = vld [vmem:[%s2716_s0 + $0xa8] sm:$0xff]   ;;  %v1889_v16 = vld [vmem:[%s2716_s0 + $0x30] sm:$0xff]  }
   0x9   :  { %36 = vst.msk [vmem:[#allocation2 + $0x80] sm:$0xff] %vm19_vm0, %v1910_v1  ;;  %37 = vst.msk [vmem:[#allocation2 + $0x88] sm:$0xff] %vm19_vm0, %v1910_v1  ;;  %v1890_v17 = vld [vmem:[%s2716_s0 + $0xb0] sm:$0xff]   ;;  %v1891_v18 = vld [vmem:[%s2716_s0 + $0x38] sm:$0xff]  }
   0xa   :  { %38 = vst.msk [vmem:[#allocation2 + $0x90] sm:$0xff] %vm19_vm0, %v1910_v1  ;;  %39 = vst.msk [vmem:[#allocation2 + $0x98] sm:$0xff] %vm19_vm0, %v1910_v1  ;;  %v1892_v19 = vld [vmem:[%s2716_s0 + $0xb8] sm:$0xff]   ;;  %v1893_v20 = vld [vmem:[%s2716_s0 + $0x40] sm:$0xff]  }
   0xb   :  { %40 = vst.msk [vmem:[#allocation2 + $0xa0] sm:$0xff] %vm19_vm0, %v1910_v1  ;;  %41 = vst.msk [vmem:[#allocation2 + $0xa8] sm:$0xff] %vm19_vm0, %v1910_v1  ;;  %1802 = vmatpush3.bf16.msra.mxu0 %v1876_v3  ;;  %1872 = vmatpush3.bf16.msra.mxu1 %v1876_v3  ;;  %v1894_v21 = vld [vmem:[%s2716_s0 + $0xc0] sm:$0xff]   ;;  %v1895_v22 = vld [vmem:[%s2716_s0 + $0x48] sm:$0xff]  }
   0xc   :  { %42 = vst.msk [vmem:[#allocation2 + $0xb0] sm:$0xff] %vm19_vm0, %v1910_v1  ;;  %43 = vst.msk [vmem:[#allocation2 + $0xb8] sm:$0xff] %vm19_vm0, %v1910_v1  ;;  %v1896_v23 = vld [vmem:[%s2716_s0 + $0xc8] sm:$0xff]   ;;  %v1897_v24 = vld [vmem:[%s2716_s0 + $0x50] sm:$0xff]  }
   0xd   :  { %44 = vst.msk [vmem:[#allocation2 + $0xc0] sm:$0xff] %vm19_vm0, %v1910_v1  ;;  %45 = vst.msk [vmem:[#allocation2 + $0xc8] sm:$0xff] %vm19_vm0, %v1910_v1  ;;  %v1898_v25 = vld [vmem:[%s2716_s0 + $0xd0] sm:$0xff]   ;;  %v1899_v26 = vld [vmem:[%s2716_s0 + $0x58] sm:$0xff]  }
   0xe   :  { %46 = vst.msk [vmem:[#allocation2 + $0xd0] sm:$0xff] %vm19_vm0, %v1910_v1  ;;  %47 = vst.msk [vmem:[#allocation2 + $0xd8] sm:$0xff] %vm19_vm0, %v1910_v1  ;;  %1804 = vmatmul.mubr.msk.bf16.vlgmr.msra.gmra.mrb[0].mxu0 %vm396_vm1, %v1879_v6  ;;  %1836 = vmatmul.mubr.msk.bf16.vlgmr.msra.gmra.mrb[0].mxu1 %vm396_vm1, %v1880_v7  ;;  %v1900_v27 = vld [vmem:[%s2716_s0 + $0xd8] sm:$0xff]   ;;  %v1901_v28 = vld [vmem:[%s2716_s0 + $0x60] sm:$0xff]  }
   0xf   :  { %48 = vst.msk [vmem:[#allocation2 + $0xe0] sm:$0xff] %vm19_vm0, %v1910_v1  ;;  %49 = vst.msk [vmem:[#allocation2 + $0xe8] sm:$0xff] %vm19_vm0, %v1910_v1  ;;  %1807 = vmatprep.mubr.msk.bf16.mxu0 %vm396_vm1, %v1881_v8  ;;  %1839 = vmatprep.mubr.msk.bf16.mxu1 %vm396_vm1, %v1882_v9  ;;  %v1902_v29 = vld [vmem:[%s2716_s0 + $0xe0] sm:$0xff]   ;;  %v1903_v30 = vld [vmem:[%s2716_s0 + $0x68] sm:$0xff]  }
  0x10   :  { %50 = vst.msk [vmem:[#allocation2 + $0xf0] sm:$0xff] %vm19_vm0, %v1910_v1  ;;  %51 = vst.msk [vmem:[#allocation2 + $0xf8] sm:$0xff] %vm19_vm0, %v1910_v1  ;;  %v1904_v31 = vld [vmem:[%s2716_s0 + $0xe8] sm:$0xff]   ;;  %v1905_v32 = vld [vmem:[%s2716_s0 + $0x70] sm:$0xff]  }
  0x11   :  { %52 = vst.msk [vmem:[#allocation2 + $0x100] sm:$0xff] %vm19_vm0, %v1910_v1  ;;  %53 = vst.msk [vmem:[#allocation2 + $0x108] sm:$0xff] %vm19_vm0, %v1910_v1  ;;  %v1906_v33 = vld [vmem:[%s2716_s0 + $0xf0] sm:$0xff]   ;;  %v1907_v34 = vld [vmem:[%s2716_s0 + $0x78] sm:$0xff]  }
  0x12   :  { %54 = vst.msk [vmem:[#allocation2 + $0x110] sm:$0xff] %vm19_vm0, %v1910_v1  ;;  %55 = vst.msk [vmem:[#allocation2 + $0x118] sm:$0xff] %vm19_vm0, %v1910_v1  ;;  %v1908_v35 = vld [vmem:[%s2716_s0 + $0xf8] sm:$0xff]   ;;  %v86_v36 = vld [vmem:[#allocation2 + $0x10] sm:$0xff] }
  0x13   :  { %56 = vst.msk [vmem:[#allocation2 + $0x120] sm:$0xff] %vm19_vm0, %v1910_v1  ;;  %57 = vst.msk [vmem:[#allocation2 + $0x128] sm:$0xff] %vm19_vm0, %v1910_v1  ;;  %v84_v38 = vld [vmem:[#allocation2] sm:$0xff]  ;;  %v87_v42 = vld [vmem:[#allocation2 + $0x18] sm:$0xff] }
  0x14   :  { %58 = vst.msk [vmem:[#allocation2 + $0x130] sm:$0xff] %vm19_vm0, %v1910_v1  ;;  %59 = vst.msk [vmem:[#allocation2 + $0x138] sm:$0xff] %vm19_vm0, %v1910_v1  ;;  %v85_v48 = vld [vmem:[#allocation2 + $0x8] sm:$0xff]  ;;  %v90_v60 = vld [vmem:[#allocation2 + $0x30] sm:$0xff] }
  0x15   :  { %60 = vst.msk [vmem:[#allocation2 + $0x140] sm:$0xff] %vm19_vm0, %v1910_v1  ;;  %61 = vst.msk [vmem:[#allocation2 + $0x148] sm:$0xff] %vm19_vm0, %v1910_v1  ;;  %v88_v62 = vld [vmem:[#allocation2 + $0x20] sm:$0xff]  ;;  %v91_v3 = vld [vmem:[#allocation2 + $0x38] sm:$0xff] }
  0x16   :  { %62 = vst.msk [vmem:[#allocation2 + $0x150] sm:$0xff] %vm19_vm0, %v1910_v1  ;;  %63 = vst.msk [vmem:[#allocation2 + $0x158] sm:$0xff] %vm19_vm0, %v1910_v1  ;;  %1808 = vmatmul.mubr.msk.bf16.gmra.mrb[4].mxu0 %vm396_vm1, %v1883_v10  ;;  %1840 = vmatmul.mubr.msk.bf16.gmra.mrb[4].mxu1 %vm396_vm1, %v1884_v11  ;;  %v2213_v0 = vld [vmem:[%s2717_s2] ss:$0 sm:$0xff]  ;;  %v89_v9 = vld [vmem:[#allocation2 + $0x28] sm:$0xff] }
  0x17   :  { %64 = vst.msk [vmem:[#allocation2 + $0x160] sm:$0xff] %vm19_vm0, %v1910_v1  ;;  %65 = vst.msk [vmem:[#allocation2 + $0x168] sm:$0xff] %vm19_vm0, %v1910_v1  ;;  %1811 = vmatprep.mubr.msk.bf16.mxu0 %vm396_vm1, %v1885_v12  ;;  %1843 = vmatprep.mubr.msk.bf16.mxu1 %vm396_vm1, %v1886_v13 }
  0x18   :  { %66 = vst.msk [vmem:[#allocation2 + $0x170] sm:$0xff] %vm19_vm0, %v1910_v1  ;;  %67 = vst.msk [vmem:[#allocation2 + $0x178] sm:$0xff] %vm19_vm0, %v1910_v1  ;;  %v116_v39 = vld [vmem:[#allocation2 + $0x100] sm:$0xff]  ;;  %v117_v49 = vld [vmem:[#allocation2 + $0x108] sm:$0xff] }
  0x19   :  { %68 = vst.msk [vmem:[#allocation2 + $0x180] sm:$0xff] %vm19_vm0, %v1910_v1  ;;  %69 = vst.msk [vmem:[#allocation2 + $0x188] sm:$0xff] %vm19_vm0, %v1910_v1  ;;  %v118_v37 = vld [vmem:[#allocation2 + $0x110] sm:$0xff]  ;;  %v119_v43 = vld [vmem:[#allocation2 + $0x118] sm:$0xff] }
  0x1a   :  { %70 = vst.msk [vmem:[#allocation2 + $0x190] sm:$0xff] %vm19_vm0, %v1910_v1  ;;  %71 = vst.msk [vmem:[#allocation2 + $0x198] sm:$0xff] %vm19_vm0, %v1910_v1  ;;  %v120_v63 = vld [vmem:[#allocation2 + $0x120] sm:$0xff]  ;;  %v121_v10 = vld [vmem:[#allocation2 + $0x128] sm:$0xff] }
  0x1b   :  { %72 = vst.msk [vmem:[#allocation2 + $0x1a0] sm:$0xff] %vm19_vm0, %v1910_v1  ;;  %73 = vst.msk [vmem:[#allocation2 + $0x1a8] sm:$0xff] %vm19_vm0, %v1910_v1  ;;  %v122_v61 = vld [vmem:[#allocation2 + $0x130] sm:$0xff]  ;;  %v123_v4 = vld [vmem:[#allocation2 + $0x138] sm:$0xff] }
  0x1c   :  { %74 = vst.msk [vmem:[#allocation2 + $0x1b0] sm:$0xff] %vm19_vm0, %v1910_v1  ;;  %75 = vst.msk [vmem:[#allocation2 + $0x1b8] sm:$0xff] %vm19_vm0, %v1910_v1 }
  0x1d   :  { %76 = vst.msk [vmem:[#allocation2 + $0x1c0] sm:$0xff] %vm19_vm0, %v1910_v1  ;;  %77 = vst.msk [vmem:[#allocation2 + $0x1c8] sm:$0xff] %vm19_vm0, %v1910_v1 }
  0x1e   :  { %78 = vst.msk [vmem:[#allocation2 + $0x1d0] sm:$0xff] %vm19_vm0, %v1910_v1  ;;  %79 = vst.msk [vmem:[#allocation2 + $0x1d8] sm:$0xff] %vm19_vm0, %v1910_v1  ;;  %1812 = vmatmul.mubr.msk.bf16.gmra.mrb[8].mxu0 %vm396_vm1, %v1887_v14  ;;  %1844 = vmatmul.mubr.msk.bf16.gmra.mrb[8].mxu1 %vm396_vm1, %v1888_v15 }
  0x1f   :  { %80 = vst.msk [vmem:[#allocation2 + $0x1e0] sm:$0xff] %vm19_vm0, %v1910_v1  ;;  %81 = vst.msk [vmem:[#allocation2 + $0x1e8] sm:$0xff] %vm19_vm0, %v1910_v1  ;;  %1815 = vmatprep.mubr.msk.bf16.mxu0 %vm396_vm1, %v1889_v16  ;;  %1847 = vmatprep.mubr.msk.bf16.mxu1 %vm396_vm1, %v1890_v17 }
  0x20   :  { %82 = vst.msk [vmem:[#allocation2 + $0x1f0] sm:$0xff] %vm19_vm0, %v1910_v1  ;;  %83 = vst.msk [vmem:[#allocation2 + $0x1f8] sm:$0xff] %vm19_vm0, %v1910_v1 }
  0x26   :  { %1816 = vmatmul.mubr.msk.bf16.gmra.mrb[12].mxu0 %vm396_vm1, %v1891_v18  ;;  %1848 = vmatmul.mubr.msk.bf16.gmra.mrb[12].mxu1 %vm396_vm1, %v1892_v19 }
  0x27   :  { %1819 = vmatprep.mubr.msk.bf16.mxu0 %vm396_vm1, %v1893_v20  ;;  %1851 = vmatprep.mubr.msk.bf16.mxu1 %vm396_vm1, %v1894_v21 }
  0x2e   :  { %1820 = vmatmul.mubr.msk.bf16.gmra.mrb[16].mxu0 %vm396_vm1, %v1895_v22  ;;  %1852 = vmatmul.mubr.msk.bf16.gmra.mrb[16].mxu1 %vm396_vm1, %v1896_v23 }
  0x2f   :  { %1823 = vmatprep.mubr.msk.bf16.mxu0 %vm396_vm1, %v1897_v24  ;;  %1855 = vmatprep.mubr.msk.bf16.mxu1 %vm396_vm1, %v1898_v25 }
  0x36   :  { %1824 = vmatmul.mubr.msk.bf16.gmra.mrb[20].mxu0 %vm396_vm1, %v1899_v26  ;;  %1856 = vmatmul.mubr.msk.bf16.gmra.mrb[20].mxu1 %vm396_vm1, %v1900_v27 }
  0x37   :  { %1827 = vmatprep.mubr.msk.bf16.mxu0 %vm396_vm1, %v1901_v28  ;;  %1859 = vmatprep.mubr.msk.bf16.mxu1 %vm396_vm1, %v1902_v29 }
  0x3e   :  { %1828 = vmatmul.mubr.msk.bf16.gmra.mrb[24].mxu0 %vm396_vm1, %v1903_v30  ;;  %1860 = vmatmul.mubr.msk.bf16.gmra.mrb[24].mxu1 %vm396_vm1, %v1904_v31 }
  0x3f   :  { %1831 = vmatprep.mubr.msk.bf16.mxu0 %vm396_vm1, %v1905_v32  ;;  %1863 = vmatprep.mubr.msk.bf16.mxu1 %vm396_vm1, %v1906_v33 }
  0x46   :  { %1832 = vmatmul.mubr.msk.bf16.gmra.mrb[28].mxu0 %vm396_vm1, %v1907_v34  ;;  %1864 = vmatmul.mubr.msk.bf16.gmra.mrb[28].mxu1 %vm396_vm1, %v1908_v35 }
  0xe1   :  { %v1805_v40 = vpop.f32.mrb[0].mxu0  ;;  %v1837_v41 = vpop.f32.mrb[0].mxu1 }
  0xe2   :  { %v784_v44 = vadd.f32 %v1805_v40, %v86_v36  ;;  %v816_v45 = vadd.f32 %v1837_v41, %v118_v37  ;;  %v527_v46 = vpop.f32.mrb[1].mxu0  ;;  %v655_v47 = vpop.f32.mrb[1].mxu1 }
  0xe3   :  { %v782_v50 = vadd.f32 %v527_v46, %v84_v38  ;;  %v814_v51 = vadd.f32 %v655_v47, %v116_v39  ;;  %v1806_v52 = vpop.f32.mrb[2].mxu0  ;;  %v1838_v53 = vpop.f32.mrb[2].mxu1 }
  0xe4   :  { %849 = vst.msk [vmem:[#allocation2 + $0x10] sm:$0xff] %vm19_vm0, %v784_v44  ;;  %881 = vst.msk [vmem:[#allocation2 + $0x110] sm:$0xff] %vm19_vm0, %v816_v45  ;;  %v785_v54 = vadd.f32 %v1806_v52, %v87_v42  ;;  %v817_v55 = vadd.f32 %v1838_v53, %v119_v43  ;;  %v530_v56 = vpop.f32.mrb[3].mxu0  ;;  %v658_v57 = vpop.f32.mrb[3].mxu1  ;;  %v94_v45 = vld [vmem:[#allocation2 + $0x50] sm:$0xff] }
  0xe5   :  { %847 = vst.msk [vmem:[#allocation2] sm:$0xff] %vm19_vm0, %v782_v50  ;;  %879 = vst.msk [vmem:[#allocation2 + $0x100] sm:$0xff] %vm19_vm0, %v814_v51  ;;  %v783_v58 = vadd.f32 %v530_v56, %v85_v48  ;;  %v815_v59 = vadd.f32 %v658_v57, %v117_v49 }
  0xe6   :  { %850 = vst.msk [vmem:[#allocation2 + $0x18] sm:$0xff] %vm19_vm0, %v785_v54  ;;  %882 = vst.msk [vmem:[#allocation2 + $0x118] sm:$0xff] %vm19_vm0, %v817_v55 }
  0xe7   :  { %848 = vst.msk [vmem:[#allocation2 + $0x8] sm:$0xff] %vm19_vm0, %v783_v58  ;;  %880 = vst.msk [vmem:[#allocation2 + $0x108] sm:$0xff] %vm19_vm0, %v815_v59 }
  0xe9   :  { %v1809_v1 = vpop.f32.mrb[4].mxu0  ;;  %v1841_v2 = vpop.f32.mrb[4].mxu1 }
  0xea   :  { %v788_v5 = vadd.f32 %v1809_v1, %v90_v60  ;;  %v820_v6 = vadd.f32 %v1841_v2, %v122_v61  ;;  %v543_v7 = vpop.f32.mrb[5].mxu0  ;;  %v671_v8 = vpop.f32.mrb[5].mxu1 }
  0xeb   :  { %v916_v11 = vld [vmem:[#allocation2 + $0x10] sm:$0xff]  ;;  %v786_v13 = vadd.f32 %v543_v7, %v88_v62  ;;  %v818_v14 = vadd.f32 %v671_v8, %v120_v63  ;;  %v1810_v15 = vpop.f32.mrb[6].mxu0  ;;  %v1842_v16 = vpop.f32.mrb[6].mxu1 }
  0xec   :  { %v948_v12 = vld [vmem:[#allocation2 + $0x110] sm:$0xff]  ;;  %v987_v17 = vadd.f32 %v2213_v0, %v916_v11  ;;  %v914_v19 = vld [vmem:[#allocation2] sm:$0xff]  ;;  %853 = vst.msk [vmem:[#allocation2 + $0x30] sm:$0xff] %vm19_vm0, %v788_v5  ;;  %885 = vst.msk [vmem:[#allocation2 + $0x130] sm:$0xff] %vm19_vm0, %v820_v6  ;;  %v789_v21 = vadd.f32 %v1810_v15, %v91_v3  ;;  %v821_v22 = vadd.f32 %v1842_v16, %v123_v4  ;;  %v546_v23 = vpop.f32.mrb[7].mxu0  ;;  %v674_v24 = vpop.f32.mrb[7].mxu1 }
  0xed   :  { %v1019_v18 = vadd.f32 %v2213_v0, %v948_v12  ;;  %v946_v20 = vld [vmem:[#allocation2 + $0x100] sm:$0xff]  ;;  %v985_v25 = vadd.f32 %v2213_v0, %v914_v19  ;;  %v917_v27 = vld [vmem:[#allocation2 + $0x18] sm:$0xff]  ;;  %851 = vst.msk [vmem:[#allocation2 + $0x20] sm:$0xff] %vm19_vm0, %v786_v13  ;;  %883 = vst.msk [vmem:[#allocation2 + $0x120] sm:$0xff] %vm19_vm0, %v818_v14  ;;  %v787_v29 = vadd.f32 %v546_v23, %v89_v9 }
  0xee   :  { %v1017_v26 = vadd.f32 %v2213_v0, %v946_v20  ;;  %v949_v28 = vld [vmem:[#allocation2 + $0x118] sm:$0xff]  ;;  %v819_v30 = vadd.f32 %v674_v24, %v121_v10  ;;  %vm1051_vm3 = vcmp.ge.f32.partialorder %v987_v17, 0.0  ;;  %v1115_v31 = vmul.f32 0.2, %v987_v17  ;;  %854 = vst.msk [vmem:[#allocation2 + $0x38] sm:$0xff] %vm19_vm0, %v789_v21  ;;  %886 = vst.msk [vmem:[#allocation2 + $0x138] sm:$0xff] %vm19_vm0, %v821_v22 }
  0xef   :  { %vm1083_vm4 = vcmp.ge.f32.partialorder %v1019_v18, 0.0  ;;  %v1147_v32 = vmul.f32 0.2, %v1019_v18  ;;  %vm1049_vm5 = vcmp.ge.f32.partialorder %v985_v25, 0.0  ;;  %v1113_v33 = vmul.f32 0.2, %v985_v25 }
  0xf0   :  { %vm1081_vm6 = vcmp.ge.f32.partialorder %v1017_v26, 0.0  ;;  %v1145_v34 = vmul.f32 0.2, %v1017_v26  ;;  %852 = vst.msk [vmem:[#allocation2 + $0x28] sm:$0xff] %vm19_vm0, %v787_v29  ;;  %884 = vst.msk [vmem:[#allocation2 + $0x128] sm:$0xff] %vm19_vm0, %v819_v30  ;;  %v1179_v35 = vsel %vm1051_vm3, %v987_v17, %v1115_v31  ;;  %v988_v37 = vadd.f32 %v2213_v0, %v917_v27  ;;  %v915_v39 = vld [vmem:[#allocation2 + $0x8] sm:$0xff] }
  0xf1   :  { %v1211_v36 = vsel %vm1083_vm4, %v1019_v18, %v1147_v32  ;;  %v1020_v38 = vadd.f32 %v2213_v0, %v949_v28  ;;  %v947_v40 = vld [vmem:[#allocation2 + $0x108] sm:$0xff]  ;;  %v1700_v41 = vpack.c.bf16 %v1179_v35, %v1179_v35  ;;  %v1177_v43 = vsel %vm1049_vm5, %v985_v25, %v1113_v33  ;;  %v1813_v46 = vpop.f32.mrb[8].mxu0  ;;  %v2229_v47 = vpop.f32.mrb[8].mxu1  ;;  %v126_v30 = vld [vmem:[#allocation2 + $0x150] sm:$0xff] }
  0xf2   :  { %v1732_v42 = vpack.c.bf16 %v1211_v36, %v1211_v36  ;;  %v1209_v44 = vsel %vm1081_vm6, %v1017_v26, %v1145_v34  ;;  %v1698_v48 = vpack.c.bf16 %v1177_v43, %v1177_v43  ;;  %vm1052_vm7 = vcmp.ge.f32.partialorder %v988_v37, 0.0  ;;  %v2231_v51 = vpop.f32.mrb[9].mxu0  ;;  %v2233_v52 = vpop.f32.mrb[9].mxu1 }
  0xf3   :  { %v1730_v49 = vpack.c.bf16 %v1209_v44, %v1209_v44  ;;  %v1116_v50 = vmul.f32 0.2, %v988_v37  ;;  %1500 = vst.msk [vmem:[%s2718_s3 + $0x8] sm:$0xf] %vm1497_vm2, %v1700_v41  ;;  %vm1084_vm8 = vcmp.ge.f32.partialorder %v1020_v38, 0.0  ;;  %v986_v54 = vadd.f32 %v2213_v0, %v915_v39  ;;  %v920_v56 = vld [vmem:[#allocation2 + $0x30] sm:$0xff] }
  0xf4   :  { %1532 = vst.msk [vmem:[%s2718_s3 + $0x88] sm:$0xf] %vm1497_vm2, %v1732_v42  ;;  %v1148_v53 = vmul.f32 0.2, %v1020_v38  ;;  %v1018_v55 = vadd.f32 %v2213_v0, %v947_v40  ;;  %v952_v57 = vld [vmem:[#allocation2 + $0x130] sm:$0xff]  ;;  %v2245_v58 = vpop.f32.mrb[10].mxu0  ;;  %v991_v60 = vadd.f32 %v2213_v0, %v920_v56  ;;  %v792_v62 = vadd.f32 %v1813_v46, %v94_v45 }
  0xf5   :  { %1498 = vst.msk [vmem:[%s2718_s3] sm:$0xf] %vm1497_vm2, %v1698_v48  ;;  %1530 = vst.msk [vmem:[%s2718_s3 + $0x80] sm:$0xf] %vm1497_vm2, %v1730_v49  ;;  %v1180_v59 = vsel %vm1052_vm7, %v988_v37, %v1116_v50  ;;  %v1023_v61 = vadd.f32 %v2213_v0, %v952_v57  ;;  %v2257_v63 = vpop.f32.mrb[10].mxu1  ;;  %v2259_v1 = vpop.f32.mrb[11].mxu0  ;;  %v824_v46 = vadd.f32 %v2229_v47, %v126_v30 }
  0xf6   :  { %v1701_v2 = vpack.c.bf16 %v1180_v59, %v1180_v59  ;;  %v1212_v3 = vsel %vm1084_vm8, %v1020_v38, %v1148_v53  ;;  %vm1050_vm9 = vcmp.ge.f32.partialorder %v986_v54, 0.0  ;;  %v1114_v4 = vmul.f32 0.2, %v986_v54  ;;  %v918_v5 = vld [vmem:[#allocation2 + $0x20] sm:$0xff]  ;;  %v2262_v7 = vpop.f32.mrb[11].mxu1  ;;  %v921_v10 = vld [vmem:[#allocation2 + $0x38] sm:$0xff] }
  0xf7   :  { %v950_v6 = vld [vmem:[#allocation2 + $0x120] sm:$0xff]  ;;  %v1733_v8 = vpack.c.bf16 %v1212_v3, %v1212_v3  ;;  %vm1082_vm10 = vcmp.ge.f32.partialorder %v1018_v55, 0.0  ;;  %v1146_v9 = vmul.f32 0.2, %v1018_v55  ;;  %vm1055_vm11 = vcmp.ge.f32.partialorder %v991_v60, 0.0  ;;  %857 = vst.msk [vmem:[#allocation2 + $0x50] sm:$0xff] %vm19_vm0, %v792_v62 }
  0xf8   :  { %1501 = vst.msk [vmem:[%s2718_s3 + $0xc] sm:$0xf] %vm1497_vm2, %v1701_v2  ;;  %v1178_v11 = vsel %vm1050_vm9, %v986_v54, %v1114_v4  ;;  %v1119_v12 = vmul.f32 0.2, %v991_v60  ;;  %vm1087_vm12 = vcmp.ge.f32.partialorder %v1023_v61, 0.0  ;;  %v989_v16 = vadd.f32 %v2213_v0, %v918_v5  ;;  %v953_v22 = vld [vmem:[#allocation2 + $0x138] sm:$0xff] }
  0xf9   :  { %v1151_v13 = vmul.f32 0.2, %v1023_v61  ;;  %1533 = vst.msk [vmem:[%s2718_s3 + $0x8c] sm:$0xf] %vm1497_vm2, %v1733_v8  ;;  %v1699_v14 = vpack.c.bf16 %v1178_v11, %v1178_v11  ;;  %v1210_v15 = vsel %vm1082_vm10, %v1018_v55, %v1146_v9  ;;  %v1021_v17 = vadd.f32 %v2213_v0, %v950_v6  ;;  %v919_v23 = vld [vmem:[#allocation2 + $0x28] sm:$0xff]  ;;  %v2276_v25 = vpop.f32.mrb[12].mxu0 }
  0xfa   :  { %v1731_v18 = vpack.c.bf16 %v1210_v15, %v1210_v15  ;;  %v1183_v19 = vsel %vm1055_vm11, %v991_v60, %v1119_v12  ;;  %v992_v21 = vadd.f32 %v2213_v0, %v921_v10  ;;  %v951_v24 = vld [vmem:[#allocation2 + $0x128] sm:$0xff]  ;;  %v2278_v26 = vpop.f32.mrb[12].mxu1  ;;  %vm1053_vm13 = vcmp.ge.f32.partialorder %v989_v16, 0.0  ;;  %v2284_v31 = vpop.f32.mrb[13].mxu0  ;;  %v92_v39 = vld [vmem:[#allocation2 + $0x40] sm:$0xff]  ;;  %v95_v49 = vld [vmem:[#allocation2 + $0x58] sm:$0xff] }
  0xfb   :  { %v1215_v20 = vsel %vm1087_vm12, %v1023_v61, %v1151_v13  ;;  %1499 = vst.msk [vmem:[%s2718_s3 + $0x4] sm:$0xf] %vm1497_vm2, %v1699_v14  ;;  %v1704_v27 = vpack.c.bf16 %v1183_v19, %v1183_v19  ;;  %v1117_v29 = vmul.f32 0.2, %v989_v16  ;;  %v2286_v32 = vpop.f32.mrb[13].mxu1  ;;  %vm1085_vm14 = vcmp.ge.f32.partialorder %v1021_v17, 0.0 }
  0xfc   :  { %v1736_v28 = vpack.c.bf16 %v1215_v20, %v1215_v20  ;;  %1531 = vst.msk [vmem:[%s2718_s3 + $0x84] sm:$0xf] %vm1497_vm2, %v1731_v18  ;;  %v1149_v33 = vmul.f32 0.2, %v1021_v17  ;;  %vm1056_vm15 = vcmp.ge.f32.partialorder %v992_v21, 0.0  ;;  %v1024_v36 = vadd.f32 %v2213_v0, %v953_v22  ;;  %v2303_v40 = vpop.f32.mrb[14].mxu0 }
  0xfd   :  { %v1120_v34 = vmul.f32 0.2, %v992_v21  ;;  %1504 = vst.msk [vmem:[%s2718_s3 + $0x18] sm:$0xf] %vm1497_vm2, %v1704_v27  ;;  %v1181_v35 = vsel %vm1053_vm13, %v989_v16, %v1117_v29  ;;  %v990_v37 = vadd.f32 %v2213_v0, %v919_v23  ;;  %v1022_v38 = vadd.f32 %v2213_v0, %v951_v24  ;;  %v2305_v41 = vpop.f32.mrb[14].mxu1  ;;  %v124_v48 = vld [vmem:[#allocation2 + $0x140] sm:$0xff] }
  0xfe   :  { %1536 = vst.msk [vmem:[%s2718_s3 + $0x98] sm:$0xf] %vm1497_vm2, %v1736_v28  ;;  %v1702_v42 = vpack.c.bf16 %v1181_v35, %v1181_v35  ;;  %v1213_v43 = vsel %vm1085_vm14, %v1021_v17, %v1149_v33  ;;  %v924_v45 = vld [vmem:[#allocation2 + $0x50] sm:$0xff]  ;;  %v2308_v50 = vpop.f32.mrb[15].mxu0  ;;  %v2310_v53 = vpop.f32.mrb[15].mxu1  ;;  %vm1088_vm1 = vcmp.ge.f32.partialorder %v1024_v36, 0.0  ;;  %v790_v4 = vadd.f32 %v2231_v51, %v92_v39 }
  0xff   :  { %v1184_v44 = vsel %vm1056_vm15, %v992_v21, %v1120_v34  ;;  %v1734_v54 = vpack.c.bf16 %v1213_v43, %v1213_v43  ;;  %v1152_v56 = vmul.f32 0.2, %v1024_v36  ;;  %v127_v57 = vld [vmem:[#allocation2 + $0x158] sm:$0xff]  ;;  %v93_v59 = vld [vmem:[#allocation2 + $0x48] sm:$0xff]  ;;  %v98_v61 = vld [vmem:[#allocation2 + $0x70] sm:$0xff]  ;;  %vm1054_vm3 = vcmp.ge.f32.partialorder %v990_v37, 0.0 }
 0x100   :  { %v1705_v55 = vpack.c.bf16 %v1184_v44, %v1184_v44  ;;  %v125_v60 = vld [vmem:[#allocation2 + $0x148] sm:$0xff]  ;;  %1502 = vst.msk [vmem:[%s2718_s3 + $0x10] sm:$0xf] %vm1497_vm2, %v1702_v42  ;;  %v1118_v47 = vmul.f32 0.2, %v990_v37  ;;  %vm1086_vm4 = vcmp.ge.f32.partialorder %v1022_v38, 0.0  ;;  %v995_v3 = vadd.f32 %v2213_v0, %v924_v45 }
 0x101   :  { %v1150_v62 = vmul.f32 0.2, %v1022_v38  ;;  %889 = vst.msk [vmem:[#allocation2 + $0x150] sm:$0xff] %vm19_vm0, %v824_v46  ;;  %v1216_v2 = vsel %vm1088_vm1, %v1024_v36, %v1152_v56  ;;  %v822_v5 = vadd.f32 %v2233_v52, %v124_v48  ;;  %v130_v6 = vld [vmem:[#allocation2 + $0x170] sm:$0xff]  ;;  %v96_v8 = vld [vmem:[#allocation2 + $0x60] sm:$0xff]  ;;  %v793_v13 = vadd.f32 %v2245_v58, %v95_v49  ;;  %v99_v14 = vld [vmem:[#allocation2 + $0x78] sm:$0xff] }
 0x102   :  { %1534 = vst.msk [vmem:[%s2718_s3 + $0x90] sm:$0xf] %vm1497_vm2, %v1734_v54  ;;  %1505 = vst.msk [vmem:[%s2718_s3 + $0x1c] sm:$0xf] %vm1497_vm2, %v1705_v55  ;;  %v128_v9 = vld [vmem:[#allocation2 + $0x160] sm:$0xff]  ;;  %v1737_v10 = vpack.c.bf16 %v1216_v2, %v1216_v2  ;;  %v1182_v11 = vsel %vm1054_vm3, %v990_v37, %v1118_v47  ;;  %v131_v15 = vld [vmem:[#allocation2 + $0x178] sm:$0xff]  ;;  %v825_v58 = vadd.f32 %v2257_v63, %v127_v57 }
 0x103   :  { %v1214_v12 = vsel %vm1086_vm4, %v1022_v38, %v1150_v62  ;;  %v97_v16 = vld [vmem:[#allocation2 + $0x68] sm:$0xff]  ;;  %v1821_v17 = vpop.f32.mrb[16].mxu0  ;;  %v1853_v18 = vpop.f32.mrb[16].mxu1  ;;  %v1703_v19 = vpack.c.bf16 %v1182_v11, %v1182_v11  ;;  %vm1059_vm5 = vcmp.ge.f32.partialorder %v995_v3, 0.0  ;;  %v1123_v21 = vmul.f32 0.2, %v995_v3 }
 0x104   :  { %v1735_v20 = vpack.c.bf16 %v1214_v12, %v1214_v12  ;;  %855 = vst.msk [vmem:[#allocation2 + $0x40] sm:$0xff] %vm19_vm0, %v790_v4  ;;  %887 = vst.msk [vmem:[#allocation2 + $0x140] sm:$0xff] %vm19_vm0, %v822_v5  ;;  %v129_v51 = vld [vmem:[#allocation2 + $0x168] sm:$0xff]  ;;  %v591_v52 = vpop.f32.mrb[17].mxu0  ;;  %v719_v22 = vpop.f32.mrb[17].mxu1  ;;  %v791_v23 = vadd.f32 %v2259_v1, %v93_v59  ;;  %v823_v24 = vadd.f32 %v2262_v7, %v125_v60  ;;  %v102_v28 = vld [vmem:[#allocation2 + $0x90] sm:$0xff] }
 0x105   :  { %1537 = vst.msk [vmem:[%s2718_s3 + $0x9c] sm:$0xf] %vm1497_vm2, %v1737_v10  ;;  %v796_v27 = vadd.f32 %v2276_v25, %v98_v61  ;;  %v134_v29 = vld [vmem:[#allocation2 + $0x190] sm:$0xff]  ;;  %v100_v30 = vld [vmem:[#allocation2 + $0x80] sm:$0xff]  ;;  %v1822_v33 = vpop.f32.mrb[18].mxu0  ;;  %v1854_v34 = vpop.f32.mrb[18].mxu1  ;;  %v1187_v63 = vsel %vm1059_vm5, %v995_v3, %v1123_v21  ;;  %v828_v1 = vadd.f32 %v2278_v26, %v130_v6  ;;  %v794_v7 = vadd.f32 %v2284_v31, %v96_v8 }
 0x106   :  { %858 = vst.msk [vmem:[#allocation2 + $0x58] sm:$0xff] %vm19_vm0, %v793_v13  ;;  %v826_v25 = vadd.f32 %v2286_v32, %v128_v9  ;;  %v132_v35 = vld [vmem:[#allocation2 + $0x180] sm:$0xff]  ;;  %v103_v36 = vld [vmem:[#allocation2 + $0x98] sm:$0xff]  ;;  %v594_v38 = vpop.f32.mrb[19].mxu0  ;;  %v722_v39 = vpop.f32.mrb[19].mxu1  ;;  %v1708_v42 = vpack.c.bf16 %v1187_v63, %v1187_v63  ;;  %890 = vst.msk [vmem:[#allocation2 + $0x158] sm:$0xff] %vm19_vm0, %v825_v58  ;;  %v797_v26 = vadd.f32 %v2303_v40, %v99_v14 }
 0x107   :  { %1503 = vst.msk [vmem:[%s2718_s3 + $0x14] sm:$0xf] %vm1497_vm2, %v1703_v19  ;;  %1535 = vst.msk [vmem:[%s2718_s3 + $0x94] sm:$0xf] %vm1497_vm2, %v1735_v20  ;;  %v135_v37 = vld [vmem:[#allocation2 + $0x198] sm:$0xff]  ;;  %v829_v31 = vadd.f32 %v2305_v41, %v131_v15  ;;  %v795_v32 = vadd.f32 %v2308_v50, %v97_v16  ;;  %v101_v43 = vld [vmem:[#allocation2 + $0x88] sm:$0xff]  ;;  %v827_v46 = vadd.f32 %v2310_v53, %v129_v51 }
 0x108   :  { %856 = vst.msk [vmem:[#allocation2 + $0x48] sm:$0xff] %vm19_vm0, %v791_v23  ;;  %888 = vst.msk [vmem:[#allocation2 + $0x148] sm:$0xff] %vm19_vm0, %v823_v24  ;;  %v133_v44 = vld [vmem:[#allocation2 + $0x188] sm:$0xff]  ;;  %v956_v45 = vld [vmem:[#allocation2 + $0x150] sm:$0xff]  ;;  %v800_v48 = vadd.f32 %v1821_v17, %v102_v28  ;;  %v832_v49 = vadd.f32 %v1853_v18, %v134_v29  ;;  %v798_v54 = vadd.f32 %v591_v52, %v100_v30 }
 0x109   :  { %861 = vst.msk [vmem:[#allocation2 + $0x70] sm:$0xff] %vm19_vm0, %v796_v27  ;;  %893 = vst.msk [vmem:[#allocation2 + $0x170] sm:$0xff] %vm19_vm0, %v828_v1  ;;  %v1027_v40 = vadd.f32 %v2213_v0, %v956_v45  ;;  %v830_v41 = vadd.f32 %v719_v22, %v132_v35  ;;  %v801_v50 = vadd.f32 %v1822_v33, %v103_v36  ;;  %v106_v53 = vld [vmem:[#allocation2 + $0xb0] sm:$0xff]  ;;  %v104_v60 = vld [vmem:[#allocation2 + $0xa0] sm:$0xff]  ;;  %v1825_v2 = vpop.f32.mrb[20].mxu0  ;;  %v1857_v8 = vpop.f32.mrb[20].mxu1 }
 0x10a   :  { %859 = vst.msk [vmem:[#allocation2 + $0x60] sm:$0xff] %vm19_vm0, %v794_v7  ;;  %891 = vst.msk [vmem:[#allocation2 + $0x160] sm:$0xff] %vm19_vm0, %v826_v25  ;;  %v833_v55 = vadd.f32 %v1854_v34, %v135_v37  ;;  %v799_v56 = vadd.f32 %v594_v38, %v101_v43  ;;  %v831_v57 = vadd.f32 %v722_v39, %v133_v44  ;;  %v138_v59 = vld [vmem:[#allocation2 + $0x1b0] sm:$0xff]  ;;  %v607_v9 = vpop.f32.mrb[21].mxu0  ;;  %v136_v14 = vld [vmem:[#allocation2 + $0x1a0] sm:$0xff]  ;;  %v735_v15 = vpop.f32.mrb[21].mxu1 }
 0x10b   :  { %1508 = vst.msk [vmem:[%s2718_s3 + $0x28] sm:$0xf] %vm1497_vm2, %v1708_v42  ;;  %vm1091_vm6 = vcmp.ge.f32.partialorder %v1027_v40, 0.0  ;;  %v1155_v61 = vmul.f32 0.2, %v1027_v40  ;;  %v922_v47 = vld [vmem:[#allocation2 + $0x40] sm:$0xff]  ;;  %v804_v6 = vadd.f32 %v1825_v2, %v106_v53  ;;  %v836_v12 = vadd.f32 %v1857_v8, %v138_v59 }
 0x10c   :  { %862 = vst.msk [vmem:[#allocation2 + $0x78] sm:$0xff] %vm19_vm0, %v797_v26  ;;  %894 = vst.msk [vmem:[#allocation2 + $0x178] sm:$0xff] %vm19_vm0, %v829_v31  ;;  %v954_v62 = vld [vmem:[#allocation2 + $0x140] sm:$0xff]  ;;  %v993_v3 = vadd.f32 %v2213_v0, %v922_v47  ;;  %v802_v13 = vadd.f32 %v607_v9, %v104_v60  ;;  %v2384_v16 = vpop.f32.mrb[22].mxu0  ;;  %v834_v28 = vadd.f32 %v735_v15, %v136_v14  ;;  %v2396_v29 = vpop.f32.mrb[22].mxu1 }
 0x10d   :  { %860 = vst.msk [vmem:[#allocation2 + $0x68] sm:$0xff] %vm19_vm0, %v795_v32  ;;  %892 = vst.msk [vmem:[#allocation2 + $0x168] sm:$0xff] %vm19_vm0, %v827_v46  ;;  %v1025_v4 = vadd.f32 %v2213_v0, %v954_v62  ;;  %v925_v5 = vld [vmem:[#allocation2 + $0x58] sm:$0xff]  ;;  %v1219_v10 = vsel %vm1091_vm6, %v1027_v40, %v1155_v61  ;;  %v2398_v30 = vpop.f32.mrb[23].mxu0  ;;  %v2402_v35 = vpop.f32.mrb[23].mxu1 }
 0x10e   :  { %865 = vst.msk [vmem:[#allocation2 + $0x90] sm:$0xff] %vm19_vm0, %v800_v48  ;;  %897 = vst.msk [vmem:[#allocation2 + $0x190] sm:$0xff] %vm19_vm0, %v832_v49  ;;  %v996_v11 = vadd.f32 %v2213_v0, %v925_v5  ;;  %v1740_v17 = vpack.c.bf16 %v1219_v10, %v1219_v10  ;;  %vm1057_vm7 = vcmp.ge.f32.partialorder %v993_v3, 0.0  ;;  %v1121_v18 = vmul.f32 0.2, %v993_v3  ;;  %v957_v19 = vld [vmem:[#allocation2 + $0x158] sm:$0xff] }
 0x10f   :  { %863 = vst.msk [vmem:[#allocation2 + $0x80] sm:$0xff] %vm19_vm0, %v798_v54  ;;  %895 = vst.msk [vmem:[#allocation2 + $0x180] sm:$0xff] %vm19_vm0, %v830_v41  ;;  %vm1089_vm8 = vcmp.ge.f32.partialorder %v1025_v4, 0.0  ;;  %v923_v20 = vld [vmem:[#allocation2 + $0x48] sm:$0xff]  ;;  %v1153_v21 = vmul.f32 0.2, %v1025_v4  ;;  %v1028_v52 = vadd.f32 %v2213_v0, %v957_v19 }
 0x110   :  { %866 = vst.msk [vmem:[#allocation2 + $0x98] sm:$0xff] %vm19_vm0, %v801_v50  ;;  %898 = vst.msk [vmem:[#allocation2 + $0x198] sm:$0xff] %vm19_vm0, %v833_v55  ;;  %vm1060_vm9 = vcmp.ge.f32.partialorder %v996_v11, 0.0  ;;  %v1124_v51 = vmul.f32 0.2, %v996_v11  ;;  %v955_v22 = vld [vmem:[#allocation2 + $0x148] sm:$0xff]  ;;  %v1185_v58 = vsel %vm1057_vm7, %v993_v3, %v1121_v18  ;;  %v994_v23 = vadd.f32 %v2213_v0, %v923_v20 }
 0x111   :  { %864 = vst.msk [vmem:[#allocation2 + $0x88] sm:$0xff] %vm19_vm0, %v799_v56  ;;  %896 = vst.msk [vmem:[#allocation2 + $0x188] sm:$0xff] %vm19_vm0, %v831_v57  ;;  %v1026_v24 = vadd.f32 %v2213_v0, %v955_v22  ;;  %v928_v27 = vld [vmem:[#allocation2 + $0x70] sm:$0xff]  ;;  %v1706_v33 = vpack.c.bf16 %v1185_v58, %v1185_v58  ;;  %v1217_v34 = vsel %vm1089_vm8, %v1025_v4, %v1153_v21  ;;  %vm1092_vm10 = vcmp.ge.f32.partialorder %v1028_v52, 0.0  ;;  %v926_v7 = vld [vmem:[#allocation2 + $0x60] sm:$0xff]  ;;  %v2422_v45 = vpop.f32.mrb[24].mxu0 }
 0x112   :  { %869 = vst.msk [vmem:[#allocation2 + $0xb0] sm:$0xff] %vm19_vm0, %v804_v6  ;;  %901 = vst.msk [vmem:[#allocation2 + $0x1b0] sm:$0xff] %vm19_vm0, %v836_v12  ;;  %v1188_v63 = vsel %vm1060_vm9, %v996_v11, %v1124_v51  ;;  %v960_v1 = vld [vmem:[#allocation2 + $0x170] sm:$0xff]  ;;  %v958_v25 = vld [vmem:[#allocation2 + $0x160] sm:$0xff]  ;;  %v1738_v36 = vpack.c.bf16 %v1217_v34, %v1217_v34  ;;  %v1156_v38 = vmul.f32 0.2, %v1028_v52  ;;  %v999_v26 = vadd.f32 %v2213_v0, %v928_v27 }
 0x113   :  { %867 = vst.msk [vmem:[#allocation2 + $0xa0] sm:$0xff] %vm19_vm0, %v802_v13  ;;  %v1709_v37 = vpack.c.bf16 %v1188_v63, %v1188_v63  ;;  %vm1058_vm11 = vcmp.ge.f32.partialorder %v994_v23, 0.0  ;;  %899 = vst.msk [vmem:[#allocation2 + $0x1a0] sm:$0xff] %vm19_vm0, %v834_v28  ;;  %v1122_v39 = vmul.f32 0.2, %v994_v23  ;;  %vm1090_vm12 = vcmp.ge.f32.partialorder %v1026_v24, 0.0 }
 0x114   :  { %1540 = vst.msk [vmem:[%s2718_s3 + $0xa8] sm:$0xf] %vm1497_vm2, %v1740_v17  ;;  %1506 = vst.msk [vmem:[%s2718_s3 + $0x20] sm:$0xf] %vm1497_vm2, %v1706_v33  ;;  %v1154_v42 = vmul.f32 0.2, %v1026_v24  ;;  %v1220_v31 = vsel %vm1092_vm10, %v1028_v52, %v1156_v38  ;;  %v1031_v32 = vadd.f32 %v2213_v0, %v960_v1  ;;  %v997_v43 = vadd.f32 %v2213_v0, %v926_v7 }
 0x115   :  { %1538 = vst.msk [vmem:[%s2718_s3 + $0xa0] sm:$0xf] %vm1497_vm2, %v1738_v36  ;;  %1509 = vst.msk [vmem:[%s2718_s3 + $0x2c] sm:$0xf] %vm1497_vm2, %v1709_v37  ;;  %v1029_v44 = vadd.f32 %v2213_v0, %v958_v25  ;;  %v2424_v46 = vpop.f32.mrb[24].mxu1  ;;  %v1741_v48 = vpack.c.bf16 %v1220_v31, %v1220_v31  ;;  %v1186_v49 = vsel %vm1058_vm11, %v994_v23, %v1122_v39  ;;  %vm1063_vm13 = vcmp.ge.f32.partialorder %v999_v26, 0.0 }
 0x116   :  { %v1218_v54 = vsel %vm1090_vm12, %v1026_v24, %v1154_v42  ;;  %v929_v40 = vld [vmem:[#allocation2 + $0x78] sm:$0xff]  ;;  %v2427_v50 = vpop.f32.mrb[25].mxu0  ;;  %v2429_v55 = vpop.f32.mrb[25].mxu1  ;;  %v1707_v53 = vpack.c.bf16 %v1186_v49, %v1186_v49  ;;  %v1127_v57 = vmul.f32 0.2, %v999_v26  ;;  %vm1095_vm14 = vcmp.ge.f32.partialorder %v1031_v32, 0.0 }
 0x117   :  { %v961_v41 = vld [vmem:[#allocation2 + $0x178] sm:$0xff]  ;;  %v1739_v56 = vpack.c.bf16 %v1218_v54, %v1218_v54  ;;  %v927_v59 = vld [vmem:[#allocation2 + $0x68] sm:$0xff]  ;;  %1541 = vst.msk [vmem:[%s2718_s3 + $0xac] sm:$0xf] %vm1497_vm2, %v1741_v48  ;;  %v1159_v60 = vmul.f32 0.2, %v1031_v32  ;;  %v1000_v2 = vadd.f32 %v2213_v0, %v929_v40 }
 0x118   :  { %vm1061_vm15 = vcmp.ge.f32.partialorder %v997_v43, 0.0  ;;  %v1125_v61 = vmul.f32 0.2, %v997_v43  ;;  %vm1093_vm1 = vcmp.ge.f32.partialorder %v1029_v44, 0.0  ;;  %1507 = vst.msk [vmem:[%s2718_s3 + $0x24] sm:$0xf] %vm1497_vm2, %v1707_v53  ;;  %v1191_v47 = vsel %vm1063_vm13, %v999_v26, %v1127_v57 }
 0x119   :  { %1539 = vst.msk [vmem:[%s2718_s3 + $0xa4] sm:$0xf] %vm1497_vm2, %v1739_v56  ;;  %v1157_v62 = vmul.f32 0.2, %v1029_v44  ;;  %v1032_v3 = vadd.f32 %v2213_v0, %v961_v41  ;;  %v2446_v4 = vpop.f32.mrb[26].mxu0  ;;  %v2448_v5 = vpop.f32.mrb[26].mxu1  ;;  %v1712_v6 = vpack.c.bf16 %v1191_v47, %v1191_v47  ;;  %v1223_v8 = vsel %vm1095_vm14, %v1031_v32, %v1159_v60 }
 0x11a   :  { %v1189_v9 = vsel %vm1061_vm15, %v997_v43, %v1125_v61  ;;  %v998_v10 = vadd.f32 %v2213_v0, %v927_v59  ;;  %v959_v11 = vld [vmem:[#allocation2 + $0x168] sm:$0xff]  ;;  %v932_v12 = vld [vmem:[#allocation2 + $0x90] sm:$0xff]  ;;  %v2452_v13 = vpop.f32.mrb[27].mxu0  ;;  %v2454_v14 = vpop.f32.mrb[27].mxu1  ;;  %v1744_v15 = vpack.c.bf16 %v1223_v8, %v1223_v8  ;;  %vm1064_vm3 = vcmp.ge.f32.partialorder %v1000_v2, 0.0  ;;  %v930_v20 = vld [vmem:[#allocation2 + $0x80] sm:$0xff] }
 0x11b   :  { %v1710_v17 = vpack.c.bf16 %v1189_v9, %v1189_v9  ;;  %v1221_v18 = vsel %vm1093_vm1, %v1029_v44, %v1157_v62  ;;  %v964_v19 = vld [vmem:[#allocation2 + $0x190] sm:$0xff]  ;;  %1512 = vst.msk [vmem:[%s2718_s3 + $0x38] sm:$0xf] %vm1497_vm2, %v1712_v6  ;;  %v1128_v51 = vmul.f32 0.2, %v1000_v2  ;;  %vm1096_vm4 = vcmp.ge.f32.partialorder %v1032_v3, 0.0 }
 0x11c   :  { %v1742_v21 = vpack.c.bf16 %v1221_v18, %v1221_v18  ;;  %v1160_v52 = vmul.f32 0.2, %v1032_v3  ;;  %v2461_v22 = vpop.f32.mrb[28].mxu0  ;;  %1544 = vst.msk [vmem:[%s2718_s3 + $0xb8] sm:$0xf] %vm1497_vm2, %v1744_v15  ;;  %vm1062_vm5 = vcmp.ge.f32.partialorder %v998_v10, 0.0  ;;  %v1030_v23 = vadd.f32 %v2213_v0, %v959_v11 }
 0x11d   :  { %1510 = vst.msk [vmem:[%s2718_s3 + $0x30] sm:$0xf] %vm1497_vm2, %v1710_v17  ;;  %v1126_v58 = vmul.f32 0.2, %v998_v10  ;;  %v1003_v24 = vadd.f32 %v2213_v0, %v932_v12  ;;  %v2473_v27 = vpop.f32.mrb[28].mxu1  ;;  %v2475_v28 = vpop.f32.mrb[29].mxu0  ;;  %v1192_v33 = vsel %vm1064_vm3, %v1000_v2, %v1128_v51  ;;  %v1035_v63 = vadd.f32 %v2213_v0, %v964_v19 }
 0x11e   :  { %1542 = vst.msk [vmem:[%s2718_s3 + $0xb0] sm:$0xf] %vm1497_vm2, %v1742_v21  ;;  %v1224_v34 = vsel %vm1096_vm4, %v1032_v3, %v1160_v52  ;;  %v1001_v1 = vadd.f32 %v2213_v0, %v930_v20  ;;  %v2484_v7 = vpop.f32.mrb[29].mxu1  ;;  %v2486_v25 = vpop.f32.mrb[30].mxu0  ;;  %v1713_v36 = vpack.c.bf16 %v1192_v33, %v1192_v33  ;;  %vm1094_vm6 = vcmp.ge.f32.partialorder %v1030_v23, 0.0  ;;  %v962_v39 = vld [vmem:[#allocation2 + $0x180] sm:$0xff] }
 0x11f   :  { %v1745_v37 = vpack.c.bf16 %v1224_v34, %v1224_v34  ;;  %v1190_v38 = vsel %vm1062_vm5, %v998_v10, %v1126_v58  ;;  %v933_v42 = vld [vmem:[#allocation2 + $0x98] sm:$0xff]  ;;  %v2488_v26 = vpop.f32.mrb[30].mxu1  ;;  %v2490_v31 = vpop.f32.mrb[31].mxu0  ;;  %v1158_v43 = vmul.f32 0.2, %v1030_v23  ;;  %vm1067_vm7 = vcmp.ge.f32.partialorder %v1003_v24, 0.0 }
 0x120   :  { %v1711_v32 = vpack.c.bf16 %v1190_v38, %v1190_v38  ;;  %v1131_v44 = vmul.f32 0.2, %v1003_v24  ;;  %v2492_v48 = vpop.f32.mrb[31].mxu1  ;;  %1513 = vst.msk [vmem:[%s2718_s3 + $0x3c] sm:$0xf] %vm1497_vm2, %v1713_v36  ;;  %vm1099_vm8 = vcmp.ge.f32.partialorder %v1035_v63, 0.0  ;;  %v1033_v53 = vadd.f32 %v2213_v0, %v962_v39 }
 0x121   :  { %1545 = vst.msk [vmem:[%s2718_s3 + $0xbc] sm:$0xf] %vm1497_vm2, %v1745_v37  ;;  %v1163_v49 = vmul.f32 0.2, %v1035_v63  ;;  %vm1065_vm9 = vcmp.ge.f32.partialorder %v1001_v1, 0.0  ;;  %v1222_v40 = vsel %vm1094_vm6, %v1030_v23, %v1158_v43  ;;  %v1004_v56 = vadd.f32 %v2213_v0, %v933_v42  ;;  %v965_v57 = vld [vmem:[#allocation2 + $0x198] sm:$0xff] }
 0x122   :  { %v1129_v54 = vmul.f32 0.2, %v1001_v1  ;;  %1511 = vst.msk [vmem:[%s2718_s3 + $0x34] sm:$0xf] %vm1497_vm2, %v1711_v32  ;;  %v1195_v41 = vsel %vm1067_vm7, %v1003_v24, %v1131_v44  ;;  %v931_v59 = vld [vmem:[#allocation2 + $0x88] sm:$0xff]  ;;  %v1743_v60 = vpack.c.bf16 %v1222_v40, %v1222_v40  ;;  %v936_v3 = vld [vmem:[#allocation2 + $0xb0] sm:$0xff]  ;;  %v1036_v12 = vadd.f32 %v2213_v0, %v965_v57 }
 0x123   :  { %v1716_v61 = vpack.c.bf16 %v1195_v41, %v1195_v41  ;;  %v1227_v47 = vsel %vm1099_vm8, %v1035_v63, %v1163_v49  ;;  %v963_v2 = vld [vmem:[#allocation2 + $0x188] sm:$0xff]  ;;  %v968_v6 = vld [vmem:[#allocation2 + $0x1b0] sm:$0xff]  ;;  %vm1097_vm10 = vcmp.ge.f32.partialorder %v1033_v53, 0.0  ;;  %v1161_v10 = vmul.f32 0.2, %v1033_v53  ;;  %v934_v24 = vld [vmem:[#allocation2 + $0xa0] sm:$0xff] }
 0x124   :  { %v1193_v62 = vsel %vm1065_vm9, %v1001_v1, %v1129_v54  ;;  %v1748_v8 = vpack.c.bf16 %v1227_v47, %v1227_v47  ;;  %1543 = vst.msk [vmem:[%s2718_s3 + $0xb4] sm:$0xf] %vm1497_vm2, %v1743_v60  ;;  %vm1068_vm11 = vcmp.ge.f32.partialorder %v1004_v56, 0.0  ;;  %v1132_v11 = vmul.f32 0.2, %v1004_v56  ;;  %v966_v1 = vld [vmem:[#allocation2 + $0x1a0] sm:$0xff] }
 0x125   :  { %v1714_v9 = vpack.c.bf16 %v1193_v62, %v1193_v62  ;;  %1516 = vst.msk [vmem:[%s2718_s3 + $0x48] sm:$0xf] %vm1497_vm2, %v1716_v61  ;;  %v1002_v15 = vadd.f32 %v2213_v0, %v931_v59  ;;  %v1225_v17 = vsel %vm1097_vm10, %v1033_v53, %v1161_v10  ;;  %v1034_v18 = vadd.f32 %v2213_v0, %v963_v2  ;;  %v107_v39 = vld [vmem:[#allocation2 + $0xb8] sm:$0xff]  ;;  %v105_v54 = vld [vmem:[#allocation2 + $0xa8] sm:$0xff]  ;;  %v110_v59 = vld [vmem:[#allocation2 + $0xd0] sm:$0xff] }
 0x126   :  { %1548 = vst.msk [vmem:[%s2718_s3 + $0xc8] sm:$0xf] %vm1497_vm2, %v1748_v8  ;;  %v1007_v19 = vadd.f32 %v2213_v0, %v936_v3  ;;  %v1039_v20 = vadd.f32 %v2213_v0, %v968_v6  ;;  %v1746_v21 = vpack.c.bf16 %v1225_v17, %v1225_v17  ;;  %v1196_v51 = vsel %vm1068_vm11, %v1004_v56, %v1132_v11  ;;  %v139_v49 = vld [vmem:[#allocation2 + $0x1b8] sm:$0xff]  ;;  %v137_v40 = vld [vmem:[#allocation2 + $0x1a8] sm:$0xff]  ;;  %v142_v60 = vld [vmem:[#allocation2 + $0x1d0] sm:$0xff] }
 0x127   :  { %1514 = vst.msk [vmem:[%s2718_s3 + $0x40] sm:$0xf] %vm1497_vm2, %v1714_v9  ;;  %vm1100_vm12 = vcmp.ge.f32.partialorder %v1036_v12, 0.0  ;;  %v1164_v52 = vmul.f32 0.2, %v1036_v12  ;;  %v1717_v58 = vpack.c.bf16 %v1196_v51, %v1196_v51  ;;  %vm1066_vm13 = vcmp.ge.f32.partialorder %v1002_v15, 0.0 }
 0x128   :  { %v1130_v23 = vmul.f32 0.2, %v1002_v15  ;;  %vm1098_vm14 = vcmp.ge.f32.partialorder %v1034_v18, 0.0  ;;  %1546 = vst.msk [vmem:[%s2718_s3 + $0xc0] sm:$0xf] %vm1497_vm2, %v1746_v21  ;;  %vm1071_vm15 = vcmp.ge.f32.partialorder %v1007_v19, 0.0  ;;  %v1005_v44 = vadd.f32 %v2213_v0, %v934_v24 }
 0x129   :  { %v1228_v33 = vsel %vm1100_vm12, %v1036_v12, %v1164_v52  ;;  %v1162_v34 = vmul.f32 0.2, %v1034_v18  ;;  %v1135_v63 = vmul.f32 0.2, %v1007_v19  ;;  %1517 = vst.msk [vmem:[%s2718_s3 + $0x4c] sm:$0xf] %vm1497_vm2, %v1717_v58  ;;  %v1037_v57 = vadd.f32 %v2213_v0, %v966_v1 }
 0x12a   :  { %v1749_v36 = vpack.c.bf16 %v1228_v33, %v1228_v33  ;;  %v1194_v37 = vsel %vm1066_vm13, %v1002_v15, %v1130_v23  ;;  %vm1103_vm1 = vcmp.ge.f32.partialorder %v1039_v20, 0.0  ;;  %v1167_v38 = vmul.f32 0.2, %v1039_v20  ;;  %v108_v61 = vld [vmem:[#allocation2 + $0xc0] sm:$0xff]  ;;  %v111_v6 = vld [vmem:[#allocation2 + $0xd8] sm:$0xff]  ;;  %v141_v11 = vld [vmem:[#allocation2 + $0x1c8] sm:$0xff] }
 0x12b   :  { %v1715_v42 = vpack.c.bf16 %v1194_v37, %v1194_v37  ;;  %v1226_v32 = vsel %vm1098_vm14, %v1034_v18, %v1162_v34  ;;  %v1199_v43 = vsel %vm1071_vm15, %v1007_v19, %v1135_v63  ;;  %vm1069_vm3 = vcmp.ge.f32.partialorder %v1005_v44, 0.0  ;;  %v140_v3 = vld [vmem:[#allocation2 + $0x1c0] sm:$0xff]  ;;  %v143_v8 = vld [vmem:[#allocation2 + $0x1d8] sm:$0xff]  ;;  %v114_v12 = vld [vmem:[#allocation2 + $0xf0] sm:$0xff] }
 0x12c   :  { %1549 = vst.msk [vmem:[%s2718_s3 + $0xcc] sm:$0xf] %vm1497_vm2, %v1749_v36  ;;  %v1747_v41 = vpack.c.bf16 %v1226_v32, %v1226_v32  ;;  %v1720_v53 = vpack.c.bf16 %v1199_v43, %v1199_v43  ;;  %v1231_v56 = vsel %vm1103_vm1, %v1039_v20, %v1167_v38  ;;  %v1133_v62 = vmul.f32 0.2, %v1005_v44  ;;  %v146_v19 = vld [vmem:[#allocation2 + $0x1f0] sm:$0xff]  ;;  %v144_v20 = vld [vmem:[#allocation2 + $0x1e0] sm:$0xff] }
 0x12d   :  { %1515 = vst.msk [vmem:[%s2718_s3 + $0x44] sm:$0xf] %vm1497_vm2, %v1715_v42  ;;  %v1752_v47 = vpack.c.bf16 %v1231_v56, %v1231_v56  ;;  %v805_v2 = vadd.f32 %v2384_v16, %v107_v39  ;;  %vm1101_vm4 = vcmp.ge.f32.partialorder %v1037_v57, 0.0  ;;  %v1165_v0 = vmul.f32 0.2, %v1037_v57  ;;  %v109_v16 = vld [vmem:[#allocation2 + $0xc8] sm:$0xff] }
 0x12e   :  { %1547 = vst.msk [vmem:[%s2718_s3 + $0xc4] sm:$0xf] %vm1497_vm2, %v1747_v41  ;;  %1520 = vst.msk [vmem:[%s2718_s3 + $0x58] sm:$0xf] %vm1497_vm2, %v1720_v53  ;;  %v837_v9 = vadd.f32 %v2396_v29, %v139_v49  ;;  %v803_v10 = vadd.f32 %v2398_v30, %v105_v54  ;;  %v1197_v15 = vsel %vm1069_vm3, %v1005_v44, %v1133_v62  ;;  %v112_v30 = vld [vmem:[#allocation2 + $0xe0] sm:$0xff]  ;;  %v115_v23 = vld [vmem:[#allocation2 + $0xf8] sm:$0xff] }
 0x12f   :  { %1552 = vst.msk [vmem:[%s2718_s3 + $0xd8] sm:$0xf] %vm1497_vm2, %v1752_v47  ;;  %v835_v17 = vadd.f32 %v2402_v35, %v137_v40  ;;  %v808_v18 = vadd.f32 %v2422_v45, %v110_v59  ;;  %v840_v29 = vadd.f32 %v2424_v46, %v142_v60  ;;  %v1718_v21 = vpack.c.bf16 %v1197_v15, %v1197_v15  ;;  %v147_v35 = vld [vmem:[#allocation2 + $0x1f8] sm:$0xff]  ;;  %v113_v24 = vld [vmem:[#allocation2 + $0xe8] sm:$0xff] }
 0x130   :  { %870 = vst.msk [vmem:[#allocation2 + $0xb8] sm:$0xff] %vm19_vm0, %v805_v2  ;;  %v1229_v51 = vsel %vm1101_vm4, %v1037_v57, %v1165_v0  ;;  %902 = vst.msk [vmem:[#allocation2 + $0x1b8] sm:$0xff] %vm19_vm0, %v837_v9  ;;  %v806_v52 = vadd.f32 %v2427_v50, %v108_v61  ;;  %v838_v58 = vadd.f32 %v2429_v55, %v140_v3  ;;  %v145_v63 = vld [vmem:[#allocation2 + $0x1e8] sm:$0xff] }
 0x131   :  { %868 = vst.msk [vmem:[#allocation2 + $0xa8] sm:$0xff] %vm19_vm0, %v803_v10  ;;  %v1750_v45 = vpack.c.bf16 %v1229_v51, %v1229_v51  ;;  %900 = vst.msk [vmem:[#allocation2 + $0x1a8] sm:$0xff] %vm19_vm0, %v835_v17  ;;  %v809_v46 = vadd.f32 %v2446_v4, %v111_v6  ;;  %v841_v33 = vadd.f32 %v2448_v5, %v143_v8 }
 0x132   :  { %873 = vst.msk [vmem:[#allocation2 + $0xd0] sm:$0xff] %vm19_vm0, %v808_v18  ;;  %905 = vst.msk [vmem:[#allocation2 + $0x1d0] sm:$0xff] %vm19_vm0, %v840_v29  ;;  %v807_v34 = vadd.f32 %v2452_v13, %v109_v16  ;;  %v839_v50 = vadd.f32 %v2454_v14, %v141_v11  ;;  %v812_v55 = vadd.f32 %v2461_v22, %v114_v12 }
 0x133   :  { %1518 = vst.msk [vmem:[%s2718_s3 + $0x50] sm:$0xf] %vm1497_vm2, %v1718_v21  ;;  %v844_v4 = vadd.f32 %v2473_v27, %v146_v19  ;;  %v810_v5 = vadd.f32 %v2475_v28, %v112_v30  ;;  %1550 = vst.msk [vmem:[%s2718_s3 + $0xd0] sm:$0xf] %vm1497_vm2, %v1750_v45  ;;  %v842_v13 = vadd.f32 %v2484_v7, %v144_v20 }
 0x134   :  { %871 = vst.msk [vmem:[#allocation2 + $0xc0] sm:$0xff] %vm19_vm0, %v806_v52  ;;  %903 = vst.msk [vmem:[#allocation2 + $0x1c0] sm:$0xff] %vm19_vm0, %v838_v58  ;;  %v813_v14 = vadd.f32 %v2486_v25, %v115_v23  ;;  %v845_v22 = vadd.f32 %v2488_v26, %v147_v35  ;;  %v811_v27 = vadd.f32 %v2490_v31, %v113_v24  ;;  %v2613_v25 = vld [vmem:[%s2717_s2] ss:$0 sm:$0xff] }
 0x135   :  { %874 = vst.msk [vmem:[#allocation2 + $0xd8] sm:$0xff] %vm19_vm0, %v809_v46  ;;  %906 = vst.msk [vmem:[#allocation2 + $0x1d8] sm:$0xff] %vm19_vm0, %v841_v33  ;;  %v843_v28 = vadd.f32 %v2492_v48, %v145_v63 }
 0x136   :  { %872 = vst.msk [vmem:[#allocation2 + $0xc8] sm:$0xff] %vm19_vm0, %v807_v34  ;;  %904 = vst.msk [vmem:[#allocation2 + $0x1c8] sm:$0xff] %vm19_vm0, %v839_v50 }
 0x137   :  { %877 = vst.msk [vmem:[#allocation2 + $0xf0] sm:$0xff] %vm19_vm0, %v812_v55  ;;  %909 = vst.msk [vmem:[#allocation2 + $0x1f0] sm:$0xff] %vm19_vm0, %v844_v4  ;;  %v937_v7 = vld [vmem:[#allocation2 + $0xb8] sm:$0xff] }
 0x138   :  { %875 = vst.msk [vmem:[#allocation2 + $0xe0] sm:$0xff] %vm19_vm0, %v810_v5  ;;  %907 = vst.msk [vmem:[#allocation2 + $0x1e0] sm:$0xff] %vm19_vm0, %v842_v13  ;;  %v1008_v26 = vadd.f32 %v2613_v25, %v937_v7  ;;  %v969_v31 = vld [vmem:[#allocation2 + $0x1b8] sm:$0xff]  ;;  %v935_v48 = vld [vmem:[#allocation2 + $0xa8] sm:$0xff] }
 0x139   :  { %878 = vst.msk [vmem:[#allocation2 + $0xf8] sm:$0xff] %vm19_vm0, %v813_v14  ;;  %910 = vst.msk [vmem:[#allocation2 + $0x1f8] sm:$0xff] %vm19_vm0, %v845_v22  ;;  %v1040_v1 = vadd.f32 %v2613_v25, %v969_v31  ;;  %v1006_v36 = vadd.f32 %v2613_v25, %v935_v48  ;;  %v967_v37 = vld [vmem:[#allocation2 + $0x1a8] sm:$0xff]  ;;  %v940_v38 = vld [vmem:[#allocation2 + $0xd0] sm:$0xff] }
 0x13a   :  { %876 = vst.msk [vmem:[#allocation2 + $0xe8] sm:$0xff] %vm19_vm0, %v811_v27  ;;  %908 = vst.msk [vmem:[#allocation2 + $0x1e8] sm:$0xff] %vm19_vm0, %v843_v28  ;;  %vm1072_vm5 = vcmp.ge.f32.partialorder %v1008_v26, 0.0  ;;  %v1136_v39 = vmul.f32 0.2, %v1008_v26  ;;  %v1038_v42 = vadd.f32 %v2613_v25, %v967_v37  ;;  %v1011_v32 = vadd.f32 %v2613_v25, %v940_v38  ;;  %v972_v43 = vld [vmem:[#allocation2 + $0x1d0] sm:$0xff] }
 0x13b   :  { %vm1104_vm0 = vcmp.ge.f32.partialorder %v1040_v1, 0.0  ;;  %v1168_v44 = vmul.f32 0.2, %v1040_v1  ;;  %vm1070_vm6 = vcmp.ge.f32.partialorder %v1006_v36, 0.0  ;;  %v1134_v49 = vmul.f32 0.2, %v1006_v36 }
 0x13c   :  { %v1200_v54 = vsel %vm1072_vm5, %v1008_v26, %v1136_v39  ;;  %vm1102_vm7 = vcmp.ge.f32.partialorder %v1038_v42, 0.0  ;;  %v1166_v40 = vmul.f32 0.2, %v1038_v42  ;;  %vm1075_vm8 = vcmp.ge.f32.partialorder %v1011_v32, 0.0  ;;  %v938_v41 = vld [vmem:[#allocation2 + $0xc0] sm:$0xff]  ;;  %v941_v61 = vld [vmem:[#allocation2 + $0xd8] sm:$0xff] }
 0x13d   :  { %v970_v53 = vld [vmem:[#allocation2 + $0x1c0] sm:$0xff]  ;;  %v1721_v56 = vpack.c.bf16 %v1200_v54, %v1200_v54  ;;  %v1232_v57 = vsel %vm1104_vm0, %v1040_v1, %v1168_v44  ;;  %v1198_v59 = vsel %vm1070_vm6, %v1006_v36, %v1134_v49  ;;  %v1139_v60 = vmul.f32 0.2, %v1011_v32  ;;  %v973_v10 = vld [vmem:[#allocation2 + $0x1d8] sm:$0xff]  ;;  %v939_v15 = vld [vmem:[#allocation2 + $0xc8] sm:$0xff] }
 0x13e   :  { %v1753_v47 = vpack.c.bf16 %v1232_v57, %v1232_v57  ;;  %v1719_v62 = vpack.c.bf16 %v1198_v59, %v1198_v59  ;;  %v1230_v2 = vsel %vm1102_vm7, %v1038_v42, %v1166_v40  ;;  %v1043_v3 = vadd.f32 %v2613_v25, %v972_v43  ;;  %v971_v20 = vld [vmem:[#allocation2 + $0x1c8] sm:$0xff]  ;;  %v944_v23 = vld [vmem:[#allocation2 + $0xf0] sm:$0xff] }
 0x13f   :  { %1521 = vst.msk [vmem:[%s2718_s3 + $0x5c] sm:$0xf] %vm1497_vm2, %v1721_v56  ;;  %v1751_v6 = vpack.c.bf16 %v1230_v2, %v1230_v2  ;;  %v1203_v8 = vsel %vm1075_vm8, %v1011_v32, %v1139_v60  ;;  %v1009_v0 = vadd.f32 %v2613_v25, %v938_v41  ;;  %v1041_v9 = vadd.f32 %v2613_v25, %v970_v53  ;;  %v976_v35 = vld [vmem:[#allocation2 + $0x1f0] sm:$0xff]  ;;  %v942_v24 = vld [vmem:[#allocation2 + $0xe0] sm:$0xff] }
 0x140   :  { %1553 = vst.msk [vmem:[%s2718_s3 + $0xdc] sm:$0xf] %vm1497_vm2, %v1753_v47  ;;  %1519 = vst.msk [vmem:[%s2718_s3 + $0x54] sm:$0xf] %vm1497_vm2, %v1719_v62  ;;  %v1724_v16 = vpack.c.bf16 %v1203_v8, %v1203_v8  ;;  %vm1107_vm9 = vcmp.ge.f32.partialorder %v1043_v3, 0.0  ;;  %v1012_v12 = vadd.f32 %v2613_v25, %v941_v61  ;;  %v1044_v30 = vadd.f32 %v2613_v25, %v973_v10  ;;  %v974_v34 = vld [vmem:[#allocation2 + $0x1e0] sm:$0xff] }
 0x141   :  { %v1171_v11 = vmul.f32 0.2, %v1043_v3  ;;  %1551 = vst.msk [vmem:[%s2718_s3 + $0xd4] sm:$0xf] %vm1497_vm2, %v1751_v6  ;;  %vm1073_vm10 = vcmp.ge.f32.partialorder %v1009_v0, 0.0  ;;  %vm1105_vm11 = vcmp.ge.f32.partialorder %v1041_v9, 0.0  ;;  %v1010_v58 = vadd.f32 %v2613_v25, %v939_v15 }
 0x142   :  { %v1137_v17 = vmul.f32 0.2, %v1009_v0  ;;  %v1169_v18 = vmul.f32 0.2, %v1041_v9  ;;  %1524 = vst.msk [vmem:[%s2718_s3 + $0x68] sm:$0xf] %vm1497_vm2, %v1724_v16  ;;  %v1042_v5 = vadd.f32 %v2613_v25, %v971_v20  ;;  %v1015_v13 = vadd.f32 %v2613_v25, %v944_v23 }
 0x143   :  { %v1235_v29 = vsel %vm1107_vm9, %v1043_v3, %v1171_v11  ;;  %vm1076_vm12 = vcmp.ge.f32.partialorder %v1012_v12, 0.0  ;;  %v1140_v19 = vmul.f32 0.2, %v1012_v12  ;;  %vm1108_vm13 = vcmp.ge.f32.partialorder %v1044_v30, 0.0  ;;  %v945_v63 = vld [vmem:[#allocation2 + $0xf8] sm:$0xff]  ;;  %v943_v54 = vld [vmem:[#allocation2 + $0xe8] sm:$0xff] }
 0x144   :  { %v1756_v21 = vpack.c.bf16 %v1235_v29, %v1235_v29  ;;  %v1201_v51 = vsel %vm1073_vm10, %v1009_v0, %v1137_v17  ;;  %v1233_v52 = vsel %vm1105_vm11, %v1041_v9, %v1169_v18  ;;  %v1172_v55 = vmul.f32 0.2, %v1044_v30  ;;  %v977_v42 = vld [vmem:[#allocation2 + $0x1f8] sm:$0xff]  ;;  %v975_v40 = vld [vmem:[#allocation2 + $0x1e8] sm:$0xff] }
 0x145   :  { %v1722_v45 = vpack.c.bf16 %v1201_v51, %v1201_v51  ;;  %v1754_v46 = vpack.c.bf16 %v1233_v52, %v1233_v52  ;;  %v1204_v33 = vsel %vm1076_vm12, %v1012_v12, %v1140_v19  ;;  %vm1074_vm14 = vcmp.ge.f32.partialorder %v1010_v58, 0.0 }
 0x146   :  { %1556 = vst.msk [vmem:[%s2718_s3 + $0xe8] sm:$0xf] %vm1497_vm2, %v1756_v21  ;;  %v1725_v50 = vpack.c.bf16 %v1204_v33, %v1204_v33  ;;  %v1138_v4 = vmul.f32 0.2, %v1010_v58  ;;  %v1047_v14 = vadd.f32 %v2613_v25, %v976_v35  ;;  %v1013_v22 = vadd.f32 %v2613_v25, %v942_v24 }
 0x147   :  { %1522 = vst.msk [vmem:[%s2718_s3 + $0x60] sm:$0xf] %vm1497_vm2, %v1722_v45  ;;  %1554 = vst.msk [vmem:[%s2718_s3 + $0xe0] sm:$0xf] %vm1497_vm2, %v1754_v46  ;;  %v1236_v27 = vsel %vm1108_vm13, %v1044_v30, %v1172_v55  ;;  %v1045_v7 = vadd.f32 %v2613_v25, %v974_v34  ;;  %v1016_v26 = vadd.f32 %v2613_v25, %v945_v63  ;;  %vm1106_vm15 = vcmp.ge.f32.partialorder %v1042_v5, 0.0 }
 0x148   :  { %1525 = vst.msk [vmem:[%s2718_s3 + $0x6c] sm:$0xf] %vm1497_vm2, %v1725_v50  ;;  %v1202_v28 = vsel %vm1074_vm14, %v1010_v58, %v1138_v4  ;;  %v1757_v31 = vpack.c.bf16 %v1236_v27, %v1236_v27  ;;  %v1170_v1 = vmul.f32 0.2, %v1042_v5  ;;  %vm1079_vm1 = vcmp.ge.f32.partialorder %v1015_v13, 0.0 }
 0x149   :  { %v1723_v48 = vpack.c.bf16 %v1202_v28, %v1202_v28  ;;  %v1143_v36 = vmul.f32 0.2, %v1015_v13  ;;  %vm1111_vm3 = vcmp.ge.f32.partialorder %v1047_v14, 0.0  ;;  %v1175_v37 = vmul.f32 0.2, %v1047_v14 }
 0x14a   :  { %1557 = vst.msk [vmem:[%s2718_s3 + $0xec] sm:$0xf] %vm1497_vm2, %v1757_v31  ;;  %v1234_v38 = vsel %vm1106_vm15, %v1042_v5, %v1170_v1  ;;  %vm1077_vm4 = vcmp.ge.f32.partialorder %v1013_v22, 0.0  ;;  %v1141_v39 = vmul.f32 0.2, %v1013_v22  ;;  %vm1109_vm5 = vcmp.ge.f32.partialorder %v1045_v7, 0.0 }
 0x14b   :  { %1523 = vst.msk [vmem:[%s2718_s3 + $0x64] sm:$0xf] %vm1497_vm2, %v1723_v48  ;;  %v1755_v32 = vpack.c.bf16 %v1234_v38, %v1234_v38  ;;  %v1207_v43 = vsel %vm1079_vm1, %v1015_v13, %v1143_v36  ;;  %v1239_v44 = vsel %vm1111_vm3, %v1047_v14, %v1175_v37  ;;  %v1173_v49 = vmul.f32 0.2, %v1045_v7 }
 0x14c   :  { %v1728_v41 = vpack.c.bf16 %v1207_v43, %v1207_v43  ;;  %v1760_v53 = vpack.c.bf16 %v1239_v44, %v1239_v44  ;;  %v1205_v56 = vsel %vm1077_vm4, %v1013_v22, %v1141_v39  ;;  %vm1080_vm0 = vcmp.ge.f32.partialorder %v1016_v26, 0.0 }
 0x14d   :  { %1555 = vst.msk [vmem:[%s2718_s3 + $0xe4] sm:$0xf] %vm1497_vm2, %v1755_v32  ;;  %v1726_v57 = vpack.c.bf16 %v1205_v56, %v1205_v56  ;;  %v1237_v59 = vsel %vm1109_vm5, %v1045_v7, %v1173_v49  ;;  %v1144_v60 = vmul.f32 0.2, %v1016_v26  ;;  %v1048_v61 = vadd.f32 %v2613_v25, %v977_v42 }
 0x14e   :  { %1528 = vst.msk [vmem:[%s2718_s3 + $0x78] sm:$0xf] %vm1497_vm2, %v1728_v41  ;;  %1560 = vst.msk [vmem:[%s2718_s3 + $0xf8] sm:$0xf] %vm1497_vm2, %v1760_v53  ;;  %v1758_v47 = vpack.c.bf16 %v1237_v59, %v1237_v59  ;;  %v1014_v62 = vadd.f32 %v2613_v25, %v943_v54  ;;  %v1046_v2 = vadd.f32 %v2613_v25, %v975_v40 }
 0x14f   :  { %1526 = vst.msk [vmem:[%s2718_s3 + $0x70] sm:$0xf] %vm1497_vm2, %v1726_v57  ;;  %v1208_v3 = vsel %vm1080_vm0, %v1016_v26, %v1144_v60  ;;  %vm1112_vm6 = vcmp.ge.f32.partialorder %v1048_v61, 0.0  ;;  %v1176_v6 = vmul.f32 0.2, %v1048_v61 }
 0x150   :  { %1558 = vst.msk [vmem:[%s2718_s3 + $0xf0] sm:$0xf] %vm1497_vm2, %v1758_v47  ;;  %v1729_v8 = vpack.c.bf16 %v1208_v3, %v1208_v3  ;;  %vm1078_vm7 = vcmp.ge.f32.partialorder %v1014_v62, 0.0  ;;  %v1142_v0 = vmul.f32 0.2, %v1014_v62  ;;  %vm1110_vm8 = vcmp.ge.f32.partialorder %v1046_v2, 0.0 }
 0x151   :  { %v1240_v9 = vsel %vm1112_vm6, %v1048_v61, %v1176_v6  ;;  %v1174_v10 = vmul.f32 0.2, %v1046_v2 }
 0x152   :  { %1529 = vst.msk [vmem:[%s2718_s3 + $0x7c] sm:$0xf] %vm1497_vm2, %v1729_v8  ;;  %v1761_v25 = vpack.c.bf16 %v1240_v9, %v1240_v9  ;;  %v1206_v16 = vsel %vm1078_vm7, %v1014_v62, %v1142_v0 }
 0x153   :  { %v1727_v11 = vpack.c.bf16 %v1206_v16, %v1206_v16  ;;  %v1238_v12 = vsel %vm1110_vm8, %v1046_v2, %v1174_v10 }
 0x154   :  { %1561 = vst.msk [vmem:[%s2718_s3 + $0xfc] sm:$0xf] %vm1497_vm2, %v1761_v25  ;;  %v1759_v15 = vpack.c.bf16 %v1238_v12, %v1238_v12 }
 0x155   :  { %1527 = vst.msk [vmem:[%s2718_s3 + $0x74] sm:$0xf] %vm1497_vm2, %v1727_v11 }
 0x156   :  { %1559 = vst.msk [vmem:[%s2718_s3 + $0xf4] sm:$0xf] %vm1497_vm2, %v1759_v15 }

// kernel: discriminator_forward.10
= control target key start
LH: loop header
LB: loop body
LE: loop exit
PB: predicated region body
PF: predicated region fallthrough
CT: control target
= control target key end

     0   :  { %s455_s0 = inlined_call_operand.vmem [shape: bf16[128,128], index: 0, kind: input, shape index: {}]   ;;  %s456_s1 = inlined_call_operand.vmem [shape: f32[1,128], index: 1, kind: input, shape index: {}]   ;;  %s457_s2 = inlined_call_operand.vmem [shape: f32[1,128], index: 2, kind: input, shape index: {}]   ;;  %s458_s3 = inlined_call_operand.vmem [shape: bf16[128,128], index: 3, kind: output, shape index: {}]  }
   0x1   :  { %v259_v0 = vld [vmem:[%s455_s0] sm:$0xff]   ;;  %v330_v4 = vld [vmem:[%s455_s0 + $0x8] sm:$0xff]   ;;  %v331_v5 = vld [vmem:[%s455_s0 + $0x10] sm:$0xff]  }
   0x2   :  { %v370_v1 = vld [vmem:[%s456_s1] ss:$0 sm:$0xff]  ;;  %v260_v2 = vunpack.c.l.bf16 %v259_v0  ;;  %v261_v3 = vunpack.c.h.bf16 %v259_v0  ;;  %v332_v6 = vld [vmem:[%s455_s0 + $0x18] sm:$0xff]   ;;  %v264_v8 = vunpack.c.l.bf16 %v330_v4  ;;  %v265_v9 = vunpack.c.h.bf16 %v330_v4  ;;  %v334_v35 = vld [vmem:[%s455_s0 + $0x28] sm:$0xff]  }
   0x3   :  { %v384_v7 = vld [vmem:[%s457_s2] ss:$0 sm:$0xff]  ;;  %v268_v10 = vunpack.c.l.bf16 %v331_v5  ;;  %v269_v11 = vunpack.c.h.bf16 %v331_v5  ;;  %v272_v14 = vunpack.c.l.bf16 %v332_v6  ;;  %v273_v15 = vunpack.c.h.bf16 %v332_v6  ;;  %v335_v48 = vld [vmem:[%s455_s0 + $0x30] sm:$0xff]   ;;  %v336_v4 = vld [vmem:[%s455_s0 + $0x38] sm:$0xff]  }
   0x4   :  { %v53_v12 = vmul.f32 %v260_v2, %v370_v1  ;;  %v54_v13 = vmul.f32 %v261_v3, %v370_v1  ;;  %v55_v16 = vmul.f32 %v264_v8, %v370_v1  ;;  %v56_v17 = vmul.f32 %v265_v9, %v370_v1  ;;  %v333_v34 = vld [vmem:[%s455_s0 + $0x20] sm:$0xff]  }
   0x5   :  { %v57_v18 = vmul.f32 %v268_v10, %v370_v1  ;;  %v58_v19 = vmul.f32 %v269_v11, %v370_v1  ;;  %v59_v22 = vmul.f32 %v272_v14, %v370_v1  ;;  %v60_v23 = vmul.f32 %v273_v15, %v370_v1 }
   0x6   :  { %v76_v20 = vadd.f32 %v384_v7, %v53_v12  ;;  %v77_v21 = vadd.f32 %v384_v7, %v54_v13  ;;  %v78_v24 = vadd.f32 %v384_v7, %v55_v16  ;;  %v79_v25 = vadd.f32 %v384_v7, %v56_v17 }
   0x7   :  { %v80_v26 = vadd.f32 %v384_v7, %v57_v18  ;;  %v81_v27 = vadd.f32 %v384_v7, %v58_v19  ;;  %v82_v42 = vadd.f32 %v384_v7, %v59_v22  ;;  %v83_v43 = vadd.f32 %v384_v7, %v60_v23 }
   0x8   :  { %vm92_vm0 = vcmp.ge.f32.partialorder %v76_v20, 0.0  ;;  %vm93_vm1 = vcmp.ge.f32.partialorder %v77_v21, 0.0  ;;  %v108_v28 = vmul.f32 0.2, %v76_v20  ;;  %v109_v29 = vmul.f32 0.2, %v77_v21 }
   0x9   :  { %vm94_vm2 = vcmp.ge.f32.partialorder %v78_v24, 0.0  ;;  %vm95_vm3 = vcmp.ge.f32.partialorder %v79_v25, 0.0  ;;  %v110_v30 = vmul.f32 0.2, %v78_v24  ;;  %v111_v31 = vmul.f32 0.2, %v79_v25 }
   0xa   :  { %v124_v32 = vsel %vm92_vm0, %v76_v20, %v108_v28  ;;  %v125_v33 = vsel %vm93_vm1, %v77_v21, %v109_v29  ;;  %vm96_vm4 = vcmp.ge.f32.partialorder %v80_v26, 0.0  ;;  %vm97_vm5 = vcmp.ge.f32.partialorder %v81_v27, 0.0 }
   0xb   :  { %v293_v36 = vpack.c.bf16 %v125_v33, %v124_v32  ;;  %v126_v37 = vsel %vm94_vm2, %v78_v24, %v110_v30  ;;  %v127_v38 = vsel %vm95_vm3, %v79_v25, %v111_v31  ;;  %v112_v39 = vmul.f32 0.2, %v80_v26 }
   0xc   :  { %v298_v40 = vpack.c.bf16 %v127_v38, %v126_v37  ;;  %v113_v41 = vmul.f32 0.2, %v81_v27  ;;  %v276_v45 = vunpack.c.l.bf16 %v333_v34  ;;  %v277_v46 = vunpack.c.h.bf16 %v333_v34 }
   0xd   :  { %294 = vst [vmem:[%s458_s3] sm:$0xff] %v293_v36   ;;  %v128_v44 = vsel %vm96_vm4, %v80_v26, %v112_v39  ;;  %v280_v47 = vunpack.c.l.bf16 %v334_v35  ;;  %vm98_vm6 = vcmp.ge.f32.partialorder %v82_v42, 0.0  ;;  %vm99_vm7 = vcmp.ge.f32.partialorder %v83_v43, 0.0 }
   0xe   :  { %337 = vst [vmem:[%s458_s3 + $0x8] sm:$0xff] %v298_v40   ;;  %v129_v49 = vsel %vm97_vm5, %v81_v27, %v113_v41  ;;  %v114_v50 = vmul.f32 0.2, %v82_v42  ;;  %v115_v52 = vmul.f32 0.2, %v83_v43  ;;  %v61_v53 = vmul.f32 %v276_v45, %v370_v1 }
   0xf   :  { %v303_v51 = vpack.c.bf16 %v129_v49, %v128_v44  ;;  %v62_v54 = vmul.f32 %v277_v46, %v370_v1  ;;  %v281_v56 = vunpack.c.h.bf16 %v334_v35  ;;  %v63_v57 = vmul.f32 %v280_v47, %v370_v1 }
  0x10   :  { %v130_v55 = vsel %vm98_vm6, %v82_v42, %v114_v50  ;;  %v284_v58 = vunpack.c.l.bf16 %v335_v48  ;;  %v131_v59 = vsel %vm99_vm7, %v83_v43, %v115_v52  ;;  %v84_v60 = vadd.f32 %v384_v7, %v61_v53 }
  0x11   :  { %338 = vst [vmem:[%s458_s3 + $0x10] sm:$0xff] %v303_v51   ;;  %v85_v61 = vadd.f32 %v384_v7, %v62_v54  ;;  %v285_v62 = vunpack.c.h.bf16 %v335_v48  ;;  %v308_v63 = vpack.c.bf16 %v131_v59, %v130_v55  ;;  %v64_v0 = vmul.f32 %v281_v56, %v370_v1 }
  0x12   :  { %v86_v2 = vadd.f32 %v384_v7, %v63_v57  ;;  %v65_v3 = vmul.f32 %v284_v58, %v370_v1  ;;  %vm100_vm8 = vcmp.ge.f32.partialorder %v84_v60, 0.0  ;;  %v116_v5 = vmul.f32 0.2, %v84_v60 }
  0x13   :  { %vm101_vm9 = vcmp.ge.f32.partialorder %v85_v61, 0.0  ;;  %v117_v6 = vmul.f32 0.2, %v85_v61  ;;  %339 = vst [vmem:[%s458_s3 + $0x18] sm:$0xff] %v308_v63   ;;  %v87_v8 = vadd.f32 %v384_v7, %v64_v0  ;;  %v66_v10 = vmul.f32 %v285_v62, %v370_v1 }
  0x14   :  { %vm102_vm10 = vcmp.ge.f32.partialorder %v86_v2, 0.0  ;;  %v118_v9 = vmul.f32 0.2, %v86_v2  ;;  %v132_v11 = vsel %vm100_vm8, %v84_v60, %v116_v5  ;;  %v88_v13 = vadd.f32 %v384_v7, %v65_v3 }
  0x15   :  { %v133_v12 = vsel %vm101_vm9, %v85_v61, %v117_v6  ;;  %v288_v14 = vunpack.c.l.bf16 %v336_v4  ;;  %vm103_vm11 = vcmp.ge.f32.partialorder %v87_v8, 0.0  ;;  %v119_v16 = vmul.f32 0.2, %v87_v8 }
  0x16   :  { %v313_v15 = vpack.c.bf16 %v133_v12, %v132_v11  ;;  %v134_v17 = vsel %vm102_vm10, %v86_v2, %v118_v9  ;;  %v89_v18 = vadd.f32 %v384_v7, %v66_v10  ;;  %vm104_vm12 = vcmp.ge.f32.partialorder %v88_v13, 0.0 }
  0x17   :  { %v120_v19 = vmul.f32 0.2, %v88_v13  ;;  %v289_v20 = vunpack.c.h.bf16 %v336_v4  ;;  %v135_v21 = vsel %vm103_vm11, %v87_v8, %v119_v16  ;;  %v67_v22 = vmul.f32 %v288_v14, %v370_v1 }
  0x18   :  { %340 = vst [vmem:[%s458_s3 + $0x20] sm:$0xff] %v313_v15   ;;  %v318_v23 = vpack.c.bf16 %v135_v21, %v134_v17  ;;  %vm105_vm13 = vcmp.ge.f32.partialorder %v89_v18, 0.0  ;;  %v121_v24 = vmul.f32 0.2, %v89_v18 }
  0x19   :  { %v136_v25 = vsel %vm104_vm12, %v88_v13, %v120_v19  ;;  %v68_v26 = vmul.f32 %v289_v20, %v370_v1  ;;  %v90_v27 = vadd.f32 %v384_v7, %v67_v22 }
  0x1a   :  { %341 = vst [vmem:[%s458_s3 + $0x28] sm:$0xff] %v318_v23   ;;  %v137_v28 = vsel %vm105_vm13, %v89_v18, %v121_v24 }
  0x1b   :  { %v323_v29 = vpack.c.bf16 %v137_v28, %v136_v25  ;;  %v91_v30 = vadd.f32 %v384_v7, %v68_v26  ;;  %vm106_vm14 = vcmp.ge.f32.partialorder %v90_v27, 0.0  ;;  %v122_v31 = vmul.f32 0.2, %v90_v27 }
  0x1d   :  { %342 = vst [vmem:[%s458_s3 + $0x30] sm:$0xff] %v323_v29   ;;  %vm107_vm15 = vcmp.ge.f32.partialorder %v91_v30, 0.0  ;;  %v123_v32 = vmul.f32 0.2, %v91_v30  ;;  %v138_v33 = vsel %vm106_vm14, %v90_v27, %v122_v31 }
  0x1f   :  { %v139_v1 = vsel %vm107_vm15, %v91_v30, %v123_v32 }
  0x20   :  { %v328_v34 = vpack.c.bf16 %v139_v1, %v138_v33 }
  0x22   :  { %343 = vst [vmem:[%s458_s3 + $0x38] sm:$0xff] %v328_v34  }

// kernel: discriminator_forward.9
= control target key start
LH: loop header
LB: loop body
LE: loop exit
PB: predicated region body
PF: predicated region fallthrough
CT: control target
= control target key end

     0   :  { %s2557_s1 = inlined_call_operand.vmem [shape: bf16[1024,128], index: 1, kind: input, shape index: {}]   ;;  %s2558_s0 = inlined_call_operand.vmem [shape: bf16[128,1024], index: 0, kind: input, shape index: {}]   ;;  %s2559_s2 = inlined_call_operand.vmem [shape: bf16[128,128], index: 2, kind: output, shape index: {0}]   ;;  %s2560_s3 = inlined_call_operand.vmem [shape: f32[8,128], index: 3, kind: output, shape index: {1}]   ;;  %s2561_s4 = inlined_call_operand.vmem [shape: f32[8,128], index: 4, kind: output, shape index: {2}]  }
   0x1   :  { %v2006_v0 = vld [vmem:[%s2557_s1 + $0x40] sm:$0xff]   ;;  %v2010_v4 = vld [vmem:[%s2557_s1 + $0x48] sm:$0xff]   ;;  %v2014_v8 = vld [vmem:[%s2557_s1 + $0x50] sm:$0xff]  }
   0x2   :  { %v2007_v1 = vld [vmem:[%s2557_s1 + $0xc0] sm:$0xff]   ;;  %1750 = vmatprep.subr.bf16.mxu0 %v2006_v0  ;;  %v2011_v5 = vld [vmem:[%s2557_s1 + $0xc8] sm:$0xff]   ;;  %v2015_v9 = vld [vmem:[%s2557_s1 + $0xd0] sm:$0xff]  }
   0x3   :  { %v2008_v2 = vld [vmem:[%s2557_s1] sm:$0xff]   ;;  %1814 = vmatprep.subr.bf16.mxu1 %v2007_v1  ;;  %v2012_v6 = vld [vmem:[%s2557_s1 + $0x8] sm:$0xff]   ;;  %v2016_v10 = vld [vmem:[%s2557_s1 + $0x10] sm:$0xff]  }
   0x4   :  { %v2009_v3 = vld [vmem:[%s2557_s1 + $0x80] sm:$0xff]   ;;  %1751 = vmatpush3.bf16.msra.mxu0 %v2008_v2  ;;  %v2013_v7 = vld [vmem:[%s2557_s1 + $0x88] sm:$0xff]   ;;  %v2017_v11 = vld [vmem:[%s2557_s1 + $0x90] sm:$0xff]  }
   0x5   :  { %1815 = vmatpush3.bf16.msra.mxu1 %v2009_v3  ;;  %1752 = vmatprep.subr.bf16.mxu0 %v2010_v4  ;;  %v2018_v12 = vld [vmem:[%s2557_s1 + $0x58] sm:$0xff]   ;;  %v2022_v16 = vld [vmem:[%s2557_s1 + $0x60] sm:$0xff]   ;;  %v2026_v20 = vld [vmem:[%s2557_s1 + $0x68] sm:$0xff]  }
   0x6   :  { %1816 = vmatprep.subr.bf16.mxu1 %v2011_v5  ;;  %v2019_v13 = vld [vmem:[%s2557_s1 + $0xd8] sm:$0xff]   ;;  %v2023_v17 = vld [vmem:[%s2557_s1 + $0xe0] sm:$0xff]   ;;  %v2027_v21 = vld [vmem:[%s2557_s1 + $0xe8] sm:$0xff]  }
   0x7   :  { %v2020_v14 = vld [vmem:[%s2557_s1 + $0x18] sm:$0xff]   ;;  %v2024_v18 = vld [vmem:[%s2557_s1 + $0x20] sm:$0xff]   ;;  %v2028_v22 = vld [vmem:[%s2557_s1 + $0x28] sm:$0xff]  }
   0x8   :  { %1753 = vmatpush3.bf16.msra.mxu0 %v2012_v6  ;;  %v2021_v15 = vld [vmem:[%s2557_s1 + $0x98] sm:$0xff]   ;;  %v2025_v19 = vld [vmem:[%s2557_s1 + $0xa0] sm:$0xff]   ;;  %v2029_v23 = vld [vmem:[%s2557_s1 + $0xa8] sm:$0xff]  }
   0x9   :  { %1817 = vmatpush3.bf16.msra.mxu1 %v2013_v7  ;;  %1754 = vmatprep.subr.bf16.mxu0 %v2014_v8  ;;  %v2030_v24 = vld [vmem:[%s2557_s1 + $0x70] sm:$0xff]   ;;  %v2034_v28 = vld [vmem:[%s2557_s1 + $0x78] sm:$0xff]   ;;  %v51_v32 = vld [vmem:[%s2558_s0] sm:$0xff] }
   0xa   :  { %1818 = vmatprep.subr.bf16.mxu1 %v2015_v9  ;;  %v2031_v25 = vld [vmem:[%s2557_s1 + $0xf0] sm:$0xff]   ;;  %v2035_v29 = vld [vmem:[%s2557_s1 + $0xf8] sm:$0xff]   ;;  %v55_v33 = vld [vmem:[%s2558_s0 + $0x20] sm:$0xff] }
   0xb   :  { %v2032_v26 = vld [vmem:[%s2557_s1 + $0x30] sm:$0xff]   ;;  %v2036_v30 = vld [vmem:[%s2557_s1 + $0x38] sm:$0xff]   ;;  %v52_v34 = vld [vmem:[%s2558_s0 + $0x8] sm:$0xff]  ;;  %v1543_v35 = vcombine.low %v51_v32, %v55_v33  ;;  %v1544_v36 = vcombine.high %v51_v32, %v55_v33 }
   0xc   :  { %1755 = vmatpush3.bf16.msra.mxu0 %v2016_v10  ;;  %v2033_v27 = vld [vmem:[%s2557_s1 + $0xb0] sm:$0xff]   ;;  %v2037_v31 = vld [vmem:[%s2557_s1 + $0xb8] sm:$0xff]   ;;  %v56_v37 = vld [vmem:[%s2558_s0 + $0x28] sm:$0xff] }
   0xd   :  { %1819 = vmatpush3.bf16.msra.mxu1 %v2017_v11  ;;  %1756 = vmatprep.subr.bf16.mxu0 %v2018_v12  ;;  %v1545_v38 = vcombine.low %v52_v34, %v56_v37  ;;  %v1546_v39 = vcombine.high %v52_v34, %v56_v37  ;;  %v2038_v40 = vld [vmem:[%s2557_s1 + $0x140] sm:$0xff]   ;;  %v60_v47 = vld [vmem:[%s2558_s0 + $0x48] sm:$0xff]  ;;  %v2046_v62 = vld [vmem:[%s2557_s1 + $0x150] sm:$0xff]  }
   0xe   :  { %1820 = vmatprep.subr.bf16.mxu1 %v2019_v13  ;;  %979 = vmatprep.mubr.bf16.mxu0 %v1544_v36  ;;  %v2039_v41 = vld [vmem:[%s2557_s1 + $0x100] sm:$0xff]   ;;  %v64_v48 = vld [vmem:[%s2558_s0 + $0x68] sm:$0xff]  ;;  %v2047_v63 = vld [vmem:[%s2557_s1 + $0x110] sm:$0xff]  }
   0xf   :  { %1076 = vmatprep.mubr.bf16.mxu1 %v1546_v39  ;;  %v2040_v42 = vld [vmem:[%s2557_s1 + $0x1c0] sm:$0xff]   ;;  %v1554_v49 = vcombine.high %v60_v47, %v64_v48  ;;  %v2042_v50 = vld [vmem:[%s2557_s1 + $0x148] sm:$0xff]   ;;  %v1553_v53 = vcombine.low %v60_v47, %v64_v48  ;;  %v2048_v0 = vld [vmem:[%s2557_s1 + $0x1d0] sm:$0xff]  }
  0x10   :  { %1757 = vmatpush3.bf16.msra.mxu0 %v2020_v14  ;;  %v2041_v43 = vld [vmem:[%s2557_s1 + $0x180] sm:$0xff]   ;;  %v2043_v52 = vld [vmem:[%s2557_s1 + $0x108] sm:$0xff]   ;;  %v2049_v1 = vld [vmem:[%s2557_s1 + $0x190] sm:$0xff]  }
  0x11   :  { %1821 = vmatpush3.bf16.msra.mxu1 %v2021_v15  ;;  %1758 = vmatprep.subr.bf16.mxu0 %v2022_v16  ;;  %v59_v44 = vld [vmem:[%s2558_s0 + $0x40] sm:$0xff]  ;;  %v2044_v54 = vld [vmem:[%s2557_s1 + $0x1c8] sm:$0xff]   ;;  %v2050_v10 = vld [vmem:[%s2557_s1 + $0x158] sm:$0xff]  }
  0x12   :  { %1822 = vmatprep.subr.bf16.mxu1 %v2023_v17  ;;  %v63_v45 = vld [vmem:[%s2558_s0 + $0x60] sm:$0xff]  ;;  %v2045_v55 = vld [vmem:[%s2557_s1 + $0x188] sm:$0xff]   ;;  %v2051_v11 = vld [vmem:[%s2557_s1 + $0x118] sm:$0xff]  }
  0x13   :  { %v1552_v46 = vcombine.high %v59_v44, %v63_v45  ;;  %v1551_v51 = vcombine.low %v59_v44, %v63_v45  ;;  %v67_v56 = vld [vmem:[%s2558_s0 + $0x80] sm:$0xff]  ;;  %v68_v58 = vld [vmem:[%s2558_s0 + $0x88] sm:$0xff]  ;;  %v2052_v12 = vld [vmem:[%s2557_s1 + $0x1d8] sm:$0xff]  }
  0x14   :  { %1759 = vmatpush3.bf16.msra.mxu0 %v2024_v18  ;;  %v71_v57 = vld [vmem:[%s2558_s0 + $0xa0] sm:$0xff]  ;;  %v72_v59 = vld [vmem:[%s2558_s0 + $0xa8] sm:$0xff]  ;;  %v2053_v13 = vld [vmem:[%s2557_s1 + $0x198] sm:$0xff]  }
  0x15   :  { %1823 = vmatpush3.bf16.msra.mxu1 %v2025_v19  ;;  %1760 = vmatprep.subr.bf16.mxu0 %v2026_v20  ;;  %v1560_v60 = vcombine.high %v67_v56, %v71_v57  ;;  %v1562_v61 = vcombine.high %v68_v58, %v72_v59  ;;  %v1559_v2 = vcombine.low %v67_v56, %v71_v57  ;;  %v75_v3 = vld [vmem:[%s2558_s0 + $0xc0] sm:$0xff]  ;;  %v76_v5 = vld [vmem:[%s2558_s0 + $0xc8] sm:$0xff]  ;;  %v2063_v39 = vld [vmem:[%s2557_s1 + $0x130] sm:$0xff]  }
  0x16   :  { %1824 = vmatprep.subr.bf16.mxu1 %v2027_v21  ;;  %v79_v4 = vld [vmem:[%s2558_s0 + $0xe0] sm:$0xff]  ;;  %v1561_v6 = vcombine.low %v68_v58, %v72_v59  ;;  %v80_v8 = vld [vmem:[%s2558_s0 + $0xe8] sm:$0xff]  ;;  %v2067_v48 = vld [vmem:[%s2557_s1 + $0x138] sm:$0xff]  }
  0x17   :  { %v1568_v7 = vcombine.high %v75_v3, %v79_v4  ;;  %v1570_v9 = vcombine.high %v76_v5, %v80_v8  ;;  %v83_v14 = vld [vmem:[%s2558_s0 + $0x100] sm:$0xff]  ;;  %v84_v16 = vld [vmem:[%s2558_s0 + $0x108] sm:$0xff]  ;;  %v1567_v19 = vcombine.low %v75_v3, %v79_v4  ;;  %v1569_v21 = vcombine.low %v76_v5, %v80_v8  ;;  %v62_v8 = vld [vmem:[%s2558_s0 + $0x58] sm:$0xff] }
  0x18   :  { %1761 = vmatpush3.bf16.msra.mxu0 %v2028_v22  ;;  %v87_v15 = vld [vmem:[%s2558_s0 + $0x120] sm:$0xff]  ;;  %v88_v17 = vld [vmem:[%s2558_s0 + $0x128] sm:$0xff] }
  0x19   :  { %1825 = vmatpush3.bf16.msra.mxu1 %v2029_v23  ;;  %1762 = vmatprep.subr.bf16.mxu0 %v2030_v24  ;;  %v2054_v18 = vld [vmem:[%s2557_s1 + $0x160] sm:$0xff]   ;;  %v1576_v22 = vcombine.high %v83_v14, %v87_v15  ;;  %v1578_v24 = vcombine.high %v84_v16, %v88_v17  ;;  %v2060_v32 = vld [vmem:[%s2557_s1 + $0x1e8] sm:$0xff]   ;;  %v1575_v34 = vcombine.low %v83_v14, %v87_v15  ;;  %v69_v14 = vld [vmem:[%s2558_s0 + $0x90] sm:$0xff] }
  0x1a   :  { %1826 = vmatprep.subr.bf16.mxu1 %v2031_v25  ;;  %v2055_v20 = vld [vmem:[%s2557_s1 + $0x120] sm:$0xff]   ;;  %v2061_v33 = vld [vmem:[%s2557_s1 + $0x1a8] sm:$0xff]   ;;  %v73_v15 = vld [vmem:[%s2558_s0 + $0xb0] sm:$0xff] }
  0x1b   :  { %v2056_v23 = vld [vmem:[%s2557_s1 + $0x1e0] sm:$0xff]   ;;  %v100_v44 = vld [vmem:[%s2558_s0 + $0x188] sm:$0xff] }
  0x1c   :  { %1763 = vmatpush3.bf16.msra.mxu0 %v2032_v26  ;;  %v2057_v25 = vld [vmem:[%s2557_s1 + $0x1a0] sm:$0xff]   ;;  %v104_v45 = vld [vmem:[%s2558_s0 + $0x1a8] sm:$0xff] }
  0x1d   :  { %1827 = vmatpush3.bf16.msra.mxu1 %v2033_v27  ;;  %1764 = vmatprep.subr.bf16.mxu0 %v2034_v28  ;;  %v91_v26 = vld [vmem:[%s2558_s0 + $0x140] sm:$0xff]  ;;  %v2058_v28 = vld [vmem:[%s2557_s1 + $0x168] sm:$0xff]   ;;  %v1593_v59 = vcombine.low %v100_v44, %v104_v45 }
  0x1e   :  { %1828 = vmatprep.subr.bf16.mxu1 %v2035_v29  ;;  %v95_v27 = vld [vmem:[%s2558_s0 + $0x160] sm:$0xff]  ;;  %v92_v29 = vld [vmem:[%s2558_s0 + $0x148] sm:$0xff] }
  0x1f   :  { %v1584_v36 = vcombine.high %v91_v26, %v95_v27  ;;  %v1583_v47 = vcombine.low %v91_v26, %v95_v27  ;;  %v108_v56 = vld [vmem:[%s2558_s0 + $0x1c8] sm:$0xff]  ;;  %v1563_v26 = vcombine.low %v69_v14, %v73_v15 }
  0x20   :  { %1765 = vmatpush3.bf16.msra.mxu0 %v2036_v30  ;;  %v96_v30 = vld [vmem:[%s2558_s0 + $0x168] sm:$0xff] }
  0x21   :  { %1829 = vmatpush3.bf16.msra.mxu1 %v2037_v31  ;;  %1878 = vmatprep.subr.bf16.mxu0 %v2038_v40  ;;  %v2059_v31 = vld [vmem:[%s2557_s1 + $0x128] sm:$0xff]   ;;  %v1586_v37 = vcombine.high %v92_v29, %v96_v30  ;;  %v2064_v40 = vld [vmem:[%s2557_s1 + $0x1f0] sm:$0xff]  }
  0x22   :  { %1942 = vmatprep.subr.bf16.mxu1 %v2040_v42  ;;  %v103_v42 = vld [vmem:[%s2558_s0 + $0x1a0] sm:$0xff]  ;;  %v112_v57 = vld [vmem:[%s2558_s0 + $0x1e8] sm:$0xff] }
  0x23   :  { %980 = vmatmul.mubr.bf16.vlgmr.msra.gmra.mrb[0].mxu0 %v1543_v35  ;;  %v1577_v35 = vcombine.low %v84_v16, %v88_v17  ;;  %v1601_v3 = vcombine.low %v108_v56, %v112_v57  ;;  %v70_v16 = vld [vmem:[%s2558_s0 + $0x98] sm:$0xff] }
  0x24   :  { %1077 = vmatmul.mubr.bf16.vlgmr.msra.gmra.mrb[0].mxu1 %v1545_v38  ;;  %1879 = vmatpush3.bf16.msra.mxu0 %v2039_v41  ;;  %v2062_v38 = vld [vmem:[%s2557_s1 + $0x170] sm:$0xff]   ;;  %v99_v41 = vld [vmem:[%s2558_s0 + $0x180] sm:$0xff]  ;;  %v74_v17 = vld [vmem:[%s2558_s0 + $0xb8] sm:$0xff] }
  0x25   :  { %1943 = vmatpush3.bf16.msra.mxu1 %v2041_v43  ;;  %987 = vmatprep.mubr.bf16.mxu0 %v1552_v46  ;;  %v2065_v43 = vld [vmem:[%s2557_s1 + $0x1b0] sm:$0xff]   ;;  %v2066_v46 = vld [vmem:[%s2557_s1 + $0x178] sm:$0xff]   ;;  %v1591_v58 = vcombine.low %v99_v41, %v103_v42  ;;  %v1565_v27 = vcombine.low %v70_v16, %v74_v17 }
  0x26   :  { %1084 = vmatprep.mubr.bf16.mxu1 %v1554_v49  ;;  %1880 = vmatprep.subr.bf16.mxu0 %v2042_v50  ;;  %v1585_v49 = vcombine.low %v92_v29, %v96_v30  ;;  %v1592_v50 = vcombine.high %v99_v41, %v103_v42  ;;  %v85_v30 = vld [vmem:[%s2558_s0 + $0x110] sm:$0xff]  ;;  %v98_v41 = vld [vmem:[%s2558_s0 + $0x178] sm:$0xff] }
  0x27   :  { %1944 = vmatprep.subr.bf16.mxu1 %v2044_v54  ;;  %v107_v54 = vld [vmem:[%s2558_s0 + $0x1c0] sm:$0xff] }
  0x28   :  { %1881 = vmatpush3.bf16.msra.mxu0 %v2043_v52  ;;  %v1594_v52 = vcombine.high %v100_v44, %v104_v45 }
  0x29   :  { %1945 = vmatpush3.bf16.msra.mxu1 %v2045_v55  ;;  %1882 = vmatprep.subr.bf16.mxu0 %v2046_v62  ;;  %v111_v55 = vld [vmem:[%s2558_s0 + $0x1e0] sm:$0xff]  ;;  %v53_v62 = vld [vmem:[%s2558_s0 + $0x10] sm:$0xff] }
  0x2a   :  { %1946 = vmatprep.subr.bf16.mxu1 %v2048_v0  ;;  %v54_v0 = vld [vmem:[%s2558_s0 + $0x18] sm:$0xff] }
  0x2b   :  { %988 = vmatmul.mubr.bf16.gmra.mrb[4].mxu0 %v1551_v51  ;;  %v2068_v51 = vld [vmem:[%s2557_s1 + $0x1f8] sm:$0xff]  }
  0x2c   :  { %1085 = vmatmul.mubr.bf16.gmra.mrb[4].mxu1 %v1553_v53  ;;  %995 = vmatprep.mubr.bf16.mxu0 %v1560_v60  ;;  %v2069_v53 = vld [vmem:[%s2557_s1 + $0x1b8] sm:$0xff]   ;;  %v1600_v60 = vcombine.high %v107_v54, %v111_v55 }
  0x2d   :  { %1092 = vmatprep.mubr.bf16.mxu1 %v1562_v61  ;;  %1883 = vmatpush3.bf16.msra.mxu0 %v2047_v63  ;;  %v1602_v61 = vcombine.high %v108_v56, %v112_v57  ;;  %v57_v63 = vld [vmem:[%s2558_s0 + $0x30] sm:$0xff]  ;;  %v110_v56 = vld [vmem:[%s2558_s0 + $0x1d8] sm:$0xff] }
  0x2e   :  { %1947 = vmatpush3.bf16.msra.mxu1 %v2049_v1  ;;  %1884 = vmatprep.subr.bf16.mxu0 %v2050_v10  ;;  %v58_v1 = vld [vmem:[%s2558_s0 + $0x38] sm:$0xff]  ;;  %v1548_v4 = vcombine.high %v53_v62, %v57_v63  ;;  %v1547_v10 = vcombine.low %v53_v62, %v57_v63 }
  0x2f   :  { %1948 = vmatprep.subr.bf16.mxu1 %v2052_v12  ;;  %v1550_v5 = vcombine.high %v54_v0, %v58_v1  ;;  %v114_v57 = vld [vmem:[%s2558_s0 + $0x1f8] sm:$0xff] }
  0x30   :  { %v1605_v63 = vcombine.low %v110_v56, %v114_v57 }
  0x31   :  { %1885 = vmatpush3.bf16.msra.mxu0 %v2051_v11  ;;  %v1549_v11 = vcombine.low %v54_v0, %v58_v1 }
  0x32   :  { %1949 = vmatpush3.bf16.msra.mxu1 %v2053_v13  ;;  %1886 = vmatprep.subr.bf16.mxu0 %v2054_v18 }
  0x33   :  { %996 = vmatmul.mubr.bf16.gmra.mrb[8].mxu0 %v1559_v2  ;;  %1950 = vmatprep.subr.bf16.mxu1 %v2056_v23  ;;  %v1599_v2 = vcombine.low %v107_v54, %v111_v55  ;;  %v81_v23 = vld [vmem:[%s2558_s0 + $0xf0] sm:$0xff] }
  0x34   :  { %1093 = vmatmul.mubr.bf16.gmra.mrb[8].mxu1 %v1561_v6  ;;  %1003 = vmatprep.mubr.bf16.mxu0 %v1568_v7  ;;  %v61_v6 = vld [vmem:[%s2558_s0 + $0x50] sm:$0xff] }
  0x35   :  { %1100 = vmatprep.mubr.bf16.mxu1 %v1570_v9  ;;  %1887 = vmatpush3.bf16.msra.mxu0 %v2055_v20  ;;  %v65_v7 = vld [vmem:[%s2558_s0 + $0x70] sm:$0xff]  ;;  %v66_v9 = vld [vmem:[%s2558_s0 + $0x78] sm:$0xff]  ;;  %v1564_v20 = vcombine.high %v69_v14, %v73_v15 }
  0x36   :  { %1951 = vmatpush3.bf16.msra.mxu1 %v2057_v25  ;;  %1888 = vmatprep.subr.bf16.mxu0 %v2058_v28  ;;  %v1556_v12 = vcombine.high %v61_v6, %v65_v7  ;;  %v1558_v13 = vcombine.high %v62_v8, %v66_v9  ;;  %v1555_v18 = vcombine.low %v61_v6, %v65_v7  ;;  %v82_v25 = vld [vmem:[%s2558_s0 + $0xf8] sm:$0xff]  ;;  %v109_v54 = vld [vmem:[%s2558_s0 + $0x1d0] sm:$0xff] }
  0x37   :  { %1952 = vmatprep.subr.bf16.mxu1 %v2060_v32  ;;  %v86_v32 = vld [vmem:[%s2558_s0 + $0x118] sm:$0xff]  ;;  %v113_v55 = vld [vmem:[%s2558_s0 + $0x1f0] sm:$0xff] }
  0x38   :  { %v1603_v62 = vcombine.low %v109_v54, %v113_v55 }
  0x39   :  { %1889 = vmatpush3.bf16.msra.mxu0 %v2059_v31  ;;  %v89_v31 = vld [vmem:[%s2558_s0 + $0x130] sm:$0xff] }
  0x3a   :  { %1953 = vmatpush3.bf16.msra.mxu1 %v2061_v33  ;;  %1890 = vmatprep.subr.bf16.mxu0 %v2062_v38  ;;  %v90_v33 = vld [vmem:[%s2558_s0 + $0x138] sm:$0xff]  ;;  %v93_v38 = vld [vmem:[%s2558_s0 + $0x150] sm:$0xff]  ;;  %v1579_v42 = vcombine.low %v85_v30, %v89_v31 }
  0x3b   :  { %1004 = vmatmul.mubr.bf16.gmra.mrb[12].mxu0 %v1567_v19  ;;  %1954 = vmatprep.subr.bf16.mxu1 %v2064_v40  ;;  %v1557_v19 = vcombine.low %v62_v8, %v66_v9  ;;  %v94_v40 = vld [vmem:[%s2558_s0 + $0x158] sm:$0xff] }
  0x3c   :  { %1101 = vmatmul.mubr.bf16.gmra.mrb[12].mxu1 %v1569_v21  ;;  %1011 = vmatprep.mubr.bf16.mxu0 %v1576_v22  ;;  %v1566_v21 = vcombine.high %v70_v16, %v74_v17  ;;  %v77_v22 = vld [vmem:[%s2558_s0 + $0xd0] sm:$0xff]  ;;  %v1590_v45 = vcombine.high %v94_v40, %v98_v41 }
  0x3d   :  { %1108 = vmatprep.mubr.bf16.mxu1 %v1578_v24  ;;  %1891 = vmatpush3.bf16.msra.mxu0 %v2063_v39  ;;  %v78_v24 = vld [vmem:[%s2558_s0 + $0xd8] sm:$0xff]  ;;  %v1572_v28 = vcombine.high %v77_v22, %v81_v23  ;;  %v97_v39 = vld [vmem:[%s2558_s0 + $0x170] sm:$0xff] }
  0x3e   :  { %1955 = vmatpush3.bf16.msra.mxu1 %v2065_v43  ;;  %1892 = vmatprep.subr.bf16.mxu0 %v2066_v46  ;;  %v1574_v29 = vcombine.high %v78_v24, %v82_v25  ;;  %v1581_v43 = vcombine.low %v86_v32, %v90_v33  ;;  %v1588_v44 = vcombine.high %v93_v38, %v97_v39  ;;  %v101_v46 = vld [vmem:[%s2558_s0 + $0x190] sm:$0xff] }
  0x3f   :  { %1956 = vmatprep.subr.bf16.mxu1 %v2068_v51  ;;  %v1589_v51 = vcombine.low %v94_v40, %v98_v41 }
  0x41   :  { %1893 = vmatpush3.bf16.msra.mxu0 %v2067_v48  ;;  %v102_v48 = vld [vmem:[%s2558_s0 + $0x198] sm:$0xff] }
  0x42   :  { %1957 = vmatpush3.bf16.msra.mxu1 %v2069_v53 }
  0x43   :  { %1012 = vmatmul.mubr.bf16.gmra.mrb[16].mxu0 %v1575_v34  ;;  %v1571_v34 = vcombine.low %v77_v22, %v81_v23 }
  0x44   :  { %1109 = vmatmul.mubr.bf16.gmra.mrb[16].mxu1 %v1577_v35  ;;  %1019 = vmatprep.mubr.bf16.mxu0 %v1584_v36  ;;  %v1573_v35 = vcombine.low %v78_v24, %v82_v25  ;;  %v1580_v36 = vcombine.high %v85_v30, %v89_v31 }
  0x45   :  { %1116 = vmatprep.mubr.bf16.mxu1 %v1586_v37  ;;  %v1582_v37 = vcombine.high %v86_v32, %v90_v33 }
  0x4b   :  { %1020 = vmatmul.mubr.bf16.gmra.mrb[20].mxu0 %v1583_v47  ;;  %v105_v47 = vld [vmem:[%s2558_s0 + $0x1b0] sm:$0xff] }
  0x4c   :  { %1117 = vmatmul.mubr.bf16.gmra.mrb[20].mxu1 %v1585_v49  ;;  %1027 = vmatprep.mubr.bf16.mxu0 %v1592_v50  ;;  %v106_v49 = vld [vmem:[%s2558_s0 + $0x1b8] sm:$0xff]  ;;  %v1587_v50 = vcombine.low %v93_v38, %v97_v39 }
  0x4d   :  { %1124 = vmatprep.mubr.bf16.mxu1 %v1594_v52  ;;  %v1596_v52 = vcombine.high %v101_v46, %v105_v47  ;;  %v1598_v53 = vcombine.high %v102_v48, %v106_v49 }
  0x53   :  { %1028 = vmatmul.mubr.bf16.gmra.mrb[24].mxu0 %v1591_v58  ;;  %v1595_v58 = vcombine.low %v101_v46, %v105_v47 }
  0x54   :  { %1125 = vmatmul.mubr.bf16.gmra.mrb[24].mxu1 %v1593_v59  ;;  %1035 = vmatprep.mubr.bf16.mxu0 %v1600_v60  ;;  %v1597_v59 = vcombine.low %v102_v48, %v106_v49  ;;  %v1604_v60 = vcombine.high %v109_v54, %v113_v55 }
  0x55   :  { %1132 = vmatprep.mubr.bf16.mxu1 %v1602_v61  ;;  %v1606_v61 = vcombine.high %v110_v56, %v114_v57 }
  0x5b   :  { %1036 = vmatmul.mubr.bf16.gmra.mrb[28].mxu0 %v1599_v2 }
  0x5c   :  { %1133 = vmatmul.mubr.bf16.gmra.mrb[28].mxu1 %v1601_v3  ;;  %1173 = vmatprep.mubr.bf16.mxu0 %v1548_v4 }
  0x5d   :  { %1270 = vmatprep.mubr.bf16.mxu1 %v1550_v5 }
  0x63   :  { %1174 = vmatmul.mubr.bf16.vlgmr.msra.gmra.mrb[32].mxu0 %v1547_v10 }
  0x64   :  { %1271 = vmatmul.mubr.bf16.vlgmr.msra.gmra.mrb[32].mxu1 %v1549_v11  ;;  %1181 = vmatprep.mubr.bf16.mxu0 %v1556_v12 }
  0x65   :  { %1278 = vmatprep.mubr.bf16.mxu1 %v1558_v13 }
  0x6b   :  { %1182 = vmatmul.mubr.bf16.gmra.mrb[36].mxu0 %v1555_v18 }
  0x6c   :  { %1279 = vmatmul.mubr.bf16.gmra.mrb[36].mxu1 %v1557_v19  ;;  %1189 = vmatprep.mubr.bf16.mxu0 %v1564_v20 }
  0x6d   :  { %1286 = vmatprep.mubr.bf16.mxu1 %v1566_v21 }
  0x73   :  { %1190 = vmatmul.mubr.bf16.gmra.mrb[40].mxu0 %v1563_v26 }
  0x74   :  { %1287 = vmatmul.mubr.bf16.gmra.mrb[40].mxu1 %v1565_v27  ;;  %1197 = vmatprep.mubr.bf16.mxu0 %v1572_v28 }
  0x75   :  { %1294 = vmatprep.mubr.bf16.mxu1 %v1574_v29 }
  0x7b   :  { %1198 = vmatmul.mubr.bf16.gmra.mrb[44].mxu0 %v1571_v34 }
  0x7c   :  { %1295 = vmatmul.mubr.bf16.gmra.mrb[44].mxu1 %v1573_v35  ;;  %1205 = vmatprep.mubr.bf16.mxu0 %v1580_v36 }
  0x7d   :  { %1302 = vmatprep.mubr.bf16.mxu1 %v1582_v37 }
  0x83   :  { %1206 = vmatmul.mubr.bf16.gmra.mrb[48].mxu0 %v1579_v42 }
  0x84   :  { %1303 = vmatmul.mubr.bf16.gmra.mrb[48].mxu1 %v1581_v43  ;;  %1213 = vmatprep.mubr.bf16.mxu0 %v1588_v44 }
  0x85   :  { %1310 = vmatprep.mubr.bf16.mxu1 %v1590_v45 }
  0x8b   :  { %1214 = vmatmul.mubr.bf16.gmra.mrb[52].mxu0 %v1587_v50 }
  0x8c   :  { %1311 = vmatmul.mubr.bf16.gmra.mrb[52].mxu1 %v1589_v51  ;;  %1221 = vmatprep.mubr.bf16.mxu0 %v1596_v52 }
  0x8d   :  { %1318 = vmatprep.mubr.bf16.mxu1 %v1598_v53 }
  0x93   :  { %1222 = vmatmul.mubr.bf16.gmra.mrb[56].mxu0 %v1595_v58 }
  0x94   :  { %1319 = vmatmul.mubr.bf16.gmra.mrb[56].mxu1 %v1597_v59  ;;  %1229 = vmatprep.mubr.bf16.mxu0 %v1604_v60 }
  0x95   :  { %1326 = vmatprep.mubr.bf16.mxu1 %v1606_v61 }
  0x9b   :  { %1230 = vmatmul.mubr.bf16.gmra.mrb[60].mxu0 %v1603_v62 }
  0x9c   :  { %1327 = vmatmul.mubr.bf16.gmra.mrb[60].mxu1 %v1605_v63 }
  0xf6   :  { %v1766_v0 = vpop.f32.mrb[0].mxu0 }
  0xf7   :  { %v1830_v1 = vpop.f32.mrb[0].mxu1  ;;  %v1767_v2 = vpop.f32.mrb[1].mxu0 }
  0xf8   :  { %v1768_v3 = vadd.f32 %v1767_v2, %v1766_v0  ;;  %v1831_v4 = vpop.f32.mrb[1].mxu1  ;;  %v1769_v5 = vpop.f32.mrb[2].mxu0 }
  0xf9   :  { %v1832_v6 = vadd.f32 %v1831_v4, %v1830_v1  ;;  %v1833_v7 = vpop.f32.mrb[2].mxu1  ;;  %v1770_v8 = vpop.f32.mrb[3].mxu0 }
  0xfa   :  { %v1771_v9 = vadd.f32 %v1770_v8, %v1769_v5  ;;  %v1834_v10 = vpop.f32.mrb[3].mxu1 }
  0xfb   :  { %v2479_v11 = vadd.f32 %v1832_v6, %v1768_v3  ;;  %v1835_v12 = vadd.f32 %v1834_v10, %v1833_v7 }
  0xfd   :  { %v2481_v13 = vadd.f32 %v1835_v12, %v1771_v9 }
  0xfe   :  { %v1772_v14 = vpop.f32.mrb[4].mxu0 }
  0xff   :  { %v1836_v15 = vpop.f32.mrb[4].mxu1  ;;  %v1773_v16 = vpop.f32.mrb[5].mxu0 }
 0x100   :  { %v1774_v17 = vadd.f32 %v1773_v16, %v1772_v14  ;;  %v1837_v18 = vpop.f32.mrb[5].mxu1  ;;  %v1775_v19 = vpop.f32.mrb[6].mxu0 }
 0x101   :  { %v1838_v20 = vadd.f32 %v1837_v18, %v1836_v15  ;;  %v1839_v21 = vpop.f32.mrb[6].mxu1  ;;  %v1776_v22 = vpop.f32.mrb[7].mxu0 }
 0x102   :  { %v1777_v23 = vadd.f32 %v1776_v22, %v1775_v19  ;;  %v1840_v24 = vpop.f32.mrb[7].mxu1 }
 0x103   :  { %v2483_v25 = vadd.f32 %v1838_v20, %v1774_v17  ;;  %v1841_v26 = vadd.f32 %v1840_v24, %v1839_v21 }
 0x105   :  { %v2485_v27 = vadd.f32 %v1841_v26, %v1777_v23 }
 0x106   :  { %v1778_v28 = vpop.f32.mrb[8].mxu0 }
 0x107   :  { %v1842_v29 = vpop.f32.mrb[8].mxu1  ;;  %v1779_v30 = vpop.f32.mrb[9].mxu0 }
 0x108   :  { %v1780_v31 = vadd.f32 %v1779_v30, %v1778_v28  ;;  %v1843_v32 = vpop.f32.mrb[9].mxu1  ;;  %v1781_v33 = vpop.f32.mrb[10].mxu0 }
 0x109   :  { %v1844_v34 = vadd.f32 %v1843_v32, %v1842_v29  ;;  %v1845_v35 = vpop.f32.mrb[10].mxu1  ;;  %v1782_v36 = vpop.f32.mrb[11].mxu0 }
 0x10a   :  { %v1783_v37 = vadd.f32 %v1782_v36, %v1781_v33  ;;  %v1846_v38 = vpop.f32.mrb[11].mxu1 }
 0x10b   :  { %v2487_v39 = vadd.f32 %v1844_v34, %v1780_v31  ;;  %v1847_v40 = vadd.f32 %v1846_v38, %v1845_v35 }
 0x10d   :  { %v2489_v41 = vadd.f32 %v1847_v40, %v1783_v37 }
 0x10e   :  { %v1784_v42 = vpop.f32.mrb[12].mxu0 }
 0x10f   :  { %v1848_v43 = vpop.f32.mrb[12].mxu1  ;;  %v1785_v44 = vpop.f32.mrb[13].mxu0 }
 0x110   :  { %v1786_v45 = vadd.f32 %v1785_v44, %v1784_v42  ;;  %v1849_v46 = vpop.f32.mrb[13].mxu1  ;;  %v1787_v47 = vpop.f32.mrb[14].mxu0 }
 0x111   :  { %v1850_v48 = vadd.f32 %v1849_v46, %v1848_v43  ;;  %v1851_v49 = vpop.f32.mrb[14].mxu1  ;;  %v1788_v50 = vpop.f32.mrb[15].mxu0 }
 0x112   :  { %v1789_v51 = vadd.f32 %v1788_v50, %v1787_v47  ;;  %v1852_v52 = vpop.f32.mrb[15].mxu1 }
 0x113   :  { %v2491_v53 = vadd.f32 %v1850_v48, %v1786_v45  ;;  %v1853_v54 = vadd.f32 %v1852_v52, %v1851_v49 }
 0x115   :  { %v2493_v55 = vadd.f32 %v1853_v54, %v1789_v51 }
 0x116   :  { %v1790_v56 = vpop.f32.mrb[16].mxu0 }
 0x117   :  { %v1854_v57 = vpop.f32.mrb[16].mxu1  ;;  %v1791_v58 = vpop.f32.mrb[17].mxu0 }
 0x118   :  { %v1792_v59 = vadd.f32 %v1791_v58, %v1790_v56  ;;  %v1855_v60 = vpop.f32.mrb[17].mxu1  ;;  %v1793_v61 = vpop.f32.mrb[18].mxu0 }
 0x119   :  { %v1856_v62 = vadd.f32 %v1855_v60, %v1854_v57  ;;  %v1857_v63 = vpop.f32.mrb[18].mxu1  ;;  %v1794_v0 = vpop.f32.mrb[19].mxu0 }
 0x11a   :  { %v1795_v1 = vadd.f32 %v1794_v0, %v1793_v61  ;;  %v1858_v2 = vpop.f32.mrb[19].mxu1 }
 0x11b   :  { %v2495_v3 = vadd.f32 %v1856_v62, %v1792_v59  ;;  %v1859_v4 = vadd.f32 %v1858_v2, %v1857_v63 }
 0x11d   :  { %v2497_v5 = vadd.f32 %v1859_v4, %v1795_v1 }
 0x11e   :  { %v1796_v6 = vpop.f32.mrb[20].mxu0 }
 0x11f   :  { %v1860_v7 = vpop.f32.mrb[20].mxu1  ;;  %v1797_v8 = vpop.f32.mrb[21].mxu0 }
 0x120   :  { %v1798_v9 = vadd.f32 %v1797_v8, %v1796_v6  ;;  %v1861_v10 = vpop.f32.mrb[21].mxu1  ;;  %v1799_v12 = vpop.f32.mrb[22].mxu0 }
 0x121   :  { %v1862_v14 = vadd.f32 %v1861_v10, %v1860_v7  ;;  %v1863_v15 = vpop.f32.mrb[22].mxu1  ;;  %v1800_v16 = vpop.f32.mrb[23].mxu0 }
 0x122   :  { %v1801_v17 = vadd.f32 %v1800_v16, %v1799_v12  ;;  %v1864_v18 = vpop.f32.mrb[23].mxu1 }
 0x123   :  { %v2499_v19 = vadd.f32 %v1862_v14, %v1798_v9  ;;  %v1865_v20 = vadd.f32 %v1864_v18, %v1863_v15 }
 0x125   :  { %v2501_v21 = vadd.f32 %v1865_v20, %v1801_v17 }
 0x126   :  { %v1802_v22 = vpop.f32.mrb[24].mxu0 }
 0x127   :  { %v1866_v23 = vpop.f32.mrb[24].mxu1  ;;  %v1803_v24 = vpop.f32.mrb[25].mxu0 }
 0x128   :  { %v1804_v26 = vadd.f32 %v1803_v24, %v1802_v22  ;;  %v1867_v28 = vpop.f32.mrb[25].mxu1  ;;  %v1805_v29 = vpop.f32.mrb[26].mxu0 }
 0x129   :  { %v1868_v30 = vadd.f32 %v1867_v28, %v1866_v23  ;;  %v1869_v31 = vpop.f32.mrb[26].mxu1  ;;  %v1806_v32 = vpop.f32.mrb[27].mxu0 }
 0x12a   :  { %v1807_v33 = vadd.f32 %v1806_v32, %v1805_v29  ;;  %v1870_v34 = vpop.f32.mrb[27].mxu1 }
 0x12b   :  { %v2503_v35 = vadd.f32 %v1868_v30, %v1804_v26  ;;  %v1871_v36 = vadd.f32 %v1870_v34, %v1869_v31 }
 0x12d   :  { %v2505_v37 = vadd.f32 %v1871_v36, %v1807_v33 }
 0x12e   :  { %v1808_v38 = vpop.f32.mrb[28].mxu0 }
 0x12f   :  { %v1872_v40 = vpop.f32.mrb[28].mxu1  ;;  %v1809_v42 = vpop.f32.mrb[29].mxu0 }
 0x130   :  { %v1810_v43 = vadd.f32 %v1809_v42, %v1808_v38  ;;  %v1873_v44 = vpop.f32.mrb[29].mxu1  ;;  %v1811_v45 = vpop.f32.mrb[30].mxu0 }
 0x131   :  { %v1874_v46 = vadd.f32 %v1873_v44, %v1872_v40  ;;  %v1875_v47 = vpop.f32.mrb[30].mxu1  ;;  %v1812_v48 = vpop.f32.mrb[31].mxu0 }
 0x132   :  { %v1813_v49 = vadd.f32 %v1812_v48, %v1811_v45  ;;  %v1876_v50 = vpop.f32.mrb[31].mxu1 }
 0x133   :  { %v2507_v51 = vadd.f32 %v1874_v46, %v1810_v43  ;;  %v1877_v52 = vadd.f32 %v1876_v50, %v1875_v47 }
 0x135   :  { %v2509_v54 = vadd.f32 %v1877_v52, %v1813_v49 }
 0x136   :  { %v1894_v56 = vpop.f32.mrb[32].mxu0 }
 0x137   :  { %v1958_v57 = vpop.f32.mrb[32].mxu1  ;;  %v1895_v58 = vpop.f32.mrb[33].mxu0 }
 0x138   :  { %v1896_v59 = vadd.f32 %v1895_v58, %v1894_v56  ;;  %v1959_v60 = vpop.f32.mrb[33].mxu1  ;;  %v1897_v61 = vpop.f32.mrb[34].mxu0 }
 0x139   :  { %v1960_v62 = vadd.f32 %v1959_v60, %v1958_v57  ;;  %v1961_v63 = vpop.f32.mrb[34].mxu1  ;;  %v1898_v0 = vpop.f32.mrb[35].mxu0 }
 0x13a   :  { %v1176_v1 = vadd.f32 %v1896_v59, %v2479_v11  ;;  %v1899_v2 = vadd.f32 %v1898_v0, %v1897_v61  ;;  %v1962_v4 = vpop.f32.mrb[35].mxu1 }
 0x13b   :  { %v1963_v6 = vadd.f32 %v1962_v4, %v1961_v63 }
 0x13c   :  { %v1273_v7 = vadd.f32 %v1960_v62, %v1176_v1  ;;  %v1179_v8 = vadd.f32 %v1899_v2, %v2481_v13 }
 0x13e   :  { %v1276_v9 = vadd.f32 %v1963_v6, %v1179_v8  ;;  %v1900_v10 = vpop.f32.mrb[36].mxu0  ;;  %v1409_v12 = vmul.f32 %v1273_v7, %v1273_v7 }
 0x13f   :  { %v1964_v14 = vpop.f32.mrb[36].mxu1  ;;  %v1901_v15 = vpop.f32.mrb[37].mxu0 }
 0x140   :  { %v1388_v16 = vadd.f32 %v1276_v9, %v1273_v7  ;;  %v1410_v17 = vmul.f32 %v1276_v9, %v1276_v9  ;;  %v1706_v18 = vpack.c.bf16 %v1276_v9, %v1273_v7  ;;  %v1902_v20 = vadd.f32 %v1901_v15, %v1900_v10  ;;  %v1965_v22 = vpop.f32.mrb[37].mxu1  ;;  %v1903_v23 = vpop.f32.mrb[38].mxu0 }
 0x141   :  { %v1966_v24 = vadd.f32 %v1965_v22, %v1964_v14  ;;  %v1967_v26 = vpop.f32.mrb[38].mxu1  ;;  %v1904_v11 = vpop.f32.mrb[39].mxu0 }
 0x142   :  { %v1425_v28 = vadd.f32 %v1410_v17, %v1409_v12  ;;  %1707 = vst [vmem:[%s2559_s2] sm:$0xff] %v1706_v18   ;;  %v1184_v13 = vadd.f32 %v1902_v20, %v2483_v25  ;;  %v1905_v29 = vadd.f32 %v1904_v11, %v1903_v23  ;;  %v1968_v30 = vpop.f32.mrb[39].mxu1 }
 0x143   :  { %v1969_v31 = vadd.f32 %v1968_v30, %v1967_v26 }
 0x144   :  { %v1281_v32 = vadd.f32 %v1966_v24, %v1184_v13  ;;  %v1187_v33 = vadd.f32 %v1905_v29, %v2485_v27 }
 0x146   :  { %v1389_v34 = vadd.f32 %v1388_v16, %v1281_v32  ;;  %v1411_v36 = vmul.f32 %v1281_v32, %v1281_v32  ;;  %v1284_v38 = vadd.f32 %v1969_v31, %v1187_v33  ;;  %v1906_v40 = vpop.f32.mrb[40].mxu0 }
 0x147   :  { %v1970_v42 = vpop.f32.mrb[40].mxu1  ;;  %v1907_v43 = vpop.f32.mrb[41].mxu0 }
 0x148   :  { %v1426_v44 = vadd.f32 %v1425_v28, %v1411_v36  ;;  %v1390_v45 = vadd.f32 %v1389_v34, %v1284_v38  ;;  %v1412_v46 = vmul.f32 %v1284_v38, %v1284_v38  ;;  %v1711_v47 = vpack.c.bf16 %v1284_v38, %v1281_v32  ;;  %v1971_v48 = vpop.f32.mrb[41].mxu1  ;;  %v1909_v49 = vpop.f32.mrb[42].mxu0 }
 0x149   :  { %v1908_v50 = vadd.f32 %v1907_v43, %v1906_v40  ;;  %v1972_v25 = vadd.f32 %v1971_v48, %v1970_v42  ;;  %v1973_v52 = vpop.f32.mrb[42].mxu1  ;;  %v1910_v56 = vpop.f32.mrb[43].mxu0 }
 0x14a   :  { %v1427_v57 = vadd.f32 %v1426_v44, %v1412_v46  ;;  %1743 = vst [vmem:[%s2559_s2 + $0x8] sm:$0xff] %v1711_v47   ;;  %v1911_v27 = vadd.f32 %v1910_v56, %v1909_v49  ;;  %v1974_v58 = vpop.f32.mrb[43].mxu1 }
 0x14b   :  { %v1192_v59 = vadd.f32 %v1908_v50, %v2487_v39  ;;  %v1975_v60 = vadd.f32 %v1974_v58, %v1973_v52 }
 0x14c   :  { %v1195_v61 = vadd.f32 %v1911_v27, %v2489_v41 }
 0x14d   :  { %v1289_v62 = vadd.f32 %v1972_v25, %v1192_v59 }
 0x14e   :  { %v1292_v63 = vadd.f32 %v1975_v60, %v1195_v61  ;;  %v1912_v0 = vpop.f32.mrb[44].mxu0 }
 0x14f   :  { %v1391_v1 = vadd.f32 %v1390_v45, %v1289_v62  ;;  %v1413_v2 = vmul.f32 %v1289_v62, %v1289_v62  ;;  %v1976_v4 = vpop.f32.mrb[44].mxu1  ;;  %v1913_v6 = vpop.f32.mrb[45].mxu0 }
 0x150   :  { %v1414_v7 = vmul.f32 %v1292_v63, %v1292_v63  ;;  %v1716_v8 = vpack.c.bf16 %v1292_v63, %v1289_v62  ;;  %v1914_v9 = vadd.f32 %v1913_v6, %v1912_v0  ;;  %v1977_v10 = vpop.f32.mrb[45].mxu1  ;;  %v1915_v12 = vpop.f32.mrb[46].mxu0 }
 0x151   :  { %v1428_v14 = vadd.f32 %v1427_v57, %v1413_v2  ;;  %v1392_v15 = vadd.f32 %v1391_v1, %v1292_v63  ;;  %v1978_v16 = vadd.f32 %v1977_v10, %v1976_v4  ;;  %v1979_v17 = vpop.f32.mrb[46].mxu1  ;;  %v1916_v39 = vpop.f32.mrb[47].mxu0 }
 0x152   :  { %1744 = vst [vmem:[%s2559_s2 + $0x10] sm:$0xff] %v1716_v8   ;;  %v1200_v41 = vadd.f32 %v1914_v9, %v2491_v53  ;;  %v1917_v18 = vadd.f32 %v1916_v39, %v1915_v12  ;;  %v1980_v20 = vpop.f32.mrb[47].mxu1 }
 0x153   :  { %v1429_v22 = vadd.f32 %v1428_v14, %v1414_v7  ;;  %v1981_v23 = vadd.f32 %v1980_v20, %v1979_v17 }
 0x154   :  { %v1297_v24 = vadd.f32 %v1978_v16, %v1200_v41  ;;  %v1203_v26 = vadd.f32 %v1917_v18, %v2493_v55 }
 0x156   :  { %v1393_v11 = vadd.f32 %v1392_v15, %v1297_v24  ;;  %v1415_v28 = vmul.f32 %v1297_v24, %v1297_v24  ;;  %v1300_v13 = vadd.f32 %v1981_v23, %v1203_v26  ;;  %v1918_v29 = vpop.f32.mrb[48].mxu0 }
 0x157   :  { %v1982_v30 = vpop.f32.mrb[48].mxu1  ;;  %v1919_v31 = vpop.f32.mrb[49].mxu0 }
 0x158   :  { %v1430_v32 = vadd.f32 %v1429_v22, %v1415_v28  ;;  %v1394_v33 = vadd.f32 %v1393_v11, %v1300_v13  ;;  %v1416_v34 = vmul.f32 %v1300_v13, %v1300_v13  ;;  %v1721_v36 = vpack.c.bf16 %v1300_v13, %v1297_v24  ;;  %v1983_v38 = vpop.f32.mrb[49].mxu1  ;;  %v1921_v40 = vpop.f32.mrb[50].mxu0 }
 0x159   :  { %v1920_v53 = vadd.f32 %v1919_v31, %v1918_v29  ;;  %v1984_v42 = vadd.f32 %v1983_v38, %v1982_v30  ;;  %v1985_v43 = vpop.f32.mrb[50].mxu1  ;;  %v1922_v44 = vpop.f32.mrb[51].mxu0 }
 0x15a   :  { %v1431_v45 = vadd.f32 %v1430_v32, %v1416_v34  ;;  %1745 = vst [vmem:[%s2559_s2 + $0x18] sm:$0xff] %v1721_v36   ;;  %v1923_v55 = vadd.f32 %v1922_v44, %v1921_v40  ;;  %v1986_v46 = vpop.f32.mrb[51].mxu1 }
 0x15b   :  { %v1208_v47 = vadd.f32 %v1920_v53, %v2495_v3  ;;  %v1987_v48 = vadd.f32 %v1986_v46, %v1985_v43 }
 0x15c   :  { %v1211_v49 = vadd.f32 %v1923_v55, %v2497_v5 }
 0x15d   :  { %v1305_v50 = vadd.f32 %v1984_v42, %v1208_v47 }
 0x15e   :  { %v1308_v25 = vadd.f32 %v1987_v48, %v1211_v49  ;;  %v1924_v52 = vpop.f32.mrb[52].mxu0 }
 0x15f   :  { %v1395_v56 = vadd.f32 %v1394_v33, %v1305_v50  ;;  %v1417_v57 = vmul.f32 %v1305_v50, %v1305_v50  ;;  %v1988_v27 = vpop.f32.mrb[52].mxu1  ;;  %v1925_v58 = vpop.f32.mrb[53].mxu0 }
 0x160   :  { %v1418_v59 = vmul.f32 %v1308_v25, %v1308_v25  ;;  %v1726_v60 = vpack.c.bf16 %v1308_v25, %v1305_v50  ;;  %v1926_v61 = vadd.f32 %v1925_v58, %v1924_v52  ;;  %v1989_v62 = vpop.f32.mrb[53].mxu1  ;;  %v1927_v63 = vpop.f32.mrb[54].mxu0 }
 0x161   :  { %v1432_v0 = vadd.f32 %v1431_v45, %v1417_v57  ;;  %v1396_v1 = vadd.f32 %v1395_v56, %v1308_v25  ;;  %v1990_v2 = vadd.f32 %v1989_v62, %v1988_v27  ;;  %v1991_v4 = vpop.f32.mrb[54].mxu1  ;;  %v1928_v3 = vpop.f32.mrb[55].mxu0 }
 0x162   :  { %1746 = vst [vmem:[%s2559_s2 + $0x20] sm:$0xff] %v1726_v60   ;;  %v1216_v5 = vadd.f32 %v1926_v61, %v2499_v19  ;;  %v1929_v6 = vadd.f32 %v1928_v3, %v1927_v63  ;;  %v1992_v7 = vpop.f32.mrb[55].mxu1 }
 0x163   :  { %v1433_v8 = vadd.f32 %v1432_v0, %v1418_v59  ;;  %v1993_v9 = vadd.f32 %v1992_v7, %v1991_v4 }
 0x164   :  { %v1313_v10 = vadd.f32 %v1990_v2, %v1216_v5  ;;  %v1219_v12 = vadd.f32 %v1929_v6, %v2501_v21 }
 0x166   :  { %v1397_v14 = vadd.f32 %v1396_v1, %v1313_v10  ;;  %v1419_v15 = vmul.f32 %v1313_v10, %v1313_v10  ;;  %v1316_v16 = vadd.f32 %v1993_v9, %v1219_v12  ;;  %v1930_v17 = vpop.f32.mrb[56].mxu0 }
 0x167   :  { %v1994_v39 = vpop.f32.mrb[56].mxu1  ;;  %v1931_v41 = vpop.f32.mrb[57].mxu0 }
 0x168   :  { %v1434_v18 = vadd.f32 %v1433_v8, %v1419_v15  ;;  %v1398_v20 = vadd.f32 %v1397_v14, %v1316_v16  ;;  %v1420_v22 = vmul.f32 %v1316_v16, %v1316_v16  ;;  %v1731_v23 = vpack.c.bf16 %v1316_v16, %v1313_v10  ;;  %v1995_v24 = vpop.f32.mrb[57].mxu1  ;;  %v1933_v26 = vpop.f32.mrb[58].mxu0 }
 0x169   :  { %v1932_v19 = vadd.f32 %v1931_v41, %v1930_v17  ;;  %v1996_v11 = vadd.f32 %v1995_v24, %v1994_v39  ;;  %v1997_v28 = vpop.f32.mrb[58].mxu1  ;;  %v1934_v13 = vpop.f32.mrb[59].mxu0 }
 0x16a   :  { %v1435_v29 = vadd.f32 %v1434_v18, %v1420_v22  ;;  %1747 = vst [vmem:[%s2559_s2 + $0x28] sm:$0xff] %v1731_v23   ;;  %v1935_v21 = vadd.f32 %v1934_v13, %v1933_v26  ;;  %v1998_v30 = vpop.f32.mrb[59].mxu1 }
 0x16b   :  { %v1224_v31 = vadd.f32 %v1932_v19, %v2503_v35  ;;  %v1999_v32 = vadd.f32 %v1998_v30, %v1997_v28 }
 0x16c   :  { %v1227_v33 = vadd.f32 %v1935_v21, %v2505_v37 }
 0x16d   :  { %v1321_v34 = vadd.f32 %v1996_v11, %v1224_v31 }
 0x16e   :  { %v1324_v36 = vadd.f32 %v1999_v32, %v1227_v33  ;;  %v1936_v38 = vpop.f32.mrb[60].mxu0 }
 0x16f   :  { %v1399_v40 = vadd.f32 %v1398_v20, %v1321_v34  ;;  %v1421_v53 = vmul.f32 %v1321_v34, %v1321_v34  ;;  %v2000_v42 = vpop.f32.mrb[60].mxu1  ;;  %v1937_v43 = vpop.f32.mrb[61].mxu0 }
 0x170   :  { %v1422_v44 = vmul.f32 %v1324_v36, %v1324_v36  ;;  %v1736_v45 = vpack.c.bf16 %v1324_v36, %v1321_v34  ;;  %v1938_v55 = vadd.f32 %v1937_v43, %v1936_v38  ;;  %v2001_v46 = vpop.f32.mrb[61].mxu1  ;;  %v1939_v47 = vpop.f32.mrb[62].mxu0 }
 0x171   :  { %v1436_v48 = vadd.f32 %v1435_v29, %v1421_v53  ;;  %v1400_v49 = vadd.f32 %v1399_v40, %v1324_v36  ;;  %v2002_v50 = vadd.f32 %v2001_v46, %v2000_v42  ;;  %v2003_v25 = vpop.f32.mrb[62].mxu1  ;;  %v1940_v35 = vpop.f32.mrb[63].mxu0 }
 0x172   :  { %1748 = vst [vmem:[%s2559_s2 + $0x30] sm:$0xff] %v1736_v45   ;;  %v1232_v37 = vadd.f32 %v1938_v55, %v2507_v51  ;;  %v1941_v52 = vadd.f32 %v1940_v35, %v1939_v47  ;;  %v2004_v56 = vpop.f32.mrb[63].mxu1  ;;  %v1386_v51 = vlaneseq }
 0x173   :  { %v1437_v57 = vadd.f32 %v1436_v48, %v1422_v44  ;;  %v2005_v27 = vadd.f32 %v2004_v56, %v2003_v25 }
 0x174   :  { %v1329_v58 = vadd.f32 %v2002_v50, %v1232_v37  ;;  %v1235_v59 = vadd.f32 %v1941_v52, %v2509_v54  ;;  %v1387_v9 = vshrl.u32 %v1386_v51, 7 }
 0x176   :  { %v1401_v60 = vadd.f32 %v1400_v49, %v1329_v58  ;;  %v1423_v61 = vmul.f32 %v1329_v58, %v1329_v58  ;;  %v1332_v62 = vadd.f32 %v2005_v27, %v1235_v59  ;;  %vm1446_vm0 = vcmp.eq.s32.totalorder %v1387_v9, 0 }
 0x178   :  { %v1438_v63 = vadd.f32 %v1437_v57, %v1423_v61  ;;  %v1402_v0 = vadd.f32 %v1401_v60, %v1332_v62  ;;  %v1424_v1 = vmul.f32 %v1332_v62, %v1332_v62  ;;  %v1741_v2 = vpack.c.bf16 %v1332_v62, %v1329_v58 }
 0x17a   :  { %v1403_v4 = vrot.slane %v1402_v0, 4  ;;  %v1439_v3 = vadd.f32 %v1438_v63, %v1424_v1  ;;  %1749 = vst [vmem:[%s2559_s2 + $0x38] sm:$0xff] %v1741_v2  }
 0x17c   :  { %v1404_v5 = vadd.f32 %v1403_v4, %v1402_v0  ;;  %v1440_v6 = vrot.slane %v1439_v3, 4 }
 0x17e   :  { %v1405_v7 = vrot.slane %v1404_v5, 2  ;;  %v1441_v8 = vadd.f32 %v1440_v6, %v1439_v3 }
 0x180   :  { %v1406_v54 = vadd.f32 %v1405_v7, %v1404_v5  ;;  %v1442_v10 = vrot.slane %v1441_v8, 2 }
 0x182   :  { %v1407_v12 = vrot.slane %v1406_v54, 1  ;;  %v1443_v14 = vadd.f32 %v1442_v10, %v1441_v8 }
 0x184   :  { %v1408_v15 = vadd.f32 %v1407_v12, %v1406_v54  ;;  %v1444_v16 = vrot.slane %v1443_v14, 1 }
 0x186   :  { %v1445_v17 = vadd.f32 %v1444_v16, %v1443_v14  ;;  %v1447_v39 = vsel %vm1446_vm0, %v1408_v15, 0.0 }
 0x187   :  { %1448 = vst [vmem:[%s2560_s3] sm:$0xff] %v1447_v39 }
 0x188   :  { %v1449_v41 = vsel %vm1446_vm0, %v1445_v17, 0.0 }
 0x189   :  { %1450 = vst [vmem:[%s2561_s4] sm:$0xff] %v1449_v41 }

// kernel: discriminator_forward.12
= control target key start
LH: loop header
LB: loop body
LE: loop exit
PB: predicated region body
PF: predicated region fallthrough
CT: control target
= control target key end

     0   :  { %v28_v0 = vlaneseq  ;;  %s180_s0 = inlined_call_operand.vmem [shape: bf16[32,256], index: 0, kind: input, shape index: {}]   ;;  %s181_s1 = inlined_call_operand.vmem [shape: f32[1,256], index: 1, kind: input, shape index: {}]   ;;  %s182_s2 = inlined_call_operand.vmem [shape: f32[1,256], index: 2, kind: input, shape index: {}]   ;;  %s183_s3 = inlined_call_operand.vmem [shape: bf16[32,256], index: 3, kind: output, shape index: {}]  }
   0x1   :  { %v14_v1 = vld [vmem:[%s180_s0] sm:$0xff]  ;;  %v15_v3 = vld [vmem:[%s180_s0 + $0x8] sm:$0xff]  ;;  %v16_v4 = vld [vmem:[%s180_s0 + $0x10] sm:$0xff] }
   0x2   :  { %v29_v2 = vshrl.u32 %v28_v0, 7  ;;  %v17_v5 = vld [vmem:[%s180_s0 + $0x18] sm:$0xff]  ;;  %v18_v6 = vunpack.c.l.bf16 %v14_v1  ;;  %v19_v7 = vunpack.c.h.bf16 %v14_v1  ;;  %v26_v8 = vld [vmem:[%s181_s1] sm:$0x3]  ;;  %v20_v12 = vunpack.c.l.bf16 %v15_v3 }
   0x3   :  { %v46_v9 = vld [vmem:[%s182_s2] sm:$0x3]  ;;  %v21_v13 = vunpack.c.h.bf16 %v15_v3  ;;  %v22_v14 = vunpack.c.l.bf16 %v16_v4  ;;  %v23_v15 = vunpack.c.h.bf16 %v16_v4  ;;  %v24_v16 = vunpack.c.l.bf16 %v17_v5 }
   0x4   :  { %v30_v10 = vsub.s32 0, %v29_v2  ;;  %v34_v11 = vsub.s32 1, %v29_v2  ;;  %v25_v17 = vunpack.c.h.bf16 %v17_v5 }
   0x6   :  { %v31_v18 = vrot.slane %v26_v8, %v30_v10  ;;  %v35_v19 = vrot.slane %v26_v8, %v34_v11  ;;  %v51_v20 = vrot.slane %v46_v9, %v30_v10  ;;  %v55_v21 = vrot.slane %v46_v9, %v34_v11 }
   0x8   :  { %v38_v22 = vmul.f32 %v31_v18, %v18_v6  ;;  %v39_v23 = vmul.f32 %v35_v19, %v19_v7  ;;  %v40_v24 = vmul.f32 %v31_v18, %v20_v12  ;;  %v41_v25 = vmul.f32 %v35_v19, %v21_v13 }
   0x9   :  { %v42_v26 = vmul.f32 %v31_v18, %v22_v14  ;;  %v43_v27 = vmul.f32 %v35_v19, %v23_v15  ;;  %v44_v28 = vmul.f32 %v31_v18, %v24_v16  ;;  %v45_v29 = vmul.f32 %v35_v19, %v25_v17 }
   0xa   :  { %v58_v30 = vadd.f32 %v51_v20, %v38_v22  ;;  %v59_v31 = vadd.f32 %v55_v21, %v39_v23  ;;  %v60_v32 = vadd.f32 %v51_v20, %v40_v24  ;;  %v61_v33 = vadd.f32 %v55_v21, %v41_v25 }
   0xb   :  { %v62_v34 = vadd.f32 %v51_v20, %v42_v26  ;;  %v63_v35 = vadd.f32 %v55_v21, %v43_v27  ;;  %v64_v36 = vadd.f32 %v51_v20, %v44_v28  ;;  %v65_v37 = vadd.f32 %v55_v21, %v45_v29 }
   0xc   :  { %vm66_vm0 = vcmp.ge.f32.partialorder %v58_v30, 0.0  ;;  %vm67_vm1 = vcmp.ge.f32.partialorder %v59_v31, 0.0  ;;  %v74_v38 = vmul.f32 0.2, %v58_v30  ;;  %v75_v39 = vmul.f32 0.2, %v59_v31 }
   0xd   :  { %vm68_vm2 = vcmp.ge.f32.partialorder %v60_v32, 0.0  ;;  %vm69_vm3 = vcmp.ge.f32.partialorder %v61_v33, 0.0  ;;  %v76_v40 = vmul.f32 0.2, %v60_v32  ;;  %v77_v41 = vmul.f32 0.2, %v61_v33 }
   0xe   :  { %v82_v42 = vsel %vm66_vm0, %v58_v30, %v74_v38  ;;  %v83_v43 = vsel %vm67_vm1, %v59_v31, %v75_v39  ;;  %vm70_vm4 = vcmp.ge.f32.partialorder %v62_v34, 0.0  ;;  %vm71_vm5 = vcmp.ge.f32.partialorder %v63_v35, 0.0 }
   0xf   :  { %v126_v44 = vpack.c.bf16 %v83_v43, %v82_v42  ;;  %v84_v45 = vsel %vm68_vm2, %v60_v32, %v76_v40  ;;  %v85_v46 = vsel %vm69_vm3, %v61_v33, %v77_v41  ;;  %v78_v47 = vmul.f32 0.2, %v62_v34 }
  0x10   :  { %v127_v48 = vpack.c.bf16 %v85_v46, %v84_v45  ;;  %v79_v49 = vmul.f32 0.2, %v63_v35  ;;  %vm72_vm6 = vcmp.ge.f32.partialorder %v64_v36, 0.0  ;;  %vm73_vm7 = vcmp.ge.f32.partialorder %v65_v37, 0.0 }
  0x11   :  { %114 = vst [vmem:[%s183_s3] sm:$0xff] %v126_v44  ;;  %v86_v50 = vsel %vm70_vm4, %v62_v34, %v78_v47  ;;  %v80_v51 = vmul.f32 0.2, %v64_v36  ;;  %v81_v52 = vmul.f32 0.2, %v65_v37 }
  0x12   :  { %115 = vst [vmem:[%s183_s3 + $0x8] sm:$0xff] %v127_v48  ;;  %v87_v53 = vsel %vm71_vm5, %v63_v35, %v79_v49 }
  0x13   :  { %v128_v54 = vpack.c.bf16 %v87_v53, %v86_v50  ;;  %v88_v55 = vsel %vm72_vm6, %v64_v36, %v80_v51  ;;  %v89_v56 = vsel %vm73_vm7, %v65_v37, %v81_v52 }
  0x14   :  { %v129_v57 = vpack.c.bf16 %v89_v56, %v88_v55 }
  0x15   :  { %116 = vst [vmem:[%s183_s3 + $0x10] sm:$0xff] %v128_v54 }
  0x16   :  { %117 = vst [vmem:[%s183_s3 + $0x18] sm:$0xff] %v129_v57 }

// kernel: discriminator_forward.11
= control target key start
LH: loop header
LB: loop body
LE: loop exit
PB: predicated region body
PF: predicated region fallthrough
CT: control target
= control target key end

     0   :  { %s2286_s15 = smov 0   ;;  %s2288_s16 = smov 0   ;;  %s2559_s0 = inlined_call_operand.vmem [shape: bf16[32,2048], index: 0, kind: input, shape index: {}]   ;;  %s2560_s1 = inlined_call_operand.vmem [shape: bf16[2048,256], index: 1, kind: input, shape index: {}]   ;;  %s2561_s2 = inlined_call_operand.vmem [shape: bf16[32,256], index: 2, kind: output, shape index: {0}]   ;;  %s2562_s3 = inlined_call_operand.vmem [shape: f32[8,256], index: 3, kind: output, shape index: {1}]   ;;  %s2563_s4 = inlined_call_operand.vmem [shape: f32[8,256], index: 4, kind: output, shape index: {2}]  }
   0x1   :  { %s2290_s17 = smov 0   ;;  %s2292_s18 = smov 0  }
   0x2   :  { %s2294_s19 = smov 0  }
   0x3 LB: > { %s27_s20 = sadd.s32 1, %s2254_s18  ;;  %p50_p1 = scmp.ne.s32.totalorder %s2246_s16, %s2242_s15  ;;  %s2258_s19 = sphi %s2294_s19, %s15_s19   ;;  %s2254_s18 = sphi %s2292_s18, %s2567_s18   ;;  %s2250_s17 = sphi %s2290_s17, %s2566_s17   ;;  %s2246_s16 = sphi %s2288_s16, %s2565_s16   ;;  %s2242_s15 = sphi %s2286_s15, %s2564_s15  }
   0x4   : > { %p28_p0 = scmp.ge.s32.totalorder %s27_s20, 2  ;;  %p51_p2 = scmp.eq.s32.totalorder %s2258_s19, 0 }
   0x5   : > { %s43_s22 = sadd.s32 1, %s2246_s16  ;;  %p1790_p5 = scmp.ge.s32.totalorder %s2258_s19, 2 }
   0x6   : > { %s2569_s20 = smov (%p28_p0, %s27_s20), 0  ;;  %p52_p3 = por %p51_p2, %p50_p1 }
   0x7   : > { %s39_s21 = ssub.s32 %s2254_s18, %s2569_s20  ;;  %188 = sbr.rel (%p1790_p5) target bundleno = 26 (0x1a), region = 16 }
   0x8   : > { %p41_p4 = scmp.eq.s32.totalorder %s39_s21, 0 }
   0xa   : > { %s2321_s23 = scalar_select %p41_p4, %s2246_s16, %s43_s22  }
   0xe   : > { %191 = sbr.rel (!%p52_p3) target bundleno = 26 (0x1a), region = 20  ;;  %s193_s24 = sand.u32 (%p52_p3), 1, %s2246_s16  }
   0xf   : > { %s1957_s25 = sshll.u32 (%p52_p3), %s2254_s18, 5  ;;  %s1791_s26 = sshll.u32 (%p52_p3), %s193_s24, 7 }
  0x10   : > { %s2329_s29 = scalar_lea.vmem (%p52_p3), %s2559_s0, %s1957_s25  ;;  %s195_s30 = scalar_lea.vmem (%p52_p3), [#allocation3], %s1791_s26 }
  0x11   : > { %v214_v0 = vld [vmem:[%s2329_s29] sm:$0xff] (%p52_p3)  ;;  %v216_v1 = vld [vmem:[%s2329_s29 + $0x8] sm:$0xff] (%p52_p3)  ;;  %v218_v2 = vld [vmem:[%s2329_s29 + $0x10] sm:$0xff] (%p52_p3) }
  0x12   : > { %215 = vst [vmem:[%s195_s30] sm:$0xff] (%p52_p3), %v214_v0  ;;  %217 = vst [vmem:[%s195_s30 + $0x8] sm:$0xff] (%p52_p3), %v216_v1  ;;  %v220_v3 = vld [vmem:[%s2329_s29 + $0x18] sm:$0xff] (%p52_p3)  ;;  %v222_v4 = vld [vmem:[%s2329_s29 + $0x40] sm:$0xff] (%p52_p3) }
  0x13   : > { %219 = vst [vmem:[%s195_s30 + $0x10] sm:$0xff] (%p52_p3), %v218_v2  ;;  %v224_v5 = vld [vmem:[%s2329_s29 + $0x48] sm:$0xff] (%p52_p3)  ;;  %221 = vst [vmem:[%s195_s30 + $0x18] sm:$0xff] (%p52_p3), %v220_v3  ;;  %v226_v6 = vld [vmem:[%s2329_s29 + $0x50] sm:$0xff] (%p52_p3) }
  0x14   : > { %223 = vst [vmem:[%s195_s30 + $0x20] sm:$0xff] (%p52_p3), %v222_v4  ;;  %225 = vst [vmem:[%s195_s30 + $0x28] sm:$0xff] (%p52_p3), %v224_v5  ;;  %v228_v7 = vld [vmem:[%s2329_s29 + $0x58] sm:$0xff] (%p52_p3)  ;;  %v230_v8 = vld [vmem:[%s2329_s29 + $0x80] sm:$0xff] (%p52_p3) }
  0x15   : > { %227 = vst [vmem:[%s195_s30 + $0x30] sm:$0xff] %v226_v6  ;;  %229 = vst [vmem:[%s195_s30 + $0x38] sm:$0xff] %v228_v7  ;;  %v232_v9 = vld [vmem:[%s2329_s29 + $0x88] sm:$0xff]  ;;  %v234_v10 = vld [vmem:[%s2329_s29 + $0x90] sm:$0xff] }
  0x16   : > { %231 = vst [vmem:[%s195_s30 + $0x40] sm:$0xff] %v230_v8  ;;  %v236_v11 = vld [vmem:[%s2329_s29 + $0x98] sm:$0xff]  ;;  %233 = vst [vmem:[%s195_s30 + $0x48] sm:$0xff] %v232_v9  ;;  %v238_v12 = vld [vmem:[%s2329_s29 + $0xc0] sm:$0xff] }
  0x17   : > { %235 = vst [vmem:[%s195_s30 + $0x50] sm:$0xff] %v234_v10  ;;  %237 = vst [vmem:[%s195_s30 + $0x58] sm:$0xff] %v236_v11  ;;  %v240_v13 = vld [vmem:[%s2329_s29 + $0xc8] sm:$0xff]  ;;  %v242_v14 = vld [vmem:[%s2329_s29 + $0xd0] sm:$0xff] }
  0x18   : > { %239 = vst [vmem:[%s195_s30 + $0x60] sm:$0xff] %v238_v12  ;;  %241 = vst [vmem:[%s195_s30 + $0x68] sm:$0xff] %v240_v13  ;;  %v244_v15 = vld [vmem:[%s2329_s29 + $0xd8] sm:$0xff] }
  0x19   : > { %243 = vst [vmem:[%s195_s30 + $0x70] sm:$0xff] %v242_v14  ;;  %245 = vst [vmem:[%s195_s30 + $0x78] sm:$0xff] %v244_v15 }
  0x1a PF: > { %p1794_p6 = scmp.ge.s32.totalorder %s2258_s19, 1  ;;  %p265_p7 = scmp.lt.s32.totalorder %s2258_s19, 3 }
  0x1c   : > { %p266_p8 = pnand %p1794_p6, %p265_p7 }
  0x1d   : > { %s272_s5 = sand.u32 (!%p266_p8), 1, %s2242_s15   ;;  %s1796_s6 = sshll.u32 (!%p266_p8), %s2250_s17, 7 }
  0x1e   : > { %269 = sbr.rel (%p266_p8) target bundleno = 427 (0x1ab), region = 47  ;;  %s1795_s7 = sshll.u32 (!%p266_p8), %s272_s5, 7 }
  0x1f   : > { %p334_p9 = scmp.lt.s32.totalorder (!%p266_p8), %s1796_s6, 255  ;;  %s2356_s12 = scalar_lea.vmem (!%p266_p8), [#allocation3], %s1795_s7 }
  0x20   : > { %p1799_p10 = scmp.ne.s32.totalorder (!%p266_p8), %s2250_s17, 0 }
  0x25   : > { %s2571_s6 = smov (!%p334_p9, %s1796_s6), 255  ;;  %379 = sbr.rel (%p1799_p10) target bundleno = 44 (0x2c), region = 55 }
  0x26   : > { %s1958_s8 = sshll.u32 %s2571_s6, 3  ;;  %v2260_v16 = vmov (!%p1799_p10), 0.0  }
  0x27   : > { %s2354_s11 = scalar_lea.vmem %s2560_s1, %s1958_s8  ;;  %380 = vst [vmem:[#allocation2] sm:$0xff] (!%p1799_p10), %v2260_v16  ;;  %381 = vst [vmem:[#allocation2 + $0x8] sm:$0xff] (!%p1799_p10), %v2260_v16 }
  0x28   : > { %382 = vst [vmem:[#allocation2 + $0x10] sm:$0xff] (!%p1799_p10), %v2260_v16  ;;  %383 = vst [vmem:[#allocation2 + $0x18] sm:$0xff] (!%p1799_p10), %v2260_v16 }
  0x29   : > { %384 = vst [vmem:[#allocation2 + $0x20] sm:$0xff] (!%p1799_p10), %v2260_v16  ;;  %385 = vst [vmem:[#allocation2 + $0x28] sm:$0xff] (!%p1799_p10), %v2260_v16 }
  0x2a   : > { %386 = vst [vmem:[#allocation2 + $0x30] sm:$0xff] (!%p1799_p10), %v2260_v16  ;;  %387 = vst [vmem:[#allocation2 + $0x38] sm:$0xff] (!%p1799_p10), %v2260_v16 }
  0x2c PF: > { %v2028_v17 = vld [vmem:[%s2354_s11 + $0x4] ss:$8 sps:$4 sm:$0xff]   ;;  %v2032_v19 = vld [vmem:[%s2354_s11] ss:$8 sps:$4 sm:$0xff]   ;;  %v2034_v21 = vld [vmem:[%s2354_s11 + $0x14] ss:$8 sps:$4 sm:$0xff]  }
  0x2d   : > { %v2030_v18 = vld [vmem:[%s2354_s11 + $0x204] ss:$8 sps:$4 sm:$0xff]   ;;  %1260 = vmatprep.subr.bf16.mxu1 %v2028_v17  ;;  %v2033_v20 = vld [vmem:[%s2354_s11 + $0x200] ss:$8 sps:$4 sm:$0xff]   ;;  %v2036_v22 = vld [vmem:[%s2354_s11 + $0x214] ss:$8 sps:$4 sm:$0xff]  }
  0x2e   : > { %1366 = vmatprep.subr.bf16.mxu0 %v2030_v18  ;;  %1261 = vmatpush1.bf16.msra.mxu1 %v2032_v19  ;;  %v2038_v23 = vld [vmem:[%s2354_s11 + $0x10] ss:$8 sps:$4 sm:$0xff]   ;;  %v2040_v25 = vld [vmem:[%s2354_s11 + $0x24] ss:$8 sps:$4 sm:$0xff]   ;;  %v2044_v27 = vld [vmem:[%s2354_s11 + $0x20] ss:$8 sps:$4 sm:$0xff]  }
  0x2f   : > { %1367 = vmatpush1.bf16.msra.mxu0 %v2033_v20  ;;  %1262 = vmatprep.subr.bf16.mxu1 %v2034_v21  ;;  %v2039_v24 = vld [vmem:[%s2354_s11 + $0x210] ss:$8 sps:$4 sm:$0xff]   ;;  %v2042_v26 = vld [vmem:[%s2354_s11 + $0x224] ss:$8 sps:$4 sm:$0xff]   ;;  %v2045_v28 = vld [vmem:[%s2354_s11 + $0x220] ss:$8 sps:$4 sm:$0xff]  }
  0x30   : > { %1368 = vmatprep.subr.bf16.mxu0 %v2036_v22  ;;  %v2046_v29 = vld [vmem:[%s2354_s11 + $0x34] ss:$8 sps:$4 sm:$0xff]   ;;  %v2050_v31 = vld [vmem:[%s2354_s11 + $0x30] ss:$8 sps:$4 sm:$0xff]   ;;  %v2052_v33 = vld [vmem:[%s2354_s11 + $0x44] ss:$8 sps:$4 sm:$0xff]  }
  0x31   : > { %v2048_v30 = vld [vmem:[%s2354_s11 + $0x234] ss:$8 sps:$4 sm:$0xff]   ;;  %v2051_v32 = vld [vmem:[%s2354_s11 + $0x230] ss:$8 sps:$4 sm:$0xff]   ;;  %v2054_v34 = vld [vmem:[%s2354_s11 + $0x244] ss:$8 sps:$4 sm:$0xff]  }
  0x32   : > { %1263 = vmatpush1.bf16.msra.mxu1 %v2038_v23  ;;  %v2056_v35 = vld [vmem:[%s2354_s11 + $0x40] ss:$8 sps:$4 sm:$0xff]   ;;  %v2058_v37 = vld [vmem:[%s2354_s11 + $0x54] ss:$8 sps:$4 sm:$0xff]   ;;  %v2062_v39 = vld [vmem:[%s2354_s11 + $0x50] ss:$8 sps:$4 sm:$0xff]  }
  0x33   : > { %1369 = vmatpush1.bf16.msra.mxu0 %v2039_v24  ;;  %1264 = vmatprep.subr.bf16.mxu1 %v2040_v25  ;;  %v2057_v36 = vld [vmem:[%s2354_s11 + $0x240] ss:$8 sps:$4 sm:$0xff]   ;;  %v2060_v38 = vld [vmem:[%s2354_s11 + $0x254] ss:$8 sps:$4 sm:$0xff]   ;;  %v2063_v40 = vld [vmem:[%s2354_s11 + $0x250] ss:$8 sps:$4 sm:$0xff]  }
  0x34   : > { %1370 = vmatprep.subr.bf16.mxu0 %v2042_v26  ;;  %v2064_v41 = vld [vmem:[%s2354_s11 + $0x64] ss:$8 sps:$4 sm:$0xff]   ;;  %v2068_v43 = vld [vmem:[%s2354_s11 + $0x60] ss:$8 sps:$4 sm:$0xff]   ;;  %v2070_v45 = vld [vmem:[%s2354_s11 + $0x74] ss:$8 sps:$4 sm:$0xff]  }
  0x35   : > { %v2066_v42 = vld [vmem:[%s2354_s11 + $0x264] ss:$8 sps:$4 sm:$0xff]   ;;  %v2069_v44 = vld [vmem:[%s2354_s11 + $0x260] ss:$8 sps:$4 sm:$0xff]   ;;  %v2072_v46 = vld [vmem:[%s2354_s11 + $0x274] ss:$8 sps:$4 sm:$0xff]  }
  0x36   : > { %1265 = vmatpush1.bf16.msra.mxu1 %v2044_v27  ;;  %v2074_v47 = vld [vmem:[%s2354_s11 + $0x70] ss:$8 sps:$4 sm:$0xff]   ;;  %v2076_v49 = vld [vmem:[%s2354_s11 + $0x84] ss:$8 sps:$4 sm:$0xff]   ;;  %v2080_v51 = vld [vmem:[%s2354_s11 + $0x80] ss:$8 sps:$4 sm:$0xff]  }
  0x37   : > { %1371 = vmatpush1.bf16.msra.mxu0 %v2045_v28  ;;  %1266 = vmatprep.subr.bf16.mxu1 %v2046_v29  ;;  %v2075_v48 = vld [vmem:[%s2354_s11 + $0x270] ss:$8 sps:$4 sm:$0xff]   ;;  %v2078_v50 = vld [vmem:[%s2354_s11 + $0x284] ss:$8 sps:$4 sm:$0xff]   ;;  %v2081_v52 = vld [vmem:[%s2354_s11 + $0x280] ss:$8 sps:$4 sm:$0xff]  }
  0x38   : > { %1372 = vmatprep.subr.bf16.mxu0 %v2048_v30  ;;  %v2082_v53 = vld [vmem:[%s2354_s11 + $0x94] ss:$8 sps:$4 sm:$0xff]   ;;  %v2086_v55 = vld [vmem:[%s2354_s11 + $0x90] ss:$8 sps:$4 sm:$0xff]   ;;  %v2088_v57 = vld [vmem:[%s2354_s11 + $0xa4] ss:$8 sps:$4 sm:$0xff]  }
  0x39   : > { %v2084_v54 = vld [vmem:[%s2354_s11 + $0x294] ss:$8 sps:$4 sm:$0xff]   ;;  %v2087_v56 = vld [vmem:[%s2354_s11 + $0x290] ss:$8 sps:$4 sm:$0xff]   ;;  %v2090_v58 = vld [vmem:[%s2354_s11 + $0x2a4] ss:$8 sps:$4 sm:$0xff]  }
  0x3a   : > { %1267 = vmatpush1.bf16.msra.mxu1 %v2050_v31  ;;  %v2092_v59 = vld [vmem:[%s2354_s11 + $0xa0] ss:$8 sps:$4 sm:$0xff]   ;;  %v2094_v61 = vld [vmem:[%s2354_s11 + $0xb4] ss:$8 sps:$4 sm:$0xff]   ;;  %v2098_v63 = vld [vmem:[%s2354_s11 + $0xb0] ss:$8 sps:$4 sm:$0xff]  }
  0x3b   : > { %1373 = vmatpush1.bf16.msra.mxu0 %v2051_v32  ;;  %1268 = vmatprep.subr.bf16.mxu1 %v2052_v33  ;;  %v2093_v60 = vld [vmem:[%s2354_s11 + $0x2a0] ss:$8 sps:$4 sm:$0xff]   ;;  %v2096_v62 = vld [vmem:[%s2354_s11 + $0x2b4] ss:$8 sps:$4 sm:$0xff]   ;;  %v2099_v0 = vld [vmem:[%s2354_s11 + $0x2b0] ss:$8 sps:$4 sm:$0xff]  }
  0x3c   : > { %1374 = vmatprep.subr.bf16.mxu0 %v2054_v34  ;;  %v396_v1 = vld [vmem:[%s2356_s12] sm:$0xff]  ;;  %v398_v6 = vld [vmem:[%s2356_s12 + $0x10] sm:$0xff]  ;;  %p1944_p11 = scmp.ne.s32.totalorder %s2250_s17, 1 }
  0x3d   : > { %v400_v2 = vld [vmem:[%s2356_s12 + $0x20] sm:$0xff]  ;;  %v402_v7 = vld [vmem:[%s2356_s12 + $0x30] sm:$0xff] }
  0x3e   : > { %1269 = vmatpush1.bf16.msra.mxu1 %v2056_v35  ;;  %v2100_v3 = vld [vmem:[%s2354_s11 + $0xc4] ss:$8 sps:$4 sm:$0xff]   ;;  %v1801_v5 = vcombine.high %v396_v1, %v400_v2  ;;  %v1805_v8 = vcombine.high %v398_v6, %v402_v7  ;;  %v2104_v9 = vld [vmem:[%s2354_s11 + $0xc0] ss:$8 sps:$4 sm:$0xff]   ;;  %v2106_v11 = vld [vmem:[%s2354_s11 + $0xd4] ss:$8 sps:$4 sm:$0xff]   ;;  %v1800_v25 = vcombine.low %v396_v1, %v400_v2  ;;  %v1804_v27 = vcombine.low %v398_v6, %v402_v7 }
  0x3f   : > { %1375 = vmatpush1.bf16.msra.mxu0 %v2057_v36  ;;  %1270 = vmatprep.subr.bf16.mxu1 %v2058_v37  ;;  %v2102_v4 = vld [vmem:[%s2354_s11 + $0x2c4] ss:$8 sps:$4 sm:$0xff]   ;;  %v2105_v10 = vld [vmem:[%s2354_s11 + $0x2c0] ss:$8 sps:$4 sm:$0xff]   ;;  %v2108_v12 = vld [vmem:[%s2354_s11 + $0x2d4] ss:$8 sps:$4 sm:$0xff]  }
  0x40   : > { %1376 = vmatprep.subr.bf16.mxu0 %v2060_v38  ;;  %1292 = vmatprep.mubr.bf16.mxu1 %v1801_v5  ;;  %v2110_v13 = vld [vmem:[%s2354_s11 + $0xd0] ss:$8 sps:$4 sm:$0xff]   ;;  %v2112_v15 = vld [vmem:[%s2354_s11 + $0xe4] ss:$8 sps:$4 sm:$0xff]   ;;  %v2116_v17 = vld [vmem:[%s2354_s11 + $0xe0] ss:$8 sps:$4 sm:$0xff]  }
  0x41   : > { %1398 = vmatprep.mubr.bf16.mxu0 %v1805_v8  ;;  %v2111_v14 = vld [vmem:[%s2354_s11 + $0x2d0] ss:$8 sps:$4 sm:$0xff]   ;;  %v2114_v16 = vld [vmem:[%s2354_s11 + $0x2e4] ss:$8 sps:$4 sm:$0xff]   ;;  %v2117_v18 = vld [vmem:[%s2354_s11 + $0x2e0] ss:$8 sps:$4 sm:$0xff]  }
  0x42   : > { %1271 = vmatpush1.bf16.msra.mxu1 %v2062_v39  ;;  %v2118_v19 = vld [vmem:[%s2354_s11 + $0xf4] ss:$8 sps:$4 sm:$0xff]   ;;  %v2122_v21 = vld [vmem:[%s2354_s11 + $0xf0] ss:$8 sps:$4 sm:$0xff]   ;;  %v2126_v23 = vld [vmem:[%s2354_s11 + $0x104] ss:$8 sps:$4 sm:$0xff]  }
  0x43   : > { %1377 = vmatpush1.bf16.msra.mxu0 %v2063_v40  ;;  %1272 = vmatprep.subr.bf16.mxu1 %v2064_v41  ;;  %v2120_v20 = vld [vmem:[%s2354_s11 + $0x2f4] ss:$8 sps:$4 sm:$0xff]   ;;  %v2123_v22 = vld [vmem:[%s2354_s11 + $0x2f0] ss:$8 sps:$4 sm:$0xff]   ;;  %v2129_v24 = vld [vmem:[%s2354_s11 + $0x304] ss:$8 sps:$4 sm:$0xff]  }
  0x44   : > { %1378 = vmatprep.subr.bf16.mxu0 %v2066_v42  ;;  %v2124_v26 = vld [vmem:[%s2354_s11 + $0x100] ss:$8 sps:$4 sm:$0xff]   ;;  %v2132_v29 = vld [vmem:[%s2354_s11 + $0x114] ss:$8 sps:$4 sm:$0xff]   ;;  %v2130_v31 = vld [vmem:[%s2354_s11 + $0x110] ss:$8 sps:$4 sm:$0xff]  }
  0x45   : > { %v2127_v28 = vld [vmem:[%s2354_s11 + $0x300] ss:$8 sps:$4 sm:$0xff]   ;;  %v2135_v30 = vld [vmem:[%s2354_s11 + $0x314] ss:$8 sps:$4 sm:$0xff]   ;;  %v2133_v32 = vld [vmem:[%s2354_s11 + $0x310] ss:$8 sps:$4 sm:$0xff]  }
  0x46   : > { %1273 = vmatpush1.bf16.msra.mxu1 %v2068_v43  ;;  %v2138_v33 = vld [vmem:[%s2354_s11 + $0x124] ss:$8 sps:$4 sm:$0xff]   ;;  %v2136_v35 = vld [vmem:[%s2354_s11 + $0x120] ss:$8 sps:$4 sm:$0xff]   ;;  %v2144_v37 = vld [vmem:[%s2354_s11 + $0x134] ss:$8 sps:$4 sm:$0xff]  }
  0x47   : > { %1379 = vmatpush1.bf16.msra.mxu0 %v2069_v44  ;;  %1274 = vmatprep.subr.bf16.mxu1 %v2070_v45  ;;  %v2141_v34 = vld [vmem:[%s2354_s11 + $0x324] ss:$8 sps:$4 sm:$0xff]   ;;  %v2139_v36 = vld [vmem:[%s2354_s11 + $0x320] ss:$8 sps:$4 sm:$0xff]   ;;  %v2147_v38 = vld [vmem:[%s2354_s11 + $0x334] ss:$8 sps:$4 sm:$0xff]  }
  0x48   : > { %1380 = vmatprep.subr.bf16.mxu0 %v2072_v46  ;;  %v2142_v39 = vld [vmem:[%s2354_s11 + $0x130] ss:$8 sps:$4 sm:$0xff]   ;;  %v2150_v41 = vld [vmem:[%s2354_s11 + $0x144] ss:$8 sps:$4 sm:$0xff]   ;;  %v2148_v43 = vld [vmem:[%s2354_s11 + $0x140] ss:$8 sps:$4 sm:$0xff]  }
  0x49   : > { %v2145_v40 = vld [vmem:[%s2354_s11 + $0x330] ss:$8 sps:$4 sm:$0xff]   ;;  %v2153_v42 = vld [vmem:[%s2354_s11 + $0x344] ss:$8 sps:$4 sm:$0xff]   ;;  %v2151_v44 = vld [vmem:[%s2354_s11 + $0x340] ss:$8 sps:$4 sm:$0xff]  }
  0x4a   : > { %1275 = vmatpush1.bf16.msra.mxu1 %v2074_v47  ;;  %v2156_v45 = vld [vmem:[%s2354_s11 + $0x154] ss:$8 sps:$4 sm:$0xff]   ;;  %v404_v47 = vld [vmem:[%s2356_s12 + $0x40] sm:$0xff]  ;;  %v2166_v5 = vld [vmem:[%s2354_s11 + $0x170] ss:$8 sps:$4 sm:$0xff]  }
  0x4b   : > { %1381 = vmatpush1.bf16.msra.mxu0 %v2075_v48  ;;  %1276 = vmatprep.subr.bf16.mxu1 %v2076_v49  ;;  %v2159_v46 = vld [vmem:[%s2354_s11 + $0x354] ss:$8 sps:$4 sm:$0xff]   ;;  %v408_v48 = vld [vmem:[%s2356_s12 + $0x60] sm:$0xff]  ;;  %v2169_v6 = vld [vmem:[%s2354_s11 + $0x370] ss:$8 sps:$4 sm:$0xff]  }
  0x4c   : > { %1382 = vmatprep.subr.bf16.mxu0 %v2078_v50  ;;  %v1809_v49 = vcombine.high %v404_v47, %v408_v48  ;;  %v406_v50 = vld [vmem:[%s2356_s12 + $0x50] sm:$0xff]  ;;  %v2174_v7 = vld [vmem:[%s2354_s11 + $0x184] ss:$8 sps:$4 sm:$0xff]  }
  0x4d   : > { %v2171_v1 = vld [vmem:[%s2354_s11 + $0x374] ss:$8 sps:$4 sm:$0xff]   ;;  %v2177_v8 = vld [vmem:[%s2354_s11 + $0x384] ss:$8 sps:$4 sm:$0xff]  }
  0x4e   : > { %1277 = vmatpush1.bf16.msra.mxu1 %v2080_v51  ;;  %v410_v51 = vld [vmem:[%s2356_s12 + $0x70] sm:$0xff] }
  0x4f   : > { %1383 = vmatpush1.bf16.msra.mxu0 %v2081_v52  ;;  %1278 = vmatprep.subr.bf16.mxu1 %v2082_v53  ;;  %v2154_v52 = vld [vmem:[%s2354_s11 + $0x150] ss:$8 sps:$4 sm:$0xff]  }
  0x50   : > { %1384 = vmatprep.subr.bf16.mxu0 %v2084_v54  ;;  %v2157_v53 = vld [vmem:[%s2354_s11 + $0x350] ss:$8 sps:$4 sm:$0xff]   ;;  %v1813_v54 = vcombine.high %v406_v50, %v410_v51 }
  0x52   : > { %1279 = vmatpush1.bf16.msra.mxu1 %v2086_v55  ;;  %v1808_v55 = vcombine.low %v404_v47, %v408_v48 }
  0x53   : > { %1385 = vmatpush1.bf16.msra.mxu0 %v2087_v56  ;;  %1280 = vmatprep.subr.bf16.mxu1 %v2088_v57  ;;  %v1812_v56 = vcombine.low %v406_v50, %v410_v51  ;;  %v2162_v57 = vld [vmem:[%s2354_s11 + $0x164] ss:$8 sps:$4 sm:$0xff]  }
  0x54   : > { %1386 = vmatprep.subr.bf16.mxu0 %v2090_v58  ;;  %v2165_v58 = vld [vmem:[%s2354_s11 + $0x364] ss:$8 sps:$4 sm:$0xff]  }
  0x55   : > { %v388_v50 = vld [vmem:[#allocation2] sm:$0xff] }
  0x56   : > { %1281 = vmatpush1.bf16.msra.mxu1 %v2092_v59  ;;  %v2160_v59 = vld [vmem:[%s2354_s11 + $0x160] ss:$8 sps:$4 sm:$0xff]  }
  0x57   : > { %1387 = vmatpush1.bf16.msra.mxu0 %v2093_v60  ;;  %1282 = vmatprep.subr.bf16.mxu1 %v2094_v61  ;;  %v2163_v60 = vld [vmem:[%s2354_s11 + $0x360] ss:$8 sps:$4 sm:$0xff]  }
  0x58   : > { %1388 = vmatprep.subr.bf16.mxu0 %v2096_v62  ;;  %v2460_v61 = vld [vmem:[%s2356_s12 + $0x8] sm:$0xff] }
  0x59   : > { %v2463_v62 = vld [vmem:[%s2356_s12 + $0x28] sm:$0xff] }
  0x5a   : > { %1283 = vmatpush1.bf16.msra.mxu1 %v2098_v63  ;;  %v2466_v63 = vld [vmem:[%s2356_s12 + $0x18] sm:$0xff]  ;;  %v1803_v2 = vcombine.high %v2460_v61, %v2463_v62 }
  0x5b   : > { %1389 = vmatpush1.bf16.msra.mxu0 %v2099_v0  ;;  %1284 = vmatprep.subr.bf16.mxu1 %v2100_v3  ;;  %v2168_v0 = vld [vmem:[%s2354_s11 + $0x174] ss:$8 sps:$4 sm:$0xff]  }
  0x5c   : > { %1390 = vmatprep.subr.bf16.mxu0 %v2102_v4  ;;  %v2473_v3 = vld [vmem:[%s2356_s12 + $0x38] sm:$0xff] }
  0x5d   : > { %v1807_v4 = vcombine.high %v2466_v63, %v2473_v3 }
  0x5e   : > { %1285 = vmatpush1.bf16.msra.mxu1 %v2104_v9  ;;  %v2172_v9 = vld [vmem:[%s2354_s11 + $0x180] ss:$8 sps:$4 sm:$0xff]  }
  0x5f   : > { %1391 = vmatpush1.bf16.msra.mxu0 %v2105_v10  ;;  %1286 = vmatprep.subr.bf16.mxu1 %v2106_v11  ;;  %v2175_v10 = vld [vmem:[%s2354_s11 + $0x380] ss:$8 sps:$4 sm:$0xff]   ;;  %v2180_v11 = vld [vmem:[%s2354_s11 + $0x194] ss:$8 sps:$4 sm:$0xff]  }
  0x60   : > { %1392 = vmatprep.subr.bf16.mxu0 %v2108_v12  ;;  %v2183_v12 = vld [vmem:[%s2354_s11 + $0x394] ss:$8 sps:$4 sm:$0xff]  }
  0x62   : > { %1287 = vmatpush1.bf16.msra.mxu1 %v2110_v13  ;;  %v2178_v13 = vld [vmem:[%s2354_s11 + $0x190] ss:$8 sps:$4 sm:$0xff]  }
  0x63   : > { %1393 = vmatpush1.bf16.msra.mxu0 %v2111_v14  ;;  %1288 = vmatprep.subr.bf16.mxu1 %v2112_v15  ;;  %v2181_v14 = vld [vmem:[%s2354_s11 + $0x390] ss:$8 sps:$4 sm:$0xff]   ;;  %v2186_v15 = vld [vmem:[%s2354_s11 + $0x1a4] ss:$8 sps:$4 sm:$0xff]  }
  0x64   : > { %1394 = vmatprep.subr.bf16.mxu0 %v2114_v16  ;;  %v2189_v16 = vld [vmem:[%s2354_s11 + $0x3a4] ss:$8 sps:$4 sm:$0xff]  }
  0x66   : > { %1289 = vmatpush1.bf16.msra.mxu1 %v2116_v17  ;;  %v2184_v17 = vld [vmem:[%s2354_s11 + $0x1a0] ss:$8 sps:$4 sm:$0xff]  }
  0x67   : > { %1395 = vmatpush1.bf16.msra.mxu0 %v2117_v18  ;;  %1290 = vmatprep.subr.bf16.mxu1 %v2118_v19  ;;  %v2187_v18 = vld [vmem:[%s2354_s11 + $0x3a0] ss:$8 sps:$4 sm:$0xff]   ;;  %v2192_v19 = vld [vmem:[%s2354_s11 + $0x1b4] ss:$8 sps:$4 sm:$0xff]  }
  0x68   : > { %1396 = vmatprep.subr.bf16.mxu0 %v2120_v20  ;;  %v2195_v20 = vld [vmem:[%s2354_s11 + $0x3b4] ss:$8 sps:$4 sm:$0xff]  }
  0x6a   : > { %1291 = vmatpush1.bf16.msra.mxu1 %v2122_v21  ;;  %v2190_v21 = vld [vmem:[%s2354_s11 + $0x1b0] ss:$8 sps:$4 sm:$0xff]  }
  0x6b   : > { %1397 = vmatpush1.bf16.msra.mxu0 %v2123_v22  ;;  %1313 = vmatprep.subr.bf16.mxu1 %v2126_v23  ;;  %v2193_v22 = vld [vmem:[%s2354_s11 + $0x3b0] ss:$8 sps:$4 sm:$0xff]   ;;  %v2198_v23 = vld [vmem:[%s2354_s11 + $0x1c4] ss:$8 sps:$4 sm:$0xff]  }
  0x6c   : > { %1419 = vmatprep.subr.bf16.mxu0 %v2129_v24  ;;  %v2201_v24 = vld [vmem:[%s2354_s11 + $0x3c4] ss:$8 sps:$4 sm:$0xff]  }
  0x6d   : > { %1293 = vmatmul.mubr.bf16.vlgmr.msra.gmra.mrb[0].mxu1 %v1800_v25  ;;  %v2196_v25 = vld [vmem:[%s2354_s11 + $0x1c0] ss:$8 sps:$4 sm:$0xff]  }
  0x6e   : > { %1399 = vmatmul.mubr.bf16.vlgmr.msra.gmra.mrb[0].mxu0 %v1804_v27  ;;  %1314 = vmatpush1.bf16.msra.mxu1 %v2124_v26  ;;  %v2199_v26 = vld [vmem:[%s2354_s11 + $0x3c0] ss:$8 sps:$4 sm:$0xff]   ;;  %v2204_v27 = vld [vmem:[%s2354_s11 + $0x1d4] ss:$8 sps:$4 sm:$0xff]  }
  0x6f   : > { %1420 = vmatpush1.bf16.msra.mxu0 %v2127_v28  ;;  %1315 = vmatprep.subr.bf16.mxu1 %v2132_v29  ;;  %v2207_v28 = vld [vmem:[%s2354_s11 + $0x3d4] ss:$8 sps:$4 sm:$0xff]   ;;  %v2202_v29 = vld [vmem:[%s2354_s11 + $0x1d0] ss:$8 sps:$4 sm:$0xff]  }
  0x70   : > { %1421 = vmatprep.subr.bf16.mxu0 %v2135_v30  ;;  %1302 = vmatprep.mubr.bf16.mxu1 %v1809_v49  ;;  %v2205_v30 = vld [vmem:[%s2354_s11 + $0x3d0] ss:$8 sps:$4 sm:$0xff]  }
  0x71   : > { %1408 = vmatprep.mubr.bf16.mxu0 %v1813_v54  ;;  %v389_v54 = vld [vmem:[#allocation2 + $0x8] sm:$0xff] }
  0x72   : > { %1316 = vmatpush1.bf16.msra.mxu1 %v2130_v31  ;;  %v2210_v31 = vld [vmem:[%s2354_s11 + $0x1e4] ss:$8 sps:$4 sm:$0xff]  }
  0x73   : > { %1422 = vmatpush1.bf16.msra.mxu0 %v2133_v32  ;;  %1317 = vmatprep.subr.bf16.mxu1 %v2138_v33  ;;  %v2213_v32 = vld [vmem:[%s2354_s11 + $0x3e4] ss:$8 sps:$4 sm:$0xff]   ;;  %v2208_v33 = vld [vmem:[%s2354_s11 + $0x1e0] ss:$8 sps:$4 sm:$0xff]  }
  0x74   : > { %1423 = vmatprep.subr.bf16.mxu0 %v2141_v34  ;;  %v2211_v34 = vld [vmem:[%s2354_s11 + $0x3e0] ss:$8 sps:$4 sm:$0xff]  }
  0x75   : > { %1303 = vmatmul.mubr.bf16.gmra.mrb[4].mxu1 %v1808_v55 }
  0x76   : > { %1318 = vmatpush1.bf16.msra.mxu1 %v2136_v35  ;;  %1409 = vmatmul.mubr.bf16.gmra.mrb[4].mxu0 %v1812_v56  ;;  %v2216_v35 = vld [vmem:[%s2354_s11 + $0x1f4] ss:$8 sps:$4 sm:$0xff]  }
  0x77   : > { %1424 = vmatpush1.bf16.msra.mxu0 %v2139_v36  ;;  %1319 = vmatprep.subr.bf16.mxu1 %v2144_v37  ;;  %v2219_v36 = vld [vmem:[%s2354_s11 + $0x3f4] ss:$8 sps:$4 sm:$0xff]   ;;  %v2214_v37 = vld [vmem:[%s2354_s11 + $0x1f0] ss:$8 sps:$4 sm:$0xff]  }
  0x78   : > { %1425 = vmatprep.subr.bf16.mxu0 %v2147_v38  ;;  %1345 = vmatprep.mubr.bf16.mxu1 %v1803_v2  ;;  %v2217_v38 = vld [vmem:[%s2354_s11 + $0x3f0] ss:$8 sps:$4 sm:$0xff]  }
  0x79   : > { %1451 = vmatprep.mubr.bf16.mxu0 %v1807_v4 }
  0x7a   : > { %1320 = vmatpush1.bf16.msra.mxu1 %v2142_v39  ;;  %v405_v39 = vld [vmem:[%s2356_s12 + $0x48] sm:$0xff] }
  0x7b   : > { %1426 = vmatpush1.bf16.msra.mxu0 %v2145_v40  ;;  %1321 = vmatprep.subr.bf16.mxu1 %v2150_v41  ;;  %v409_v40 = vld [vmem:[%s2356_s12 + $0x68] sm:$0xff]  ;;  %v407_v41 = vld [vmem:[%s2356_s12 + $0x58] sm:$0xff] }
  0x7c   : > { %1427 = vmatprep.subr.bf16.mxu0 %v2153_v42  ;;  %v411_v42 = vld [vmem:[%s2356_s12 + $0x78] sm:$0xff]  ;;  %v1810_v47 = vcombine.low %v405_v39, %v409_v40 }
  0x7d   : > { %v1814_v48 = vcombine.low %v407_v41, %v411_v42 }
  0x7e   : > { %1322 = vmatpush1.bf16.msra.mxu1 %v2148_v43  ;;  %v1802_v43 = vcombine.low %v2460_v61, %v2463_v62 }
  0x7f   : > { %1428 = vmatpush1.bf16.msra.mxu0 %v2151_v44  ;;  %1323 = vmatprep.subr.bf16.mxu1 %v2156_v45  ;;  %v1806_v44 = vcombine.low %v2466_v63, %v2473_v3  ;;  %v1811_v45 = vcombine.high %v405_v39, %v409_v40  ;;  %v391_v63 = vld [vmem:[#allocation2 + $0x18] sm:$0xff] }
  0x80   : > { %1429 = vmatprep.subr.bf16.mxu0 %v2159_v46  ;;  %v1815_v46 = vcombine.high %v407_v41, %v411_v42 }
  0x82   : > { %1324 = vmatpush1.bf16.msra.mxu1 %v2154_v52 }
  0x83   : > { %1430 = vmatpush1.bf16.msra.mxu0 %v2157_v53  ;;  %1325 = vmatprep.subr.bf16.mxu1 %v2162_v57 }
  0x84   : > { %1431 = vmatprep.subr.bf16.mxu0 %v2165_v58  ;;  %v390_v58 = vld [vmem:[#allocation2 + $0x10] sm:$0xff] }
  0x86   : > { %1326 = vmatpush1.bf16.msra.mxu1 %v2160_v59 }
  0x87   : > { %1432 = vmatpush1.bf16.msra.mxu0 %v2163_v60  ;;  %1327 = vmatprep.subr.bf16.mxu1 %v2168_v0 }
  0x88   : > { %1433 = vmatprep.subr.bf16.mxu0 %v2171_v1 }
  0x8a   : > { %1328 = vmatpush1.bf16.msra.mxu1 %v2166_v5 }
  0x8b   : > { %1434 = vmatpush1.bf16.msra.mxu0 %v2169_v6  ;;  %1329 = vmatprep.subr.bf16.mxu1 %v2174_v7  ;;  %v392_v6 = vld [vmem:[#allocation2 + $0x20] sm:$0xff] }
  0x8c   : > { %1435 = vmatprep.subr.bf16.mxu0 %v2177_v8 }
  0x8e   : > { %1330 = vmatpush1.bf16.msra.mxu1 %v2172_v9 }
  0x8f   : > { %1436 = vmatpush1.bf16.msra.mxu0 %v2175_v10  ;;  %1331 = vmatprep.subr.bf16.mxu1 %v2180_v11  ;;  %v393_v10 = vld [vmem:[#allocation2 + $0x28] sm:$0xff] }
  0x90   : > { %1437 = vmatprep.subr.bf16.mxu0 %v2183_v12 }
  0x92   : > { %1332 = vmatpush1.bf16.msra.mxu1 %v2178_v13 }
  0x93   : > { %1438 = vmatpush1.bf16.msra.mxu0 %v2181_v14  ;;  %1333 = vmatprep.subr.bf16.mxu1 %v2186_v15  ;;  %v394_v14 = vld [vmem:[#allocation2 + $0x30] sm:$0xff] }
  0x94   : > { %1439 = vmatprep.subr.bf16.mxu0 %v2189_v16 }
  0x96   : > { %1334 = vmatpush1.bf16.msra.mxu1 %v2184_v17 }
  0x97   : > { %1440 = vmatpush1.bf16.msra.mxu0 %v2187_v18  ;;  %1335 = vmatprep.subr.bf16.mxu1 %v2192_v19  ;;  %v395_v19 = vld [vmem:[#allocation2 + $0x38] sm:$0xff] }
  0x98   : > { %1441 = vmatprep.subr.bf16.mxu0 %v2195_v20 }
  0x9a   : > { %1336 = vmatpush1.bf16.msra.mxu1 %v2190_v21 }
  0x9b   : > { %1442 = vmatpush1.bf16.msra.mxu0 %v2193_v22  ;;  %1337 = vmatprep.subr.bf16.mxu1 %v2198_v23 }
  0x9c   : > { %1443 = vmatprep.subr.bf16.mxu0 %v2201_v24 }
  0x9e   : > { %1338 = vmatpush1.bf16.msra.mxu1 %v2196_v25 }
  0x9f   : > { %1444 = vmatpush1.bf16.msra.mxu0 %v2199_v26  ;;  %1339 = vmatprep.subr.bf16.mxu1 %v2204_v27 }
  0xa0   : > { %1445 = vmatprep.subr.bf16.mxu0 %v2207_v28 }
  0xa2   : > { %1340 = vmatpush1.bf16.msra.mxu1 %v2202_v29 }
  0xa3   : > { %1446 = vmatpush1.bf16.msra.mxu0 %v2205_v30  ;;  %1341 = vmatprep.subr.bf16.mxu1 %v2210_v31 }
  0xa4   : > { %1447 = vmatprep.subr.bf16.mxu0 %v2213_v32 }
  0xa6   : > { %1342 = vmatpush1.bf16.msra.mxu1 %v2208_v33 }
  0xa7   : > { %1448 = vmatpush1.bf16.msra.mxu0 %v2211_v34  ;;  %1343 = vmatprep.subr.bf16.mxu1 %v2216_v35 }
  0xa8   : > { %1449 = vmatprep.subr.bf16.mxu0 %v2219_v36 }
  0xaa   : > { %1344 = vmatpush1.bf16.msra.mxu1 %v2214_v37 }
  0xab   : > { %1450 = vmatpush1.bf16.msra.mxu0 %v2217_v38 }
  0xad   : > { %1346 = vmatmul.mubr.bf16.vlgmr.msra.gmra.mrb[0].mxu1 %v1802_v43 }
  0xae   : > { %1452 = vmatmul.mubr.bf16.vlgmr.msra.gmra.mrb[0].mxu0 %v1806_v44  ;;  %1355 = vmatprep.mubr.bf16.mxu1 %v1811_v45 }
  0xaf   : > { %1461 = vmatprep.mubr.bf16.mxu0 %v1815_v46 }
  0xb5   : > { %1356 = vmatmul.mubr.bf16.gmra.mrb[4].mxu1 %v1810_v47 }
  0xb6   : > { %1462 = vmatmul.mubr.bf16.gmra.mrb[4].mxu0 %v1814_v48 }
 0x180   : > { %v1347_v49 = vpop.f32.mrb[0].mxu1 }
 0x181   : > { %v1453_v51 = vpop.f32.mrb[0].mxu0  ;;  %v1349_v53 = vpop.f32.mrb[1].mxu1 }
 0x182   : > { %v1963_v52 = vadd.f32 %v1453_v51, %v1347_v49  ;;  %v1455_v55 = vpop.f32.mrb[1].mxu0  ;;  %v1351_v57 = vpop.f32.mrb[2].mxu1 }
 0x183   : > { %v1964_v56 = vadd.f32 %v1455_v55, %v1349_v53  ;;  %v1457_v59 = vpop.f32.mrb[2].mxu0  ;;  %v1353_v62 = vpop.f32.mrb[3].mxu1 }
 0x184   : > { %v1472_v60 = vadd.f32 %v1963_v52, %v388_v50  ;;  %v1965_v61 = vadd.f32 %v1457_v59, %v1351_v57  ;;  %v1459_v0 = vpop.f32.mrb[3].mxu0  ;;  %v1500_v57 = vlaneseq (!%p1944_p11) }
 0x185   : > { %v1473_v1 = vadd.f32 %v1964_v56, %v389_v54  ;;  %v1966_v2 = vadd.f32 %v1459_v0, %v1353_v62 }
 0x186   : > { %1480 = vst [vmem:[#allocation2] sm:$0xff] %v1472_v60  ;;  %v1474_v3 = vadd.f32 %v1965_v61, %v390_v58 }
 0x187   : > { %1481 = vst [vmem:[#allocation2 + $0x8] sm:$0xff] %v1473_v1  ;;  %v1475_v4 = vadd.f32 %v1966_v2, %v391_v63  ;;  %v1501_v2 = vshrl.u32 (!%p1944_p11), %v1500_v57, 7 }
 0x188   : > { %1482 = vst [vmem:[#allocation2 + $0x10] sm:$0xff] %v1474_v3  ;;  %v1357_v5 = vpop.f32.mrb[4].mxu1 }
 0x189   : > { %1483 = vst [vmem:[#allocation2 + $0x18] sm:$0xff] %v1475_v4  ;;  %v1463_v7 = vpop.f32.mrb[4].mxu0  ;;  %v1359_v9 = vpop.f32.mrb[5].mxu1  ;;  %vm1546_vm0 = vcmp.eq.s32.totalorder (!%p1944_p11), %v1501_v2, 0 }
 0x18a   : > { %v1967_v8 = vadd.f32 %v1463_v7, %v1357_v5  ;;  %v1465_v11 = vpop.f32.mrb[5].mxu0  ;;  %v1361_v13 = vpop.f32.mrb[6].mxu1 }
 0x18b   : > { %v1968_v12 = vadd.f32 %v1465_v11, %v1359_v9  ;;  %v1467_v15 = vpop.f32.mrb[6].mxu0  ;;  %v1363_v18 = vpop.f32.mrb[7].mxu1  ;;  %1491 = sbr.rel (%p1944_p11) target bundleno = 427 (0x1ab), region = 59 }
 0x18c   : > { %v1476_v16 = vadd.f32 %v1967_v8, %v392_v6  ;;  %v1969_v17 = vadd.f32 %v1467_v15, %v1361_v13  ;;  %v1469_v20 = vpop.f32.mrb[7].mxu0 }
 0x18d   : > { %v1477_v21 = vadd.f32 %v1968_v12, %v393_v10  ;;  %v1970_v22 = vadd.f32 %v1469_v20, %v1363_v18  ;;  %v1492_v25 = vld [vmem:[#allocation2] sm:$0xff] (!%p1944_p11) }
 0x18e   : > { %1484 = vst [vmem:[#allocation2 + $0x20] sm:$0xff] %v1476_v16  ;;  %v1478_v23 = vadd.f32 %v1969_v17, %v394_v14  ;;  %v1493_v30 = vld [vmem:[#allocation2 + $0x8] sm:$0xff] (!%p1944_p11)  ;;  %v1520_v32 = vmul.f32 (!%p1944_p11), %v1492_v25, %v1492_v25 }
 0x18f   : > { %1485 = vst [vmem:[#allocation2 + $0x28] sm:$0xff] %v1477_v21  ;;  %v1479_v24 = vadd.f32 %v1970_v22, %v395_v19  ;;  %v1494_v26 = vld [vmem:[#allocation2 + $0x10] sm:$0xff] (!%p1944_p11)  ;;  %v1521_v39 = vmul.f32 (!%p1944_p11), %v1493_v30, %v1493_v30  ;;  %v1959_v46 = vpack.c.bf16 (!%p1944_p11), %v1493_v30, %v1492_v25 }
 0x190   : > { %1486 = vst [vmem:[#allocation2 + $0x30] sm:$0xff] %v1478_v23  ;;  %v1502_v29 = vadd.f32 (!%p1944_p11), %v1494_v26, %v1492_v25  ;;  %v1495_v31 = vld [vmem:[#allocation2 + $0x18] sm:$0xff] (!%p1944_p11)  ;;  %v1522_v33 = vmul.f32 (!%p1944_p11), %v1494_v26, %v1494_v26 }
 0x191   : > { %1487 = vst [vmem:[#allocation2 + $0x38] sm:$0xff] %v1479_v24  ;;  %v1511_v37 = vadd.f32 (!%p1944_p11), %v1495_v31, %v1493_v30  ;;  %v1523_v42 = vmul.f32 (!%p1944_p11), %v1495_v31, %v1495_v31  ;;  %v1960_v50 = vpack.c.bf16 (!%p1944_p11), %v1495_v31, %v1494_v26  ;;  %1579 = vst [vmem:[%s2561_s2] sm:$0xff] (!%p1944_p11), %v1959_v46 }
 0x192   : > { %v1528_v41 = vadd.f32 %v1522_v33, %v1520_v32 }
 0x193   : > { %v1537_v49 = vadd.f32 %v1523_v42, %v1521_v39  ;;  %1580 = vst [vmem:[%s2561_s2 + $0x8] sm:$0xff] %v1960_v50 }
 0x195   : > { %v1496_v27 = vld [vmem:[#allocation2 + $0x20] sm:$0xff] }
 0x196   : > { %v1524_v34 = vmul.f32 %v1496_v27, %v1496_v27  ;;  %v1497_v35 = vld [vmem:[#allocation2 + $0x28] sm:$0xff]  ;;  %v1503_v40 = vadd.f32 %v1502_v29, %v1496_v27 }
 0x197   : > { %v1498_v28 = vld [vmem:[#allocation2 + $0x30] sm:$0xff]  ;;  %v1525_v43 = vmul.f32 %v1497_v35, %v1497_v35  ;;  %v1512_v44 = vadd.f32 %v1511_v37, %v1497_v35  ;;  %v1961_v52 = vpack.c.bf16 %v1497_v35, %v1496_v27 }
 0x198   : > { %v1499_v36 = vld [vmem:[#allocation2 + $0x38] sm:$0xff]  ;;  %v1526_v38 = vmul.f32 %v1498_v28, %v1498_v28  ;;  %v1504_v47 = vadd.f32 %v1503_v40, %v1498_v28  ;;  %v1529_v48 = vadd.f32 %v1528_v41, %v1524_v34 }
 0x199   : > { %v1527_v45 = vmul.f32 %v1499_v36, %v1499_v36  ;;  %v1513_v51 = vadd.f32 %v1512_v44, %v1499_v36  ;;  %v1962_v53 = vpack.c.bf16 %v1499_v36, %v1498_v28  ;;  %v1538_v56 = vadd.f32 %v1537_v49, %v1525_v43  ;;  %1581 = vst [vmem:[%s2561_s2 + $0x10] sm:$0xff] %v1961_v52 }
 0x19a   : > { %v1505_v54 = vrot.slane %v1504_v47, 4  ;;  %v1530_v55 = vadd.f32 %v1529_v48, %v1526_v38 }
 0x19b   : > { %v1514_v58 = vrot.slane %v1513_v51, 4  ;;  %1582 = vst [vmem:[%s2561_s2 + $0x18] sm:$0xff] %v1962_v53  ;;  %v1539_v61 = vadd.f32 %v1538_v56, %v1527_v45 }
 0x19c   : > { %v1506_v59 = vadd.f32 %v1505_v54, %v1504_v47  ;;  %v1531_v60 = vrot.slane %v1530_v55, 4 }
 0x19d   : > { %v1515_v62 = vadd.f32 %v1514_v58, %v1513_v51  ;;  %v1540_v1 = vrot.slane %v1539_v61, 4 }
 0x19e   : > { %v1507_v63 = vrot.slane %v1506_v59, 2  ;;  %v1532_v0 = vadd.f32 %v1531_v60, %v1530_v55 }
 0x19f   : > { %v1516_v3 = vrot.slane %v1515_v62, 2  ;;  %v1541_v6 = vadd.f32 %v1540_v1, %v1539_v61 }
 0x1a0   : > { %v1508_v4 = vadd.f32 %v1507_v63, %v1506_v59  ;;  %v1533_v5 = vrot.slane %v1532_v0, 2 }
 0x1a1   : > { %v1517_v7 = vadd.f32 %v1516_v3, %v1515_v62  ;;  %v1542_v10 = vrot.slane %v1541_v6, 2 }
 0x1a2   : > { %v1509_v8 = vrot.slane %v1508_v4, 1  ;;  %v1534_v9 = vadd.f32 %v1533_v5, %v1532_v0 }
 0x1a3   : > { %v1518_v11 = vrot.slane %v1517_v7, 1  ;;  %v1543_v14 = vadd.f32 %v1542_v10, %v1541_v6 }
 0x1a4   : > { %v1510_v12 = vadd.f32 %v1509_v8, %v1508_v4  ;;  %v1535_v13 = vrot.slane %v1534_v9, 1 }
 0x1a5   : > { %v1519_v15 = vadd.f32 %v1518_v11, %v1517_v7  ;;  %v1544_v18 = vrot.slane %v1543_v14, 1 }
 0x1a6   : > { %v1547_v16 = vsel %vm1546_vm0, %v1510_v12, 0.0  ;;  %v1536_v17 = vadd.f32 %v1535_v13, %v1534_v9 }
 0x1a7   : > { %1549 = vst [vmem:[%s2562_s3] sm:$0xff] %v1547_v16  ;;  %v1548_v19 = vsel %vm1546_vm0, %v1519_v15, 0.0  ;;  %v1545_v21 = vadd.f32 %v1544_v18, %v1543_v14 }
 0x1a8   : > { %1550 = vst [vmem:[%s2562_s3 + $0x8] sm:$0xff] %v1548_v19  ;;  %v1551_v20 = vsel %vm1546_vm0, %v1536_v17, 0.0 }
 0x1a9   : > { %1553 = vst [vmem:[%s2563_s4] sm:$0xff] %v1551_v20  ;;  %v1552_v22 = vsel %vm1546_vm0, %v1545_v21, 0.0 }
 0x1aa   : > { %1554 = vst [vmem:[%s2563_s4 + $0x8] sm:$0xff] %v1552_v22 }
 0x1ab PF: > { %s15_s19 = sadd.s32 1, %s2258_s19   ;;  %s2564_s15 = smov %s2246_s16 }
 0x1ac   : > { %p12_p12 = scmp.ge.s32.totalorder %s15_s19, 4   ;;  %s2565_s16 = smov %s2321_s23 }
 0x1ad   : > { %s2566_s17 = smov %s2254_s18  ;;  %s2567_s18 = smov %s2569_s20 }
 0x1ae   :  { %14 = sbr.rel (!%p12_p12) target bundleno = 3 (0x3), region = 121 }

// kernel: discriminator_forward.13
= control target key start
LH: loop header
LB: loop body
LE: loop exit
PB: predicated region body
PF: predicated region fallthrough
CT: control target
= control target key end

     0   :  { %s3738_s15 = smov 0   ;;  %s3740_s16 = smov 0   ;;  %s4286_s0 = inlined_call_operand.vmem [shape: bf16[32,4096], index: 0, kind: input, shape index: {}]   ;;  %s4287_s1 = inlined_call_operand.vmem [shape: bf16[4096,512], index: 1, kind: input, shape index: {}]   ;;  %s4288_s2 = inlined_call_operand.vmem [shape: bf16[32,512], index: 2, kind: output, shape index: {0}]   ;;  %s4289_s3 = inlined_call_operand.vmem [shape: f32[8,512], index: 3, kind: output, shape index: {1}]   ;;  %s4290_s4 = inlined_call_operand.vmem [shape: f32[8,512], index: 4, kind: output, shape index: {2}]  }
   0x1   :  { %s3742_s17 = smov 0   ;;  %s3744_s18 = smov 0  }
   0x2   :  { %s3746_s19 = smov 0  }
   0x3 LB: > { %s27_s20 = sadd.s32 1, %s3706_s18  ;;  %p50_p1 = scmp.ne.s32.totalorder %s3698_s16, %s3694_s15  ;;  %s3710_s19 = sphi %s3746_s19, %s15_s19   ;;  %s3706_s18 = sphi %s3744_s18, %s4294_s18   ;;  %s3702_s17 = sphi %s3742_s17, %s4293_s17   ;;  %s3698_s16 = sphi %s3740_s16, %s4292_s16   ;;  %s3694_s15 = sphi %s3738_s15, %s4291_s15  }
   0x4   : > { %p28_p0 = scmp.ge.s32.totalorder %s27_s20, 4  ;;  %p51_p2 = scmp.eq.s32.totalorder %s3710_s19, 0 }
   0x5   : > { %s43_s22 = sadd.s32 1, %s3698_s16  ;;  %p2890_p5 = scmp.ge.s32.totalorder %s3710_s19, 4 }
   0x6   : > { %s4296_s20 = smov (%p28_p0, %s27_s20), 0  ;;  %p52_p3 = por %p51_p2, %p50_p1 }
   0x7   : > { %s39_s21 = ssub.s32 %s3706_s18, %s4296_s20  ;;  %188 = sbr.rel (%p2890_p5) target bundleno = 26 (0x1a), region = 16 }
   0x8   : > { %p41_p4 = scmp.eq.s32.totalorder %s39_s21, 0 }
   0xa   : > { %s3773_s23 = scalar_select %p41_p4, %s3698_s16, %s43_s22  }
   0xe   : > { %191 = sbr.rel (!%p52_p3) target bundleno = 26 (0x1a), region = 20  ;;  %s193_s24 = sand.u32 (%p52_p3), 1, %s3698_s16  }
   0xf   : > { %s3189_s25 = sshll.u32 (%p52_p3), %s3706_s18, 5  ;;  %s2891_s26 = sshll.u32 (%p52_p3), %s193_s24, 7 }
  0x10   : > { %s3781_s29 = scalar_lea.vmem (%p52_p3), %s4286_s0, %s3189_s25  ;;  %s195_s30 = scalar_lea.vmem (%p52_p3), [#allocation3], %s2891_s26 }
  0x11   : > { %v214_v0 = vld [vmem:[%s3781_s29] sm:$0xff] (%p52_p3)  ;;  %v216_v1 = vld [vmem:[%s3781_s29 + $0x8] sm:$0xff] (%p52_p3)  ;;  %v218_v2 = vld [vmem:[%s3781_s29 + $0x10] sm:$0xff] (%p52_p3) }
  0x12   : > { %215 = vst [vmem:[%s195_s30] sm:$0xff] (%p52_p3), %v214_v0  ;;  %217 = vst [vmem:[%s195_s30 + $0x8] sm:$0xff] (%p52_p3), %v216_v1  ;;  %v220_v3 = vld [vmem:[%s3781_s29 + $0x18] sm:$0xff] (%p52_p3)  ;;  %v222_v4 = vld [vmem:[%s3781_s29 + $0x80] sm:$0xff] (%p52_p3) }
  0x13   : > { %219 = vst [vmem:[%s195_s30 + $0x10] sm:$0xff] (%p52_p3), %v218_v2  ;;  %v224_v5 = vld [vmem:[%s3781_s29 + $0x88] sm:$0xff] (%p52_p3)  ;;  %221 = vst [vmem:[%s195_s30 + $0x18] sm:$0xff] (%p52_p3), %v220_v3  ;;  %v226_v6 = vld [vmem:[%s3781_s29 + $0x90] sm:$0xff] (%p52_p3) }
  0x14   : > { %223 = vst [vmem:[%s195_s30 + $0x20] sm:$0xff] (%p52_p3), %v222_v4  ;;  %225 = vst [vmem:[%s195_s30 + $0x28] sm:$0xff] (%p52_p3), %v224_v5  ;;  %v228_v7 = vld [vmem:[%s3781_s29 + $0x98] sm:$0xff] (%p52_p3)  ;;  %v230_v8 = vld [vmem:[%s3781_s29 + $0x100] sm:$0xff] (%p52_p3) }
  0x15   : > { %227 = vst [vmem:[%s195_s30 + $0x30] sm:$0xff] %v226_v6  ;;  %229 = vst [vmem:[%s195_s30 + $0x38] sm:$0xff] %v228_v7  ;;  %v232_v9 = vld [vmem:[%s3781_s29 + $0x108] sm:$0xff]  ;;  %v234_v10 = vld [vmem:[%s3781_s29 + $0x110] sm:$0xff] }
  0x16   : > { %231 = vst [vmem:[%s195_s30 + $0x40] sm:$0xff] %v230_v8  ;;  %v236_v11 = vld [vmem:[%s3781_s29 + $0x118] sm:$0xff]  ;;  %233 = vst [vmem:[%s195_s30 + $0x48] sm:$0xff] %v232_v9  ;;  %v238_v12 = vld [vmem:[%s3781_s29 + $0x180] sm:$0xff] }
  0x17   : > { %235 = vst [vmem:[%s195_s30 + $0x50] sm:$0xff] %v234_v10  ;;  %237 = vst [vmem:[%s195_s30 + $0x58] sm:$0xff] %v236_v11  ;;  %v240_v13 = vld [vmem:[%s3781_s29 + $0x188] sm:$0xff]  ;;  %v242_v14 = vld [vmem:[%s3781_s29 + $0x190] sm:$0xff] }
  0x18   : > { %239 = vst [vmem:[%s195_s30 + $0x60] sm:$0xff] %v238_v12  ;;  %241 = vst [vmem:[%s195_s30 + $0x68] sm:$0xff] %v240_v13  ;;  %v244_v15 = vld [vmem:[%s3781_s29 + $0x198] sm:$0xff] }
  0x19   : > { %243 = vst [vmem:[%s195_s30 + $0x70] sm:$0xff] %v242_v14  ;;  %245 = vst [vmem:[%s195_s30 + $0x78] sm:$0xff] %v244_v15 }
  0x1a PF: > { %p2894_p6 = scmp.ge.s32.totalorder %s3710_s19, 1  ;;  %p265_p7 = scmp.lt.s32.totalorder %s3710_s19, 5 }
  0x1c   : > { %p266_p8 = pnand %p2894_p6, %p265_p7 }
  0x1d   : > { %s272_s5 = sand.u32 (!%p266_p8), 1, %s3694_s15   ;;  %s2896_s6 = sshll.u32 (!%p266_p8), %s3702_s17, 7 }
  0x1e   : > { %269 = sbr.rel (%p266_p8) target bundleno = 567 (0x237), region = 47  ;;  %s2895_s7 = sshll.u32 (!%p266_p8), %s272_s5, 7 }
  0x1f   : > { %p334_p9 = scmp.lt.s32.totalorder (!%p266_p8), %s2896_s6, 511  ;;  %s3808_s12 = scalar_lea.vmem (!%p266_p8), [#allocation3], %s2895_s7 }
  0x20   : > { %p2899_p10 = scmp.ne.s32.totalorder (!%p266_p8), %s3702_s17, 0 }
  0x25   : > { %s4298_s6 = smov (!%p334_p9, %s2896_s6), 511  ;;  %379 = sbr.rel (%p2899_p10) target bundleno = 47 (0x2f), region = 55 }
  0x26   : > { %s3190_s8 = sshll.u32 %s4298_s6, 4  ;;  %v3712_v16 = vmov (!%p2899_p10), 0.0  }
  0x27   : > { %s3806_s11 = scalar_lea.vmem %s4287_s1, %s3190_s8  ;;  %380 = vst [vmem:[#allocation2] sm:$0xff] (!%p2899_p10), %v3712_v16  ;;  %381 = vst [vmem:[#allocation2 + $0x8] sm:$0xff] (!%p2899_p10), %v3712_v16 }
  0x28   : > { %382 = vst [vmem:[#allocation2 + $0x10] sm:$0xff] (!%p2899_p10), %v3712_v16  ;;  %383 = vst [vmem:[#allocation2 + $0x18] sm:$0xff] (!%p2899_p10), %v3712_v16 }
  0x29   : > { %384 = vst [vmem:[#allocation2 + $0x20] sm:$0xff] (!%p2899_p10), %v3712_v16  ;;  %385 = vst [vmem:[#allocation2 + $0x28] sm:$0xff] (!%p2899_p10), %v3712_v16 }
  0x2a   : > { %386 = vst [vmem:[#allocation2 + $0x30] sm:$0xff] (!%p2899_p10), %v3712_v16  ;;  %387 = vst [vmem:[#allocation2 + $0x38] sm:$0xff] (!%p2899_p10), %v3712_v16 }
  0x2b   : > { %388 = vst [vmem:[#allocation2 + $0x40] sm:$0xff] (!%p2899_p10), %v3712_v16  ;;  %389 = vst [vmem:[#allocation2 + $0x48] sm:$0xff] (!%p2899_p10), %v3712_v16 }
  0x2c   : > { %390 = vst [vmem:[#allocation2 + $0x50] sm:$0xff] %v3712_v16  ;;  %391 = vst [vmem:[#allocation2 + $0x58] sm:$0xff] %v3712_v16 }
  0x2d   : > { %392 = vst [vmem:[#allocation2 + $0x60] sm:$0xff] %v3712_v16  ;;  %393 = vst [vmem:[#allocation2 + $0x68] sm:$0xff] %v3712_v16 }
  0x2e   : > { %394 = vst [vmem:[#allocation2 + $0x70] sm:$0xff] %v3712_v16  ;;  %395 = vst [vmem:[#allocation2 + $0x78] sm:$0xff] %v3712_v16 }
  0x2f PF: > { %v3288_v17 = vld [vmem:[%s3806_s11 + $0x4] ss:$16 sps:$4 sm:$0xff]   ;;  %v3290_v18 = vld [vmem:[%s3806_s11 + $0xc] ss:$16 sps:$4 sm:$0xff]   ;;  %v3292_v19 = vld [vmem:[%s3806_s11] ss:$16 sps:$4 sm:$0xff]  }
  0x30   : > { %2044 = vmatprep.subr.bf16.mxu0 %v3288_v17  ;;  %v3293_v20 = vld [vmem:[%s3806_s11 + $0x8] ss:$16 sps:$4 sm:$0xff]   ;;  %2256 = vmatprep.subr.bf16.mxu1 %v3290_v18  ;;  %v3294_v21 = vld [vmem:[%s3806_s11 + $0x24] ss:$16 sps:$4 sm:$0xff]   ;;  %v3296_v22 = vld [vmem:[%s3806_s11 + $0x2c] ss:$16 sps:$4 sm:$0xff]  }
  0x31   : > { %2045 = vmatpush1.bf16.msra.mxu0 %v3292_v19  ;;  %2257 = vmatpush1.bf16.msra.mxu1 %v3293_v20  ;;  %v3298_v23 = vld [vmem:[%s3806_s11 + $0x20] ss:$16 sps:$4 sm:$0xff]   ;;  %v3299_v24 = vld [vmem:[%s3806_s11 + $0x28] ss:$16 sps:$4 sm:$0xff]   ;;  %v3300_v25 = vld [vmem:[%s3806_s11 + $0x44] ss:$16 sps:$4 sm:$0xff]  }
  0x32   : > { %2046 = vmatprep.subr.bf16.mxu0 %v3294_v21  ;;  %2258 = vmatprep.subr.bf16.mxu1 %v3296_v22  ;;  %v3302_v26 = vld [vmem:[%s3806_s11 + $0x4c] ss:$16 sps:$4 sm:$0xff]   ;;  %v3304_v27 = vld [vmem:[%s3806_s11 + $0x40] ss:$16 sps:$4 sm:$0xff]   ;;  %v3305_v28 = vld [vmem:[%s3806_s11 + $0x48] ss:$16 sps:$4 sm:$0xff]  }
  0x33   : > { %v3306_v29 = vld [vmem:[%s3806_s11 + $0x64] ss:$16 sps:$4 sm:$0xff]   ;;  %v3308_v30 = vld [vmem:[%s3806_s11 + $0x6c] ss:$16 sps:$4 sm:$0xff]   ;;  %v3310_v31 = vld [vmem:[%s3806_s11 + $0x60] ss:$16 sps:$4 sm:$0xff]  }
  0x34   : > { %v3311_v32 = vld [vmem:[%s3806_s11 + $0x68] ss:$16 sps:$4 sm:$0xff]   ;;  %v3312_v33 = vld [vmem:[%s3806_s11 + $0x84] ss:$16 sps:$4 sm:$0xff]   ;;  %v3314_v34 = vld [vmem:[%s3806_s11 + $0x8c] ss:$16 sps:$4 sm:$0xff]  }
  0x35   : > { %2047 = vmatpush1.bf16.msra.mxu0 %v3298_v23  ;;  %2259 = vmatpush1.bf16.msra.mxu1 %v3299_v24  ;;  %v3316_v35 = vld [vmem:[%s3806_s11 + $0x80] ss:$16 sps:$4 sm:$0xff]   ;;  %v3317_v36 = vld [vmem:[%s3806_s11 + $0x88] ss:$16 sps:$4 sm:$0xff]   ;;  %v3318_v37 = vld [vmem:[%s3806_s11 + $0xa4] ss:$16 sps:$4 sm:$0xff]  }
  0x36   : > { %2048 = vmatprep.subr.bf16.mxu0 %v3300_v25  ;;  %2260 = vmatprep.subr.bf16.mxu1 %v3302_v26  ;;  %v3320_v38 = vld [vmem:[%s3806_s11 + $0xac] ss:$16 sps:$4 sm:$0xff]   ;;  %v3322_v39 = vld [vmem:[%s3806_s11 + $0xa0] ss:$16 sps:$4 sm:$0xff]   ;;  %v3323_v40 = vld [vmem:[%s3806_s11 + $0xa8] ss:$16 sps:$4 sm:$0xff]  }
  0x37   : > { %v3324_v41 = vld [vmem:[%s3806_s11 + $0xc4] ss:$16 sps:$4 sm:$0xff]   ;;  %v3326_v42 = vld [vmem:[%s3806_s11 + $0xcc] ss:$16 sps:$4 sm:$0xff]   ;;  %v3328_v43 = vld [vmem:[%s3806_s11 + $0xc0] ss:$16 sps:$4 sm:$0xff]  }
  0x38   : > { %v3329_v44 = vld [vmem:[%s3806_s11 + $0xc8] ss:$16 sps:$4 sm:$0xff]   ;;  %v3330_v45 = vld [vmem:[%s3806_s11 + $0xe4] ss:$16 sps:$4 sm:$0xff]   ;;  %v3332_v46 = vld [vmem:[%s3806_s11 + $0xec] ss:$16 sps:$4 sm:$0xff]  }
  0x39   : > { %2049 = vmatpush1.bf16.msra.mxu0 %v3304_v27  ;;  %2261 = vmatpush1.bf16.msra.mxu1 %v3305_v28  ;;  %v3334_v47 = vld [vmem:[%s3806_s11 + $0xe0] ss:$16 sps:$4 sm:$0xff]   ;;  %v3335_v48 = vld [vmem:[%s3806_s11 + $0xe8] ss:$16 sps:$4 sm:$0xff]   ;;  %v3336_v49 = vld [vmem:[%s3806_s11 + $0x104] ss:$16 sps:$4 sm:$0xff]  }
  0x3a   : > { %2050 = vmatprep.subr.bf16.mxu0 %v3306_v29  ;;  %2262 = vmatprep.subr.bf16.mxu1 %v3308_v30  ;;  %v3338_v50 = vld [vmem:[%s3806_s11 + $0x10c] ss:$16 sps:$4 sm:$0xff]   ;;  %v3340_v51 = vld [vmem:[%s3806_s11 + $0x100] ss:$16 sps:$4 sm:$0xff]   ;;  %v3341_v52 = vld [vmem:[%s3806_s11 + $0x108] ss:$16 sps:$4 sm:$0xff]  }
  0x3b   : > { %v3342_v53 = vld [vmem:[%s3806_s11 + $0x124] ss:$16 sps:$4 sm:$0xff]   ;;  %v3344_v54 = vld [vmem:[%s3806_s11 + $0x12c] ss:$16 sps:$4 sm:$0xff]   ;;  %v3346_v55 = vld [vmem:[%s3806_s11 + $0x120] ss:$16 sps:$4 sm:$0xff]  }
  0x3c   : > { %v3347_v56 = vld [vmem:[%s3806_s11 + $0x128] ss:$16 sps:$4 sm:$0xff]   ;;  %v3348_v57 = vld [vmem:[%s3806_s11 + $0x144] ss:$16 sps:$4 sm:$0xff]   ;;  %v3350_v58 = vld [vmem:[%s3806_s11 + $0x14c] ss:$16 sps:$4 sm:$0xff]  }
  0x3d   : > { %2051 = vmatpush1.bf16.msra.mxu0 %v3310_v31  ;;  %2263 = vmatpush1.bf16.msra.mxu1 %v3311_v32  ;;  %v3352_v59 = vld [vmem:[%s3806_s11 + $0x140] ss:$16 sps:$4 sm:$0xff]   ;;  %v3353_v60 = vld [vmem:[%s3806_s11 + $0x148] ss:$16 sps:$4 sm:$0xff]   ;;  %v3354_v61 = vld [vmem:[%s3806_s11 + $0x164] ss:$16 sps:$4 sm:$0xff]  }
  0x3e   : > { %2052 = vmatprep.subr.bf16.mxu0 %v3312_v33  ;;  %2264 = vmatprep.subr.bf16.mxu1 %v3314_v34  ;;  %v3356_v62 = vld [vmem:[%s3806_s11 + $0x16c] ss:$16 sps:$4 sm:$0xff]   ;;  %v412_v63 = vld [vmem:[%s3808_s12] sm:$0xff]  ;;  %v3359_v2 = vld [vmem:[%s3806_s11 + $0x168] ss:$16 sps:$4 sm:$0xff]   ;;  %p3172_p11 = scmp.ne.s32.totalorder %s3702_s17, 3 }
  0x3f   : > { %v416_v0 = vld [vmem:[%s3808_s12 + $0x20] sm:$0xff]  ;;  %v3362_v5 = vld [vmem:[%s3806_s11 + $0x18c] ss:$16 sps:$4 sm:$0xff]   ;;  %v3365_v7 = vld [vmem:[%s3806_s11 + $0x188] ss:$16 sps:$4 sm:$0xff]  }
  0x40   : > { %v3358_v1 = vld [vmem:[%s3806_s11 + $0x160] ss:$16 sps:$4 sm:$0xff]   ;;  %v2901_v3 = vcombine.high %v412_v63, %v416_v0  ;;  %v3360_v4 = vld [vmem:[%s3806_s11 + $0x184] ss:$16 sps:$4 sm:$0xff]   ;;  %v3368_v9 = vld [vmem:[%s3806_s11 + $0x1ac] ss:$16 sps:$4 sm:$0xff]   ;;  %v2900_v22 = vcombine.low %v412_v63, %v416_v0 }
  0x41   : > { %2053 = vmatpush1.bf16.msra.mxu0 %v3316_v35  ;;  %2265 = vmatpush1.bf16.msra.mxu1 %v3317_v36  ;;  %v3364_v6 = vld [vmem:[%s3806_s11 + $0x180] ss:$16 sps:$4 sm:$0xff]   ;;  %v3366_v8 = vld [vmem:[%s3806_s11 + $0x1a4] ss:$16 sps:$4 sm:$0xff]   ;;  %v3371_v11 = vld [vmem:[%s3806_s11 + $0x1a8] ss:$16 sps:$4 sm:$0xff]  }
  0x42   : > { %2054 = vmatprep.subr.bf16.mxu0 %v3318_v37  ;;  %2266 = vmatprep.subr.bf16.mxu1 %v3320_v38  ;;  %v3370_v10 = vld [vmem:[%s3806_s11 + $0x1a0] ss:$16 sps:$4 sm:$0xff]   ;;  %v3372_v12 = vld [vmem:[%s3806_s11 + $0x1c4] ss:$16 sps:$4 sm:$0xff]   ;;  %v3374_v13 = vld [vmem:[%s3806_s11 + $0x1cc] ss:$16 sps:$4 sm:$0xff]  }
  0x43   : > { %2076 = vmatprep.mubr.bf16.mxu0 %v2901_v3  ;;  %2288 = vmatprep.mubr.bf16.mxu1 %v2901_v3  ;;  %v3376_v14 = vld [vmem:[%s3806_s11 + $0x1c0] ss:$16 sps:$4 sm:$0xff]   ;;  %v3377_v15 = vld [vmem:[%s3806_s11 + $0x1c8] ss:$16 sps:$4 sm:$0xff]   ;;  %v3378_v16 = vld [vmem:[%s3806_s11 + $0x1e4] ss:$16 sps:$4 sm:$0xff]  }
  0x44   : > { %v3380_v17 = vld [vmem:[%s3806_s11 + $0x1ec] ss:$16 sps:$4 sm:$0xff]   ;;  %v3382_v18 = vld [vmem:[%s3806_s11 + $0x1e0] ss:$16 sps:$4 sm:$0xff]   ;;  %v3383_v19 = vld [vmem:[%s3806_s11 + $0x1e8] ss:$16 sps:$4 sm:$0xff]  }
  0x45   : > { %2055 = vmatpush1.bf16.msra.mxu0 %v3322_v39  ;;  %2267 = vmatpush1.bf16.msra.mxu1 %v3323_v40  ;;  %v3386_v20 = vld [vmem:[%s3806_s11 + $0x204] ss:$16 sps:$4 sm:$0xff]   ;;  %v3389_v21 = vld [vmem:[%s3806_s11 + $0x20c] ss:$16 sps:$4 sm:$0xff]   ;;  %v3384_v23 = vld [vmem:[%s3806_s11 + $0x200] ss:$16 sps:$4 sm:$0xff]  }
  0x46   : > { %2056 = vmatprep.subr.bf16.mxu0 %v3324_v41  ;;  %2268 = vmatprep.subr.bf16.mxu1 %v3326_v42  ;;  %v3387_v24 = vld [vmem:[%s3806_s11 + $0x208] ss:$16 sps:$4 sm:$0xff]   ;;  %v3392_v25 = vld [vmem:[%s3806_s11 + $0x224] ss:$16 sps:$4 sm:$0xff]   ;;  %v3395_v26 = vld [vmem:[%s3806_s11 + $0x22c] ss:$16 sps:$4 sm:$0xff]  }
  0x47   : > { %v3390_v27 = vld [vmem:[%s3806_s11 + $0x220] ss:$16 sps:$4 sm:$0xff]   ;;  %v3393_v28 = vld [vmem:[%s3806_s11 + $0x228] ss:$16 sps:$4 sm:$0xff]   ;;  %v3398_v29 = vld [vmem:[%s3806_s11 + $0x244] ss:$16 sps:$4 sm:$0xff]  }
  0x48   : > { %v3401_v30 = vld [vmem:[%s3806_s11 + $0x24c] ss:$16 sps:$4 sm:$0xff]   ;;  %v3396_v31 = vld [vmem:[%s3806_s11 + $0x240] ss:$16 sps:$4 sm:$0xff]   ;;  %v3399_v32 = vld [vmem:[%s3806_s11 + $0x248] ss:$16 sps:$4 sm:$0xff]  }
  0x49   : > { %2057 = vmatpush1.bf16.msra.mxu0 %v3328_v43  ;;  %2269 = vmatpush1.bf16.msra.mxu1 %v3329_v44  ;;  %v3404_v33 = vld [vmem:[%s3806_s11 + $0x264] ss:$16 sps:$4 sm:$0xff]   ;;  %v3407_v34 = vld [vmem:[%s3806_s11 + $0x26c] ss:$16 sps:$4 sm:$0xff]   ;;  %v3402_v35 = vld [vmem:[%s3806_s11 + $0x260] ss:$16 sps:$4 sm:$0xff]  }
  0x4a   : > { %2058 = vmatprep.subr.bf16.mxu0 %v3330_v45  ;;  %2270 = vmatprep.subr.bf16.mxu1 %v3332_v46  ;;  %v3405_v36 = vld [vmem:[%s3806_s11 + $0x268] ss:$16 sps:$4 sm:$0xff]   ;;  %v3410_v37 = vld [vmem:[%s3806_s11 + $0x284] ss:$16 sps:$4 sm:$0xff]   ;;  %v3413_v38 = vld [vmem:[%s3806_s11 + $0x28c] ss:$16 sps:$4 sm:$0xff]  }
  0x4b   : > { %v3408_v39 = vld [vmem:[%s3806_s11 + $0x280] ss:$16 sps:$4 sm:$0xff]   ;;  %v3411_v40 = vld [vmem:[%s3806_s11 + $0x288] ss:$16 sps:$4 sm:$0xff]   ;;  %v3416_v41 = vld [vmem:[%s3806_s11 + $0x2a4] ss:$16 sps:$4 sm:$0xff]  }
  0x4c   : > { %v3419_v42 = vld [vmem:[%s3806_s11 + $0x2ac] ss:$16 sps:$4 sm:$0xff]   ;;  %v420_v43 = vld [vmem:[%s3808_s12 + $0x40] sm:$0xff]  ;;  %v3435_v63 = vld [vmem:[%s3806_s11 + $0x308] ss:$16 sps:$4 sm:$0xff]  }
  0x4d   : > { %2059 = vmatpush1.bf16.msra.mxu0 %v3334_v47  ;;  %2271 = vmatpush1.bf16.msra.mxu1 %v3335_v48  ;;  %v424_v44 = vld [vmem:[%s3808_s12 + $0x60] sm:$0xff]  ;;  %v3417_v47 = vld [vmem:[%s3806_s11 + $0x2a8] ss:$16 sps:$4 sm:$0xff]  }
  0x4e   : > { %2060 = vmatprep.subr.bf16.mxu0 %v3336_v49  ;;  %2272 = vmatprep.subr.bf16.mxu1 %v3338_v50  ;;  %v2909_v45 = vcombine.high %v420_v43, %v424_v44  ;;  %v3414_v46 = vld [vmem:[%s3806_s11 + $0x2a0] ss:$16 sps:$4 sm:$0xff]   ;;  %v2908_v48 = vcombine.low %v420_v43, %v424_v44  ;;  %v3422_v49 = vld [vmem:[%s3806_s11 + $0x2c4] ss:$16 sps:$4 sm:$0xff]   ;;  %v3425_v50 = vld [vmem:[%s3806_s11 + $0x2cc] ss:$16 sps:$4 sm:$0xff]  }
  0x4f   : > { %v3440_v0 = vld [vmem:[%s3806_s11 + $0x324] ss:$16 sps:$4 sm:$0xff]   ;;  %v3441_v3 = vld [vmem:[%s3806_s11 + $0x328] ss:$16 sps:$4 sm:$0xff]  }
  0x50   : > { %v3969_v44 = vld [vmem:[%s3808_s12 + $0x30] sm:$0xff] }
  0x51   : > { %2061 = vmatpush1.bf16.msra.mxu0 %v3340_v51  ;;  %2273 = vmatpush1.bf16.msra.mxu1 %v3341_v52  ;;  %v3906_v51 = vld [vmem:[%s3808_s12 + $0x8] sm:$0xff] }
  0x52   : > { %2062 = vmatprep.subr.bf16.mxu0 %v3342_v53  ;;  %2274 = vmatprep.subr.bf16.mxu1 %v3344_v54  ;;  %v3909_v52 = vld [vmem:[%s3808_s12 + $0x28] sm:$0xff]  ;;  %v3420_v53 = vld [vmem:[%s3806_s11 + $0x2c0] ss:$16 sps:$4 sm:$0xff]  }
  0x53   : > { %v3423_v54 = vld [vmem:[%s3806_s11 + $0x2c8] ss:$16 sps:$4 sm:$0xff]  }
  0x55   : > { %2063 = vmatpush1.bf16.msra.mxu0 %v3346_v55  ;;  %2275 = vmatpush1.bf16.msra.mxu1 %v3347_v56  ;;  %v2903_v55 = vcombine.high %v3906_v51, %v3909_v52  ;;  %v3428_v56 = vld [vmem:[%s3806_s11 + $0x2e4] ss:$16 sps:$4 sm:$0xff]  }
  0x56   : > { %2064 = vmatprep.subr.bf16.mxu0 %v3348_v57  ;;  %2276 = vmatprep.subr.bf16.mxu1 %v3350_v58  ;;  %v3431_v57 = vld [vmem:[%s3806_s11 + $0x2ec] ss:$16 sps:$4 sm:$0xff]   ;;  %v3426_v58 = vld [vmem:[%s3806_s11 + $0x2e0] ss:$16 sps:$4 sm:$0xff]  }
  0x59   : > { %2065 = vmatpush1.bf16.msra.mxu0 %v3352_v59  ;;  %2277 = vmatpush1.bf16.msra.mxu1 %v3353_v60  ;;  %v3429_v59 = vld [vmem:[%s3806_s11 + $0x2e8] ss:$16 sps:$4 sm:$0xff]   ;;  %v3434_v60 = vld [vmem:[%s3806_s11 + $0x304] ss:$16 sps:$4 sm:$0xff]  }
  0x5a   : > { %2066 = vmatprep.subr.bf16.mxu0 %v3354_v61  ;;  %2278 = vmatprep.subr.bf16.mxu1 %v3356_v62  ;;  %v3437_v61 = vld [vmem:[%s3806_s11 + $0x30c] ss:$16 sps:$4 sm:$0xff]   ;;  %v3432_v62 = vld [vmem:[%s3806_s11 + $0x300] ss:$16 sps:$4 sm:$0xff]  }
  0x5d   : > { %2067 = vmatpush1.bf16.msra.mxu0 %v3358_v1  ;;  %2279 = vmatpush1.bf16.msra.mxu1 %v3359_v2  ;;  %v3443_v1 = vld [vmem:[%s3806_s11 + $0x32c] ss:$16 sps:$4 sm:$0xff]   ;;  %v3438_v2 = vld [vmem:[%s3806_s11 + $0x320] ss:$16 sps:$4 sm:$0xff]  }
  0x5e   : > { %2068 = vmatprep.subr.bf16.mxu0 %v3360_v4  ;;  %2280 = vmatprep.subr.bf16.mxu1 %v3362_v5  ;;  %v3446_v4 = vld [vmem:[%s3806_s11 + $0x344] ss:$16 sps:$4 sm:$0xff]   ;;  %v3449_v5 = vld [vmem:[%s3806_s11 + $0x34c] ss:$16 sps:$4 sm:$0xff]  }
  0x61   : > { %2069 = vmatpush1.bf16.msra.mxu0 %v3364_v6  ;;  %2281 = vmatpush1.bf16.msra.mxu1 %v3365_v7  ;;  %v3444_v6 = vld [vmem:[%s3806_s11 + $0x340] ss:$16 sps:$4 sm:$0xff]   ;;  %v3447_v7 = vld [vmem:[%s3806_s11 + $0x348] ss:$16 sps:$4 sm:$0xff]  }
  0x62   : > { %2070 = vmatprep.subr.bf16.mxu0 %v3366_v8  ;;  %2282 = vmatprep.subr.bf16.mxu1 %v3368_v9  ;;  %v3452_v8 = vld [vmem:[%s3806_s11 + $0x364] ss:$16 sps:$4 sm:$0xff]   ;;  %v3455_v9 = vld [vmem:[%s3806_s11 + $0x36c] ss:$16 sps:$4 sm:$0xff]  }
  0x65   : > { %2071 = vmatpush1.bf16.msra.mxu0 %v3370_v10  ;;  %2283 = vmatpush1.bf16.msra.mxu1 %v3371_v11  ;;  %v3450_v10 = vld [vmem:[%s3806_s11 + $0x360] ss:$16 sps:$4 sm:$0xff]   ;;  %v3453_v11 = vld [vmem:[%s3806_s11 + $0x368] ss:$16 sps:$4 sm:$0xff]  }
  0x66   : > { %2072 = vmatprep.subr.bf16.mxu0 %v3372_v12  ;;  %2284 = vmatprep.subr.bf16.mxu1 %v3374_v13  ;;  %v3458_v12 = vld [vmem:[%s3806_s11 + $0x384] ss:$16 sps:$4 sm:$0xff]   ;;  %v3461_v13 = vld [vmem:[%s3806_s11 + $0x38c] ss:$16 sps:$4 sm:$0xff]  }
  0x69   : > { %2073 = vmatpush1.bf16.msra.mxu0 %v3376_v14  ;;  %2285 = vmatpush1.bf16.msra.mxu1 %v3377_v15  ;;  %v3456_v14 = vld [vmem:[%s3806_s11 + $0x380] ss:$16 sps:$4 sm:$0xff]   ;;  %v3459_v15 = vld [vmem:[%s3806_s11 + $0x388] ss:$16 sps:$4 sm:$0xff]  }
  0x6a   : > { %2074 = vmatprep.subr.bf16.mxu0 %v3378_v16  ;;  %2286 = vmatprep.subr.bf16.mxu1 %v3380_v17  ;;  %v3464_v16 = vld [vmem:[%s3806_s11 + $0x3a4] ss:$16 sps:$4 sm:$0xff]   ;;  %v3467_v17 = vld [vmem:[%s3806_s11 + $0x3ac] ss:$16 sps:$4 sm:$0xff]  }
  0x6d   : > { %2075 = vmatpush1.bf16.msra.mxu0 %v3382_v18  ;;  %2287 = vmatpush1.bf16.msra.mxu1 %v3383_v19  ;;  %v3462_v18 = vld [vmem:[%s3806_s11 + $0x3a0] ss:$16 sps:$4 sm:$0xff]   ;;  %v3465_v19 = vld [vmem:[%s3806_s11 + $0x3a8] ss:$16 sps:$4 sm:$0xff]  }
  0x6e   : > { %2097 = vmatprep.subr.bf16.mxu0 %v3386_v20  ;;  %2309 = vmatprep.subr.bf16.mxu1 %v3389_v21  ;;  %v3470_v20 = vld [vmem:[%s3806_s11 + $0x3c4] ss:$16 sps:$4 sm:$0xff]   ;;  %v3473_v21 = vld [vmem:[%s3806_s11 + $0x3cc] ss:$16 sps:$4 sm:$0xff]  }
  0x70   : > { %2077 = vmatmul.mubr.bf16.vlgmr.msra.gmra.mrb[0].mxu0 %v2900_v22  ;;  %2289 = vmatmul.mubr.bf16.vlgmr.msra.gmra.mrb[0].mxu1 %v2900_v22  ;;  %v3468_v22 = vld [vmem:[%s3806_s11 + $0x3c0] ss:$16 sps:$4 sm:$0xff]  }
  0x71   : > { %2098 = vmatpush1.bf16.msra.mxu0 %v3384_v23  ;;  %2310 = vmatpush1.bf16.msra.mxu1 %v3387_v24  ;;  %v3471_v23 = vld [vmem:[%s3806_s11 + $0x3c8] ss:$16 sps:$4 sm:$0xff]   ;;  %v3476_v24 = vld [vmem:[%s3806_s11 + $0x3e4] ss:$16 sps:$4 sm:$0xff]  }
  0x72   : > { %2099 = vmatprep.subr.bf16.mxu0 %v3392_v25  ;;  %2311 = vmatprep.subr.bf16.mxu1 %v3395_v26  ;;  %v3479_v25 = vld [vmem:[%s3806_s11 + $0x3ec] ss:$16 sps:$4 sm:$0xff]   ;;  %v3474_v26 = vld [vmem:[%s3806_s11 + $0x3e0] ss:$16 sps:$4 sm:$0xff]  }
  0x73   : > { %2086 = vmatprep.mubr.bf16.mxu0 %v2909_v45  ;;  %2298 = vmatprep.mubr.bf16.mxu1 %v2909_v45  ;;  %v3492_v45 = vld [vmem:[%s3806_s11 + $0x440] ss:$16 sps:$4 sm:$0xff]  }
  0x75   : > { %2100 = vmatpush1.bf16.msra.mxu0 %v3390_v27  ;;  %2312 = vmatpush1.bf16.msra.mxu1 %v3393_v28  ;;  %v3477_v27 = vld [vmem:[%s3806_s11 + $0x3e8] ss:$16 sps:$4 sm:$0xff]   ;;  %v3482_v28 = vld [vmem:[%s3806_s11 + $0x404] ss:$16 sps:$4 sm:$0xff]  }
  0x76   : > { %2101 = vmatprep.subr.bf16.mxu0 %v3398_v29  ;;  %2313 = vmatprep.subr.bf16.mxu1 %v3401_v30  ;;  %v3485_v29 = vld [vmem:[%s3806_s11 + $0x40c] ss:$16 sps:$4 sm:$0xff]   ;;  %v3480_v30 = vld [vmem:[%s3806_s11 + $0x400] ss:$16 sps:$4 sm:$0xff]  }
  0x78   : > { %2087 = vmatmul.mubr.bf16.gmra.mrb[4].mxu0 %v2908_v48  ;;  %2299 = vmatmul.mubr.bf16.gmra.mrb[4].mxu1 %v2908_v48  ;;  %v3503_v48 = vld [vmem:[%s3806_s11 + $0x46c] ss:$16 sps:$4 sm:$0xff]  }
  0x79   : > { %2102 = vmatpush1.bf16.msra.mxu0 %v3396_v31  ;;  %2314 = vmatpush1.bf16.msra.mxu1 %v3399_v32  ;;  %v3483_v31 = vld [vmem:[%s3806_s11 + $0x408] ss:$16 sps:$4 sm:$0xff]   ;;  %v2902_v32 = vcombine.low %v3906_v51, %v3909_v52  ;;  %v3506_v52 = vld [vmem:[%s3806_s11 + $0x484] ss:$16 sps:$4 sm:$0xff]  }
  0x7a   : > { %2103 = vmatprep.subr.bf16.mxu0 %v3404_v33  ;;  %2315 = vmatprep.subr.bf16.mxu1 %v3407_v34  ;;  %v421_v33 = vld [vmem:[%s3808_s12 + $0x48] sm:$0xff] }
  0x7b   : > { %2129 = vmatprep.mubr.bf16.mxu0 %v2903_v55  ;;  %2341 = vmatprep.mubr.bf16.mxu1 %v2903_v55  ;;  %v425_v34 = vld [vmem:[%s3808_s12 + $0x68] sm:$0xff] }
  0x7c   : > { %v2910_v43 = vcombine.low %v421_v33, %v425_v34  ;;  %v3501_v51 = vld [vmem:[%s3806_s11 + $0x468] ss:$16 sps:$4 sm:$0xff]  }
  0x7d   : > { %2104 = vmatpush1.bf16.msra.mxu0 %v3402_v35  ;;  %2316 = vmatpush1.bf16.msra.mxu1 %v3405_v36  ;;  %v3488_v35 = vld [vmem:[%s3806_s11 + $0x424] ss:$16 sps:$4 sm:$0xff]   ;;  %v3491_v36 = vld [vmem:[%s3806_s11 + $0x42c] ss:$16 sps:$4 sm:$0xff]   ;;  %v3507_v55 = vld [vmem:[%s3806_s11 + $0x488] ss:$16 sps:$4 sm:$0xff]  }
  0x7e   : > { %2105 = vmatprep.subr.bf16.mxu0 %v3410_v37  ;;  %2317 = vmatprep.subr.bf16.mxu1 %v3413_v38  ;;  %v2911_v37 = vcombine.high %v421_v33, %v425_v34  ;;  %v3486_v38 = vld [vmem:[%s3806_s11 + $0x420] ss:$16 sps:$4 sm:$0xff]   ;;  %v3575_v33 = vld [vmem:[%s3806_s11 + $0x5ec] ss:$16 sps:$4 sm:$0xff]  }
  0x7f   : > { %v3570_v34 = vld [vmem:[%s3806_s11 + $0x5e0] ss:$16 sps:$4 sm:$0xff]  }
  0x81   : > { %2106 = vmatpush1.bf16.msra.mxu0 %v3408_v39  ;;  %2318 = vmatpush1.bf16.msra.mxu1 %v3411_v40  ;;  %v3489_v39 = vld [vmem:[%s3806_s11 + $0x428] ss:$16 sps:$4 sm:$0xff]   ;;  %v3494_v40 = vld [vmem:[%s3806_s11 + $0x444] ss:$16 sps:$4 sm:$0xff]  }
  0x82   : > { %2107 = vmatprep.subr.bf16.mxu0 %v3416_v41  ;;  %2319 = vmatprep.subr.bf16.mxu1 %v3419_v42  ;;  %v3497_v41 = vld [vmem:[%s3806_s11 + $0x44c] ss:$16 sps:$4 sm:$0xff]   ;;  %v3966_v42 = vld [vmem:[%s3808_s12 + $0x10] sm:$0xff] }
  0x85   : > { %2108 = vmatpush1.bf16.msra.mxu0 %v3414_v46  ;;  %2320 = vmatpush1.bf16.msra.mxu1 %v3417_v47  ;;  %v3495_v46 = vld [vmem:[%s3806_s11 + $0x448] ss:$16 sps:$4 sm:$0xff]   ;;  %v3500_v47 = vld [vmem:[%s3806_s11 + $0x464] ss:$16 sps:$4 sm:$0xff]  }
  0x86   : > { %2109 = vmatprep.subr.bf16.mxu0 %v3422_v49  ;;  %2321 = vmatprep.subr.bf16.mxu1 %v3425_v50  ;;  %v2905_v49 = vcombine.high %v3966_v42, %v3969_v44  ;;  %v3498_v50 = vld [vmem:[%s3806_s11 + $0x460] ss:$16 sps:$4 sm:$0xff]  }
  0x89   : > { %2110 = vmatpush1.bf16.msra.mxu0 %v3420_v53  ;;  %2322 = vmatpush1.bf16.msra.mxu1 %v3423_v54  ;;  %v3509_v53 = vld [vmem:[%s3806_s11 + $0x48c] ss:$16 sps:$4 sm:$0xff]   ;;  %v3504_v54 = vld [vmem:[%s3806_s11 + $0x480] ss:$16 sps:$4 sm:$0xff]  }
  0x8a   : > { %2111 = vmatprep.subr.bf16.mxu0 %v3428_v56  ;;  %2323 = vmatprep.subr.bf16.mxu1 %v3431_v57  ;;  %v3512_v56 = vld [vmem:[%s3806_s11 + $0x4a4] ss:$16 sps:$4 sm:$0xff]   ;;  %v3515_v57 = vld [vmem:[%s3806_s11 + $0x4ac] ss:$16 sps:$4 sm:$0xff]  }
  0x8d   : > { %2112 = vmatpush1.bf16.msra.mxu0 %v3426_v58  ;;  %2324 = vmatpush1.bf16.msra.mxu1 %v3429_v59  ;;  %v3510_v58 = vld [vmem:[%s3806_s11 + $0x4a0] ss:$16 sps:$4 sm:$0xff]   ;;  %v3513_v59 = vld [vmem:[%s3806_s11 + $0x4a8] ss:$16 sps:$4 sm:$0xff]  }
  0x8e   : > { %2113 = vmatprep.subr.bf16.mxu0 %v3434_v60  ;;  %2325 = vmatprep.subr.bf16.mxu1 %v3437_v61  ;;  %v3518_v60 = vld [vmem:[%s3806_s11 + $0x4c4] ss:$16 sps:$4 sm:$0xff]   ;;  %v3521_v61 = vld [vmem:[%s3806_s11 + $0x4cc] ss:$16 sps:$4 sm:$0xff]  }
  0x91   : > { %2114 = vmatpush1.bf16.msra.mxu0 %v3432_v62  ;;  %2326 = vmatpush1.bf16.msra.mxu1 %v3435_v63  ;;  %v3516_v62 = vld [vmem:[%s3806_s11 + $0x4c0] ss:$16 sps:$4 sm:$0xff]   ;;  %v3519_v63 = vld [vmem:[%s3806_s11 + $0x4c8] ss:$16 sps:$4 sm:$0xff]  }
  0x92   : > { %2115 = vmatprep.subr.bf16.mxu0 %v3440_v0  ;;  %2327 = vmatprep.subr.bf16.mxu1 %v3443_v1  ;;  %v3524_v0 = vld [vmem:[%s3806_s11 + $0x4e4] ss:$16 sps:$4 sm:$0xff]   ;;  %v3527_v1 = vld [vmem:[%s3806_s11 + $0x4ec] ss:$16 sps:$4 sm:$0xff]  }
  0x95   : > { %2116 = vmatpush1.bf16.msra.mxu0 %v3438_v2  ;;  %2328 = vmatpush1.bf16.msra.mxu1 %v3441_v3  ;;  %v3522_v2 = vld [vmem:[%s3806_s11 + $0x4e0] ss:$16 sps:$4 sm:$0xff]   ;;  %v3525_v3 = vld [vmem:[%s3806_s11 + $0x4e8] ss:$16 sps:$4 sm:$0xff]  }
  0x96   : > { %2117 = vmatprep.subr.bf16.mxu0 %v3446_v4  ;;  %2329 = vmatprep.subr.bf16.mxu1 %v3449_v5  ;;  %v3530_v4 = vld [vmem:[%s3806_s11 + $0x504] ss:$16 sps:$4 sm:$0xff]   ;;  %v3533_v5 = vld [vmem:[%s3806_s11 + $0x50c] ss:$16 sps:$4 sm:$0xff]  }
  0x99   : > { %2118 = vmatpush1.bf16.msra.mxu0 %v3444_v6  ;;  %2330 = vmatpush1.bf16.msra.mxu1 %v3447_v7  ;;  %v3528_v6 = vld [vmem:[%s3806_s11 + $0x500] ss:$16 sps:$4 sm:$0xff]   ;;  %v3531_v7 = vld [vmem:[%s3806_s11 + $0x508] ss:$16 sps:$4 sm:$0xff]  }
  0x9a   : > { %2119 = vmatprep.subr.bf16.mxu0 %v3452_v8  ;;  %2331 = vmatprep.subr.bf16.mxu1 %v3455_v9  ;;  %v3536_v8 = vld [vmem:[%s3806_s11 + $0x524] ss:$16 sps:$4 sm:$0xff]   ;;  %v3539_v9 = vld [vmem:[%s3806_s11 + $0x52c] ss:$16 sps:$4 sm:$0xff]  }
  0x9d   : > { %2120 = vmatpush1.bf16.msra.mxu0 %v3450_v10  ;;  %2332 = vmatpush1.bf16.msra.mxu1 %v3453_v11  ;;  %v3534_v10 = vld [vmem:[%s3806_s11 + $0x520] ss:$16 sps:$4 sm:$0xff]   ;;  %v3537_v11 = vld [vmem:[%s3806_s11 + $0x528] ss:$16 sps:$4 sm:$0xff]  }
  0x9e   : > { %2121 = vmatprep.subr.bf16.mxu0 %v3458_v12  ;;  %2333 = vmatprep.subr.bf16.mxu1 %v3461_v13  ;;  %v3542_v12 = vld [vmem:[%s3806_s11 + $0x544] ss:$16 sps:$4 sm:$0xff]   ;;  %v3545_v13 = vld [vmem:[%s3806_s11 + $0x54c] ss:$16 sps:$4 sm:$0xff]  }
  0xa1   : > { %2122 = vmatpush1.bf16.msra.mxu0 %v3456_v14  ;;  %2334 = vmatpush1.bf16.msra.mxu1 %v3459_v15  ;;  %v3540_v14 = vld [vmem:[%s3806_s11 + $0x540] ss:$16 sps:$4 sm:$0xff]   ;;  %v3543_v15 = vld [vmem:[%s3806_s11 + $0x548] ss:$16 sps:$4 sm:$0xff]  }
  0xa2   : > { %2123 = vmatprep.subr.bf16.mxu0 %v3464_v16  ;;  %2335 = vmatprep.subr.bf16.mxu1 %v3467_v17  ;;  %v3548_v16 = vld [vmem:[%s3806_s11 + $0x564] ss:$16 sps:$4 sm:$0xff]   ;;  %v3551_v17 = vld [vmem:[%s3806_s11 + $0x56c] ss:$16 sps:$4 sm:$0xff]  }
  0xa5   : > { %2124 = vmatpush1.bf16.msra.mxu0 %v3462_v18  ;;  %2336 = vmatpush1.bf16.msra.mxu1 %v3465_v19  ;;  %v3546_v18 = vld [vmem:[%s3806_s11 + $0x560] ss:$16 sps:$4 sm:$0xff]   ;;  %v3549_v19 = vld [vmem:[%s3806_s11 + $0x568] ss:$16 sps:$4 sm:$0xff]  }
  0xa6   : > { %2125 = vmatprep.subr.bf16.mxu0 %v3470_v20  ;;  %2337 = vmatprep.subr.bf16.mxu1 %v3473_v21  ;;  %v3554_v20 = vld [vmem:[%s3806_s11 + $0x584] ss:$16 sps:$4 sm:$0xff]   ;;  %v3557_v21 = vld [vmem:[%s3806_s11 + $0x58c] ss:$16 sps:$4 sm:$0xff]  }
  0xa9   : > { %2126 = vmatpush1.bf16.msra.mxu0 %v3468_v22  ;;  %2338 = vmatpush1.bf16.msra.mxu1 %v3471_v23  ;;  %v3552_v22 = vld [vmem:[%s3806_s11 + $0x580] ss:$16 sps:$4 sm:$0xff]   ;;  %v3555_v23 = vld [vmem:[%s3806_s11 + $0x588] ss:$16 sps:$4 sm:$0xff]  }
  0xaa   : > { %2127 = vmatprep.subr.bf16.mxu0 %v3476_v24  ;;  %2339 = vmatprep.subr.bf16.mxu1 %v3479_v25  ;;  %v3560_v24 = vld [vmem:[%s3806_s11 + $0x5a4] ss:$16 sps:$4 sm:$0xff]   ;;  %v3563_v25 = vld [vmem:[%s3806_s11 + $0x5ac] ss:$16 sps:$4 sm:$0xff]  }
  0xad   : > { %2128 = vmatpush1.bf16.msra.mxu0 %v3474_v26  ;;  %2340 = vmatpush1.bf16.msra.mxu1 %v3477_v27  ;;  %v3558_v26 = vld [vmem:[%s3806_s11 + $0x5a0] ss:$16 sps:$4 sm:$0xff]   ;;  %v3561_v27 = vld [vmem:[%s3806_s11 + $0x5a8] ss:$16 sps:$4 sm:$0xff]  }
  0xae   : > { %2150 = vmatprep.subr.bf16.mxu0 %v3482_v28  ;;  %2362 = vmatprep.subr.bf16.mxu1 %v3485_v29  ;;  %v3566_v28 = vld [vmem:[%s3806_s11 + $0x5c4] ss:$16 sps:$4 sm:$0xff]   ;;  %v3569_v29 = vld [vmem:[%s3806_s11 + $0x5cc] ss:$16 sps:$4 sm:$0xff]  }
  0xb0   : > { %2130 = vmatmul.mubr.bf16.vlgmr.msra.gmra.mrb[0].mxu0 %v2902_v32  ;;  %2342 = vmatmul.mubr.bf16.vlgmr.msra.gmra.mrb[0].mxu1 %v2902_v32  ;;  %v3572_v32 = vld [vmem:[%s3806_s11 + $0x5e4] ss:$16 sps:$4 sm:$0xff]  }
  0xb1   : > { %2151 = vmatpush1.bf16.msra.mxu0 %v3480_v30  ;;  %2363 = vmatpush1.bf16.msra.mxu1 %v3483_v31  ;;  %v3564_v30 = vld [vmem:[%s3806_s11 + $0x5c0] ss:$16 sps:$4 sm:$0xff]   ;;  %v3567_v31 = vld [vmem:[%s3806_s11 + $0x5c8] ss:$16 sps:$4 sm:$0xff]  }
  0xb2   : > { %2152 = vmatprep.subr.bf16.mxu0 %v3488_v35  ;;  %2364 = vmatprep.subr.bf16.mxu1 %v3491_v36  ;;  %v3573_v35 = vld [vmem:[%s3806_s11 + $0x5e8] ss:$16 sps:$4 sm:$0xff]   ;;  %v3578_v36 = vld [vmem:[%s3806_s11 + $0x604] ss:$16 sps:$4 sm:$0xff]  }
  0xb3   : > { %2139 = vmatprep.mubr.bf16.mxu0 %v2911_v37  ;;  %2351 = vmatprep.mubr.bf16.mxu1 %v2911_v37  ;;  %v3581_v37 = vld [vmem:[%s3806_s11 + $0x60c] ss:$16 sps:$4 sm:$0xff]  }
  0xb5   : > { %2153 = vmatpush1.bf16.msra.mxu0 %v3486_v38  ;;  %2365 = vmatpush1.bf16.msra.mxu1 %v3489_v39  ;;  %v2904_v38 = vcombine.low %v3966_v42, %v3969_v44  ;;  %v422_v39 = vld [vmem:[%s3808_s12 + $0x50] sm:$0xff]  ;;  %v3585_v44 = vld [vmem:[%s3806_s11 + $0x628] ss:$16 sps:$4 sm:$0xff]  }
  0xb6   : > { %2154 = vmatprep.subr.bf16.mxu0 %v3494_v40  ;;  %2366 = vmatprep.subr.bf16.mxu1 %v3497_v41  ;;  %v426_v40 = vld [vmem:[%s3808_s12 + $0x70] sm:$0xff] }
  0xb7   : > { %v3576_v41 = vld [vmem:[%s3806_s11 + $0x600] ss:$16 sps:$4 sm:$0xff]  }
  0xb8   : > { %2140 = vmatmul.mubr.bf16.gmra.mrb[4].mxu0 %v2910_v43  ;;  %2352 = vmatmul.mubr.bf16.gmra.mrb[4].mxu1 %v2910_v43  ;;  %v3579_v43 = vld [vmem:[%s3806_s11 + $0x608] ss:$16 sps:$4 sm:$0xff]   ;;  %v3582_v42 = vld [vmem:[%s3806_s11 + $0x620] ss:$16 sps:$4 sm:$0xff]  }
  0xb9   : > { %2155 = vmatpush1.bf16.msra.mxu0 %v3492_v45  ;;  %2367 = vmatpush1.bf16.msra.mxu1 %v3495_v46  ;;  %v3584_v45 = vld [vmem:[%s3806_s11 + $0x624] ss:$16 sps:$4 sm:$0xff]   ;;  %v3587_v46 = vld [vmem:[%s3806_s11 + $0x62c] ss:$16 sps:$4 sm:$0xff]  }
  0xba   : > { %2156 = vmatprep.subr.bf16.mxu0 %v3500_v47  ;;  %2368 = vmatprep.subr.bf16.mxu1 %v3503_v48  ;;  %v2913_v47 = vcombine.high %v422_v39, %v426_v40  ;;  %v3590_v48 = vld [vmem:[%s3806_s11 + $0x644] ss:$16 sps:$4 sm:$0xff]  }
  0xbb   : > { %2182 = vmatprep.mubr.bf16.mxu0 %v2905_v49  ;;  %2394 = vmatprep.mubr.bf16.mxu1 %v2905_v49  ;;  %v3593_v49 = vld [vmem:[%s3806_s11 + $0x64c] ss:$16 sps:$4 sm:$0xff]  }
  0xbd   : > { %2157 = vmatpush1.bf16.msra.mxu0 %v3498_v50  ;;  %2369 = vmatpush1.bf16.msra.mxu1 %v3501_v51  ;;  %v2912_v50 = vcombine.low %v422_v39, %v426_v40  ;;  %v4042_v51 = vld [vmem:[%s3808_s12 + $0x18] sm:$0xff]  ;;  %v3668_v40 = vld [vmem:[%s3806_s11 + $0x7e4] ss:$16 sps:$4 sm:$0xff]  }
  0xbe   : > { %2158 = vmatprep.subr.bf16.mxu0 %v3506_v52  ;;  %2370 = vmatprep.subr.bf16.mxu1 %v3509_v53  ;;  %v4045_v52 = vld [vmem:[%s3808_s12 + $0x38] sm:$0xff]  ;;  %v3588_v53 = vld [vmem:[%s3806_s11 + $0x640] ss:$16 sps:$4 sm:$0xff]  }
  0xbf   : > { %v3663_v39 = vld [vmem:[%s3806_s11 + $0x7c8] ss:$16 sps:$4 sm:$0xff]  }
  0xc1   : > { %2159 = vmatpush1.bf16.msra.mxu0 %v3504_v54  ;;  %2371 = vmatpush1.bf16.msra.mxu1 %v3507_v55  ;;  %v3591_v54 = vld [vmem:[%s3806_s11 + $0x648] ss:$16 sps:$4 sm:$0xff]   ;;  %v3596_v55 = vld [vmem:[%s3806_s11 + $0x664] ss:$16 sps:$4 sm:$0xff]  }
  0xc2   : > { %2160 = vmatprep.subr.bf16.mxu0 %v3512_v56  ;;  %2372 = vmatprep.subr.bf16.mxu1 %v3515_v57  ;;  %v3599_v56 = vld [vmem:[%s3806_s11 + $0x66c] ss:$16 sps:$4 sm:$0xff]   ;;  %v2907_v57 = vcombine.high %v4042_v51, %v4045_v52 }
  0xc5   : > { %2161 = vmatpush1.bf16.msra.mxu0 %v3510_v58  ;;  %2373 = vmatpush1.bf16.msra.mxu1 %v3513_v59  ;;  %v3594_v58 = vld [vmem:[%s3806_s11 + $0x660] ss:$16 sps:$4 sm:$0xff]   ;;  %v3597_v59 = vld [vmem:[%s3806_s11 + $0x668] ss:$16 sps:$4 sm:$0xff]  }
  0xc6   : > { %2162 = vmatprep.subr.bf16.mxu0 %v3518_v60  ;;  %2374 = vmatprep.subr.bf16.mxu1 %v3521_v61  ;;  %v3602_v60 = vld [vmem:[%s3806_s11 + $0x684] ss:$16 sps:$4 sm:$0xff]   ;;  %v3605_v61 = vld [vmem:[%s3806_s11 + $0x68c] ss:$16 sps:$4 sm:$0xff]  }
  0xc9   : > { %2163 = vmatpush1.bf16.msra.mxu0 %v3516_v62  ;;  %2375 = vmatpush1.bf16.msra.mxu1 %v3519_v63  ;;  %v3600_v62 = vld [vmem:[%s3806_s11 + $0x680] ss:$16 sps:$4 sm:$0xff]   ;;  %v3603_v63 = vld [vmem:[%s3806_s11 + $0x688] ss:$16 sps:$4 sm:$0xff]  }
  0xca   : > { %2164 = vmatprep.subr.bf16.mxu0 %v3524_v0  ;;  %2376 = vmatprep.subr.bf16.mxu1 %v3527_v1  ;;  %v3608_v0 = vld [vmem:[%s3806_s11 + $0x6a4] ss:$16 sps:$4 sm:$0xff]   ;;  %v3611_v1 = vld [vmem:[%s3806_s11 + $0x6ac] ss:$16 sps:$4 sm:$0xff]  }
  0xcd   : > { %2165 = vmatpush1.bf16.msra.mxu0 %v3522_v2  ;;  %2377 = vmatpush1.bf16.msra.mxu1 %v3525_v3  ;;  %v3606_v2 = vld [vmem:[%s3806_s11 + $0x6a0] ss:$16 sps:$4 sm:$0xff]   ;;  %v3609_v3 = vld [vmem:[%s3806_s11 + $0x6a8] ss:$16 sps:$4 sm:$0xff]  }
  0xce   : > { %2166 = vmatprep.subr.bf16.mxu0 %v3530_v4  ;;  %2378 = vmatprep.subr.bf16.mxu1 %v3533_v5  ;;  %v3614_v4 = vld [vmem:[%s3806_s11 + $0x6c4] ss:$16 sps:$4 sm:$0xff]   ;;  %v3617_v5 = vld [vmem:[%s3806_s11 + $0x6cc] ss:$16 sps:$4 sm:$0xff]  }
  0xd1   : > { %2167 = vmatpush1.bf16.msra.mxu0 %v3528_v6  ;;  %2379 = vmatpush1.bf16.msra.mxu1 %v3531_v7  ;;  %v3612_v6 = vld [vmem:[%s3806_s11 + $0x6c0] ss:$16 sps:$4 sm:$0xff]   ;;  %v3615_v7 = vld [vmem:[%s3806_s11 + $0x6c8] ss:$16 sps:$4 sm:$0xff]  }
  0xd2   : > { %2168 = vmatprep.subr.bf16.mxu0 %v3536_v8  ;;  %2380 = vmatprep.subr.bf16.mxu1 %v3539_v9  ;;  %v3620_v8 = vld [vmem:[%s3806_s11 + $0x6e4] ss:$16 sps:$4 sm:$0xff]   ;;  %v3623_v9 = vld [vmem:[%s3806_s11 + $0x6ec] ss:$16 sps:$4 sm:$0xff]  }
  0xd5   : > { %2169 = vmatpush1.bf16.msra.mxu0 %v3534_v10  ;;  %2381 = vmatpush1.bf16.msra.mxu1 %v3537_v11  ;;  %v3618_v10 = vld [vmem:[%s3806_s11 + $0x6e0] ss:$16 sps:$4 sm:$0xff]   ;;  %v3621_v11 = vld [vmem:[%s3806_s11 + $0x6e8] ss:$16 sps:$4 sm:$0xff]  }
  0xd6   : > { %2170 = vmatprep.subr.bf16.mxu0 %v3542_v12  ;;  %2382 = vmatprep.subr.bf16.mxu1 %v3545_v13  ;;  %v3626_v12 = vld [vmem:[%s3806_s11 + $0x704] ss:$16 sps:$4 sm:$0xff]   ;;  %v3629_v13 = vld [vmem:[%s3806_s11 + $0x70c] ss:$16 sps:$4 sm:$0xff]  }
  0xd9   : > { %2171 = vmatpush1.bf16.msra.mxu0 %v3540_v14  ;;  %2383 = vmatpush1.bf16.msra.mxu1 %v3543_v15  ;;  %v3624_v14 = vld [vmem:[%s3806_s11 + $0x700] ss:$16 sps:$4 sm:$0xff]   ;;  %v3627_v15 = vld [vmem:[%s3806_s11 + $0x708] ss:$16 sps:$4 sm:$0xff]  }
  0xda   : > { %2172 = vmatprep.subr.bf16.mxu0 %v3548_v16  ;;  %2384 = vmatprep.subr.bf16.mxu1 %v3551_v17  ;;  %v3632_v16 = vld [vmem:[%s3806_s11 + $0x724] ss:$16 sps:$4 sm:$0xff]   ;;  %v3635_v17 = vld [vmem:[%s3806_s11 + $0x72c] ss:$16 sps:$4 sm:$0xff]  }
  0xdd   : > { %2173 = vmatpush1.bf16.msra.mxu0 %v3546_v18  ;;  %2385 = vmatpush1.bf16.msra.mxu1 %v3549_v19  ;;  %v3630_v18 = vld [vmem:[%s3806_s11 + $0x720] ss:$16 sps:$4 sm:$0xff]   ;;  %v3633_v19 = vld [vmem:[%s3806_s11 + $0x728] ss:$16 sps:$4 sm:$0xff]  }
  0xde   : > { %2174 = vmatprep.subr.bf16.mxu0 %v3554_v20  ;;  %2386 = vmatprep.subr.bf16.mxu1 %v3557_v21  ;;  %v3638_v20 = vld [vmem:[%s3806_s11 + $0x744] ss:$16 sps:$4 sm:$0xff]   ;;  %v3641_v21 = vld [vmem:[%s3806_s11 + $0x74c] ss:$16 sps:$4 sm:$0xff]  }
  0xe1   : > { %2175 = vmatpush1.bf16.msra.mxu0 %v3552_v22  ;;  %2387 = vmatpush1.bf16.msra.mxu1 %v3555_v23  ;;  %v3636_v22 = vld [vmem:[%s3806_s11 + $0x740] ss:$16 sps:$4 sm:$0xff]   ;;  %v3639_v23 = vld [vmem:[%s3806_s11 + $0x748] ss:$16 sps:$4 sm:$0xff]  }
  0xe2   : > { %2176 = vmatprep.subr.bf16.mxu0 %v3560_v24  ;;  %2388 = vmatprep.subr.bf16.mxu1 %v3563_v25  ;;  %v3644_v24 = vld [vmem:[%s3806_s11 + $0x764] ss:$16 sps:$4 sm:$0xff]   ;;  %v3647_v25 = vld [vmem:[%s3806_s11 + $0x76c] ss:$16 sps:$4 sm:$0xff]  }
  0xe5   : > { %2177 = vmatpush1.bf16.msra.mxu0 %v3558_v26  ;;  %2389 = vmatpush1.bf16.msra.mxu1 %v3561_v27  ;;  %v3642_v26 = vld [vmem:[%s3806_s11 + $0x760] ss:$16 sps:$4 sm:$0xff]   ;;  %v3645_v27 = vld [vmem:[%s3806_s11 + $0x768] ss:$16 sps:$4 sm:$0xff]  }
  0xe6   : > { %2178 = vmatprep.subr.bf16.mxu0 %v3566_v28  ;;  %2390 = vmatprep.subr.bf16.mxu1 %v3569_v29  ;;  %v3650_v28 = vld [vmem:[%s3806_s11 + $0x784] ss:$16 sps:$4 sm:$0xff]   ;;  %v3653_v29 = vld [vmem:[%s3806_s11 + $0x78c] ss:$16 sps:$4 sm:$0xff]  }
  0xe9   : > { %2179 = vmatpush1.bf16.msra.mxu0 %v3564_v30  ;;  %2391 = vmatpush1.bf16.msra.mxu1 %v3567_v31  ;;  %v3648_v30 = vld [vmem:[%s3806_s11 + $0x780] ss:$16 sps:$4 sm:$0xff]   ;;  %v3651_v31 = vld [vmem:[%s3806_s11 + $0x788] ss:$16 sps:$4 sm:$0xff]  }
  0xea   : > { %2180 = vmatprep.subr.bf16.mxu0 %v3572_v32  ;;  %2392 = vmatprep.subr.bf16.mxu1 %v3575_v33  ;;  %v3656_v32 = vld [vmem:[%s3806_s11 + $0x7a4] ss:$16 sps:$4 sm:$0xff]   ;;  %v3659_v33 = vld [vmem:[%s3806_s11 + $0x7ac] ss:$16 sps:$4 sm:$0xff]  }
  0xed   : > { %2181 = vmatpush1.bf16.msra.mxu0 %v3570_v34  ;;  %2393 = vmatpush1.bf16.msra.mxu1 %v3573_v35  ;;  %v3654_v34 = vld [vmem:[%s3806_s11 + $0x7a0] ss:$16 sps:$4 sm:$0xff]   ;;  %v3657_v35 = vld [vmem:[%s3806_s11 + $0x7a8] ss:$16 sps:$4 sm:$0xff]  }
  0xee   : > { %2203 = vmatprep.subr.bf16.mxu0 %v3578_v36  ;;  %2415 = vmatprep.subr.bf16.mxu1 %v3581_v37  ;;  %v3662_v36 = vld [vmem:[%s3806_s11 + $0x7c4] ss:$16 sps:$4 sm:$0xff]   ;;  %v3665_v37 = vld [vmem:[%s3806_s11 + $0x7cc] ss:$16 sps:$4 sm:$0xff]  }
  0xf0   : > { %2183 = vmatmul.mubr.bf16.vlgmr.msra.gmra.mrb[0].mxu0 %v2904_v38  ;;  %2395 = vmatmul.mubr.bf16.vlgmr.msra.gmra.mrb[0].mxu1 %v2904_v38  ;;  %v3660_v38 = vld [vmem:[%s3806_s11 + $0x7c0] ss:$16 sps:$4 sm:$0xff]  }
  0xf1   : > { %2204 = vmatpush1.bf16.msra.mxu0 %v3576_v41  ;;  %2416 = vmatpush1.bf16.msra.mxu1 %v3579_v43  ;;  %v3671_v41 = vld [vmem:[%s3806_s11 + $0x7ec] ss:$16 sps:$4 sm:$0xff]   ;;  %v3666_v43 = vld [vmem:[%s3806_s11 + $0x7e0] ss:$16 sps:$4 sm:$0xff]  }
  0xf2   : > { %2205 = vmatprep.subr.bf16.mxu0 %v3584_v45  ;;  %2417 = vmatprep.subr.bf16.mxu1 %v3587_v46  ;;  %v3669_v45 = vld [vmem:[%s3806_s11 + $0x7e8] ss:$16 sps:$4 sm:$0xff]  }
  0xf3   : > { %2192 = vmatprep.mubr.bf16.mxu0 %v2913_v47  ;;  %2404 = vmatprep.mubr.bf16.mxu1 %v2913_v47  ;;  %v423_v46 = vld [vmem:[%s3808_s12 + $0x58] sm:$0xff] }
  0xf4   : > { %v427_v47 = vld [vmem:[%s3808_s12 + $0x78] sm:$0xff] }
  0xf5   : > { %2206 = vmatpush1.bf16.msra.mxu0 %v3582_v42  ;;  %2418 = vmatpush1.bf16.msra.mxu1 %v3585_v44  ;;  %v2906_v42 = vcombine.low %v4042_v51, %v4045_v52  ;;  %v2915_v44 = vcombine.high %v423_v46, %v427_v47 }
  0xf6   : > { %2207 = vmatprep.subr.bf16.mxu0 %v3590_v48  ;;  %2419 = vmatprep.subr.bf16.mxu1 %v3593_v49  ;;  %v2914_v48 = vcombine.low %v423_v46, %v427_v47  ;;  %v396_v49 = vld [vmem:[#allocation2] sm:$0xff] }
  0xf8   : > { %2193 = vmatmul.mubr.bf16.gmra.mrb[4].mxu0 %v2912_v50  ;;  %2405 = vmatmul.mubr.bf16.gmra.mrb[4].mxu1 %v2912_v50  ;;  %v398_v50 = vld [vmem:[#allocation2 + $0x10] sm:$0xff] }
  0xf9   : > { %2208 = vmatpush1.bf16.msra.mxu0 %v3588_v53  ;;  %2420 = vmatpush1.bf16.msra.mxu1 %v3591_v54  ;;  %v397_v53 = vld [vmem:[#allocation2 + $0x8] sm:$0xff]  ;;  %v399_v54 = vld [vmem:[#allocation2 + $0x18] sm:$0xff] }
  0xfa   : > { %2209 = vmatprep.subr.bf16.mxu0 %v3596_v55  ;;  %2421 = vmatprep.subr.bf16.mxu1 %v3599_v56 }
  0xfb   : > { %2235 = vmatprep.mubr.bf16.mxu0 %v2907_v57  ;;  %2447 = vmatprep.mubr.bf16.mxu1 %v2907_v57  ;;  %v400_v57 = vld [vmem:[#allocation2 + $0x20] sm:$0xff] }
  0xfd   : > { %2210 = vmatpush1.bf16.msra.mxu0 %v3594_v58  ;;  %2422 = vmatpush1.bf16.msra.mxu1 %v3597_v59  ;;  %v402_v58 = vld [vmem:[#allocation2 + $0x30] sm:$0xff] }
  0xfe   : > { %2211 = vmatprep.subr.bf16.mxu0 %v3602_v60  ;;  %2423 = vmatprep.subr.bf16.mxu1 %v3605_v61  ;;  %v401_v61 = vld [vmem:[#allocation2 + $0x28] sm:$0xff] }
 0x101   : > { %2212 = vmatpush1.bf16.msra.mxu0 %v3600_v62  ;;  %2424 = vmatpush1.bf16.msra.mxu1 %v3603_v63  ;;  %v403_v62 = vld [vmem:[#allocation2 + $0x38] sm:$0xff] }
 0x102   : > { %2213 = vmatprep.subr.bf16.mxu0 %v3608_v0  ;;  %2425 = vmatprep.subr.bf16.mxu1 %v3611_v1 }
 0x105   : > { %2214 = vmatpush1.bf16.msra.mxu0 %v3606_v2  ;;  %2426 = vmatpush1.bf16.msra.mxu1 %v3609_v3 }
 0x106   : > { %2215 = vmatprep.subr.bf16.mxu0 %v3614_v4  ;;  %2427 = vmatprep.subr.bf16.mxu1 %v3617_v5 }
 0x109   : > { %2216 = vmatpush1.bf16.msra.mxu0 %v3612_v6  ;;  %2428 = vmatpush1.bf16.msra.mxu1 %v3615_v7 }
 0x10a   : > { %2217 = vmatprep.subr.bf16.mxu0 %v3620_v8  ;;  %2429 = vmatprep.subr.bf16.mxu1 %v3623_v9  ;;  %v404_v9 = vld [vmem:[#allocation2 + $0x40] sm:$0xff] }
 0x10d   : > { %2218 = vmatpush1.bf16.msra.mxu0 %v3618_v10  ;;  %2430 = vmatpush1.bf16.msra.mxu1 %v3621_v11  ;;  %v406_v10 = vld [vmem:[#allocation2 + $0x50] sm:$0xff]  ;;  %v405_v11 = vld [vmem:[#allocation2 + $0x48] sm:$0xff] }
 0x10e   : > { %2219 = vmatprep.subr.bf16.mxu0 %v3626_v12  ;;  %2431 = vmatprep.subr.bf16.mxu1 %v3629_v13  ;;  %v407_v12 = vld [vmem:[#allocation2 + $0x58] sm:$0xff] }
 0x111   : > { %2220 = vmatpush1.bf16.msra.mxu0 %v3624_v14  ;;  %2432 = vmatpush1.bf16.msra.mxu1 %v3627_v15  ;;  %v408_v15 = vld [vmem:[#allocation2 + $0x60] sm:$0xff] }
 0x112   : > { %2221 = vmatprep.subr.bf16.mxu0 %v3632_v16  ;;  %2433 = vmatprep.subr.bf16.mxu1 %v3635_v17  ;;  %v410_v16 = vld [vmem:[#allocation2 + $0x70] sm:$0xff] }
 0x115   : > { %2222 = vmatpush1.bf16.msra.mxu0 %v3630_v18  ;;  %2434 = vmatpush1.bf16.msra.mxu1 %v3633_v19 }
 0x116   : > { %2223 = vmatprep.subr.bf16.mxu0 %v3638_v20  ;;  %2435 = vmatprep.subr.bf16.mxu1 %v3641_v21  ;;  %v409_v21 = vld [vmem:[#allocation2 + $0x68] sm:$0xff] }
 0x119   : > { %2224 = vmatpush1.bf16.msra.mxu0 %v3636_v22  ;;  %2436 = vmatpush1.bf16.msra.mxu1 %v3639_v23  ;;  %v411_v22 = vld [vmem:[#allocation2 + $0x78] sm:$0xff] }
 0x11a   : > { %2225 = vmatprep.subr.bf16.mxu0 %v3644_v24  ;;  %2437 = vmatprep.subr.bf16.mxu1 %v3647_v25 }
 0x11d   : > { %2226 = vmatpush1.bf16.msra.mxu0 %v3642_v26  ;;  %2438 = vmatpush1.bf16.msra.mxu1 %v3645_v27 }
 0x11e   : > { %2227 = vmatprep.subr.bf16.mxu0 %v3650_v28  ;;  %2439 = vmatprep.subr.bf16.mxu1 %v3653_v29 }
 0x121   : > { %2228 = vmatpush1.bf16.msra.mxu0 %v3648_v30  ;;  %2440 = vmatpush1.bf16.msra.mxu1 %v3651_v31 }
 0x122   : > { %2229 = vmatprep.subr.bf16.mxu0 %v3656_v32  ;;  %2441 = vmatprep.subr.bf16.mxu1 %v3659_v33 }
 0x125   : > { %2230 = vmatpush1.bf16.msra.mxu0 %v3654_v34  ;;  %2442 = vmatpush1.bf16.msra.mxu1 %v3657_v35 }
 0x126   : > { %2231 = vmatprep.subr.bf16.mxu0 %v3662_v36  ;;  %2443 = vmatprep.subr.bf16.mxu1 %v3665_v37  ;;  %v2520_v36 = vlaneseq (!%p3172_p11) }
 0x129   : > { %2232 = vmatpush1.bf16.msra.mxu0 %v3660_v38  ;;  %2444 = vmatpush1.bf16.msra.mxu1 %v3663_v39 }
 0x12a   : > { %2233 = vmatprep.subr.bf16.mxu0 %v3668_v40  ;;  %2445 = vmatprep.subr.bf16.mxu1 %v3671_v41 }
 0x12d   : > { %2234 = vmatpush1.bf16.msra.mxu0 %v3666_v43  ;;  %2446 = vmatpush1.bf16.msra.mxu1 %v3669_v45 }
 0x130   : > { %2236 = vmatmul.mubr.bf16.vlgmr.msra.gmra.mrb[0].mxu0 %v2906_v42  ;;  %2448 = vmatmul.mubr.bf16.vlgmr.msra.gmra.mrb[0].mxu1 %v2906_v42 }
 0x131   : > { %2245 = vmatprep.mubr.bf16.mxu0 %v2915_v44  ;;  %2457 = vmatprep.mubr.bf16.mxu1 %v2915_v44 }
 0x138   : > { %2246 = vmatmul.mubr.bf16.gmra.mrb[4].mxu0 %v2914_v48  ;;  %2458 = vmatmul.mubr.bf16.gmra.mrb[4].mxu1 %v2914_v48 }
 0x203   : > { %v2237_v55 = vpop.f32.mrb[0].mxu0  ;;  %v2449_v56 = vpop.f32.mrb[0].mxu1 }
 0x204   : > { %v2468_v59 = vadd.f32 %v2237_v55, %v396_v49  ;;  %v2470_v51 = vadd.f32 %v2449_v56, %v398_v50  ;;  %v2239_v52 = vpop.f32.mrb[1].mxu0  ;;  %v2451_v60 = vpop.f32.mrb[1].mxu1 }
 0x205   : > { %v2469_v63 = vadd.f32 %v2239_v52, %v397_v53  ;;  %v2471_v0 = vadd.f32 %v2451_v60, %v399_v54  ;;  %v2241_v1 = vpop.f32.mrb[2].mxu0  ;;  %v2453_v2 = vpop.f32.mrb[2].mxu1 }
 0x206   : > { %2484 = vst [vmem:[#allocation2] sm:$0xff] %v2468_v59  ;;  %2486 = vst [vmem:[#allocation2 + $0x10] sm:$0xff] %v2470_v51  ;;  %v2472_v3 = vadd.f32 %v2241_v1, %v400_v57  ;;  %v2474_v4 = vadd.f32 %v2453_v2, %v402_v58  ;;  %v2243_v5 = vpop.f32.mrb[3].mxu0  ;;  %v2455_v6 = vpop.f32.mrb[3].mxu1  ;;  %v4147_v57 = vshrl.u32 (!%p3172_p11), %v2520_v36, 7 }
 0x207   : > { %2485 = vst [vmem:[#allocation2 + $0x8] sm:$0xff] %v2469_v63  ;;  %2487 = vst [vmem:[#allocation2 + $0x18] sm:$0xff] %v2471_v0  ;;  %v2473_v7 = vadd.f32 %v2243_v5, %v401_v61  ;;  %v2475_v8 = vadd.f32 %v2455_v6, %v403_v62 }
 0x208   : > { %2488 = vst [vmem:[#allocation2 + $0x20] sm:$0xff] %v2472_v3  ;;  %2490 = vst [vmem:[#allocation2 + $0x30] sm:$0xff] %v2474_v4  ;;  %vm2610_vm0 = vcmp.eq.s32.totalorder (!%p3172_p11), %v4147_v57, 0 }
 0x209   : > { %2489 = vst [vmem:[#allocation2 + $0x28] sm:$0xff] %v2473_v7  ;;  %2491 = vst [vmem:[#allocation2 + $0x38] sm:$0xff] %v2475_v8 }
 0x20b   : > { %v2247_v13 = vpop.f32.mrb[4].mxu0  ;;  %v2459_v14 = vpop.f32.mrb[4].mxu1  ;;  %2503 = sbr.rel (%p3172_p11) target bundleno = 567 (0x237), region = 59 }
 0x20c   : > { %v2476_v17 = vadd.f32 %v2247_v13, %v404_v9  ;;  %v2478_v18 = vadd.f32 %v2459_v14, %v406_v10  ;;  %v2249_v19 = vpop.f32.mrb[5].mxu0  ;;  %v2461_v20 = vpop.f32.mrb[5].mxu1 }
 0x20d   : > { %v2477_v23 = vadd.f32 %v2249_v19, %v405_v11  ;;  %v2479_v24 = vadd.f32 %v2461_v20, %v407_v12  ;;  %v2251_v25 = vpop.f32.mrb[6].mxu0  ;;  %v2463_v26 = vpop.f32.mrb[6].mxu1  ;;  %v4108_v33 = vld [vmem:[#allocation2] sm:$0xff] (!%p3172_p11)  ;;  %v4139_v50 = vld [vmem:[#allocation2 + $0x10] sm:$0xff] (!%p3172_p11) }
 0x20e   : > { %2492 = vst [vmem:[#allocation2 + $0x40] sm:$0xff] %v2476_v17  ;;  %2494 = vst [vmem:[#allocation2 + $0x50] sm:$0xff] %v2478_v18  ;;  %v2480_v27 = vadd.f32 %v2251_v25, %v408_v15  ;;  %v2482_v28 = vadd.f32 %v2463_v26, %v410_v16  ;;  %v2253_v29 = vpop.f32.mrb[7].mxu0  ;;  %v2465_v30 = vpop.f32.mrb[7].mxu1  ;;  %v4118_v39 = vld [vmem:[#allocation2 + $0x8] sm:$0xff] (!%p3172_p11)  ;;  %v2558_v41 = vmul.f32 (!%p3172_p11), %v4108_v33, %v4108_v33  ;;  %v4152_v51 = vld [vmem:[#allocation2 + $0x18] sm:$0xff] (!%p3172_p11) }
 0x20f   : > { %2493 = vst [vmem:[#allocation2 + $0x48] sm:$0xff] %v2477_v23  ;;  %2495 = vst [vmem:[#allocation2 + $0x58] sm:$0xff] %v2479_v24  ;;  %v2481_v31 = vadd.f32 %v2253_v29, %v409_v21  ;;  %v2483_v32 = vadd.f32 %v2465_v30, %v411_v22  ;;  %v4110_v34 = vld [vmem:[#allocation2 + $0x20] sm:$0xff] (!%p3172_p11)  ;;  %v2559_v48 = vmul.f32 (!%p3172_p11), %v4118_v39, %v4118_v39  ;;  %v4141_v53 = vld [vmem:[#allocation2 + $0x30] sm:$0xff] (!%p3172_p11) }
 0x210   : > { %2496 = vst [vmem:[#allocation2 + $0x60] sm:$0xff] %v2480_v27  ;;  %2498 = vst [vmem:[#allocation2 + $0x70] sm:$0xff] %v2482_v28  ;;  %v2522_v38 = vadd.f32 (!%p3172_p11), %v4110_v34, %v4108_v33  ;;  %v4120_v40 = vld [vmem:[#allocation2 + $0x28] sm:$0xff] (!%p3172_p11)  ;;  %v2562_v43 = vmul.f32 (!%p3172_p11), %v4110_v34, %v4110_v34  ;;  %v2540_v59 = vadd.f32 (!%p3172_p11), %v4141_v53, %v4139_v50  ;;  %v4154_v52 = vld [vmem:[#allocation2 + $0x38] sm:$0xff] (!%p3172_p11) }
 0x211   : > { %2497 = vst [vmem:[#allocation2 + $0x68] sm:$0xff] %v2481_v31  ;;  %2499 = vst [vmem:[#allocation2 + $0x78] sm:$0xff] %v2483_v32  ;;  %v2531_v42 = vadd.f32 (!%p3172_p11), %v4120_v40, %v4118_v39  ;;  %v2563_v55 = vmul.f32 (!%p3172_p11), %v4120_v40, %v4120_v40  ;;  %v2549_v0 = vadd.f32 (!%p3172_p11), %v4154_v52, %v4152_v51 }
 0x212   : > { %v2574_v54 = vadd.f32 %v2562_v43, %v2558_v41  ;;  %v2560_v6 = vmul.f32 %v4139_v50, %v4139_v50  ;;  %v2564_v7 = vmul.f32 %v4141_v53, %v4141_v53  ;;  %v2561_v24 = vmul.f32 %v4152_v51, %v4152_v51 }
 0x213   : > { %v2583_v2 = vadd.f32 %v2563_v55, %v2559_v48  ;;  %v2565_v32 = vmul.f32 %v4154_v52, %v4154_v52 }
 0x214   : > { %v2592_v23 = vadd.f32 %v2564_v7, %v2560_v6 }
 0x215   : > { %v4112_v35 = vld [vmem:[#allocation2 + $0x40] sm:$0xff]  ;;  %v4159_v62 = vld [vmem:[#allocation2 + $0x50] sm:$0xff] }
 0x216   : > { %v2566_v45 = vmul.f32 %v4112_v35, %v4112_v35  ;;  %v4128_v46 = vld [vmem:[#allocation2 + $0x48] sm:$0xff]  ;;  %v2523_v49 = vadd.f32 %v2522_v38, %v4112_v35  ;;  %v2541_v4 = vadd.f32 %v2540_v59, %v4159_v62  ;;  %v4167_v5 = vld [vmem:[#allocation2 + $0x58] sm:$0xff]  ;;  %v2568_v15 = vmul.f32 %v4159_v62, %v4159_v62 }
 0x217   : > { %v4114_v37 = vld [vmem:[#allocation2 + $0x60] sm:$0xff]  ;;  %v2567_v56 = vmul.f32 %v4128_v46, %v4128_v46  ;;  %v2532_v58 = vadd.f32 %v2531_v42, %v4128_v46  ;;  %v4161_v63 = vld [vmem:[#allocation2 + $0x70] sm:$0xff]  ;;  %v2550_v9 = vadd.f32 %v2549_v0, %v4167_v5  ;;  %v2569_v48 = vmul.f32 %v4167_v5, %v4167_v5 }
 0x218   : > { %v4130_v47 = vld [vmem:[#allocation2 + $0x68] sm:$0xff]  ;;  %v2570_v44 = vmul.f32 %v4114_v37, %v4114_v37  ;;  %v2524_v61 = vadd.f32 %v2523_v49, %v4114_v37  ;;  %v2575_v1 = vadd.f32 %v2574_v54, %v2566_v45  ;;  %v2542_v13 = vadd.f32 %v2541_v4, %v4161_v63  ;;  %v4176_v14 = vld [vmem:[#allocation2 + $0x78] sm:$0xff] }
 0x219   : > { %v2571_v60 = vmul.f32 %v4130_v47, %v4130_v47  ;;  %v2533_v3 = vadd.f32 %v2532_v58, %v4130_v47  ;;  %v2584_v11 = vadd.f32 %v2583_v2, %v2567_v56  ;;  %v2572_v16 = vmul.f32 %v4161_v63, %v4161_v63 }
 0x21a   : > { %v2525_v8 = vrot.slane %v2524_v61, 4  ;;  %v2576_v10 = vadd.f32 %v2575_v1, %v2570_v44  ;;  %v2551_v18 = vadd.f32 %v2550_v9, %v4176_v14  ;;  %v2543_v22 = vrot.slane %v2542_v13, 4 }
 0x21b   : > { %v2534_v12 = vrot.slane %v2533_v3, 4  ;;  %v2585_v20 = vadd.f32 %v2584_v11, %v2571_v60  ;;  %v2593_v31 = vadd.f32 %v2592_v23, %v2568_v15 }
 0x21c   : > { %v2526_v17 = vadd.f32 %v2525_v8, %v2524_v61  ;;  %v2577_v19 = vrot.slane %v2576_v10, 4  ;;  %v2552_v26 = vrot.slane %v2551_v18, 4  ;;  %v2544_v30 = vadd.f32 %v2543_v22, %v2542_v13 }
 0x21d   : > { %v2535_v21 = vadd.f32 %v2534_v12, %v2533_v3  ;;  %v2586_v28 = vrot.slane %v2585_v20, 4  ;;  %v2594_v44 = vadd.f32 %v2593_v31, %v2572_v16  ;;  %v2573_v61 = vmul.f32 %v4176_v14, %v4176_v14 }
 0x21e   : > { %v2527_v25 = vrot.slane %v2526_v17, 2  ;;  %v2578_v27 = vadd.f32 %v2577_v19, %v2576_v10  ;;  %v2553_v38 = vadd.f32 %v2552_v26, %v2551_v18  ;;  %v2545_v42 = vrot.slane %v2544_v30, 2 }
 0x21f   : > { %v2536_v29 = vrot.slane %v2535_v21, 2  ;;  %v2587_v43 = vadd.f32 %v2586_v28, %v2585_v20  ;;  %v2595_v60 = vrot.slane %v2594_v44, 4  ;;  %v2601_v8 = vadd.f32 %v2565_v32, %v2561_v24 }
 0x220   : > { %v2528_v36 = vadd.f32 %v2527_v25, %v2526_v17  ;;  %v2579_v41 = vrot.slane %v2578_v27, 2  ;;  %v2554_v54 = vrot.slane %v2553_v38, 2  ;;  %v2546_v59 = vadd.f32 %v2545_v42, %v2544_v30 }
 0x221   : > { %v2537_v45 = vadd.f32 %v2536_v29, %v2535_v21  ;;  %v2588_v56 = vrot.slane %v2587_v43, 2  ;;  %v2596_v7 = vadd.f32 %v2595_v60, %v2594_v44  ;;  %v2602_v17 = vadd.f32 %v2601_v8, %v2569_v48 }
 0x222   : > { %v2529_v49 = vrot.slane %v2528_v36, 1  ;;  %v2580_v55 = vadd.f32 %v2579_v41, %v2578_v27  ;;  %v2555_v1 = vadd.f32 %v2554_v54, %v2553_v38  ;;  %v2547_v6 = vrot.slane %v2546_v59, 1 }
 0x223   : > { %v2538_v58 = vrot.slane %v2537_v45, 1  ;;  %v2589_v3 = vadd.f32 %v2588_v56, %v2587_v43  ;;  %v2597_v16 = vrot.slane %v2596_v7, 2  ;;  %v3191_v21 = vpack.c.bf16 %v4118_v39, %v4108_v33 }
 0x224   : > { %v2530_v0 = vadd.f32 %v2529_v49, %v2528_v36  ;;  %v2581_v2 = vrot.slane %v2580_v55, 1  ;;  %v2556_v10 = vrot.slane %v2555_v1, 1  ;;  %v2548_v15 = vadd.f32 %v2547_v6, %v2546_v59 }
 0x225   : > { %v2539_v4 = vadd.f32 %v2538_v58, %v2537_v45  ;;  %v2590_v12 = vrot.slane %v2589_v3, 1  ;;  %v2598_v23 = vadd.f32 %v2597_v16, %v2596_v7  ;;  %v2603_v24 = vadd.f32 %v2602_v17, %v2573_v61  ;;  %2675 = vst [vmem:[%s4288_s2] sm:$0xff] %v3191_v21 }
 0x226   : > { %v2611_v9 = vsel %vm2610_vm0, %v2530_v0, 0.0  ;;  %v2582_v11 = vadd.f32 %v2581_v2, %v2580_v55  ;;  %v2557_v18 = vadd.f32 %v2556_v10, %v2555_v1  ;;  %v2613_v22 = vsel %vm2610_vm0, %v2548_v15, 0.0 }
 0x227   : > { %2615 = vst [vmem:[%s4289_s3] sm:$0xff] %v2611_v9  ;;  %v2612_v13 = vsel %vm2610_vm0, %v2539_v4, 0.0  ;;  %v2591_v20 = vadd.f32 %v2590_v12, %v2589_v3  ;;  %v3192_v25 = vpack.c.bf16 %v4152_v51, %v4139_v50  ;;  %2617 = vst [vmem:[%s4289_s3 + $0x10] sm:$0xff] %v2613_v22  ;;  %v3193_v39 = vpack.c.bf16 %v4120_v40, %v4110_v34 }
 0x228   : > { %2616 = vst [vmem:[%s4289_s3 + $0x8] sm:$0xff] %v2612_v13  ;;  %v2619_v19 = vsel %vm2610_vm0, %v2582_v11, 0.0  ;;  %v2614_v26 = vsel %vm2610_vm0, %v2557_v18, 0.0  ;;  %v3194_v50 = vpack.c.bf16 %v4154_v52, %v4141_v53  ;;  %v2599_v51 = vrot.slane %v2598_v23, 1 }
 0x229   : > { %2623 = vst [vmem:[%s4290_s4] sm:$0xff] %v2619_v19  ;;  %v2620_v33 = vsel %vm2610_vm0, %v2591_v20, 0.0  ;;  %2618 = vst [vmem:[%s4289_s3 + $0x18] sm:$0xff] %v2614_v26  ;;  %v2604_v27 = vrot.slane %v2603_v24, 4  ;;  %v3195_v34 = vpack.c.bf16 %v4128_v46, %v4112_v35  ;;  %v3196_v40 = vpack.c.bf16 %v4167_v5, %v4159_v62 }
 0x22a   : > { %2624 = vst [vmem:[%s4290_s4 + $0x8] sm:$0xff] %v2620_v33  ;;  %2676 = vst [vmem:[%s4288_s2 + $0x8] sm:$0xff] %v3192_v25  ;;  %v3197_v53 = vpack.c.bf16 %v4130_v47, %v4114_v37  ;;  %v3198_v52 = vpack.c.bf16 %v4176_v14, %v4161_v63  ;;  %v2600_v28 = vadd.f32 %v2599_v51, %v2598_v23 }
 0x22b   : > { %2677 = vst [vmem:[%s4288_s2 + $0x10] sm:$0xff] %v3193_v39  ;;  %2678 = vst [vmem:[%s4288_s2 + $0x18] sm:$0xff] %v3194_v50  ;;  %v2605_v29 = vadd.f32 %v2604_v27, %v2603_v24 }
 0x22c   : > { %2679 = vst [vmem:[%s4288_s2 + $0x20] sm:$0xff] %v3195_v34  ;;  %2680 = vst [vmem:[%s4288_s2 + $0x28] sm:$0xff] %v3196_v40  ;;  %v2621_v35 = vsel %vm2610_vm0, %v2600_v28, 0.0 }
 0x22d   : > { %2681 = vst [vmem:[%s4288_s2 + $0x30] sm:$0xff] %v3197_v53  ;;  %2682 = vst [vmem:[%s4288_s2 + $0x38] sm:$0xff] %v3198_v52  ;;  %v2606_v37 = vrot.slane %v2605_v29, 2 }
 0x22e   : > { %2625 = vst [vmem:[%s4290_s4 + $0x10] sm:$0xff] %v2621_v35 }
 0x22f   : > { %v2607_v46 = vadd.f32 %v2606_v37, %v2605_v29 }
 0x231   : > { %v2608_v47 = vrot.slane %v2607_v46, 1 }
 0x233   : > { %v2609_v62 = vadd.f32 %v2608_v47, %v2607_v46 }
 0x235   : > { %v2622_v63 = vsel %vm2610_vm0, %v2609_v62, 0.0 }
 0x236   : > { %2626 = vst [vmem:[%s4290_s4 + $0x18] sm:$0xff] %v2622_v63 }
 0x237 PF: > { %s15_s19 = sadd.s32 1, %s3710_s19   ;;  %s4291_s15 = smov %s3698_s16 }
 0x238   : > { %p12_p12 = scmp.ge.s32.totalorder %s15_s19, 6   ;;  %s4292_s16 = smov %s3773_s23 }
 0x239   : > { %s4293_s17 = smov %s3706_s18  ;;  %s4294_s18 = smov %s4296_s20 }
 0x23a   :  { %14 = sbr.rel (!%p12_p12) target bundleno = 3 (0x3), region = 121 }

// kernel: discriminator_forward.14
= control target key start
LH: loop header
LB: loop body
LE: loop exit
PB: predicated region body
PF: predicated region fallthrough
CT: control target
= control target key end

     0   :  { %v40_v0 = vlaneseq  ;;  %s365_s0 = inlined_call_operand.vmem [shape: bf16[32,512], index: 0, kind: input, shape index: {}]   ;;  %s366_s1 = inlined_call_operand.vmem [shape: f32[1,512], index: 1, kind: input, shape index: {}]   ;;  %s367_s2 = inlined_call_operand.vmem [shape: f32[1,512], index: 2, kind: input, shape index: {}]   ;;  %s368_s3 = inlined_call_operand.vmem [shape: bf16[32,512], index: 3, kind: output, shape index: {}]  }
   0x1   :  { %v14_v1 = vld [vmem:[%s365_s0] sm:$0xff]  ;;  %v15_v5 = vld [vmem:[%s365_s0 + $0x8] sm:$0xff]  ;;  %v16_v6 = vld [vmem:[%s365_s0 + $0x10] sm:$0xff] }
   0x2   :  { %v22_v2 = vunpack.c.l.bf16 %v14_v1  ;;  %v23_v3 = vunpack.c.h.bf16 %v14_v1  ;;  %v41_v4 = vshrl.u32 %v40_v0, 7  ;;  %v17_v7 = vld [vmem:[%s365_s0 + $0x18] sm:$0xff]  ;;  %v38_v8 = vld [vmem:[%s366_s1] sm:$0xf]  ;;  %v24_v10 = vunpack.c.l.bf16 %v15_v5  ;;  %v19_v57 = vld [vmem:[%s365_s0 + $0x28] sm:$0xff] }
   0x3   :  { %v76_v9 = vld [vmem:[%s367_s2] sm:$0xf]  ;;  %v25_v11 = vunpack.c.h.bf16 %v15_v5  ;;  %v26_v12 = vunpack.c.l.bf16 %v16_v6  ;;  %v27_v13 = vunpack.c.h.bf16 %v16_v6  ;;  %v28_v19 = vunpack.c.l.bf16 %v17_v7 }
   0x4   :  { %v279_v14 = vld [vmem:[%s365_s0 + $0x20] sm:$0xff]  ;;  %v42_v15 = vsub.s32 0, %v41_v4  ;;  %v46_v16 = vsub.s32 1, %v41_v4  ;;  %v50_v17 = vsub.s32 2, %v41_v4  ;;  %v54_v18 = vsub.s32 3, %v41_v4  ;;  %v20_v4 = vld [vmem:[%s365_s0 + $0x30] sm:$0xff] }
   0x5   :  { %v29_v20 = vunpack.c.h.bf16 %v17_v7  ;;  %v30_v21 = vunpack.c.l.bf16 %v279_v14  ;;  %v31_v22 = vunpack.c.h.bf16 %v279_v14 }
   0x6   :  { %v283_v23 = vrot.slane %v38_v8, %v42_v15  ;;  %v285_v24 = vrot.slane %v38_v8, %v46_v16  ;;  %v287_v25 = vrot.slane %v76_v9, %v42_v15  ;;  %v289_v26 = vrot.slane %v76_v9, %v46_v16 }
   0x7   :  { %v291_v27 = vrot.slane %v38_v8, %v50_v17  ;;  %v293_v28 = vrot.slane %v38_v8, %v54_v18  ;;  %v295_v29 = vrot.slane %v76_v9, %v50_v17  ;;  %v297_v30 = vrot.slane %v76_v9, %v54_v18 }
   0x8   :  { %v60_v31 = vmul.f32 %v283_v23, %v22_v2  ;;  %v61_v32 = vmul.f32 %v285_v24, %v23_v3  ;;  %v64_v33 = vmul.f32 %v283_v23, %v26_v12  ;;  %v65_v34 = vmul.f32 %v285_v24, %v27_v13  ;;  %v21_v13 = vld [vmem:[%s365_s0 + $0x38] sm:$0xff] }
   0x9   :  { %v62_v35 = vmul.f32 %v291_v27, %v24_v10  ;;  %v63_v36 = vmul.f32 %v293_v28, %v25_v11  ;;  %v66_v37 = vmul.f32 %v291_v27, %v28_v19  ;;  %v67_v38 = vmul.f32 %v293_v28, %v29_v20 }
   0xa   :  { %v98_v39 = vadd.f32 %v287_v25, %v60_v31  ;;  %v99_v40 = vadd.f32 %v289_v26, %v61_v32  ;;  %v102_v41 = vadd.f32 %v287_v25, %v64_v33  ;;  %v103_v42 = vadd.f32 %v289_v26, %v65_v34 }
   0xb   :  { %v100_v43 = vadd.f32 %v295_v29, %v62_v35  ;;  %v101_v44 = vadd.f32 %v297_v30, %v63_v36  ;;  %v104_v45 = vadd.f32 %v295_v29, %v66_v37  ;;  %v105_v46 = vadd.f32 %v297_v30, %v67_v38 }
   0xc   :  { %vm114_vm0 = vcmp.ge.f32.partialorder %v98_v39, 0.0  ;;  %vm115_vm1 = vcmp.ge.f32.partialorder %v99_v40, 0.0  ;;  %v130_v47 = vmul.f32 0.2, %v98_v39  ;;  %v131_v48 = vmul.f32 0.2, %v99_v40 }
   0xd   :  { %vm116_vm2 = vcmp.ge.f32.partialorder %v100_v43, 0.0  ;;  %vm117_vm3 = vcmp.ge.f32.partialorder %v101_v44, 0.0  ;;  %v132_v49 = vmul.f32 0.2, %v100_v43  ;;  %v133_v50 = vmul.f32 0.2, %v101_v44 }
   0xe   :  { %v146_v51 = vsel %vm114_vm0, %v98_v39, %v130_v47  ;;  %v147_v52 = vsel %vm115_vm1, %v99_v40, %v131_v48  ;;  %vm118_vm4 = vcmp.ge.f32.partialorder %v102_v41, 0.0  ;;  %vm119_vm5 = vcmp.ge.f32.partialorder %v103_v42, 0.0 }
   0xf   :  { %v230_v53 = vpack.c.bf16 %v147_v52, %v146_v51  ;;  %v148_v54 = vsel %vm116_vm2, %v100_v43, %v132_v49  ;;  %v149_v55 = vsel %vm117_vm3, %v101_v44, %v133_v50  ;;  %v134_v56 = vmul.f32 0.2, %v102_v41 }
  0x10   :  { %v231_v58 = vpack.c.bf16 %v149_v55, %v148_v54  ;;  %v135_v59 = vmul.f32 0.2, %v103_v42  ;;  %vm120_vm6 = vcmp.ge.f32.partialorder %v104_v45, 0.0  ;;  %vm121_vm7 = vcmp.ge.f32.partialorder %v105_v46, 0.0 }
  0x11   :  { %210 = vst [vmem:[%s368_s3] sm:$0xff] %v230_v53  ;;  %v150_v60 = vsel %vm118_vm4, %v102_v41, %v134_v56  ;;  %v136_v61 = vmul.f32 0.2, %v104_v45  ;;  %v137_v62 = vmul.f32 0.2, %v105_v46  ;;  %v68_v63 = vmul.f32 %v283_v23, %v30_v21 }
  0x12   :  { %211 = vst [vmem:[%s368_s3 + $0x8] sm:$0xff] %v231_v58  ;;  %v151_v0 = vsel %vm119_vm5, %v103_v42, %v135_v59  ;;  %v69_v1 = vmul.f32 %v285_v24, %v31_v22  ;;  %v32_v2 = vunpack.c.l.bf16 %v19_v57  ;;  %v33_v3 = vunpack.c.h.bf16 %v19_v57 }
  0x13   :  { %v232_v5 = vpack.c.bf16 %v151_v0, %v150_v60  ;;  %v152_v6 = vsel %vm120_vm6, %v104_v45, %v136_v61  ;;  %v153_v7 = vsel %vm121_vm7, %v105_v46, %v137_v62  ;;  %v106_v8 = vadd.f32 %v287_v25, %v68_v63 }
  0x14   :  { %v233_v9 = vpack.c.bf16 %v153_v7, %v152_v6  ;;  %v107_v10 = vadd.f32 %v289_v26, %v69_v1  ;;  %v70_v11 = vmul.f32 %v291_v27, %v32_v2  ;;  %v71_v12 = vmul.f32 %v293_v28, %v33_v3 }
  0x15   :  { %212 = vst [vmem:[%s368_s3 + $0x10] sm:$0xff] %v232_v5  ;;  %vm122_vm8 = vcmp.ge.f32.partialorder %v106_v8, 0.0  ;;  %v138_v14 = vmul.f32 0.2, %v106_v8  ;;  %v34_v15 = vunpack.c.l.bf16 %v20_v4  ;;  %v35_v16 = vunpack.c.h.bf16 %v20_v4 }
  0x16   :  { %213 = vst [vmem:[%s368_s3 + $0x18] sm:$0xff] %v233_v9  ;;  %vm123_vm9 = vcmp.ge.f32.partialorder %v107_v10, 0.0  ;;  %v139_v17 = vmul.f32 0.2, %v107_v10  ;;  %v108_v18 = vadd.f32 %v295_v29, %v70_v11  ;;  %v109_v19 = vadd.f32 %v297_v30, %v71_v12 }
  0x17   :  { %v154_v20 = vsel %vm122_vm8, %v106_v8, %v138_v14  ;;  %v72_v21 = vmul.f32 %v283_v23, %v34_v15  ;;  %v73_v22 = vmul.f32 %v285_v24, %v35_v16  ;;  %v36_v31 = vunpack.c.l.bf16 %v21_v13 }
  0x18   :  { %v155_v32 = vsel %vm123_vm9, %v107_v10, %v139_v17  ;;  %vm124_vm10 = vcmp.ge.f32.partialorder %v108_v18, 0.0  ;;  %vm125_vm11 = vcmp.ge.f32.partialorder %v109_v19, 0.0  ;;  %v140_v33 = vmul.f32 0.2, %v108_v18 }
  0x19   :  { %v234_v34 = vpack.c.bf16 %v155_v32, %v154_v20  ;;  %v141_v35 = vmul.f32 0.2, %v109_v19  ;;  %v110_v36 = vadd.f32 %v287_v25, %v72_v21  ;;  %v111_v37 = vadd.f32 %v289_v26, %v73_v22 }
  0x1a   :  { %v156_v38 = vsel %vm124_vm10, %v108_v18, %v140_v33  ;;  %v37_v39 = vunpack.c.h.bf16 %v21_v13  ;;  %v74_v40 = vmul.f32 %v291_v27, %v36_v31 }
  0x1b   :  { %214 = vst [vmem:[%s368_s3 + $0x20] sm:$0xff] %v234_v34  ;;  %v157_v23 = vsel %vm125_vm11, %v109_v19, %v141_v35  ;;  %vm126_vm12 = vcmp.ge.f32.partialorder %v110_v36, 0.0  ;;  %vm127_vm13 = vcmp.ge.f32.partialorder %v111_v37, 0.0  ;;  %v142_v24 = vmul.f32 0.2, %v110_v36 }
  0x1c   :  { %v235_v41 = vpack.c.bf16 %v157_v23, %v156_v38  ;;  %v143_v42 = vmul.f32 0.2, %v111_v37  ;;  %v75_v43 = vmul.f32 %v293_v28, %v37_v39  ;;  %v112_v25 = vadd.f32 %v295_v29, %v74_v40 }
  0x1d   :  { %v158_v44 = vsel %vm126_vm12, %v110_v36, %v142_v24 }
  0x1e   :  { %215 = vst [vmem:[%s368_s3 + $0x28] sm:$0xff] %v235_v41  ;;  %v159_v26 = vsel %vm127_vm13, %v111_v37, %v143_v42  ;;  %v113_v27 = vadd.f32 %v297_v30, %v75_v43  ;;  %vm128_vm14 = vcmp.ge.f32.partialorder %v112_v25, 0.0  ;;  %v144_v45 = vmul.f32 0.2, %v112_v25 }
  0x1f   :  { %v236_v46 = vpack.c.bf16 %v159_v26, %v158_v44 }
  0x20   :  { %vm129_vm15 = vcmp.ge.f32.partialorder %v113_v27, 0.0  ;;  %v145_v47 = vmul.f32 0.2, %v113_v27  ;;  %v160_v48 = vsel %vm128_vm14, %v112_v25, %v144_v45 }
  0x21   :  { %216 = vst [vmem:[%s368_s3 + $0x30] sm:$0xff] %v236_v46 }
  0x22   :  { %v161_v28 = vsel %vm129_vm15, %v113_v27, %v145_v47 }
  0x23   :  { %v237_v29 = vpack.c.bf16 %v161_v28, %v160_v48 }
  0x25   :  { %217 = vst [vmem:[%s368_s3 + $0x38] sm:$0xff] %v237_v29 }

// kernel: discriminator_forward.15
= control target key start
LH: loop header
LB: loop body
LE: loop exit
PB: predicated region body
PF: predicated region fallthrough
CT: control target
= control target key end

     0   :  { %s1497_s12 = smov 0   ;;  %s1499_s13 = smov 0   ;;  %s1649_s0 = inlined_call_operand.vmem [shape: bf16[16,8192], index: 0, kind: input, shape index: {}]   ;;  %s1650_s1 = inlined_call_operand.vmem [shape: bf16[8192,128], index: 1, kind: input, shape index: {}]   ;;  %s1651_s2 = inlined_call_operand.vmem [shape: f32[1,128], index: 2, kind: input, shape index: {}]   ;;  %s1652_s3 = inlined_call_operand.vmem [shape: f32[16,128], index: 3, kind: output, shape index: {}]  }
   0x1   :  { %s1501_s14 = smov 0   ;;  %s1503_s15 = smov 0  }
   0x2   :  { %s1505_s16 = smov 0  }
   0x3 LB: > { %s25_s17 = sadd.s32 1, %s1470_s15  ;;  %p48_p1 = scmp.ne.s32.totalorder %s1462_s13, %s1458_s12  ;;  %s1474_s16 = sphi %s1505_s16, %s13_s16   ;;  %s1470_s15 = sphi %s1503_s15, %s1656_s15   ;;  %s1466_s14 = sphi %s1501_s14, %s1655_s14   ;;  %s1462_s13 = sphi %s1499_s13, %s1654_s13   ;;  %s1458_s12 = sphi %s1497_s12, %s1653_s12  }
   0x4   : > { %p26_p0 = scmp.ge.s32.totalorder %s25_s17, 8  ;;  %p49_p2 = scmp.eq.s32.totalorder %s1474_s16, 0 }
   0x5   : > { %s41_s19 = sadd.s32 1, %s1462_s13  ;;  %p1155_p5 = scmp.ge.s32.totalorder %s1474_s16, 8 }
   0x6   : > { %s1658_s17 = smov (%p26_p0, %s25_s17), 0  ;;  %p50_p3 = por %p49_p2, %p48_p1 }
   0x7   : > { %s37_s18 = ssub.s32 %s1470_s15, %s1658_s17  ;;  %162 = sbr.rel (%p1155_p5) target bundleno = 22 (0x16), region = 20 }
   0x8   : > { %p39_p4 = scmp.eq.s32.totalorder %s37_s18, 0 }
   0xa   : > { %s1532_s20 = scalar_select %p39_p4, %s1462_s13, %s41_s19  }
   0xe   : > { %165 = sbr.rel (!%p50_p3) target bundleno = 22 (0x16), region = 24  ;;  %s167_s21 = sand.u32 (%p50_p3), 1, %s1462_s13  }
   0xf   : > { %s1242_s22 = sshll.u32 (%p50_p3), %s1470_s15, 5  ;;  %s1156_s23 = sshll.u32 (%p50_p3), %s167_s21, 6 }
  0x10   : > { %s175_s26 = scalar_lea.vmem (%p50_p3), %s1649_s0, %s1242_s22  ;;  %s169_s27 = scalar_lea.vmem (%p50_p3), [#allocation3], %s1156_s23 }
  0x11   : > { %v188_v0 = vld [vmem:[%s175_s26] sm:$0xff] (%p50_p3)  ;;  %v190_v1 = vld [vmem:[%s175_s26 + $0x8] sm:$0xff] (%p50_p3)  ;;  %v192_v2 = vld [vmem:[%s175_s26 + $0x10] sm:$0xff] (%p50_p3) }
  0x12   : > { %189 = vst [vmem:[%s169_s27] sm:$0xff] (%p50_p3), %v188_v0  ;;  %191 = vst [vmem:[%s169_s27 + $0x8] sm:$0xff] (%p50_p3), %v190_v1  ;;  %v194_v3 = vld [vmem:[%s175_s26 + $0x18] sm:$0xff] (%p50_p3)  ;;  %v196_v4 = vld [vmem:[%s175_s26 + $0x100] sm:$0xff] (%p50_p3) }
  0x13   : > { %193 = vst [vmem:[%s169_s27 + $0x10] sm:$0xff] (%p50_p3), %v192_v2  ;;  %v198_v5 = vld [vmem:[%s175_s26 + $0x108] sm:$0xff] (%p50_p3)  ;;  %195 = vst [vmem:[%s169_s27 + $0x18] sm:$0xff] (%p50_p3), %v194_v3  ;;  %v200_v6 = vld [vmem:[%s175_s26 + $0x110] sm:$0xff] (%p50_p3) }
  0x14   : > { %197 = vst [vmem:[%s169_s27 + $0x20] sm:$0xff] (%p50_p3), %v196_v4  ;;  %199 = vst [vmem:[%s169_s27 + $0x28] sm:$0xff] (%p50_p3), %v198_v5  ;;  %v202_v7 = vld [vmem:[%s175_s26 + $0x118] sm:$0xff] (%p50_p3) }
  0x15   : > { %201 = vst [vmem:[%s169_s27 + $0x30] sm:$0xff] %v200_v6  ;;  %203 = vst [vmem:[%s169_s27 + $0x38] sm:$0xff] %v202_v7 }
  0x16 PF: > { %p1159_p6 = scmp.ge.s32.totalorder %s1474_s16, 1  ;;  %p220_p7 = scmp.lt.s32.totalorder %s1474_s16, 9 }
  0x18   : > { %p221_p8 = pnand %p1159_p6, %p220_p7 }
  0x19   : > { %s227_s28 = sand.u32 (!%p221_p8), 1, %s1458_s12   ;;  %s1161_s29 = sshll.u32 (!%p221_p8), %s1466_s14, 7 }
  0x1a   : > { %224 = sbr.rel (%p221_p8) target bundleno = 340 (0x154), region = 51  ;;  %s1160_s30 = sshll.u32 (!%p221_p8), %s227_s28, 6 }
  0x1b   : > { %p267_p9 = scmp.lt.s32.totalorder (!%p221_p8), %s1161_s29, 1023  ;;  %s1549_s8 = scalar_lea.vmem (!%p221_p8), [#allocation3], %s1160_s30 }
  0x1c   : > { %p1163_p10 = scmp.ne.s32.totalorder (!%p221_p8), %s1466_s14, 0 }
  0x21   : > { %s1660_s29 = smov (!%p267_p9, %s1161_s29), 1023  ;;  %291 = sbr.rel (%p1163_p10) target bundleno = 40 (0x28), region = 59 }
  0x22   : > { %s1162_s4 = sshll.u32 %s1660_s29, 2  ;;  %v1476_v8 = vmov (!%p1163_p10), 0.0  }
  0x23   : > { %s1547_s7 = scalar_lea.vmem %s1650_s1, %s1162_s4  ;;  %292 = vst [vmem:[#allocation2] sm:$0xff] (!%p1163_p10), %v1476_v8  ;;  %293 = vst [vmem:[#allocation2 + $0x8] sm:$0xff] (!%p1163_p10), %v1476_v8 }
  0x28 PF: > { %v1372_v9 = vld [vmem:[%s1547_s7 + $0x40] sm:$0xff]   ;;  %v1376_v13 = vld [vmem:[%s1547_s7 + $0x48] sm:$0xff]   ;;  %v1380_v17 = vld [vmem:[%s1547_s7 + $0x50] sm:$0xff]   ;;  %p1236_p11 = scmp.ne.s32.totalorder %s1466_s14, 7 }
  0x29   : > { %v1373_v10 = vld [vmem:[%s1547_s7 + $0xc0] sm:$0xff]   ;;  %1243 = vmatprep.subr.bf16.mxu0 %v1372_v9  ;;  %v1377_v14 = vld [vmem:[%s1547_s7 + $0xc8] sm:$0xff]   ;;  %v1381_v18 = vld [vmem:[%s1547_s7 + $0xd0] sm:$0xff]  }
  0x2a   : > { %v1374_v11 = vld [vmem:[%s1547_s7] sm:$0xff]   ;;  %1265 = vmatprep.subr.bf16.mxu1 %v1373_v10  ;;  %v1378_v15 = vld [vmem:[%s1547_s7 + $0x8] sm:$0xff]   ;;  %v1382_v19 = vld [vmem:[%s1547_s7 + $0x10] sm:$0xff]  }
  0x2b   : > { %v1375_v12 = vld [vmem:[%s1547_s7 + $0x80] sm:$0xff]   ;;  %1244 = vmatpush3.bf16.msra.mxu0 %v1374_v11  ;;  %v1379_v16 = vld [vmem:[%s1547_s7 + $0x88] sm:$0xff]   ;;  %v1383_v20 = vld [vmem:[%s1547_s7 + $0x90] sm:$0xff]  }
  0x2c   : > { %1266 = vmatpush3.bf16.msra.mxu1 %v1375_v12  ;;  %1245 = vmatprep.subr.bf16.mxu0 %v1376_v13  ;;  %v1384_v21 = vld [vmem:[%s1547_s7 + $0x58] sm:$0xff]   ;;  %v1388_v25 = vld [vmem:[%s1547_s7 + $0x60] sm:$0xff]   ;;  %v1392_v29 = vld [vmem:[%s1547_s7 + $0x68] sm:$0xff]  }
  0x2d   : > { %1267 = vmatprep.subr.bf16.mxu1 %v1377_v14  ;;  %v1385_v22 = vld [vmem:[%s1547_s7 + $0xd8] sm:$0xff]   ;;  %v1389_v26 = vld [vmem:[%s1547_s7 + $0xe0] sm:$0xff]   ;;  %v1393_v30 = vld [vmem:[%s1547_s7 + $0xe8] sm:$0xff]  }
  0x2e   : > { %v1386_v23 = vld [vmem:[%s1547_s7 + $0x18] sm:$0xff]   ;;  %v1390_v27 = vld [vmem:[%s1547_s7 + $0x20] sm:$0xff]   ;;  %v1394_v31 = vld [vmem:[%s1547_s7 + $0x28] sm:$0xff]  }
  0x2f   : > { %1246 = vmatpush3.bf16.msra.mxu0 %v1378_v15  ;;  %v1387_v24 = vld [vmem:[%s1547_s7 + $0x98] sm:$0xff]   ;;  %v1391_v28 = vld [vmem:[%s1547_s7 + $0xa0] sm:$0xff]   ;;  %v1395_v32 = vld [vmem:[%s1547_s7 + $0xa8] sm:$0xff]  }
  0x30   : > { %1268 = vmatpush3.bf16.msra.mxu1 %v1379_v16  ;;  %1247 = vmatprep.subr.bf16.mxu0 %v1380_v17  ;;  %v1396_v33 = vld [vmem:[%s1547_s7 + $0x70] sm:$0xff]   ;;  %v1400_v37 = vld [vmem:[%s1547_s7 + $0x78] sm:$0xff]   ;;  %v1404_v49 = vld [vmem:[%s1547_s7 + $0x140] sm:$0xff]  }
  0x31   : > { %1269 = vmatprep.subr.bf16.mxu1 %v1381_v18  ;;  %v1397_v34 = vld [vmem:[%s1547_s7 + $0xf0] sm:$0xff]   ;;  %v1401_v38 = vld [vmem:[%s1547_s7 + $0xf8] sm:$0xff]   ;;  %v1405_v50 = vld [vmem:[%s1547_s7 + $0x1c0] sm:$0xff]  }
  0x32   : > { %v1398_v35 = vld [vmem:[%s1547_s7 + $0x30] sm:$0xff]   ;;  %v1402_v39 = vld [vmem:[%s1547_s7 + $0x38] sm:$0xff]   ;;  %v1406_v51 = vld [vmem:[%s1547_s7 + $0x100] sm:$0xff]  }
  0x33   : > { %1248 = vmatpush3.bf16.msra.mxu0 %v1382_v19  ;;  %v1399_v36 = vld [vmem:[%s1547_s7 + $0xb0] sm:$0xff]   ;;  %v1403_v40 = vld [vmem:[%s1547_s7 + $0xb8] sm:$0xff]   ;;  %v1407_v52 = vld [vmem:[%s1547_s7 + $0x180] sm:$0xff]  }
  0x34   : > { %1270 = vmatpush3.bf16.msra.mxu1 %v1383_v20  ;;  %1249 = vmatprep.subr.bf16.mxu0 %v1384_v21  ;;  %v296_v41 = vld [vmem:[%s1549_s8] sm:$0xff]  ;;  %v297_v43 = vld [vmem:[%s1549_s8 + $0x8] sm:$0xff]  ;;  %v1408_v53 = vld [vmem:[%s1547_s7 + $0x148] sm:$0xff]  }
  0x35   : > { %1271 = vmatprep.subr.bf16.mxu1 %v1385_v22  ;;  %v300_v42 = vld [vmem:[%s1549_s8 + $0x20] sm:$0xff]  ;;  %v301_v46 = vld [vmem:[%s1549_s8 + $0x28] sm:$0xff]  ;;  %v1409_v54 = vld [vmem:[%s1547_s7 + $0x1c8] sm:$0xff]  }
  0x36   : > { %v1164_v44 = vcombine.low %v296_v41, %v300_v42  ;;  %v1165_v45 = vcombine.high %v296_v41, %v300_v42  ;;  %v1166_v47 = vcombine.low %v297_v43, %v301_v46  ;;  %v1167_v48 = vcombine.high %v297_v43, %v301_v46  ;;  %v1410_v55 = vld [vmem:[%s1547_s7 + $0x108] sm:$0xff]   ;;  %v1412_v57 = vld [vmem:[%s1547_s7 + $0x150] sm:$0xff]   ;;  %v1416_v61 = vld [vmem:[%s1547_s7 + $0x158] sm:$0xff]  }
  0x37   : > { %1250 = vmatpush3.bf16.msra.mxu0 %v1386_v23  ;;  %v1411_v56 = vld [vmem:[%s1547_s7 + $0x188] sm:$0xff]   ;;  %v1413_v58 = vld [vmem:[%s1547_s7 + $0x1d0] sm:$0xff]   ;;  %v1417_v62 = vld [vmem:[%s1547_s7 + $0x1d8] sm:$0xff]  }
  0x38   : > { %1272 = vmatpush3.bf16.msra.mxu1 %v1387_v24  ;;  %1251 = vmatprep.subr.bf16.mxu0 %v1388_v25  ;;  %v1414_v59 = vld [vmem:[%s1547_s7 + $0x110] sm:$0xff]   ;;  %v1418_v63 = vld [vmem:[%s1547_s7 + $0x118] sm:$0xff]   ;;  %v1420_v1 = vld [vmem:[%s1547_s7 + $0x160] sm:$0xff]  }
  0x39   : > { %1273 = vmatprep.subr.bf16.mxu1 %v1389_v26  ;;  %888 = vmatprep.mubr.bf16.mxu0 %v1165_v45  ;;  %v1415_v60 = vld [vmem:[%s1547_s7 + $0x190] sm:$0xff]   ;;  %v1419_v0 = vld [vmem:[%s1547_s7 + $0x198] sm:$0xff]   ;;  %v1421_v2 = vld [vmem:[%s1547_s7 + $0x1e0] sm:$0xff]  }
  0x3a   : > { %929 = vmatprep.mubr.bf16.mxu1 %v1167_v48  ;;  %v1422_v3 = vld [vmem:[%s1547_s7 + $0x120] sm:$0xff]   ;;  %v1424_v5 = vld [vmem:[%s1547_s7 + $0x168] sm:$0xff]   ;;  %v1428_v9 = vld [vmem:[%s1547_s7 + $0x170] sm:$0xff]  }
  0x3b   : > { %1252 = vmatpush3.bf16.msra.mxu0 %v1390_v27  ;;  %v1423_v4 = vld [vmem:[%s1547_s7 + $0x1a0] sm:$0xff]   ;;  %v1425_v6 = vld [vmem:[%s1547_s7 + $0x1e8] sm:$0xff]   ;;  %v1429_v10 = vld [vmem:[%s1547_s7 + $0x1f0] sm:$0xff]  }
  0x3c   : > { %1274 = vmatpush3.bf16.msra.mxu1 %v1391_v28  ;;  %1253 = vmatprep.subr.bf16.mxu0 %v1392_v29  ;;  %v1426_v7 = vld [vmem:[%s1547_s7 + $0x128] sm:$0xff]   ;;  %v1430_v11 = vld [vmem:[%s1547_s7 + $0x130] sm:$0xff]   ;;  %v1432_v13 = vld [vmem:[%s1547_s7 + $0x178] sm:$0xff]  }
  0x3d   : > { %1275 = vmatprep.subr.bf16.mxu1 %v1393_v30  ;;  %v1427_v8 = vld [vmem:[%s1547_s7 + $0x1a8] sm:$0xff]   ;;  %v1431_v12 = vld [vmem:[%s1547_s7 + $0x1b0] sm:$0xff]   ;;  %v1433_v14 = vld [vmem:[%s1547_s7 + $0x1f8] sm:$0xff]  }
  0x3e   : > { %v1434_v15 = vld [vmem:[%s1547_s7 + $0x138] sm:$0xff]   ;;  %v298_v17 = vld [vmem:[%s1549_s8 + $0x10] sm:$0xff]  ;;  %v299_v21 = vld [vmem:[%s1549_s8 + $0x18] sm:$0xff] }
  0x3f   : > { %1254 = vmatpush3.bf16.msra.mxu0 %v1394_v31  ;;  %v1435_v16 = vld [vmem:[%s1547_s7 + $0x1b8] sm:$0xff]   ;;  %v302_v18 = vld [vmem:[%s1549_s8 + $0x30] sm:$0xff]  ;;  %v303_v22 = vld [vmem:[%s1549_s8 + $0x38] sm:$0xff] }
  0x40   : > { %1276 = vmatpush3.bf16.msra.mxu1 %v1395_v32  ;;  %1255 = vmatprep.subr.bf16.mxu0 %v1396_v33  ;;  %v1168_v19 = vcombine.low %v298_v17, %v302_v18  ;;  %v1169_v20 = vcombine.high %v298_v17, %v302_v18  ;;  %v1170_v23 = vcombine.low %v299_v21, %v303_v22 }
  0x41   : > { %1277 = vmatprep.subr.bf16.mxu1 %v1397_v34  ;;  %v1171_v24 = vcombine.high %v299_v21, %v303_v22 }
  0x43   : > { %1256 = vmatpush3.bf16.msra.mxu0 %v1398_v35 }
  0x44   : > { %1278 = vmatpush3.bf16.msra.mxu1 %v1399_v36  ;;  %1257 = vmatprep.subr.bf16.mxu0 %v1400_v37 }
  0x45   : > { %1279 = vmatprep.subr.bf16.mxu1 %v1401_v38 }
  0x47   : > { %1258 = vmatpush3.bf16.msra.mxu0 %v1402_v39 }
  0x48   : > { %1280 = vmatpush3.bf16.msra.mxu1 %v1403_v40  ;;  %1287 = vmatprep.subr.bf16.mxu0 %v1404_v49 }
  0x49   : > { %1309 = vmatprep.subr.bf16.mxu1 %v1405_v50 }
  0x4a   : > { %889 = vmatmul.mubr.bf16.vlgmr.msra.gmra.mrb[0].mxu0 %v1164_v44 }
  0x4b   : > { %930 = vmatmul.mubr.bf16.vlgmr.msra.gmra.mrb[0].mxu1 %v1166_v47  ;;  %1288 = vmatpush3.bf16.msra.mxu0 %v1406_v51  ;;  %v294_v51 = vld [vmem:[#allocation2] sm:$0xff] }
  0x4c   : > { %1310 = vmatpush3.bf16.msra.mxu1 %v1407_v52  ;;  %1289 = vmatprep.subr.bf16.mxu0 %v1408_v53 }
  0x4d   : > { %1311 = vmatprep.subr.bf16.mxu1 %v1409_v54  ;;  %970 = vmatprep.mubr.bf16.mxu0 %v1169_v20 }
  0x4e   : > { %1011 = vmatprep.mubr.bf16.mxu1 %v1171_v24 }
  0x4f   : > { %1290 = vmatpush3.bf16.msra.mxu0 %v1410_v55  ;;  %v295_v55 = vld [vmem:[#allocation2 + $0x8] sm:$0xff] }
  0x50   : > { %1312 = vmatpush3.bf16.msra.mxu1 %v1411_v56  ;;  %1291 = vmatprep.subr.bf16.mxu0 %v1412_v57 }
  0x51   : > { %1313 = vmatprep.subr.bf16.mxu1 %v1413_v58 }
  0x53   : > { %1292 = vmatpush3.bf16.msra.mxu0 %v1414_v59 }
  0x54   : > { %1314 = vmatpush3.bf16.msra.mxu1 %v1415_v60  ;;  %1293 = vmatprep.subr.bf16.mxu0 %v1416_v61  ;;  %v1237_v60 = vld [vmem:[%s1651_s2] ss:$0 sm:$0xff] (!%p1236_p11) }
  0x55   : > { %1315 = vmatprep.subr.bf16.mxu1 %v1417_v62 }
  0x57   : > { %1294 = vmatpush3.bf16.msra.mxu0 %v1418_v63 }
  0x58   : > { %1316 = vmatpush3.bf16.msra.mxu1 %v1419_v0  ;;  %1295 = vmatprep.subr.bf16.mxu0 %v1420_v1 }
  0x59   : > { %1317 = vmatprep.subr.bf16.mxu1 %v1421_v2 }
  0x5b   : > { %1296 = vmatpush3.bf16.msra.mxu0 %v1422_v3 }
  0x5c   : > { %1318 = vmatpush3.bf16.msra.mxu1 %v1423_v4  ;;  %1297 = vmatprep.subr.bf16.mxu0 %v1424_v5 }
  0x5d   : > { %1319 = vmatprep.subr.bf16.mxu1 %v1425_v6 }
  0x5f   : > { %1298 = vmatpush3.bf16.msra.mxu0 %v1426_v7 }
  0x60   : > { %1320 = vmatpush3.bf16.msra.mxu1 %v1427_v8  ;;  %1299 = vmatprep.subr.bf16.mxu0 %v1428_v9 }
  0x61   : > { %1321 = vmatprep.subr.bf16.mxu1 %v1429_v10 }
  0x63   : > { %1300 = vmatpush3.bf16.msra.mxu0 %v1430_v11 }
  0x64   : > { %1322 = vmatpush3.bf16.msra.mxu1 %v1431_v12  ;;  %1301 = vmatprep.subr.bf16.mxu0 %v1432_v13 }
  0x65   : > { %1323 = vmatprep.subr.bf16.mxu1 %v1433_v14 }
  0x67   : > { %1302 = vmatpush3.bf16.msra.mxu0 %v1434_v15 }
  0x68   : > { %1324 = vmatpush3.bf16.msra.mxu1 %v1435_v16 }
  0x6a   : > { %971 = vmatmul.mubr.bf16.vlgmr.msra.gmra.mrb[4].mxu0 %v1168_v19 }
  0x6b   : > { %1012 = vmatmul.mubr.bf16.vlgmr.msra.gmra.mrb[4].mxu1 %v1170_v23 }
 0x11d   : > { %v1259_v25 = vpop.f32.mrb[0].mxu0 }
 0x11e   : > { %v1281_v26 = vpop.f32.mrb[0].mxu1  ;;  %v1260_v27 = vpop.f32.mrb[1].mxu0 }
 0x11f   : > { %v1261_v28 = vadd.f32 %v1260_v27, %v1259_v25  ;;  %v1282_v29 = vpop.f32.mrb[1].mxu1  ;;  %v1262_v30 = vpop.f32.mrb[2].mxu0 }
 0x120   : > { %v1283_v31 = vadd.f32 %v1282_v29, %v1281_v26  ;;  %v1284_v32 = vpop.f32.mrb[2].mxu1  ;;  %v1263_v33 = vpop.f32.mrb[3].mxu0 }
 0x121   : > { %v1264_v34 = vadd.f32 %v1263_v33, %v1262_v30  ;;  %v1285_v35 = vpop.f32.mrb[3].mxu1 }
 0x122   : > { %v932_v36 = vadd.f32 %v1283_v31, %v1261_v28  ;;  %v1286_v37 = vadd.f32 %v1285_v35, %v1284_v32 }
 0x124   : > { %v935_v38 = vadd.f32 %v1286_v37, %v1264_v34 }
 0x13d   : > { %v1303_v39 = vpop.f32.mrb[4].mxu0 }
 0x13e   : > { %v1325_v40 = vpop.f32.mrb[4].mxu1  ;;  %v1304_v41 = vpop.f32.mrb[5].mxu0 }
 0x13f   : > { %v1305_v42 = vadd.f32 %v1304_v41, %v1303_v39  ;;  %v1326_v43 = vpop.f32.mrb[5].mxu1  ;;  %v1306_v44 = vpop.f32.mrb[6].mxu0 }
 0x140   : > { %v1327_v45 = vadd.f32 %v1326_v43, %v1325_v40  ;;  %v1328_v46 = vpop.f32.mrb[6].mxu1  ;;  %v1307_v47 = vpop.f32.mrb[7].mxu0 }
 0x141   : > { %v973_v48 = vadd.f32 %v1305_v42, %v932_v36  ;;  %v1308_v49 = vadd.f32 %v1307_v47, %v1306_v44  ;;  %v1329_v50 = vpop.f32.mrb[7].mxu1 }
 0x142   : > { %v1330_v52 = vadd.f32 %v1329_v50, %v1328_v46 }
 0x143   : > { %v1014_v53 = vadd.f32 %v1327_v45, %v973_v48  ;;  %v976_v54 = vadd.f32 %v1308_v49, %v935_v38  ;;  %1027 = sbr.rel (%p1236_p11) target bundleno = 340 (0x154), region = 63 }
 0x145   : > { %v1020_v56 = vadd.f32 %v1014_v53, %v294_v51  ;;  %v1017_v57 = vadd.f32 %v1330_v52, %v976_v54 }
 0x147   : > { %1022 = vst [vmem:[#allocation2] sm:$0xff] %v1020_v56  ;;  %v1021_v58 = vadd.f32 %v1017_v57, %v295_v55 }
 0x149   : > { %1023 = vst [vmem:[#allocation2 + $0x8] sm:$0xff] %v1021_v58 }
 0x14e   : > { %v1028_v59 = vld [vmem:[#allocation2] sm:$0xff] }
 0x14f   : > { %v1037_v62 = vadd.f32 %v1237_v60, %v1028_v59 }
 0x150   : > { %v1029_v61 = vld [vmem:[#allocation2 + $0x8] sm:$0xff] }
 0x151   : > { %v1038_v63 = vadd.f32 %v1237_v60, %v1029_v61  ;;  %1039 = vst [vmem:[%s1652_s3] sm:$0xff] %v1037_v62 }
 0x153   : > { %1040 = vst [vmem:[%s1652_s3 + $0x8] sm:$0xff] %v1038_v63 }
 0x154 PF: > { %s13_s16 = sadd.s32 1, %s1474_s16   ;;  %s1653_s12 = smov %s1462_s13 }
 0x155   : > { %p10_p12 = scmp.ge.s32.totalorder %s13_s16, 10   ;;  %s1654_s13 = smov %s1532_s20 }
 0x156   : > { %s1655_s14 = smov %s1470_s15  ;;  %s1656_s15 = smov %s1658_s17 }
 0x157   :  { %12 = sbr.rel (!%p10_p12) target bundleno = 3 (0x3), region = 104 }

</bundles_post_ra>
